<compile_context>
chip_gen: v6e
topology: v6e:2x2x1
jax: 0.10.0
libtpu: 0.0.40
codegen_flags: <defaults>
</compile_context>

<pallas_src>
import functools

import jax
import jax.numpy as jnp
from jax.experimental import pallas as pl
from jax.experimental.pallas import tpu as pltpu


def _round_up(x, m):
    return (x + m - 1) // m * m


def _pick_block_n(cout):
    # Split wide output-channel dims into >=2 lane-aligned blocks (second
    # "parallel" grid axis -> v7x's two TensorCores both get work); keep
    # narrow dims whole.
    for bn in (512, 384, 256, 128):
        if cout > bn and cout % bn == 0:
            return bn
    return cout


# ----------------------------------------------------------------------------
# Pallas kernel: (bm, K) @ (K, bn) bf16 matmul -> f32 acc, + bias, + activation
# ----------------------------------------------------------------------------
def _mm_bias_act_kernel(a_ref, w_ref, b_ref, o_ref, *, act):
    acc = jnp.dot(a_ref[...], w_ref[...], preferred_element_type=jnp.float32)
    y = acc + b_ref[...]
    if act == "relu":
        y = jnp.maximum(y, 0.0)
    elif act == "sigmoid":
        # f32 epilogue: exp overflow resolves to 0.0, no NaN.
        y = 1.0 / (1.0 + jnp.exp(-y))
    o_ref[...] = y.astype(o_ref.dtype)


def matmul_bias_act(a, w, bias, *, act, out_dtype):
    """a: (M, K) bf16, w: (K, Cout) bf16, bias: (Cout,) f32 -> (M, Cout)."""
    M, K = a.shape
    Cout = w.shape[1]
    bm = _round_up(M, 16) if M <= 256 else 256
    m_pad = _round_up(M, bm)
    if m_pad != M:
        a = jnp.pad(a, ((0, m_pad - M), (0, 0)))
    bn = _pick_block_n(Cout)
    out = pl.pallas_call(
        functools.partial(_mm_bias_act_kernel, act=act),
        out_shape=jax.ShapeDtypeStruct((m_pad, Cout), out_dtype),
        grid=(m_pad // bm, Cout // bn),
        in_specs=[
            pl.BlockSpec((bm, K), lambda i, j: (i, 0)),
            pl.BlockSpec((K, bn), lambda i, j: (0, j)),
            pl.BlockSpec((1, bn), lambda i, j: (0, j)),
        ],
        out_specs=pl.BlockSpec((bm, bn), lambda i, j: (i, j)),
        compiler_params=pltpu.CompilerParams(
            dimension_semantics=("parallel", "parallel")),
    )(a, w, bias.reshape(1, Cout).astype(jnp.float32))
    return out[:M] if m_pad != M else out


# ----------------------------------------------------------------------------
# JAX glue: im2col (bf16) / col2im scatter-add (layout plumbing only)
# ----------------------------------------------------------------------------
def _im2col(xp, kh, kw, stride, dilation):
    N, Hp, Wp, Cin = xp.shape
    Ho = (Hp - dilation * (kh - 1) - 1) // stride + 1
    Wo = (Wp - dilation * (kw - 1) - 1) // stride + 1
    cols = []
    for i in range(kh):
        for j in range(kw):
            r0, c0 = i * dilation, j * dilation
            cols.append(
                xp[:, r0:r0 + (Ho - 1) * stride + 1:stride,
                      c0:c0 + (Wo - 1) * stride + 1:stride, :])
    cols = jnp.stack(cols, axis=3)                      # (N, Ho, Wo, KH*KW, Cin)
    return cols.reshape(N * Ho * Wo, kh * kw * Cin), (N, Ho, Wo)


def conv2d(x, w_mat, bias, *, kh, kw, stride=1, padding=0, dilation=1,
           act="relu", out_dtype=jnp.bfloat16):
    N, H, W, Cin = x.shape
    xp = jnp.pad(x.astype(jnp.bfloat16),
                 ((0, 0), (padding, padding), (padding, padding), (0, 0)))
    patches, (N, Ho, Wo) = _im2col(xp, kh, kw, stride, dilation)
    k_pad = w_mat.shape[0]
    if patches.shape[1] != k_pad:                       # lane-pad K (layer 0: 100 -> 128)
        patches = jnp.pad(patches, ((0, 0), (0, k_pad - patches.shape[1])))
    out = matmul_bias_act(patches, w_mat, bias, act=act, out_dtype=out_dtype)
    return out.reshape(N, Ho, Wo, w_mat.shape[1])


def conv_transpose2d_gemm(x, w_mat, bias, *, k=3, stride=2, output_padding=1):
    """ConvTranspose2d (padding=0) as dense gemm + col2im scatter-add + BN bias + ReLU.

    w_mat: (Cin, k*k*Cout) with BN scale pre-folded, columns ordered (ky, kx, c).
    The gemm runs on the un-dilated input, so no zero-FLOP waste.
    """
    N, H, W, Cin = x.shape
    kkcout = w_mat.shape[1]
    Cout = kkcout // (k * k)
    contrib = matmul_bias_act(
        x.astype(jnp.bfloat16).reshape(N * H * W, Cin), w_mat,
        jnp.zeros((kkcout,), jnp.float32), act="none", out_dtype=jnp.float32)
    contrib = contrib.reshape(N, H, W, k, k, Cout)
    Ho = (H - 1) * stride + k + output_padding
    Wo = (W - 1) * stride + k + output_padding
    out = jnp.zeros((N, Ho, Wo, Cout), jnp.float32)
    for ky in range(k):
        for kx in range(k):
            out = out.at[:, ky:ky + (H - 1) * stride + 1:stride,
                            kx:kx + (W - 1) * stride + 1:stride, :].add(
                                contrib[:, :, :, ky, kx, :])
    # both ConvTranspose2d layers are followed by BatchNorm + ReLU in the spec
    return jnp.maximum(out + bias.reshape(1, 1, 1, Cout), 0.0)


# ----------------------------------------------------------------------------
# Parameter initialization (deterministic, synthetic) + spectral norm + BN fold
# ----------------------------------------------------------------------------
def spectral_normalize(w, dim, iters=10, eps=1e-12):
    perm = (dim,) + tuple(i for i in range(w.ndim) if i != dim)
    mat = jnp.transpose(w, perm).reshape(w.shape[dim], -1)
    u = jnp.ones((mat.shape[0],), jnp.float32)
    u = u / jnp.linalg.norm(u)
    v = None
    for _ in range(iters):
        v = mat.T @ u
        v = v / (jnp.linalg.norm(v) + eps)
        u = mat @ v
        u = u / (jnp.linalg.norm(u) + eps)
    sigma = u @ (mat @ v)
    return w / sigma


def init_generator_params(key, in_channel, out_channel):
    eps = 1e-5
    cfg = [
        # downsampling_block
        dict(kind="conv", cin=in_channel, cout=64, k=5, stride=1, padding=2,
             dilation=1, output_padding=0, bn=False, act="relu"),
        dict(kind="conv", cin=64, cout=128, k=3, stride=2, padding=1,
             dilation=1, output_padding=0, bn=True, act="relu"),
        dict(kind="conv", cin=128, cout=128, k=3, stride=1, padding=1,
             dilation=1, output_padding=0, bn=True, act="relu"),
        dict(kind="conv", cin=128, cout=256, k=3, stride=2, padding=1,
             dilation=1, output_padding=0, bn=True, act="relu"),
        dict(kind="conv", cin=256, cout=256, k=3, stride=1, padding=1,
             dilation=1, output_padding=0, bn=True, act="relu"),
        # dilated_block
        dict(kind="conv", cin=256, cout=256, k=3, stride=1, padding=2,
             dilation=2, output_padding=0, bn=True, act="relu"),
        dict(kind="conv", cin=256, cout=256, k=3, stride=1, padding=4,
             dilation=4, output_padding=0, bn=True, act="relu"),
        dict(kind="conv", cin=256, cout=256, k=3, stride=1, padding=8,
             dilation=8, output_padding=0, bn=True, act="relu"),
        # upsampling_block
        dict(kind="convT", cin=256, cout=128, k=3, stride=2, padding=0,
             dilation=1, output_padding=1, bn=True, act="relu"),
        dict(kind="conv", cin=128, cout=128, k=3, stride=1, padding=0,
             dilation=1, output_padding=0, bn=True, act="relu"),
        dict(kind="convT", cin=128, cout=64, k=3, stride=2, padding=0,
             dilation=1, output_padding=1, bn=True, act="relu"),
        # final conv + nn.Sigmoid() fused as epilogue
        dict(kind="conv", cin=64, cout=out_channel, k=3, stride=1, padding=0,
             dilation=1, output_padding=0, bn=False, act="sigmoid"),
    ]

    n_layers = len(cfg)
    params = []
    for li, layer in enumerate(cfg):
        key, kw_, kb, kg, kbt, km, kv = jax.random.split(key, 7)
        cin, cout, k = layer["cin"], layer["cout"], layer["k"]
        b = 0.01 * jax.random.normal(kb, (cout,), jnp.float32)
        if layer["bn"]:
            gamma = 1.0 + 0.1 * jax.random.normal(kg, (cout,), jnp.float32)
            beta = 0.1 * jax.random.normal(kbt, (cout,), jnp.float32)
            mean = 0.1 * jax.random.normal(km, (cout,), jnp.float32)
            var = 1.0 + 0.1 * jax.random.uniform(kv, (cout,), jnp.float32)
            scale = gamma / jnp.sqrt(var + eps)
            bias = (b - mean) * scale + beta
        else:
            scale = jnp.ones((cout,), jnp.float32)
            bias = b

        if layer["kind"] == "conv":
            w_pt = 0.05 * jax.random.normal(kw_, (cout, cin, k, k), jnp.float32)
            w_pt = spectral_normalize(w_pt, dim=0)
            # HWIO, fold BN scale per output channel, flatten to (K, Cout)
            w_mat = (jnp.transpose(w_pt, (2, 3, 1, 0)) * scale
                     ).reshape(k * k * cin, cout)
            k_real = k * k * cin
            k_pad = _round_up(k_real, 128)            # lane-align K (layer 0: 100->128)
            if k_pad != k_real:
                w_mat = jnp.pad(w_mat, ((0, k_pad - k_real), (0, 0)))
            cout_pad = _round_up(cout, 128) if li == n_layers - 1 else cout
            if cout_pad != cout:                      # lane-dense output (final 4->128)
                w_mat = jnp.pad(w_mat, ((0, 0), (0, cout_pad - cout)))
                bias = jnp.pad(bias, (0, cout_pad - cout))
            params.append(dict(kind="conv", k=k, stride=layer["stride"],
                               padding=layer["padding"],
                               dilation=layer["dilation"], act=layer["act"],
                               cout_real=cout,
                               w=w_mat.astype(jnp.bfloat16), bias=bias))
        else:  # ConvTranspose2d weight: (Cin, Cout, KH, KW), SN over dim=1
            w_pt = 0.05 * jax.random.normal(kw_, (cin, cout, k, k), jnp.float32)
            w_pt = spectral_normalize(w_pt, dim=1)
            # (Cin, ky, kx, Cout) * scale -> (Cin, k*k*Cout) contribution matrix
            w_mat = (jnp.transpose(w_pt, (0, 2, 3, 1)) * scale
                     ).reshape(cin, k * k * cout)
            params.append(dict(kind="convT", k=k, stride=layer["stride"],
                               output_padding=layer["output_padding"],
                               act=layer["act"], cout_real=cout,
                               w=w_mat.astype(jnp.bfloat16), bias=bias))
    return params


def generator_forward(params, x_nchw):
    x = jnp.transpose(x_nchw, (0, 2, 3, 1))           # NCHW -> NHWC (C -> lanes)
    for p in params:
        if p["kind"] == "conv":
            out_dtype = jnp.float32 if p["act"] == "sigmoid" else jnp.bfloat16
            x = conv2d(x, p["w"], p["bias"], kh=p["k"], kw=p["k"],
                       stride=p["stride"], padding=p["padding"],
                       dilation=p["dilation"], act=p["act"],
                       out_dtype=out_dtype)
        else:
            x = conv_transpose2d_gemm(x, p["w"], p["bias"], k=p["k"],
                                      stride=p["stride"],
                                      output_padding=p["output_padding"])
    x = x[..., :params[-1]["cout_real"]]              # drop final-layer lane padding
    return jnp.transpose(x, (0, 3, 1, 2)).astype(jnp.float32)   # NHWC -> NCHW


if __name__ == "__main__":
    key = jax.random.PRNGKey(0)
    kp, kx = jax.random.split(key)
    in_channel, out_channel = 4, 4
    params = init_generator_params(kp, in_channel, out_channel)

    # Generator(cropped_size=16, output_size=24, in_channel=4, out_channel=4)
    x = jax.random.uniform(kx, (2, in_channel, 16, 16), dtype=jnp.float32)

    fwd = jax.jit(functools.partial(generator_forward, params))
    y = jax.block_until_ready(fwd(x))

    assert y.shape == (2, out_channel, 16, 16), y.shape
    assert bool(jnp.all(jnp.isfinite(y)))
    assert bool(jnp.all((y >= 0.0) & (y <= 1.0)))     # sigmoid output range
    print("KERNEL_OK")
</pallas_src>

<mosaic_0001>
module attributes {stable_mosaic.version = 11 : i64} {
  func.func @_mm_bias_act_kernel(%arg0: i32, %arg1: i32, %arg2: memref<256x128xbf16, #tpu.memory_space<vmem>>, %arg3: memref<128x64xbf16, #tpu.memory_space<vmem>>, %arg4: memref<1x64xf32, #tpu.memory_space<vmem>>, %arg5: memref<256x64xbf16, #tpu.memory_space<vmem>>) attributes {dimension_semantics = [#tpu.dimension_semantics<parallel>, #tpu.dimension_semantics<parallel>], iteration_bounds = array<i64: 2, 1>, scalar_prefetch = 0 : i64, scratch_operands = 0 : i64, tpu.core_type = #tpu.core_type<tc>, window_params = [{transform_indices = @transform_0, window_bounds = array<i64: 256, 128>}, {transform_indices = @transform_1, window_bounds = array<i64: 128, 64>}, {transform_indices = @transform_2, window_bounds = array<i64: 1, 64>}, {transform_indices = @transform_3, window_bounds = array<i64: 256, 64>}]} {
    %c0 = arith.constant 0 : index
    %c0_0 = arith.constant 0 : index
    %0 = vector.load %arg2[%c0, %c0_0] : memref<256x128xbf16, #tpu.memory_space<vmem>>, vector<256x128xbf16>
    %c0_1 = arith.constant 0 : index
    %c0_2 = arith.constant 0 : index
    %1 = vector.load %arg3[%c0_1, %c0_2] : memref<128x64xbf16, #tpu.memory_space<vmem>>, vector<128x64xbf16>
    %cst = arith.constant dense<0.000000e+00> : vector<256x64xf32>
    %2 = tpu.matmul %0, %1, %cst {dimension_numbers = #tpu.dot_dimension_numbers<[1], [0], [0], [1], [0, 0, 1, 1], [], []>} : vector<256x128xbf16>, vector<128x64xbf16>, vector<256x64xf32> -> vector<256x64xf32>
    %c0_3 = arith.constant 0 : index
    %c0_4 = arith.constant 0 : index
    %3 = vector.load %arg4[%c0_3, %c0_4] : memref<1x64xf32, #tpu.memory_space<vmem>>, vector<1x64xf32>
    %4 = vector.broadcast %3 : vector<1x64xf32> to vector<256x64xf32>
    %5 = arith.addf %2, %4 : vector<256x64xf32>
    %cst_5 = arith.constant 0.000000e+00 : f32
    %6 = vector.broadcast %cst_5 : f32 to vector<256x64xf32>
    %7 = arith.maximumf %5, %6 : vector<256x64xf32>
    %8 = arith.truncf %7 : vector<256x64xf32> to vector<256x64xbf16>
    %c0_6 = arith.constant 0 : index
    %c0_7 = arith.constant 0 : index
    %9 = vector.load %arg5[%c0_6, %c0_7] : memref<256x64xbf16, #tpu.memory_space<vmem>>, vector<256x64xbf16>
    tpu.vector_store %arg5[%c0_6, %c0_7], %8 {strides = array<i32>} : memref<256x64xbf16, #tpu.memory_space<vmem>>, vector<256x64xbf16>,
    return
  }
  func.func @transform_0(%arg0: i32, %arg1: i32) -> (i32, i32) {
    %c0_i32 = arith.constant 0 : i32
    %c0_i32_0 = arith.constant 0 : i32
    return %arg0, %c0_i32 : i32, i32
  }
  func.func @transform_1(%arg0: i32, %arg1: i32) -> (i32, i32) {
    %c0_i32 = arith.constant 0 : i32
    %c0_i32_0 = arith.constant 0 : i32
    return %c0_i32, %arg1 : i32, i32
  }
  func.func @transform_2(%arg0: i32, %arg1: i32) -> (i32, i32) {
    %c0_i32 = arith.constant 0 : i32
    %c0_i32_0 = arith.constant 0 : i32
    return %c0_i32, %arg1 : i32, i32
  }
  func.func @transform_3(%arg0: i32, %arg1: i32) -> (i32, i32) {
    %c0_i32 = arith.constant 0 : i32
    return %arg0, %arg1 : i32, i32
  }
}

module attributes {stable_mosaic.version = 11 : i64} {
  func.func @_mm_bias_act_kernel(%arg0: i32, %arg1: i32, %arg2: memref<128x640xbf16, #tpu.memory_space<vmem>>, %arg3: memref<640x128xbf16, #tpu.memory_space<vmem>>, %arg4: memref<1x128xf32, #tpu.memory_space<vmem>>, %arg5: memref<128x128xbf16, #tpu.memory_space<vmem>>) attributes {dimension_semantics = [#tpu.dimension_semantics<parallel>, #tpu.dimension_semantics<parallel>], iteration_bounds = array<i64: 1, 1>, scalar_prefetch = 0 : i64, scratch_operands = 0 : i64, tpu.core_type = #tpu.core_type<tc>, window_params = [{transform_indices = @transform_0, window_bounds = array<i64: 128, 640>}, {transform_indices = @transform_1, window_bounds = array<i64: 640, 128>}, {transform_indices = @transform_2, window_bounds = array<i64: 1, 128>}, {transform_indices = @transform_3, window_bounds = array<i64: 128, 128>}]} {
    %c0 = arith.constant 0 : index
    %c0_0 = arith.constant 0 : index
    %0 = vector.load %arg2[%c0, %c0_0] : memref<128x640xbf16, #tpu.memory_space<vmem>>, vector<128x640xbf16>
    %c0_1 = arith.constant 0 : index
    %c0_2 = arith.constant 0 : index
    %1 = vector.load %arg3[%c0_1, %c0_2] : memref<640x128xbf16, #tpu.memory_space<vmem>>, vector<640x128xbf16>
    %cst = arith.constant dense<0.000000e+00> : vector<128x128xf32>
    %2 = tpu.matmul %0, %1, %cst {dimension_numbers = #tpu.dot_dimension_numbers<[1], [0], [0], [1], [0, 0, 1, 1], [], []>} : vector<128x640xbf16>, vector<640x128xbf16>, vector<128x128xf32> -> vector<128x128xf32>
    %c0_3 = arith.constant 0 : index
    %c0_4 = arith.constant 0 : index
    %3 = vector.load %arg4[%c0_3, %c0_4] : memref<1x128xf32, #tpu.memory_space<vmem>>, vector<1x128xf32>
    %4 = vector.broadcast %3 : vector<1x128xf32> to vector<128x128xf32>
    %5 = arith.addf %2, %4 : vector<128x128xf32>
    %cst_5 = arith.constant 0.000000e+00 : f32
    %6 = vector.broadcast %cst_5 : f32 to vector<128x128xf32>
    %7 = arith.maximumf %5, %6 : vector<128x128xf32>
    %8 = arith.truncf %7 : vector<128x128xf32> to vector<128x128xbf16>
    %c0_6 = arith.constant 0 : index
    %c0_7 = arith.constant 0 : index
    %9 = vector.load %arg5[%c0_6, %c0_7] : memref<128x128xbf16, #tpu.memory_space<vmem>>, vector<128x128xbf16>
    tpu.vector_store %arg5[%c0_6, %c0_7], %8 {strides = array<i32>} : memref<128x128xbf16, #tpu.memory_space<vmem>>, vector<128x128xbf16>,
    return
  }
  func.func @transform_0(%arg0: i32, %arg1: i32) -> (i32, i32) {
    %c0_i32 = arith.constant 0 : i32
    %c0_i32_0 = arith.constant 0 : i32
    return %arg0, %c0_i32 : i32, i32
  }
  func.func @transform_1(%arg0: i32, %arg1: i32) -> (i32, i32) {
    %c0_i32 = arith.constant 0 : i32
    %c0_i32_0 = arith.constant 0 : i32
    return %c0_i32, %arg1 : i32, i32
  }
  func.func @transform_2(%arg0: i32, %arg1: i32) -> (i32, i32) {
    %c0_i32 = arith.constant 0 : i32
    %c0_i32_0 = arith.constant 0 : i32
    return %c0_i32, %arg1 : i32, i32
  }
  func.func @transform_3(%arg0: i32, %arg1: i32) -> (i32, i32) {
    %c0_i32 = arith.constant 0 : i32
    return %arg0, %arg1 : i32, i32
  }
}

module attributes {stable_mosaic.version = 11 : i64} {
  func.func @_mm_bias_act_kernel(%arg0: i32, %arg1: i32, %arg2: memref<128x1152xbf16, #tpu.memory_space<vmem>>, %arg3: memref<1152x128xbf16, #tpu.memory_space<vmem>>, %arg4: memref<1x128xf32, #tpu.memory_space<vmem>>, %arg5: memref<128x128xbf16, #tpu.memory_space<vmem>>) attributes {dimension_semantics = [#tpu.dimension_semantics<parallel>, #tpu.dimension_semantics<parallel>], iteration_bounds = array<i64: 1, 1>, scalar_prefetch = 0 : i64, scratch_operands = 0 : i64, tpu.core_type = #tpu.core_type<tc>, window_params = [{transform_indices = @transform_0, window_bounds = array<i64: 128, 1152>}, {transform_indices = @transform_1, window_bounds = array<i64: 1152, 128>}, {transform_indices = @transform_2, window_bounds = array<i64: 1, 128>}, {transform_indices = @transform_3, window_bounds = array<i64: 128, 128>}]} {
    %c0 = arith.constant 0 : index
    %c0_0 = arith.constant 0 : index
    %0 = vector.load %arg2[%c0, %c0_0] : memref<128x1152xbf16, #tpu.memory_space<vmem>>, vector<128x1152xbf16>
    %c0_1 = arith.constant 0 : index
    %c0_2 = arith.constant 0 : index
    %1 = vector.load %arg3[%c0_1, %c0_2] : memref<1152x128xbf16, #tpu.memory_space<vmem>>, vector<1152x128xbf16>
    %cst = arith.constant dense<0.000000e+00> : vector<128x128xf32>
    %2 = tpu.matmul %0, %1, %cst {dimension_numbers = #tpu.dot_dimension_numbers<[1], [0], [0], [1], [0, 0, 1, 1], [], []>} : vector<128x1152xbf16>, vector<1152x128xbf16>, vector<128x128xf32> -> vector<128x128xf32>
    %c0_3 = arith.constant 0 : index
    %c0_4 = arith.constant 0 : index
    %3 = vector.load %arg4[%c0_3, %c0_4] : memref<1x128xf32, #tpu.memory_space<vmem>>, vector<1x128xf32>
    %4 = vector.broadcast %3 : vector<1x128xf32> to vector<128x128xf32>
    %5 = arith.addf %2, %4 : vector<128x128xf32>
    %cst_5 = arith.constant 0.000000e+00 : f32
    %6 = vector.broadcast %cst_5 : f32 to vector<128x128xf32>
    %7 = arith.maximumf %5, %6 : vector<128x128xf32>
    %8 = arith.truncf %7 : vector<128x128xf32> to vector<128x128xbf16>
    %c0_6 = arith.constant 0 : index
    %c0_7 = arith.constant 0 : index
    %9 = vector.load %arg5[%c0_6, %c0_7] : memref<128x128xbf16, #tpu.memory_space<vmem>>, vector<128x128xbf16>
    tpu.vector_store %arg5[%c0_6, %c0_7], %8 {strides = array<i32>} : memref<128x128xbf16, #tpu.memory_space<vmem>>, vector<128x128xbf16>,
    return
  }
  func.func @transform_0(%arg0: i32, %arg1: i32) -> (i32, i32) {
    %c0_i32 = arith.constant 0 : i32
    %c0_i32_0 = arith.constant 0 : i32
    return %arg0, %c0_i32 : i32, i32
  }
  func.func @transform_1(%arg0: i32, %arg1: i32) -> (i32, i32) {
    %c0_i32 = arith.constant 0 : i32
    %c0_i32_0 = arith.constant 0 : i32
    return %c0_i32, %arg1 : i32, i32
  }
  func.func @transform_2(%arg0: i32, %arg1: i32) -> (i32, i32) {
    %c0_i32 = arith.constant 0 : i32
    %c0_i32_0 = arith.constant 0 : i32
    return %c0_i32, %arg1 : i32, i32
  }
  func.func @transform_3(%arg0: i32, %arg1: i32) -> (i32, i32) {
    %c0_i32 = arith.constant 0 : i32
    return %arg0, %arg1 : i32, i32
  }
}

module attributes {stable_mosaic.version = 11 : i64} {
  func.func @_mm_bias_act_kernel(%arg0: i32, %arg1: i32, %arg2: memref<32x1152xbf16, #tpu.memory_space<vmem>>, %arg3: memref<1152x128xbf16, #tpu.memory_space<vmem>>, %arg4: memref<1x128xf32, #tpu.memory_space<vmem>>, %arg5: memref<32x128xbf16, #tpu.memory_space<vmem>>) attributes {dimension_semantics = [#tpu.dimension_semantics<parallel>, #tpu.dimension_semantics<parallel>], iteration_bounds = array<i64: 1, 2>, scalar_prefetch = 0 : i64, scratch_operands = 0 : i64, tpu.core_type = #tpu.core_type<tc>, window_params = [{transform_indices = @transform_0, window_bounds = array<i64: 32, 1152>}, {transform_indices = @transform_1, window_bounds = array<i64: 1152, 128>}, {transform_indices = @transform_2, window_bounds = array<i64: 1, 128>}, {transform_indices = @transform_3, window_bounds = array<i64: 32, 128>}]} {
    %c0 = arith.constant 0 : index
    %c0_0 = arith.constant 0 : index
    %0 = vector.load %arg2[%c0, %c0_0] : memref<32x1152xbf16, #tpu.memory_space<vmem>>, vector<32x1152xbf16>
    %c0_1 = arith.constant 0 : index
    %c0_2 = arith.constant 0 : index
    %1 = vector.load %arg3[%c0_1, %c0_2] : memref<1152x128xbf16, #tpu.memory_space<vmem>>, vector<1152x128xbf16>
    %cst = arith.constant dense<0.000000e+00> : vector<32x128xf32>
    %2 = tpu.matmul %0, %1, %cst {dimension_numbers = #tpu.dot_dimension_numbers<[1], [0], [0], [1], [0, 0, 1, 1], [], []>} : vector<32x1152xbf16>, vector<1152x128xbf16>, vector<32x128xf32> -> vector<32x128xf32>
    %c0_3 = arith.constant 0 : index
    %c0_4 = arith.constant 0 : index
    %3 = vector.load %arg4[%c0_3, %c0_4] : memref<1x128xf32, #tpu.memory_space<vmem>>, vector<1x128xf32>
    %4 = vector.broadcast %3 : vector<1x128xf32> to vector<32x128xf32>
    %5 = arith.addf %2, %4 : vector<32x128xf32>
    %cst_5 = arith.constant 0.000000e+00 : f32
    %6 = vector.broadcast %cst_5 : f32 to vector<32x128xf32>
    %7 = arith.maximumf %5, %6 : vector<32x128xf32>
    %8 = arith.truncf %7 : vector<32x128xf32> to vector<32x128xbf16>
    %c0_6 = arith.constant 0 : index
    %c0_7 = arith.constant 0 : index
    %9 = vector.load %arg5[%c0_6, %c0_7] : memref<32x128xbf16, #tpu.memory_space<vmem>>, vector<32x128xbf16>
    tpu.vector_store %arg5[%c0_6, %c0_7], %8 {strides = array<i32>} : memref<32x128xbf16, #tpu.memory_space<vmem>>, vector<32x128xbf16>,
    return
  }
  func.func @transform_0(%arg0: i32, %arg1: i32) -> (i32, i32) {
    %c0_i32 = arith.constant 0 : i32
    %c0_i32_0 = arith.constant 0 : i32
    return %arg0, %c0_i32 : i32, i32
  }
  func.func @transform_1(%arg0: i32, %arg1: i32) -> (i32, i32) {
    %c0_i32 = arith.constant 0 : i32
    %c0_i32_0 = arith.constant 0 : i32
    return %c0_i32, %arg1 : i32, i32
  }
  func.func @transform_2(%arg0: i32, %arg1: i32) -> (i32, i32) {
    %c0_i32 = arith.constant 0 : i32
    %c0_i32_0 = arith.constant 0 : i32
    return %c0_i32, %arg1 : i32, i32
  }
  func.func @transform_3(%arg0: i32, %arg1: i32) -> (i32, i32) {
    %c0_i32 = arith.constant 0 : i32
    return %arg0, %arg1 : i32, i32
  }
}

module attributes {stable_mosaic.version = 11 : i64} {
  func.func @_mm_bias_act_kernel(%arg0: i32, %arg1: i32, %arg2: memref<32x2304xbf16, #tpu.memory_space<vmem>>, %arg3: memref<2304x128xbf16, #tpu.memory_space<vmem>>, %arg4: memref<1x128xf32, #tpu.memory_space<vmem>>, %arg5: memref<32x128xbf16, #tpu.memory_space<vmem>>) attributes {dimension_semantics = [#tpu.dimension_semantics<parallel>, #tpu.dimension_semantics<parallel>], iteration_bounds = array<i64: 1, 2>, scalar_prefetch = 0 : i64, scratch_operands = 0 : i64, tpu.core_type = #tpu.core_type<tc>, window_params = [{transform_indices = @transform_0, window_bounds = array<i64: 32, 2304>}, {transform_indices = @transform_1, window_bounds = array<i64: 2304, 128>}, {transform_indices = @transform_2, window_bounds = array<i64: 1, 128>}, {transform_indices = @transform_3, window_bounds = array<i64: 32, 128>}]} {
    %c0 = arith.constant 0 : index
    %c0_0 = arith.constant 0 : index
    %0 = vector.load %arg2[%c0, %c0_0] : memref<32x2304xbf16, #tpu.memory_space<vmem>>, vector<32x2304xbf16>
    %c0_1 = arith.constant 0 : index
    %c0_2 = arith.constant 0 : index
    %1 = vector.load %arg3[%c0_1, %c0_2] : memref<2304x128xbf16, #tpu.memory_space<vmem>>, vector<2304x128xbf16>
    %cst = arith.constant dense<0.000000e+00> : vector<32x128xf32>
    %2 = tpu.matmul %0, %1, %cst {dimension_numbers = #tpu.dot_dimension_numbers<[1], [0], [0], [1], [0, 0, 1, 1], [], []>} : vector<32x2304xbf16>, vector<2304x128xbf16>, vector<32x128xf32> -> vector<32x128xf32>
    %c0_3 = arith.constant 0 : index
    %c0_4 = arith.constant 0 : index
    %3 = vector.load %arg4[%c0_3, %c0_4] : memref<1x128xf32, #tpu.memory_space<vmem>>, vector<1x128xf32>
    %4 = vector.broadcast %3 : vector<1x128xf32> to vector<32x128xf32>
    %5 = arith.addf %2, %4 : vector<32x128xf32>
    %cst_5 = arith.constant 0.000000e+00 : f32
    %6 = vector.broadcast %cst_5 : f32 to vector<32x128xf32>
    %7 = arith.maximumf %5, %6 : vector<32x128xf32>
    %8 = arith.truncf %7 : vector<32x128xf32> to vector<32x128xbf16>
    %c0_6 = arith.constant 0 : index
    %c0_7 = arith.constant 0 : index
    %9 = vector.load %arg5[%c0_6, %c0_7] : memref<32x128xbf16, #tpu.memory_space<vmem>>, vector<32x128xbf16>
    tpu.vector_store %arg5[%c0_6, %c0_7], %8 {strides = array<i32>} : memref<32x128xbf16, #tpu.memory_space<vmem>>, vector<32x128xbf16>,
    return
  }
  func.func @transform_0(%arg0: i32, %arg1: i32) -> (i32, i32) {
    %c0_i32 = arith.constant 0 : i32
    %c0_i32_0 = arith.constant 0 : i32
    return %arg0, %c0_i32 : i32, i32
  }
  func.func @transform_1(%arg0: i32, %arg1: i32) -> (i32, i32) {
    %c0_i32 = arith.constant 0 : i32
    %c0_i32_0 = arith.constant 0 : i32
    return %c0_i32, %arg1 : i32, i32
  }
  func.func @transform_2(%arg0: i32, %arg1: i32) -> (i32, i32) {
    %c0_i32 = arith.constant 0 : i32
    %c0_i32_0 = arith.constant 0 : i32
    return %c0_i32, %arg1 : i32, i32
  }
  func.func @transform_3(%arg0: i32, %arg1: i32) -> (i32, i32) {
    %c0_i32 = arith.constant 0 : i32
    return %arg0, %arg1 : i32, i32
  }
}

module attributes {stable_mosaic.version = 11 : i64} {
  func.func @_mm_bias_act_kernel(%arg0: i32, %arg1: i32, %arg2: memref<32x256xbf16, #tpu.memory_space<vmem>>, %arg3: memref<256x384xbf16, #tpu.memory_space<vmem>>, %arg4: memref<1x384xf32, #tpu.memory_space<vmem>>, %arg5: memref<32x384xf32, #tpu.memory_space<vmem>>) attributes {dimension_semantics = [#tpu.dimension_semantics<parallel>, #tpu.dimension_semantics<parallel>], iteration_bounds = array<i64: 1, 3>, scalar_prefetch = 0 : i64, scratch_operands = 0 : i64, tpu.core_type = #tpu.core_type<tc>, window_params = [{transform_indices = @transform_0, window_bounds = array<i64: 32, 256>}, {transform_indices = @transform_1, window_bounds = array<i64: 256, 384>}, {transform_indices = @transform_2, window_bounds = array<i64: 1, 384>}, {transform_indices = @transform_3, window_bounds = array<i64: 32, 384>}]} {
    %c0 = arith.constant 0 : index
    %c0_0 = arith.constant 0 : index
    %0 = vector.load %arg2[%c0, %c0_0] : memref<32x256xbf16, #tpu.memory_space<vmem>>, vector<32x256xbf16>
    %c0_1 = arith.constant 0 : index
    %c0_2 = arith.constant 0 : index
    %1 = vector.load %arg3[%c0_1, %c0_2] : memref<256x384xbf16, #tpu.memory_space<vmem>>, vector<256x384xbf16>
    %cst = arith.constant dense<0.000000e+00> : vector<32x384xf32>
    %2 = tpu.matmul %0, %1, %cst {dimension_numbers = #tpu.dot_dimension_numbers<[1], [0], [0], [1], [0, 0, 1, 1], [], []>} : vector<32x256xbf16>, vector<256x384xbf16>, vector<32x384xf32> -> vector<32x384xf32>
    %c0_3 = arith.constant 0 : index
    %c0_4 = arith.constant 0 : index
    %3 = vector.load %arg4[%c0_3, %c0_4] : memref<1x384xf32, #tpu.memory_space<vmem>>, vector<1x384xf32>
    %4 = vector.broadcast %3 : vector<1x384xf32> to vector<32x384xf32>
    %5 = arith.addf %2, %4 : vector<32x384xf32>
    %c0_5 = arith.constant 0 : index
    %c0_6 = arith.constant 0 : index
    %6 = vector.load %arg5[%c0_5, %c0_6] : memref<32x384xf32, #tpu.memory_space<vmem>>, vector<32x384xf32>
    tpu.vector_store %arg5[%c0_5, %c0_6], %5 {strides = array<i32>} : memref<32x384xf32, #tpu.memory_space<vmem>>, vector<32x384xf32>,
    return
  }
  func.func @transform_0(%arg0: i32, %arg1: i32) -> (i32, i32) {
    %c0_i32 = arith.constant 0 : i32
    %c0_i32_0 = arith.constant 0 : i32
    return %arg0, %c0_i32 : i32, i32
  }
  func.func @transform_1(%arg0: i32, %arg1: i32) -> (i32, i32) {
    %c0_i32 = arith.constant 0 : i32
    %c0_i32_0 = arith.constant 0 : i32
    return %c0_i32, %arg1 : i32, i32
  }
  func.func @transform_2(%arg0: i32, %arg1: i32) -> (i32, i32) {
    %c0_i32 = arith.constant 0 : i32
    %c0_i32_0 = arith.constant 0 : i32
    return %c0_i32, %arg1 : i32, i32
  }
  func.func @transform_3(%arg0: i32, %arg1: i32) -> (i32, i32) {
    %c0_i32 = arith.constant 0 : i32
    return %arg0, %arg1 : i32, i32
  }
}

module attributes {stable_mosaic.version = 11 : i64} {
  func.func @_mm_bias_act_kernel(%arg0: i32, %arg1: i32, %arg2: memref<128x128xbf16, #tpu.memory_space<vmem>>, %arg3: memref<128x576xbf16, #tpu.memory_space<vmem>>, %arg4: memref<1x576xf32, #tpu.memory_space<vmem>>, %arg5: memref<128x576xf32, #tpu.memory_space<vmem>>) attributes {dimension_semantics = [#tpu.dimension_semantics<parallel>, #tpu.dimension_semantics<parallel>], iteration_bounds = array<i64: 1, 1>, scalar_prefetch = 0 : i64, scratch_operands = 0 : i64, tpu.core_type = #tpu.core_type<tc>, window_params = [{transform_indices = @transform_0, window_bounds = array<i64: 128, 128>}, {transform_indices = @transform_1, window_bounds = array<i64: 128, 576>}, {transform_indices = @transform_2, window_bounds = array<i64: 1, 576>}, {transform_indices = @transform_3, window_bounds = array<i64: 128, 576>}]} {
    %c0 = arith.constant 0 : index
    %c0_0 = arith.constant 0 : index
    %0 = vector.load %arg2[%c0, %c0_0] : memref<128x128xbf16, #tpu.memory_space<vmem>>, vector<128x128xbf16>
    %c0_1 = arith.constant 0 : index
    %c0_2 = arith.constant 0 : index
    %1 = vector.load %arg3[%c0_1, %c0_2] : memref<128x576xbf16, #tpu.memory_space<vmem>>, vector<128x576xbf16>
    %cst = arith.constant dense<0.000000e+00> : vector<128x576xf32>
    %2 = tpu.matmul %0, %1, %cst {dimension_numbers = #tpu.dot_dimension_numbers<[1], [0], [0], [1], [0, 0, 1, 1], [], []>} : vector<128x128xbf16>, vector<128x576xbf16>, vector<128x576xf32> -> vector<128x576xf32>
    %c0_3 = arith.constant 0 : index
    %c0_4 = arith.constant 0 : index
    %3 = vector.load %arg4[%c0_3, %c0_4] : memref<1x576xf32, #tpu.memory_space<vmem>>, vector<1x576xf32>
    %4 = vector.broadcast %3 : vector<1x576xf32> to vector<128x576xf32>
    %5 = arith.addf %2, %4 : vector<128x576xf32>
    %c0_5 = arith.constant 0 : index
    %c0_6 = arith.constant 0 : index
    %6 = vector.load %arg5[%c0_5, %c0_6] : memref<128x576xf32, #tpu.memory_space<vmem>>, vector<128x576xf32>
    tpu.vector_store %arg5[%c0_5, %c0_6], %5 {strides = array<i32>} : memref<128x576xf32, #tpu.memory_space<vmem>>, vector<128x576xf32>,
    return
  }
  func.func @transform_0(%arg0: i32, %arg1: i32) -> (i32, i32) {
    %c0_i32 = arith.constant 0 : i32
    %c0_i32_0 = arith.constant 0 : i32
    return %arg0, %c0_i32 : i32, i32
  }
  func.func @transform_1(%arg0: i32, %arg1: i32) -> (i32, i32) {
    %c0_i32 = arith.constant 0 : i32
    %c0_i32_0 = arith.constant 0 : i32
    return %c0_i32, %arg1 : i32, i32
  }
  func.func @transform_2(%arg0: i32, %arg1: i32) -> (i32, i32) {
    %c0_i32 = arith.constant 0 : i32
    %c0_i32_0 = arith.constant 0 : i32
    return %c0_i32, %arg1 : i32, i32
  }
  func.func @transform_3(%arg0: i32, %arg1: i32) -> (i32, i32) {
    %c0_i32 = arith.constant 0 : i32
    return %arg0, %arg1 : i32, i32
  }
}

module attributes {stable_mosaic.version = 11 : i64} {
  func.func @_mm_bias_act_kernel(%arg0: i32, %arg1: i32, %arg2: memref<256x640xbf16, #tpu.memory_space<vmem>>, %arg3: memref<640x128xbf16, #tpu.memory_space<vmem>>, %arg4: memref<1x128xf32, #tpu.memory_space<vmem>>, %arg5: memref<256x128xf32, #tpu.memory_space<vmem>>) attributes {dimension_semantics = [#tpu.dimension_semantics<parallel>, #tpu.dimension_semantics<parallel>], iteration_bounds = array<i64: 2, 1>, scalar_prefetch = 0 : i64, scratch_operands = 0 : i64, tpu.core_type = #tpu.core_type<tc>, window_params = [{transform_indices = @transform_0, window_bounds = array<i64: 256, 640>}, {transform_indices = @transform_1, window_bounds = array<i64: 640, 128>}, {transform_indices = @transform_2, window_bounds = array<i64: 1, 128>}, {transform_indices = @transform_3, window_bounds = array<i64: 256, 128>}]} {
    %c0 = arith.constant 0 : index
    %c0_0 = arith.constant 0 : index
    %0 = vector.load %arg2[%c0, %c0_0] : memref<256x640xbf16, #tpu.memory_space<vmem>>, vector<256x640xbf16>
    %c0_1 = arith.constant 0 : index
    %c0_2 = arith.constant 0 : index
    %1 = vector.load %arg3[%c0_1, %c0_2] : memref<640x128xbf16, #tpu.memory_space<vmem>>, vector<640x128xbf16>
    %cst = arith.constant dense<0.000000e+00> : vector<256x128xf32>
    %2 = tpu.matmul %0, %1, %cst {dimension_numbers = #tpu.dot_dimension_numbers<[1], [0], [0], [1], [0, 0, 1, 1], [], []>} : vector<256x640xbf16>, vector<640x128xbf16>, vector<256x128xf32> -> vector<256x128xf32>
    %c0_3 = arith.constant 0 : index
    %c0_4 = arith.constant 0 : index
    %3 = vector.load %arg4[%c0_3, %c0_4] : memref<1x128xf32, #tpu.memory_space<vmem>>, vector<1x128xf32>
    %4 = vector.broadcast %3 : vector<1x128xf32> to vector<256x128xf32>
    %5 = arith.addf %2, %4 : vector<256x128xf32>
    %cst_5 = arith.constant 0.000000e+00 : f32
    %6 = vector.broadcast %cst_5 : f32 to vector<256x128xf32>
    %7 = arith.subf %6, %5 : vector<256x128xf32>
    %8 = math.exp %7 : vector<256x128xf32>
    %cst_6 = arith.constant 1.000000e+00 : f32
    %9 = vector.broadcast %cst_6 : f32 to vector<256x128xf32>
    %10 = arith.addf %9, %8 : vector<256x128xf32>
    %cst_7 = arith.constant 1.000000e+00 : f32
    %11 = vector.broadcast %cst_7 : f32 to vector<256x128xf32>
    %12 = arith.divf %11, %10 : vector<256x128xf32>
    %c0_8 = arith.constant 0 : index
    %c0_9 = arith.constant 0 : index
    %13 = vector.load %arg5[%c0_8, %c0_9] : memref<256x128xf32, #tpu.memory_space<vmem>>, vector<256x128xf32>
    tpu.vector_store %arg5[%c0_8, %c0_9], %12 {strides = array<i32>} : memref<256x128xf32, #tpu.memory_space<vmem>>, vector<256x128xf32>,
    return
  }
  func.func @transform_0(%arg0: i32, %arg1: i32) -> (i32, i32) {
    %c0_i32 = arith.constant 0 : i32
    %c0_i32_0 = arith.constant 0 : i32
    return %arg0, %c0_i32 : i32, i32
  }
  func.func @transform_1(%arg0: i32, %arg1: i32) -> (i32, i32) {
    %c0_i32 = arith.constant 0 : i32
    %c0_i32_0 = arith.constant 0 : i32
    return %c0_i32, %arg1 : i32, i32
  }
  func.func @transform_2(%arg0: i32, %arg1: i32) -> (i32, i32) {
    %c0_i32 = arith.constant 0 : i32
    %c0_i32_0 = arith.constant 0 : i32
    return %c0_i32, %arg1 : i32, i32
  }
  func.func @transform_3(%arg0: i32, %arg1: i32) -> (i32, i32) {
    %c0_i32 = arith.constant 0 : i32
    return %arg0, %arg1 : i32, i32
  }
}

</mosaic_0001>

<bundles_post_ra>
// kernel: generator_forward.12
= control target key start
LH: loop header
LB: loop body
LE: loop exit
PB: predicated region body
PF: predicated region fallthrough
CT: control target
= control target key end

     0   :  { %s1163_s12 = smov 0   ;;  %s1165_s13 = smov 0   ;;  %s1348_s0 = inlined_call_operand.vmem [shape: bf16[512,128], index: 0, kind: input, shape index: {}]   ;;  %s1349_s1 = inlined_call_operand.vmem [shape: bf16[128,64], index: 1, kind: input, shape index: {}]   ;;  %s1350_s2 = inlined_call_operand.vmem [shape: f32[1,64], index: 2, kind: input, shape index: {}]   ;;  %s1351_s3 = inlined_call_operand.vmem [shape: bf16[512,64], index: 3, kind: output, shape index: {}]  }
   0x1   :  { %s1167_s14 = smov 0  }
   0x2 LB: > { %s25_s15 = sadd.s32 1, %s1137_s13  ;;  %p887_p0 = scmp.ge.s32.totalorder %s1141_s14, 1  ;;  %s1141_s14 = sphi %s1167_s14, %s13_s14   ;;  %s1137_s13 = sphi %s1165_s13, %s1353_s13   ;;  %s1133_s12 = sphi %s1163_s12, %s1352_s12  }
   0x3   : > { %p27_p1 = scmp.ge.s32.totalorder %s25_s15, 2  ;;  %p169_p2 = scmp.lt.s32.totalorder %s1141_s14, 3 }
   0x5   : > { %s1355_s15 = smov (%p27_p1, %s25_s15), 0  ;;  %p170_p3 = pnand %p887_p0, %p169_p2 }
   0x6   : > { %s888_s18 = sshll.u32 (!%p170_p3), %s1133_s12, 5 }
   0x7   : > { %173 = sbr.rel (%p170_p3) target bundleno = 276 (0x114), region = 32  ;;  %p204_p4 = scmp.lt.s32.totalorder (!%p170_p3), %s888_s18, 63 }
   0xc   : > { %v1095_v0 = vld [vmem:[%s1349_s1 + $0x38] sm:$0xff]   ;;  %v1096_v1 = vld [vmem:[%s1349_s1 + $0x30] sm:$0xff]   ;;  %s1357_s18 = smov (!%p204_p4, %s888_s18), 63  ;;  %v1097_v2 = vld [vmem:[%s1349_s1 + $0x28] sm:$0xff]   ;;  %vm746_vm0 = vcmask 519168  }
   0xd   : > { %1007 = vmatprep.subr.bf16.mxu0 %v1095_v0  ;;  %1055 = vmatprep.subr.bf16.mxu1 %v1095_v0  ;;  %s889_s23 = sshll.u32 %s1357_s18, 2  ;;  %v1098_v3 = vld [vmem:[%s1349_s1 + $0x20] sm:$0xff]   ;;  %v1099_v6 = vld [vmem:[%s1349_s1 + $0x18] sm:$0xff]   ;;  %v1100_v7 = vld [vmem:[%s1349_s1 + $0x10] sm:$0xff]  }
   0xe   : > { %1008 = vmatpush3.bf16.msra.mxu0 %v1095_v0  ;;  %1063 = vmatpush3.bf16.msra.mxu1 %v1095_v0  ;;  %s1198_s26 = scalar_lea.vmem %s1348_s0, %s889_s23  ;;  %v1101_v8 = vld [vmem:[%s1349_s1 + $0x8] sm:$0xff]   ;;  %v1102_v9 = vld [vmem:[%s1349_s1] sm:$0xff]   ;;  %s1245_s17 = scalar_lea.vmem %s1351_s3, %s889_s23 }
   0xf   : > { %1009 = vmatprep.subr.bf16.mxu0 %v1096_v1  ;;  %1056 = vmatprep.subr.bf16.mxu1 %v1096_v1  ;;  %v1103_v4 = vld [vmem:[%s1198_s26] sm:$0xff]   ;;  %v1105_v10 = vld [vmem:[%s1198_s26 + $0x8] sm:$0xff]   ;;  %v1107_v12 = vld [vmem:[%s1198_s26 + $0x10] sm:$0xff]  }
  0x10   : > { %v1104_v5 = vld [vmem:[%s1198_s26 + $0x40] sm:$0xff]   ;;  %1023 = vmatprep.mubr.bf16.mxu0 %v1103_v4  ;;  %v1106_v11 = vld [vmem:[%s1198_s26 + $0x48] sm:$0xff]   ;;  %v1108_v13 = vld [vmem:[%s1198_s26 + $0x50] sm:$0xff]  }
  0x11   : > { %1039 = vmatprep.mubr.bf16.mxu1 %v1104_v5  ;;  %v1109_v14 = vld [vmem:[%s1198_s26 + $0x18] sm:$0xff]   ;;  %v1111_v16 = vld [vmem:[%s1198_s26 + $0x20] sm:$0xff]   ;;  %v1113_v18 = vld [vmem:[%s1198_s26 + $0x28] sm:$0xff]  }
  0x12   : > { %1010 = vmatpush3.bf16.msra.mxu0 %v1096_v1  ;;  %1064 = vmatpush3.bf16.msra.mxu1 %v1096_v1  ;;  %v1110_v15 = vld [vmem:[%s1198_s26 + $0x58] sm:$0xff]   ;;  %v1112_v17 = vld [vmem:[%s1198_s26 + $0x60] sm:$0xff]   ;;  %v1114_v19 = vld [vmem:[%s1198_s26 + $0x68] sm:$0xff]  }
  0x13   : > { %1011 = vmatprep.subr.bf16.mxu0 %v1097_v2  ;;  %1057 = vmatprep.subr.bf16.mxu1 %v1097_v2  ;;  %v1115_v20 = vld [vmem:[%s1198_s26 + $0x30] sm:$0xff]   ;;  %v1117_v22 = vld [vmem:[%s1198_s26 + $0x38] sm:$0xff]   ;;  %v1234_v24 = vld [vmem:[%s1350_s2] ss:$0 sm:$0xff] }
  0x14   : > { %v1116_v21 = vld [vmem:[%s1198_s26 + $0x70] sm:$0xff]   ;;  %v1118_v23 = vld [vmem:[%s1198_s26 + $0x78] sm:$0xff]  }
  0x16   : > { %1012 = vmatpush3.bf16.msra.mxu0 %v1097_v2  ;;  %1065 = vmatpush3.bf16.msra.mxu1 %v1097_v2 }
  0x17   : > { %1013 = vmatprep.subr.bf16.mxu0 %v1098_v3  ;;  %1058 = vmatprep.subr.bf16.mxu1 %v1098_v3 }
  0x1a   : > { %1014 = vmatpush3.bf16.msra.mxu0 %v1098_v3  ;;  %1066 = vmatpush3.bf16.msra.mxu1 %v1098_v3 }
  0x1b   : > { %1015 = vmatprep.subr.bf16.mxu0 %v1099_v6  ;;  %1059 = vmatprep.subr.bf16.mxu1 %v1099_v6 }
  0x1e   : > { %1016 = vmatpush3.bf16.msra.mxu0 %v1099_v6  ;;  %1067 = vmatpush3.bf16.msra.mxu1 %v1099_v6 }
  0x1f   : > { %1017 = vmatprep.subr.bf16.mxu0 %v1100_v7  ;;  %1060 = vmatprep.subr.bf16.mxu1 %v1100_v7 }
  0x22   : > { %1018 = vmatpush3.bf16.msra.mxu0 %v1100_v7  ;;  %1068 = vmatpush3.bf16.msra.mxu1 %v1100_v7 }
  0x23   : > { %1019 = vmatprep.subr.bf16.mxu0 %v1101_v8  ;;  %1061 = vmatprep.subr.bf16.mxu1 %v1101_v8 }
  0x26   : > { %1020 = vmatpush3.bf16.msra.mxu0 %v1101_v8  ;;  %1069 = vmatpush3.bf16.msra.mxu1 %v1101_v8 }
  0x27   : > { %1021 = vmatprep.subr.bf16.mxu0 %v1102_v9  ;;  %1062 = vmatprep.subr.bf16.mxu1 %v1102_v9 }
  0x2a   : > { %1022 = vmatpush3.bf16.msra.mxu0 %v1102_v9  ;;  %1070 = vmatpush3.bf16.msra.mxu1 %v1102_v9 }
  0x2d   : > { %1024 = vmatmul.mubr.bf16.vlgmr.msra.gmra.mxu0 %v1105_v10  ;;  %1040 = vmatmul.mubr.bf16.vlgmr.msra.gmra.mxu1 %v1106_v11 }
  0x2e   : > { %1027 = vmatprep.mubr.bf16.mxu0 %v1107_v12  ;;  %1043 = vmatprep.mubr.bf16.mxu1 %v1108_v13 }
  0x35   : > { %1028 = vmatmul.mubr.bf16.gmra.mxu0 %v1109_v14  ;;  %1044 = vmatmul.mubr.bf16.gmra.mxu1 %v1110_v15 }
  0x36   : > { %1031 = vmatprep.mubr.bf16.mxu0 %v1111_v16  ;;  %1047 = vmatprep.mubr.bf16.mxu1 %v1112_v17 }
  0x3d   : > { %1032 = vmatmul.mubr.bf16.gmra.mxu0 %v1113_v18  ;;  %1048 = vmatmul.mubr.bf16.gmra.mxu1 %v1114_v19 }
  0x3e   : > { %1035 = vmatprep.mubr.bf16.mxu0 %v1115_v20  ;;  %1051 = vmatprep.mubr.bf16.mxu1 %v1116_v21 }
  0x45   : > { %1036 = vmatmul.mubr.bf16.gmra.mxu0 %v1117_v22  ;;  %1052 = vmatmul.mubr.bf16.gmra.mxu1 %v1118_v23 }
  0xed   : > { %v1025_v25 = vpop.f32.mrf.mxu0  ;;  %v1041_v26 = vpop.f32.mrf.mxu1 }
  0xee   : > { %v468_v27 = vadd.f32 %v1025_v25, %v1234_v24  ;;  %v532_v28 = vadd.f32 %v1041_v26, %v1234_v24 }
  0xef   : > { %v459_v29 = vpop.f32.mrf.mxu0  ;;  %v523_v30 = vpop.f32.mrf.mxu1 }
  0xf0   : > { %v588_v31 = vmax.f32 %v468_v27, 0.0  ;;  %v604_v32 = vmax.f32 %v532_v28, 0.0  ;;  %v460_v33 = vadd.f32 %v1234_v24, %v459_v29  ;;  %v524_v34 = vadd.f32 %v1234_v24, %v523_v30 }
  0xf1   : > { %v1026_v35 = vpop.f32.mrf.mxu0  ;;  %v1042_v36 = vpop.f32.mrf.mxu1 }
  0xf2   : > { %v953_v37 = vpack.c.bf16 %v588_v31, %v588_v31  ;;  %v969_v38 = vpack.c.bf16 %v604_v32, %v604_v32  ;;  %v586_v39 = vmax.f32 %v460_v33, 0.0  ;;  %v602_v40 = vmax.f32 %v524_v34, 0.0 }
  0xf3   : > { %v471_v41 = vadd.f32 %v1026_v35, %v1234_v24  ;;  %v535_v42 = vadd.f32 %v1042_v36, %v1234_v24  ;;  %v462_v43 = vpop.f32.mrf.mxu0  ;;  %v526_v44 = vpop.f32.mrf.mxu1 }
  0xf4   : > { %749 = vst.msk [vmem:[%s1245_s17 + $0x8] sm:$0xf] %vm746_vm0, %v953_v37  ;;  %765 = vst.msk [vmem:[%s1245_s17 + $0x48] sm:$0xf] %vm746_vm0, %v969_v38  ;;  %v951_v45 = vpack.c.bf16 %v586_v39, %v586_v39  ;;  %v967_v46 = vpack.c.bf16 %v602_v40, %v602_v40  ;;  %v463_v47 = vadd.f32 %v1234_v24, %v462_v43 }
  0xf5   : > { %v527_v48 = vadd.f32 %v1234_v24, %v526_v44  ;;  %v589_v49 = vmax.f32 %v471_v41, 0.0  ;;  %v605_v50 = vmax.f32 %v535_v42, 0.0  ;;  %v1029_v51 = vpop.f32.mrf.mxu0  ;;  %v1045_v52 = vpop.f32.mrf.mxu1 }
  0xf6   : > { %747 = vst.msk [vmem:[%s1245_s17] sm:$0xf] %vm746_vm0, %v951_v45  ;;  %763 = vst.msk [vmem:[%s1245_s17 + $0x40] sm:$0xf] %vm746_vm0, %v967_v46  ;;  %v587_v53 = vmax.f32 %v463_v47, 0.0  ;;  %v484_v55 = vadd.f32 %v1029_v51, %v1234_v24  ;;  %v548_v56 = vadd.f32 %v1045_v52, %v1234_v24 }
  0xf7   : > { %v603_v54 = vmax.f32 %v527_v48, 0.0  ;;  %v954_v57 = vpack.c.bf16 %v589_v49, %v589_v49  ;;  %v970_v58 = vpack.c.bf16 %v605_v50, %v605_v50  ;;  %v475_v59 = vpop.f32.mrf.mxu0  ;;  %v539_v60 = vpop.f32.mrf.mxu1 }
  0xf8   : > { %v952_v61 = vpack.c.bf16 %v587_v53, %v587_v53  ;;  %v592_v63 = vmax.f32 %v484_v55, 0.0  ;;  %v608_v0 = vmax.f32 %v548_v56, 0.0  ;;  %v476_v1 = vadd.f32 %v1234_v24, %v475_v59 }
  0xf9   : > { %v968_v62 = vpack.c.bf16 %v603_v54, %v603_v54  ;;  %750 = vst.msk [vmem:[%s1245_s17 + $0xc] sm:$0xf] %vm746_vm0, %v954_v57  ;;  %766 = vst.msk [vmem:[%s1245_s17 + $0x4c] sm:$0xf] %vm746_vm0, %v970_v58  ;;  %v540_v2 = vadd.f32 %v1234_v24, %v539_v60  ;;  %v1030_v3 = vpop.f32.mrf.mxu0  ;;  %v1046_v4 = vpop.f32.mrf.mxu1 }
  0xfa   : > { %748 = vst.msk [vmem:[%s1245_s17 + $0x4] sm:$0xf] %vm746_vm0, %v952_v61  ;;  %v957_v5 = vpack.c.bf16 %v592_v63, %v592_v63  ;;  %v973_v6 = vpack.c.bf16 %v608_v0, %v608_v0  ;;  %v487_v7 = vadd.f32 %v1030_v3, %v1234_v24  ;;  %v551_v8 = vadd.f32 %v1046_v4, %v1234_v24 }
  0xfb   : > { %764 = vst.msk [vmem:[%s1245_s17 + $0x44] sm:$0xf] %vm746_vm0, %v968_v62  ;;  %v590_v9 = vmax.f32 %v476_v1, 0.0  ;;  %v606_v10 = vmax.f32 %v540_v2, 0.0  ;;  %v478_v11 = vpop.f32.mrf.mxu0  ;;  %v542_v12 = vpop.f32.mrf.mxu1 }
  0xfc   : > { %753 = vst.msk [vmem:[%s1245_s17 + $0x18] sm:$0xf] %vm746_vm0, %v957_v5  ;;  %769 = vst.msk [vmem:[%s1245_s17 + $0x58] sm:$0xf] %vm746_vm0, %v973_v6  ;;  %v593_v13 = vmax.f32 %v487_v7, 0.0  ;;  %v609_v14 = vmax.f32 %v551_v8, 0.0  ;;  %v479_v15 = vadd.f32 %v1234_v24, %v478_v11  ;;  %v543_v16 = vadd.f32 %v1234_v24, %v542_v12 }
  0xfd   : > { %v955_v17 = vpack.c.bf16 %v590_v9, %v590_v9  ;;  %v971_v18 = vpack.c.bf16 %v606_v10, %v606_v10  ;;  %v1033_v19 = vpop.f32.mrf.mxu0  ;;  %v1049_v20 = vpop.f32.mrf.mxu1 }
  0xfe   : > { %v958_v21 = vpack.c.bf16 %v593_v13, %v593_v13  ;;  %v974_v22 = vpack.c.bf16 %v609_v14, %v609_v14  ;;  %v591_v23 = vmax.f32 %v479_v15, 0.0  ;;  %v607_v25 = vmax.f32 %v543_v16, 0.0 }
  0xff   : > { %751 = vst.msk [vmem:[%s1245_s17 + $0x10] sm:$0xf] %vm746_vm0, %v955_v17  ;;  %767 = vst.msk [vmem:[%s1245_s17 + $0x50] sm:$0xf] %vm746_vm0, %v971_v18  ;;  %v500_v26 = vadd.f32 %v1033_v19, %v1234_v24  ;;  %v564_v27 = vadd.f32 %v1049_v20, %v1234_v24  ;;  %v491_v28 = vpop.f32.mrf.mxu0  ;;  %v555_v29 = vpop.f32.mrf.mxu1 }
 0x100   : > { %754 = vst.msk [vmem:[%s1245_s17 + $0x1c] sm:$0xf] %vm746_vm0, %v958_v21  ;;  %770 = vst.msk [vmem:[%s1245_s17 + $0x5c] sm:$0xf] %vm746_vm0, %v974_v22  ;;  %v956_v30 = vpack.c.bf16 %v591_v23, %v591_v23  ;;  %v972_v31 = vpack.c.bf16 %v607_v25, %v607_v25  ;;  %v492_v32 = vadd.f32 %v1234_v24, %v491_v28 }
 0x101   : > { %v556_v33 = vadd.f32 %v1234_v24, %v555_v29  ;;  %v596_v34 = vmax.f32 %v500_v26, 0.0  ;;  %v612_v35 = vmax.f32 %v564_v27, 0.0  ;;  %v1034_v36 = vpop.f32.mrf.mxu0  ;;  %v1050_v37 = vpop.f32.mrf.mxu1 }
 0x102   : > { %752 = vst.msk [vmem:[%s1245_s17 + $0x14] sm:$0xf] %vm746_vm0, %v956_v30  ;;  %768 = vst.msk [vmem:[%s1245_s17 + $0x54] sm:$0xf] %vm746_vm0, %v972_v31  ;;  %v594_v38 = vmax.f32 %v492_v32, 0.0  ;;  %v503_v40 = vadd.f32 %v1034_v36, %v1234_v24  ;;  %v567_v41 = vadd.f32 %v1050_v37, %v1234_v24 }
 0x103   : > { %v610_v39 = vmax.f32 %v556_v33, 0.0  ;;  %v961_v42 = vpack.c.bf16 %v596_v34, %v596_v34  ;;  %v977_v43 = vpack.c.bf16 %v612_v35, %v612_v35  ;;  %v494_v44 = vpop.f32.mrf.mxu0  ;;  %v558_v45 = vpop.f32.mrf.mxu1 }
 0x104   : > { %v959_v46 = vpack.c.bf16 %v594_v38, %v594_v38  ;;  %v597_v48 = vmax.f32 %v503_v40, 0.0  ;;  %v613_v49 = vmax.f32 %v567_v41, 0.0  ;;  %v495_v50 = vadd.f32 %v1234_v24, %v494_v44 }
 0x105   : > { %v975_v47 = vpack.c.bf16 %v610_v39, %v610_v39  ;;  %757 = vst.msk [vmem:[%s1245_s17 + $0x28] sm:$0xf] %vm746_vm0, %v961_v42  ;;  %773 = vst.msk [vmem:[%s1245_s17 + $0x68] sm:$0xf] %vm746_vm0, %v977_v43  ;;  %v559_v51 = vadd.f32 %v1234_v24, %v558_v45  ;;  %v1037_v52 = vpop.f32.mrf.mxu0  ;;  %v1053_v53 = vpop.f32.mrf.mxu1 }
 0x106   : > { %755 = vst.msk [vmem:[%s1245_s17 + $0x20] sm:$0xf] %vm746_vm0, %v959_v46  ;;  %v962_v54 = vpack.c.bf16 %v597_v48, %v597_v48  ;;  %v978_v55 = vpack.c.bf16 %v613_v49, %v613_v49  ;;  %v516_v56 = vadd.f32 %v1037_v52, %v1234_v24  ;;  %v580_v57 = vadd.f32 %v1053_v53, %v1234_v24 }
 0x107   : > { %771 = vst.msk [vmem:[%s1245_s17 + $0x60] sm:$0xf] %vm746_vm0, %v975_v47  ;;  %v595_v58 = vmax.f32 %v495_v50, 0.0  ;;  %v611_v59 = vmax.f32 %v559_v51, 0.0  ;;  %v507_v60 = vpop.f32.mrf.mxu0  ;;  %v571_v61 = vpop.f32.mrf.mxu1 }
 0x108   : > { %758 = vst.msk [vmem:[%s1245_s17 + $0x2c] sm:$0xf] %vm746_vm0, %v962_v54  ;;  %774 = vst.msk [vmem:[%s1245_s17 + $0x6c] sm:$0xf] %vm746_vm0, %v978_v55  ;;  %v600_v62 = vmax.f32 %v516_v56, 0.0  ;;  %v616_v63 = vmax.f32 %v580_v57, 0.0  ;;  %v508_v0 = vadd.f32 %v1234_v24, %v507_v60  ;;  %v572_v1 = vadd.f32 %v1234_v24, %v571_v61 }
 0x109   : > { %v960_v2 = vpack.c.bf16 %v595_v58, %v595_v58  ;;  %v976_v3 = vpack.c.bf16 %v611_v59, %v611_v59  ;;  %v1038_v4 = vpop.f32.mrf.mxu0  ;;  %v1054_v5 = vpop.f32.mrf.mxu1 }
 0x10a   : > { %v965_v6 = vpack.c.bf16 %v600_v62, %v600_v62  ;;  %v981_v7 = vpack.c.bf16 %v616_v63, %v616_v63  ;;  %v598_v8 = vmax.f32 %v508_v0, 0.0  ;;  %v614_v9 = vmax.f32 %v572_v1, 0.0 }
 0x10b   : > { %756 = vst.msk [vmem:[%s1245_s17 + $0x24] sm:$0xf] %vm746_vm0, %v960_v2  ;;  %772 = vst.msk [vmem:[%s1245_s17 + $0x64] sm:$0xf] %vm746_vm0, %v976_v3  ;;  %v519_v10 = vadd.f32 %v1038_v4, %v1234_v24  ;;  %v583_v11 = vadd.f32 %v1054_v5, %v1234_v24  ;;  %v510_v12 = vpop.f32.mrf.mxu0  ;;  %v574_v13 = vpop.f32.mrf.mxu1 }
 0x10c   : > { %761 = vst.msk [vmem:[%s1245_s17 + $0x38] sm:$0xf] %vm746_vm0, %v965_v6  ;;  %777 = vst.msk [vmem:[%s1245_s17 + $0x78] sm:$0xf] %vm746_vm0, %v981_v7  ;;  %v963_v14 = vpack.c.bf16 %v598_v8, %v598_v8  ;;  %v979_v15 = vpack.c.bf16 %v614_v9, %v614_v9  ;;  %v511_v16 = vadd.f32 %v1234_v24, %v510_v12 }
 0x10d   : > { %v575_v17 = vadd.f32 %v1234_v24, %v574_v13  ;;  %v601_v18 = vmax.f32 %v519_v10, 0.0  ;;  %v617_v19 = vmax.f32 %v583_v11, 0.0 }
 0x10e   : > { %759 = vst.msk [vmem:[%s1245_s17 + $0x30] sm:$0xf] %vm746_vm0, %v963_v14  ;;  %775 = vst.msk [vmem:[%s1245_s17 + $0x70] sm:$0xf] %vm746_vm0, %v979_v15  ;;  %v599_v20 = vmax.f32 %v511_v16, 0.0 }
 0x10f   : > { %v615_v21 = vmax.f32 %v575_v17, 0.0  ;;  %v966_v22 = vpack.c.bf16 %v601_v18, %v601_v18  ;;  %v982_v23 = vpack.c.bf16 %v617_v19, %v617_v19 }
 0x110   : > { %v964_v25 = vpack.c.bf16 %v599_v20, %v599_v20 }
 0x111   : > { %v980_v26 = vpack.c.bf16 %v615_v21, %v615_v21  ;;  %762 = vst.msk [vmem:[%s1245_s17 + $0x3c] sm:$0xf] %vm746_vm0, %v966_v22  ;;  %778 = vst.msk [vmem:[%s1245_s17 + $0x7c] sm:$0xf] %vm746_vm0, %v982_v23 }
 0x112   : > { %760 = vst.msk [vmem:[%s1245_s17 + $0x34] sm:$0xf] %vm746_vm0, %v964_v25 }
 0x113   : > { %776 = vst.msk [vmem:[%s1245_s17 + $0x74] sm:$0xf] %vm746_vm0, %v980_v26 }
 0x114 PF: > { %s13_s14 = sadd.s32 1, %s1141_s14   ;;  %s1352_s12 = smov %s1137_s13 }
 0x115   : > { %p10_p5 = scmp.ge.s32.totalorder %s13_s14, 4   ;;  %s1353_s13 = smov %s1355_s15 }
 0x117   :  { %12 = sbr.rel (!%p10_p5) target bundleno = 2 (0x2), region = 68 }

// kernel: generator_forward.13
= control target key start
LH: loop header
LB: loop body
LE: loop exit
PB: predicated region body
PF: predicated region fallthrough
CT: control target
= control target key end

     0   :  { %s1796_s1 = inlined_call_operand.vmem [shape: bf16[640,128], index: 1, kind: input, shape index: {}]   ;;  %s1797_s0 = inlined_call_operand.vmem [shape: bf16[128,640], index: 0, kind: input, shape index: {}]   ;;  %s1798_s2 = inlined_call_operand.vmem [shape: f32[1,128], index: 2, kind: input, shape index: {}]   ;;  %s1799_s3 = inlined_call_operand.vmem [shape: bf16[128,128], index: 3, kind: output, shape index: {}]  }
   0x1   :  { %v1341_v0 = vld [vmem:[%s1796_s1 + $0x78] sm:$0xff]   ;;  %v1345_v4 = vld [vmem:[%s1796_s1 + $0x70] sm:$0xff]   ;;  %v1349_v8 = vld [vmem:[%s1796_s1 + $0x68] sm:$0xff]  }
   0x2   :  { %v1342_v1 = vld [vmem:[%s1796_s1 + $0xf8] sm:$0xff]   ;;  %1149 = vmatprep.subr.bf16.mxu0 %v1341_v0  ;;  %v1346_v5 = vld [vmem:[%s1796_s1 + $0xf0] sm:$0xff]   ;;  %v1350_v9 = vld [vmem:[%s1796_s1 + $0xe8] sm:$0xff]  }
   0x3   :  { %v1343_v2 = vld [vmem:[%s1796_s1 + $0x38] sm:$0xff]   ;;  %1213 = vmatprep.subr.bf16.mxu1 %v1342_v1  ;;  %v1347_v6 = vld [vmem:[%s1796_s1 + $0x30] sm:$0xff]   ;;  %v1351_v10 = vld [vmem:[%s1796_s1 + $0x28] sm:$0xff]  }
   0x4   :  { %v1344_v3 = vld [vmem:[%s1796_s1 + $0xb8] sm:$0xff]   ;;  %1150 = vmatpush3.bf16.msra.mxu0 %v1343_v2  ;;  %v1348_v7 = vld [vmem:[%s1796_s1 + $0xb0] sm:$0xff]   ;;  %v1352_v11 = vld [vmem:[%s1796_s1 + $0xa8] sm:$0xff]  }
   0x5   :  { %1214 = vmatpush3.bf16.msra.mxu1 %v1344_v3  ;;  %1151 = vmatprep.subr.bf16.mxu0 %v1345_v4  ;;  %v1353_v12 = vld [vmem:[%s1796_s1 + $0x60] sm:$0xff]   ;;  %v1357_v16 = vld [vmem:[%s1796_s1 + $0x58] sm:$0xff]   ;;  %v1361_v20 = vld [vmem:[%s1796_s1 + $0x50] sm:$0xff]  }
   0x6   :  { %1215 = vmatprep.subr.bf16.mxu1 %v1346_v5  ;;  %v1354_v13 = vld [vmem:[%s1796_s1 + $0xe0] sm:$0xff]   ;;  %v1358_v17 = vld [vmem:[%s1796_s1 + $0xd8] sm:$0xff]   ;;  %v1362_v21 = vld [vmem:[%s1796_s1 + $0xd0] sm:$0xff]  }
   0x7   :  { %v1355_v14 = vld [vmem:[%s1796_s1 + $0x20] sm:$0xff]   ;;  %v1359_v18 = vld [vmem:[%s1796_s1 + $0x18] sm:$0xff]   ;;  %v1363_v22 = vld [vmem:[%s1796_s1 + $0x10] sm:$0xff]  }
   0x8   :  { %1152 = vmatpush3.bf16.msra.mxu0 %v1347_v6  ;;  %v1356_v15 = vld [vmem:[%s1796_s1 + $0xa0] sm:$0xff]   ;;  %v1360_v19 = vld [vmem:[%s1796_s1 + $0x98] sm:$0xff]   ;;  %v1364_v23 = vld [vmem:[%s1796_s1 + $0x90] sm:$0xff]  }
   0x9   :  { %1216 = vmatpush3.bf16.msra.mxu1 %v1348_v7  ;;  %1153 = vmatprep.subr.bf16.mxu0 %v1349_v8  ;;  %v1365_v24 = vld [vmem:[%s1796_s1 + $0x48] sm:$0xff]   ;;  %v1369_v28 = vld [vmem:[%s1796_s1 + $0x40] sm:$0xff]   ;;  %v1379_v36 = vld [vmem:[%s1796_s1 + $0x138] sm:$0xff]  }
   0xa   :  { %1217 = vmatprep.subr.bf16.mxu1 %v1350_v9  ;;  %v1366_v25 = vld [vmem:[%s1796_s1 + $0xc8] sm:$0xff]   ;;  %v1370_v29 = vld [vmem:[%s1796_s1 + $0xc0] sm:$0xff]   ;;  %v1386_v39 = vld [vmem:[%s1796_s1 + $0x130] sm:$0xff]  }
   0xb   :  { %v1367_v26 = vld [vmem:[%s1796_s1 + $0x8] sm:$0xff]   ;;  %v1371_v30 = vld [vmem:[%s1796_s1] sm:$0xff]   ;;  %v1389_v43 = vld [vmem:[%s1797_s0 + $0x5c] ss:$20 sps:$4 sm:$0xff]  }
   0xc   :  { %1154 = vmatpush3.bf16.msra.mxu0 %v1351_v10  ;;  %v1368_v27 = vld [vmem:[%s1796_s1 + $0x88] sm:$0xff]   ;;  %v1372_v31 = vld [vmem:[%s1796_s1 + $0x80] sm:$0xff]   ;;  %v1394_v48 = vld [vmem:[%s1797_s0 + $0x7c] ss:$20 sps:$4 sm:$0xff]  }
   0xd   :  { %1218 = vmatpush3.bf16.msra.mxu1 %v1352_v11  ;;  %1155 = vmatprep.subr.bf16.mxu0 %v1353_v12  ;;  %v1373_v32 = vld [vmem:[%s1797_s0] ss:$20 sps:$4 sm:$0xff]   ;;  %v1375_v33 = vld [vmem:[%s1797_s0 + $0x4] ss:$20 sps:$4 sm:$0xff]   ;;  %v1376_v34 = vld [vmem:[%s1797_s0 + $0x8] ss:$20 sps:$4 sm:$0xff]  }
   0xe   :  { %1219 = vmatprep.subr.bf16.mxu1 %v1354_v13  ;;  %v1378_v35 = vld [vmem:[%s1797_s0 + $0xc] ss:$20 sps:$4 sm:$0xff]   ;;  %630 = vmatprep.mubr.bf16.mxu0 %v1375_v33  ;;  %v1382_v38 = vld [vmem:[%s1797_s0 + $0x34] ss:$20 sps:$4 sm:$0xff]   ;;  %v1385_v41 = vld [vmem:[%s1797_s0 + $0x30] ss:$20 sps:$4 sm:$0xff]  }
   0xf   :  { %727 = vmatprep.mubr.bf16.mxu1 %v1378_v35  ;;  %v1380_v37 = vld [vmem:[%s1797_s0 + $0x2c] ss:$20 sps:$4 sm:$0xff]   ;;  %v1384_v40 = vld [vmem:[%s1797_s0 + $0x28] ss:$20 sps:$4 sm:$0xff]   ;;  %v1391_v46 = vld [vmem:[%s1797_s0 + $0x50] ss:$20 sps:$4 sm:$0xff]  }
  0x10   :  { %1156 = vmatpush3.bf16.msra.mxu0 %v1355_v14  ;;  %v1387_v42 = vld [vmem:[%s1797_s0 + $0x54] ss:$20 sps:$4 sm:$0xff]   ;;  %v1400_v45 = vld [vmem:[%s1796_s1 + $0x120] sm:$0xff]   ;;  %v1392_v47 = vld [vmem:[%s1797_s0 + $0x58] ss:$20 sps:$4 sm:$0xff]  }
  0x11   :  { %1220 = vmatpush3.bf16.msra.mxu1 %v1356_v15  ;;  %1157 = vmatprep.subr.bf16.mxu0 %v1357_v16  ;;  %v1393_v44 = vld [vmem:[%s1796_s1 + $0x128] sm:$0xff]   ;;  %v1396_v49 = vld [vmem:[%s1797_s0 + $0x84] ss:$20 sps:$4 sm:$0xff]   ;;  %v1414_v51 = vld [vmem:[%s1796_s1 + $0x110] sm:$0xff]  }
  0x12   :  { %1221 = vmatprep.subr.bf16.mxu1 %v1358_v17  ;;  %v1407_v50 = vld [vmem:[%s1796_s1 + $0x118] sm:$0xff]   ;;  %v1399_v53 = vld [vmem:[%s1797_s0 + $0x80] ss:$20 sps:$4 sm:$0xff]   ;;  %v1421_v55 = vld [vmem:[%s1796_s1 + $0x108] sm:$0xff]  }
  0x13   :  { %v1398_v52 = vld [vmem:[%s1797_s0 + $0x78] ss:$20 sps:$4 sm:$0xff]   ;;  %v1428_v57 = vld [vmem:[%s1796_s1 + $0x100] sm:$0xff]   ;;  %v1406_v59 = vld [vmem:[%s1797_s0 + $0xa8] ss:$20 sps:$4 sm:$0xff]  }
  0x14   :  { %1158 = vmatpush3.bf16.msra.mxu0 %v1359_v18  ;;  %v1401_v54 = vld [vmem:[%s1797_s0 + $0xa4] ss:$20 sps:$4 sm:$0xff]   ;;  %v1403_v56 = vld [vmem:[%s1797_s0 + $0xac] ss:$20 sps:$4 sm:$0xff]   ;;  %v1410_v61 = vld [vmem:[%s1797_s0 + $0xd4] ss:$20 sps:$4 sm:$0xff]  }
  0x15   :  { %1222 = vmatpush3.bf16.msra.mxu1 %v1360_v19  ;;  %1159 = vmatprep.subr.bf16.mxu0 %v1361_v20  ;;  %v1405_v58 = vld [vmem:[%s1797_s0 + $0xa0] ss:$20 sps:$4 sm:$0xff]   ;;  %v1412_v62 = vld [vmem:[%s1797_s0 + $0xc8] ss:$20 sps:$4 sm:$0xff]   ;;  %v1413_v63 = vld [vmem:[%s1797_s0 + $0xd0] ss:$20 sps:$4 sm:$0xff]  }
  0x16   :  { %1223 = vmatprep.subr.bf16.mxu1 %v1362_v21  ;;  %v1408_v60 = vld [vmem:[%s1797_s0 + $0xcc] ss:$20 sps:$4 sm:$0xff]   ;;  %v1415_v0 = vld [vmem:[%s1797_s0 + $0xf4] ss:$20 sps:$4 sm:$0xff]   ;;  %v1417_v1 = vld [vmem:[%s1797_s0 + $0xfc] ss:$20 sps:$4 sm:$0xff]  }
  0x17   :  { %v1419_v2 = vld [vmem:[%s1797_s0 + $0xf0] ss:$20 sps:$4 sm:$0xff]   ;;  %v1420_v3 = vld [vmem:[%s1797_s0 + $0xf8] ss:$20 sps:$4 sm:$0xff]   ;;  %v1427_v7 = vld [vmem:[%s1797_s0 + $0x120] ss:$20 sps:$4 sm:$0xff]  }
  0x18   :  { %1160 = vmatpush3.bf16.msra.mxu0 %v1363_v22  ;;  %v1422_v4 = vld [vmem:[%s1797_s0 + $0x11c] ss:$20 sps:$4 sm:$0xff]   ;;  %v1424_v5 = vld [vmem:[%s1797_s0 + $0x124] ss:$20 sps:$4 sm:$0xff]   ;;  %v1433_v12 = vld [vmem:[%s1797_s0 + $0x60] ss:$20 sps:$4 sm:$0xff]  }
  0x19   :  { %1224 = vmatpush3.bf16.msra.mxu1 %v1364_v23  ;;  %1161 = vmatprep.subr.bf16.mxu0 %v1365_v24  ;;  %v1426_v6 = vld [vmem:[%s1797_s0 + $0x118] ss:$20 sps:$4 sm:$0xff]   ;;  %v1429_v8 = vld [vmem:[%s1797_s0 + $0x10] ss:$20 sps:$4 sm:$0xff]   ;;  %v1434_v13 = vld [vmem:[%s1797_s0 + $0x100] ss:$20 sps:$4 sm:$0xff]  }
  0x1a   :  { %1225 = vmatprep.subr.bf16.mxu1 %v1366_v25  ;;  %v1430_v9 = vld [vmem:[%s1797_s0 + $0xb0] ss:$20 sps:$4 sm:$0xff]   ;;  %v1431_v10 = vld [vmem:[%s1797_s0 + $0x38] ss:$20 sps:$4 sm:$0xff]   ;;  %v1435_v14 = vld [vmem:[%s1797_s0 + $0x88] ss:$20 sps:$4 sm:$0xff]  }
  0x1b   :  { %v1432_v11 = vld [vmem:[%s1797_s0 + $0xd8] ss:$20 sps:$4 sm:$0xff]   ;;  %v1436_v15 = vld [vmem:[%s1797_s0 + $0x128] ss:$20 sps:$4 sm:$0xff]   ;;  %v1700_v18 = vld [vmem:[%s1798_s2] ss:$0 sm:$0xff] }
  0x1c   :  { %1162 = vmatpush3.bf16.msra.mxu0 %v1367_v26 }
  0x1d   :  { %1226 = vmatpush3.bf16.msra.mxu1 %v1368_v27  ;;  %1163 = vmatprep.subr.bf16.mxu0 %v1369_v28 }
  0x1e   :  { %1227 = vmatprep.subr.bf16.mxu1 %v1370_v29 }
  0x20   :  { %1164 = vmatpush3.bf16.msra.mxu0 %v1371_v30 }
  0x21   :  { %1228 = vmatpush3.bf16.msra.mxu1 %v1372_v31  ;;  %1293 = vmatprep.subr.bf16.mxu0 %v1379_v36 }
  0x22   :  { %1325 = vmatprep.subr.bf16.mxu1 %v1379_v36 }
  0x23   :  { %631 = vmatmul.mubr.bf16.vlgmr.msra.gmra.mxu0 %v1373_v32 }
  0x24   :  { %728 = vmatmul.mubr.bf16.vlgmr.msra.gmra.mxu1 %v1376_v34  ;;  %1294 = vmatpush3.bf16.msra.mxu0 %v1379_v36 }
  0x25   :  { %1333 = vmatpush3.bf16.msra.mxu1 %v1379_v36  ;;  %638 = vmatprep.mubr.bf16.mxu0 %v1380_v37 }
  0x26   :  { %735 = vmatprep.mubr.bf16.mxu1 %v1382_v38  ;;  %1295 = vmatprep.subr.bf16.mxu0 %v1386_v39 }
  0x27   :  { %1326 = vmatprep.subr.bf16.mxu1 %v1386_v39 }
  0x28   :  { %1296 = vmatpush3.bf16.msra.mxu0 %v1386_v39 }
  0x29   :  { %1334 = vmatpush3.bf16.msra.mxu1 %v1386_v39  ;;  %1297 = vmatprep.subr.bf16.mxu0 %v1393_v44 }
  0x2a   :  { %1327 = vmatprep.subr.bf16.mxu1 %v1393_v44 }
  0x2b   :  { %639 = vmatmul.mubr.bf16.gmra.mxu0 %v1384_v40 }
  0x2c   :  { %736 = vmatmul.mubr.bf16.gmra.mxu1 %v1385_v41  ;;  %646 = vmatprep.mubr.bf16.mxu0 %v1387_v42 }
  0x2d   :  { %743 = vmatprep.mubr.bf16.mxu1 %v1389_v43  ;;  %1298 = vmatpush3.bf16.msra.mxu0 %v1393_v44 }
  0x2e   :  { %1335 = vmatpush3.bf16.msra.mxu1 %v1393_v44  ;;  %1299 = vmatprep.subr.bf16.mxu0 %v1400_v45 }
  0x2f   :  { %1328 = vmatprep.subr.bf16.mxu1 %v1400_v45 }
  0x31   :  { %1300 = vmatpush3.bf16.msra.mxu0 %v1400_v45 }
  0x32   :  { %1336 = vmatpush3.bf16.msra.mxu1 %v1400_v45  ;;  %1301 = vmatprep.subr.bf16.mxu0 %v1407_v50 }
  0x33   :  { %647 = vmatmul.mubr.bf16.gmra.mxu0 %v1391_v46  ;;  %1329 = vmatprep.subr.bf16.mxu1 %v1407_v50 }
  0x34   :  { %744 = vmatmul.mubr.bf16.gmra.mxu1 %v1392_v47  ;;  %654 = vmatprep.mubr.bf16.mxu0 %v1394_v48 }
  0x35   :  { %751 = vmatprep.mubr.bf16.mxu1 %v1396_v49  ;;  %1302 = vmatpush3.bf16.msra.mxu0 %v1407_v50 }
  0x36   :  { %1337 = vmatpush3.bf16.msra.mxu1 %v1407_v50  ;;  %1303 = vmatprep.subr.bf16.mxu0 %v1414_v51 }
  0x37   :  { %1330 = vmatprep.subr.bf16.mxu1 %v1414_v51 }
  0x39   :  { %1304 = vmatpush3.bf16.msra.mxu0 %v1414_v51 }
  0x3a   :  { %1338 = vmatpush3.bf16.msra.mxu1 %v1414_v51  ;;  %1305 = vmatprep.subr.bf16.mxu0 %v1421_v55 }
  0x3b   :  { %655 = vmatmul.mubr.bf16.gmra.mxu0 %v1398_v52  ;;  %1331 = vmatprep.subr.bf16.mxu1 %v1421_v55 }
  0x3c   :  { %752 = vmatmul.mubr.bf16.gmra.mxu1 %v1399_v53  ;;  %662 = vmatprep.mubr.bf16.mxu0 %v1401_v54 }
  0x3d   :  { %759 = vmatprep.mubr.bf16.mxu1 %v1403_v56  ;;  %1306 = vmatpush3.bf16.msra.mxu0 %v1421_v55 }
  0x3e   :  { %1339 = vmatpush3.bf16.msra.mxu1 %v1421_v55  ;;  %1307 = vmatprep.subr.bf16.mxu0 %v1428_v57 }
  0x3f   :  { %1332 = vmatprep.subr.bf16.mxu1 %v1428_v57 }
  0x41   :  { %1308 = vmatpush3.bf16.msra.mxu0 %v1428_v57 }
  0x42   :  { %1340 = vmatpush3.bf16.msra.mxu1 %v1428_v57 }
  0x43   :  { %663 = vmatmul.mubr.bf16.gmra.mxu0 %v1405_v58 }
  0x44   :  { %760 = vmatmul.mubr.bf16.gmra.mxu1 %v1406_v59  ;;  %670 = vmatprep.mubr.bf16.mxu0 %v1408_v60 }
  0x45   :  { %767 = vmatprep.mubr.bf16.mxu1 %v1410_v61 }
  0x4b   :  { %671 = vmatmul.mubr.bf16.gmra.mxu0 %v1412_v62 }
  0x4c   :  { %768 = vmatmul.mubr.bf16.gmra.mxu1 %v1413_v63  ;;  %678 = vmatprep.mubr.bf16.mxu0 %v1415_v0 }
  0x4d   :  { %775 = vmatprep.mubr.bf16.mxu1 %v1417_v1 }
  0x53   :  { %679 = vmatmul.mubr.bf16.gmra.mxu0 %v1419_v2 }
  0x54   :  { %776 = vmatmul.mubr.bf16.gmra.mxu1 %v1420_v3  ;;  %686 = vmatprep.mubr.bf16.mxu0 %v1422_v4 }
  0x55   :  { %783 = vmatprep.mubr.bf16.mxu1 %v1424_v5 }
  0x5b   :  { %687 = vmatmul.mubr.bf16.gmra.mxu0 %v1426_v6 }
  0x5c   :  { %784 = vmatmul.mubr.bf16.gmra.mxu1 %v1427_v7  ;;  %1309 = vmatprep.mubr.bf16.mxu0 %v1429_v8 }
  0x5d   :  { %1317 = vmatprep.mubr.bf16.mxu1 %v1430_v9 }
  0x63   :  { %1310 = vmatmul.mubr.bf16.vlgmr.msra.gmra.mxu0 %v1431_v10 }
  0x64   :  { %1318 = vmatmul.mubr.bf16.vlgmr.msra.gmra.mxu1 %v1432_v11  ;;  %1313 = vmatprep.mubr.bf16.mxu0 %v1433_v12 }
  0x65   :  { %1321 = vmatprep.mubr.bf16.mxu1 %v1434_v13 }
  0x6b   :  { %1314 = vmatmul.mubr.bf16.gmra.mxu0 %v1435_v14 }
  0x6c   :  { %1322 = vmatmul.mubr.bf16.gmra.mxu1 %v1436_v15 }
  0xe3   :  { %v1165_v16 = vpop.f32.mrf.mxu0 }
  0xe4   :  { %v1229_v17 = vpop.f32.mrf.mxu1 }
  0xe5   :  { %v1166_v19 = vpop.f32.mrf.mxu0 }
  0xe6   :  { %v1167_v20 = vadd.f32 %v1166_v19, %v1165_v16  ;;  %v1230_v21 = vpop.f32.mrf.mxu1 }
  0xe7   :  { %v1168_v22 = vpop.f32.mrf.mxu0  ;;  %v1231_v24 = vadd.f32 %v1230_v21, %v1229_v17 }
  0xe8   :  { %v633_v23 = vadd.f32 %v1167_v20, %v1700_v18  ;;  %v1703_v25 = vpop.f32.mrf.mxu1 }
  0xe9   :  { %v1169_v26 = vpop.f32.mrf.mxu0 }
  0xea   :  { %v1705_v27 = vpop.f32.mrf.mxu1  ;;  %v1707_v28 = vadd.f32 %v1231_v24, %v633_v23  ;;  %v1170_v10 = vadd.f32 %v1169_v26, %v1168_v22 }
  0xeb   :  { %v1171_v29 = vpop.f32.mrf.mxu0 }
  0xec   :  { %1800 = vst [vmem:[#allocation2_spill] sm:$0xff] %v1707_v28  ;;  %v1235_v30 = vpop.f32.mrf.mxu1  ;;  %v636_v19 = vadd.f32 %v1170_v10, %v1700_v18 }
  0xed   :  { %v1172_v31 = vpop.f32.mrf.mxu0 }
  0xee   :  { %v1236_v32 = vpop.f32.mrf.mxu1  ;;  %v1173_v12 = vadd.f32 %v1172_v31, %v1171_v29  ;;  %v1234_v29 = vadd.f32 %v1705_v27, %v1703_v25 }
  0xef   :  { %v1174_v33 = vpop.f32.mrf.mxu0  ;;  %v1237_v31 = vadd.f32 %v1236_v32, %v1235_v30 }
  0xf0   :  { %v1238_v34 = vpop.f32.mrf.mxu1  ;;  %v641_v23 = vadd.f32 %v1173_v12, %v1700_v18 }
  0xf1   :  { %v1175_v35 = vpop.f32.mrf.mxu0 }
  0xf2   :  { %v1239_v36 = vpop.f32.mrf.mxu1  ;;  %v1176_v13 = vadd.f32 %v1175_v35, %v1174_v33 }
  0xf3   :  { %v1177_v37 = vpop.f32.mrf.mxu0  ;;  %v1240_v33 = vadd.f32 %v1239_v36, %v1238_v34 }
  0xf4   :  { %v1241_v38 = vpop.f32.mrf.mxu1  ;;  %v644_v24 = vadd.f32 %v1176_v13, %v1700_v18  ;;  %v733_v13 = vadd.f32 %v1234_v29, %v636_v19 }
  0xf5   :  { %v1178_v39 = vpop.f32.mrf.mxu0 }
  0xf6   :  { %v1242_v40 = vpop.f32.mrf.mxu1  ;;  %v1179_v14 = vadd.f32 %v1178_v39, %v1177_v37  ;;  %v741_v28 = vadd.f32 %v1240_v33, %v644_v24 }
  0xf7   :  { %v1180_v41 = vpop.f32.mrf.mxu0  ;;  %v1243_v39 = vadd.f32 %v1242_v40, %v1241_v38 }
  0xf8   :  { %v1709_v42 = vpop.f32.mrf.mxu1  ;;  %v649_v22 = vadd.f32 %v1179_v14, %v1700_v18  ;;  %v738_v14 = vadd.f32 %v1237_v31, %v641_v23 }
  0xf9   :  { %v1181_v43 = vpop.f32.mrf.mxu0 }
  0xfa   :  { %v1711_v44 = vpop.f32.mrf.mxu1  ;;  %v1182_v10 = vadd.f32 %v1181_v43, %v1180_v41  ;;  %v1741_v25 = vadd.f32 %v1243_v39, %v649_v22 }
  0xfb   :  { %v1183_v45 = vpop.f32.mrf.mxu0  ;;  %v1745_v27 = vadd.f32 %v1711_v44, %v1709_v42 }
  0xfc   :  { %v1713_v46 = vpop.f32.mrf.mxu1  ;;  %v1750_v38 = vadd.f32 %v1182_v10, %v1700_v18 }
  0xfd   :  { %v1184_v47 = vpop.f32.mrf.mxu0 }
  0xfe   :  { %v1248_v48 = vpop.f32.mrf.mxu1  ;;  %v1185_v20 = vadd.f32 %v1184_v47, %v1183_v45 }
  0xff   :  { %v1186_v49 = vpop.f32.mrf.mxu0  ;;  %v1249_v30 = vadd.f32 %v1248_v48, %v1713_v46 }
 0x100   :  { %v1715_v50 = vpop.f32.mrf.mxu1  ;;  %v657_v12 = vadd.f32 %v1185_v20, %v1700_v18 }
 0x101   :  { %v1187_v51 = vpop.f32.mrf.mxu0 }
 0x102   :  { %v1717_v52 = vpop.f32.mrf.mxu1  ;;  %v1188_v32 = vadd.f32 %v1187_v51, %v1186_v49 }
 0x103   :  { %v1189_v53 = vpop.f32.mrf.mxu0  ;;  %v1252_v19 = vadd.f32 %v1717_v52, %v1715_v50 }
 0x104   :  { %v1719_v54 = vpop.f32.mrf.mxu1 }
 0x105   :  { %v1190_v55 = vpop.f32.mrf.mxu0 }
 0x106   :  { %v1254_v56 = vpop.f32.mrf.mxu1  ;;  %v1191_v35 = vadd.f32 %v1190_v55, %v1189_v53 }
 0x107   :  { %v1192_v57 = vpop.f32.mrf.mxu0  ;;  %v1255_v55 = vadd.f32 %v1254_v56, %v1719_v54 }
 0x108   :  { %v1256_v58 = vpop.f32.mrf.mxu1  ;;  %v665_v34 = vadd.f32 %v1191_v35, %v1700_v18 }
 0x109   :  { %v1193_v59 = vpop.f32.mrf.mxu0 }
 0x10a   :  { %v1257_v60 = vpop.f32.mrf.mxu1  ;;  %v1194_v45 = vadd.f32 %v1193_v59, %v1192_v57  ;;  %v754_v59 = vadd.f32 %v1249_v30, %v657_v12 }
 0x10b   :  { %v1195_v61 = vpop.f32.mrf.mxu0  ;;  %v1258_v57 = vadd.f32 %v1257_v60, %v1256_v58 }
 0x10c   :  { %v1259_v62 = vpop.f32.mrf.mxu1  ;;  %v668_v40 = vadd.f32 %v1194_v45, %v1700_v18 }
 0x10d   :  { %v1196_v63 = vpop.f32.mrf.mxu0 }
 0x10e   :  { %v1260_v0 = vpop.f32.mrf.mxu1  ;;  %v1197_v26 = vadd.f32 %v1196_v63, %v1195_v61  ;;  %v765_v58 = vadd.f32 %v1258_v57, %v668_v40 }
 0x10f   :  { %v1198_v1 = vpop.f32.mrf.mxu0  ;;  %v1261_v41 = vadd.f32 %v1260_v0, %v1259_v62  ;;  %v762_v0 = vadd.f32 %v1255_v55, %v665_v34 }
 0x110   :  { %v1262_v2 = vpop.f32.mrf.mxu1  ;;  %v673_v61 = vadd.f32 %v1197_v26, %v1700_v18 }
 0x111   :  { %v1199_v3 = vpop.f32.mrf.mxu0 }
 0x112   :  { %v1263_v4 = vpop.f32.mrf.mxu1  ;;  %v1200_v47 = vadd.f32 %v1199_v3, %v1198_v1  ;;  %v770_v51 = vadd.f32 %v1261_v41, %v673_v61  ;;  %v660_v3 = vadd.f32 %v1188_v32, %v1700_v18 }
 0x113   :  { %v1201_v5 = vpop.f32.mrf.mxu0  ;;  %v1264_v46 = vadd.f32 %v1263_v4, %v1262_v2  ;;  %v1804_v4 = vld [vmem:[#allocation2_spill] sm:$0xff] }
 0x114   :  { %v1721_v6 = vpop.f32.mrf.mxu1  ;;  %v676_v43 = vadd.f32 %v1200_v47, %v1700_v18  ;;  %v757_v41 = vadd.f32 %v1252_v19, %v660_v3 }
 0x115   :  { %v1202_v7 = vpop.f32.mrf.mxu0 }
 0x116   :  { %v1723_v8 = vpop.f32.mrf.mxu1  ;;  %v1203_v48 = vadd.f32 %v1202_v7, %v1201_v5  ;;  %v773_v56 = vadd.f32 %v1264_v46, %v676_v43 }
 0x117   :  { %v1204_v9 = vpop.f32.mrf.mxu0  ;;  %v1267_v60 = vadd.f32 %v1723_v8, %v1721_v6 }
 0x118   :  { %v1725_v11 = vpop.f32.mrf.mxu1 }
 0x119   :  { %1801 = vst [vmem:[#allocation3_spill] sm:$0xff] %v1725_v11  ;;  %v1205_v15 = vpop.f32.mrf.mxu0 }
 0x11a   :  { %v1727_v16 = vpop.f32.mrf.mxu1  ;;  %v1206_v49 = vadd.f32 %v1205_v15, %v1204_v9 }
 0x11b   :  { %1802 = vst [vmem:[#allocation4_spill] sm:$0xff] %v1727_v16  ;;  %v1207_v17 = vpop.f32.mrf.mxu0 }
 0x11c   :  { %v1730_v21 = vpop.f32.mrf.mxu1  ;;  %v684_v50 = vadd.f32 %v1206_v49, %v1700_v18 }
 0x11d   :  { %1803 = vst [vmem:[#allocation5_spill] sm:$0xff] %v1730_v21  ;;  %v1208_v11 = vpop.f32.mrf.mxu0 }
 0x11e   :  { %v1272_v37 = vpop.f32.mrf.mxu1  ;;  %v1209_v42 = vadd.f32 %v1208_v11, %v1207_v17  ;;  %v681_v11 = vadd.f32 %v1203_v48, %v1700_v18  ;;  %v749_v48 = vadd.f32 %v1745_v27, %v1750_v38 }
 0x11f   :  { %v1210_v16 = vpop.f32.mrf.mxu0 }
 0x120   :  { %v1738_v21 = vpop.f32.mrf.mxu1  ;;  %v689_v2 = vadd.f32 %v1209_v42, %v1700_v18  ;;  %v778_v34 = vadd.f32 %v1267_v60, %v681_v11  ;;  %v1806_v43 = vld [vmem:[#allocation3_spill] sm:$0xff] }
 0x121   :  { %v1211_v63 = vpop.f32.mrf.mxu0 }
 0x122   :  { %v1275_v36 = vpop.f32.mrf.mxu1  ;;  %v1212_v23 = vadd.f32 %v1211_v63, %v1210_v16 }
 0x123   :  { %v1311_v53 = vpop.f32.mrf.mxu0  ;;  %v1276_v63 = vadd.f32 %v1275_v36, %v1738_v21 }
 0x124   :  { %v1319_v44 = vpop.f32.mrf.mxu1  ;;  %v835_v62 = vadd.f32 %v1311_v53, %v738_v14  ;;  %v1805_v17 = vld [vmem:[#allocation5_spill] sm:$0xff]  ;;  %v692_v6 = vadd.f32 %v1212_v23, %v1700_v18  ;;  %v1807_v53 = vld [vmem:[#allocation4_spill] sm:$0xff] }
 0x125   :  { %v826_v1 = vpop.f32.mrf.mxu0  ;;  %v867_v24 = vadd.f32 %v1319_v44, %v770_v51  ;;  %v1273_v22 = vadd.f32 %v1272_v37, %v1805_v17  ;;  %v1270_v55 = vadd.f32 %v1807_v53, %v1806_v43 }
 0x126   :  { %v858_v20 = vpop.f32.mrf.mxu1  ;;  %v827_v5 = vadd.f32 %v826_v1, %v1804_v4  ;;  %v891_v26 = vmax.f32 %v835_v62, 0.0  ;;  %v789_v42 = vadd.f32 %v1276_v63, %v692_v6 }
 0x127   :  { %v1312_v54 = vpop.f32.mrf.mxu0  ;;  %v859_v52 = vadd.f32 %v858_v20, %v762_v0  ;;  %v899_v8 = vmax.f32 %v867_v24, 0.0  ;;  %v786_v12 = vadd.f32 %v1273_v22, %v689_v2  ;;  %v781_v3 = vadd.f32 %v1270_v55, %v684_v50 }
 0x128   :  { %v838_v7 = vadd.f32 %v1312_v54, %v741_v28  ;;  %v1320_v9 = vpop.f32.mrf.mxu1  ;;  %v889_v10 = vmax.f32 %v827_v5, 0.0 }
 0x129   :  { %v870_v15 = vadd.f32 %v1320_v9, %v773_v56  ;;  %v829_v16 = vpop.f32.mrf.mxu0  ;;  %v897_v14 = vmax.f32 %v859_v52, 0.0 }
 0x12a   :  { %v892_v29 = vmax.f32 %v838_v7, 0.0  ;;  %v830_v31 = vadd.f32 %v829_v16, %v733_v13  ;;  %v861_v33 = vpop.f32.mrf.mxu1 }
 0x12b   :  { %v900_v35 = vmax.f32 %v870_v15, 0.0  ;;  %v862_v39 = vadd.f32 %v861_v33, %v765_v58  ;;  %v1315_v28 = vpop.f32.mrf.mxu0 }
 0x12c   :  { %v1110_v45 = vpack.c.bf16 %v892_v29, %v891_v26  ;;  %v890_v47 = vmax.f32 %v830_v31, 0.0  ;;  %v1323_v61 = vpop.f32.mrf.mxu1  ;;  %v851_v13 = vadd.f32 %v1315_v28, %v754_v59 }
 0x12d   :  { %v1130_v30 = vpack.c.bf16 %v900_v35, %v899_v8  ;;  %v898_v37 = vmax.f32 %v862_v39, 0.0  ;;  %v842_v32 = vpop.f32.mrf.mxu0  ;;  %v883_v36 = vadd.f32 %v1323_v61, %v786_v12 }
 0x12e   :  { %1142 = vst [vmem:[%s1799_s3 + $0x8] sm:$0xff] %v1110_v45   ;;  %v1105_v18 = vpack.c.bf16 %v890_v47, %v889_v10  ;;  %v874_v40 = vpop.f32.mrf.mxu1  ;;  %v843_v44 = vadd.f32 %v842_v32, %v1741_v25  ;;  %v895_v19 = vmax.f32 %v851_v13, 0.0 }
 0x12f   :  { %1146 = vst [vmem:[%s1799_s3 + $0x28] sm:$0xff] %v1130_v30   ;;  %v1125_v21 = vpack.c.bf16 %v898_v37, %v897_v14  ;;  %v1316_v57 = vpop.f32.mrf.mxu0  ;;  %v875_v49 = vadd.f32 %v874_v40, %v778_v34  ;;  %v903_v23 = vmax.f32 %v883_v36, 0.0 }
 0x130   :  { %1106 = vst [vmem:[%s1799_s3] sm:$0xff] %v1105_v18   ;;  %v854_v59 = vadd.f32 %v1316_v57, %v757_v41  ;;  %v1324_v46 = vpop.f32.mrf.mxu1  ;;  %v893_v54 = vmax.f32 %v843_v44, 0.0 }
 0x131   :  { %1145 = vst [vmem:[%s1799_s3 + $0x20] sm:$0xff] %v1125_v21   ;;  %v886_v51 = vadd.f32 %v1324_v46, %v789_v42  ;;  %v845_v1 = vpop.f32.mrf.mxu0  ;;  %v901_v60 = vmax.f32 %v875_v49, 0.0 }
 0x132   :  { %v896_v62 = vmax.f32 %v854_v59, 0.0  ;;  %v846_v0 = vadd.f32 %v845_v1, %v749_v48  ;;  %v877_v20 = vpop.f32.mrf.mxu1 }
 0x133   :  { %v904_v24 = vmax.f32 %v886_v51, 0.0  ;;  %v878_v25 = vadd.f32 %v877_v20, %v781_v3 }
 0x134   :  { %v1120_v56 = vpack.c.bf16 %v896_v62, %v895_v19  ;;  %v894_v58 = vmax.f32 %v846_v0, 0.0 }
 0x135   :  { %v1140_v27 = vpack.c.bf16 %v904_v24, %v903_v23  ;;  %v902_v38 = vmax.f32 %v878_v25, 0.0 }
 0x136   :  { %1144 = vst [vmem:[%s1799_s3 + $0x18] sm:$0xff] %v1120_v56   ;;  %v1115_v2 = vpack.c.bf16 %v894_v58, %v893_v54 }
 0x137   :  { %1148 = vst [vmem:[%s1799_s3 + $0x38] sm:$0xff] %v1140_v27   ;;  %v1135_v4 = vpack.c.bf16 %v902_v38, %v901_v60 }
 0x138   :  { %1143 = vst [vmem:[%s1799_s3 + $0x10] sm:$0xff] %v1115_v2  }
 0x139   :  { %1147 = vst [vmem:[%s1799_s3 + $0x30] sm:$0xff] %v1135_v4  }

// kernel: generator_forward.14
= control target key start
LH: loop header
LB: loop body
LE: loop exit
PB: predicated region body
PF: predicated region fallthrough
CT: control target
= control target key end

     0   :  { %s2950_s1 = inlined_call_operand.vmem [shape: bf16[1152,128], index: 1, kind: input, shape index: {}]   ;;  %s2951_s0 = inlined_call_operand.vmem [shape: bf16[128,1152], index: 0, kind: input, shape index: {}]   ;;  %s2952_s2 = inlined_call_operand.vmem [shape: f32[1,128], index: 2, kind: input, shape index: {}]   ;;  %s2953_s3 = inlined_call_operand.vmem [shape: bf16[128,128], index: 3, kind: output, shape index: {}]  }
   0x1   :  { %v2175_v0 = vld [vmem:[%s2950_s1 + $0x78] sm:$0xff]   ;;  %v2179_v4 = vld [vmem:[%s2950_s1 + $0x70] sm:$0xff]   ;;  %v2183_v8 = vld [vmem:[%s2950_s1 + $0x68] sm:$0xff]  }
   0x2   :  { %v2176_v1 = vld [vmem:[%s2950_s1 + $0xf8] sm:$0xff]   ;;  %1855 = vmatprep.subr.bf16.mxu0 %v2175_v0  ;;  %v2180_v5 = vld [vmem:[%s2950_s1 + $0xf0] sm:$0xff]   ;;  %v2184_v9 = vld [vmem:[%s2950_s1 + $0xe8] sm:$0xff]  }
   0x3   :  { %v2177_v2 = vld [vmem:[%s2950_s1 + $0x38] sm:$0xff]   ;;  %1919 = vmatprep.subr.bf16.mxu1 %v2176_v1  ;;  %v2181_v6 = vld [vmem:[%s2950_s1 + $0x30] sm:$0xff]   ;;  %v2185_v10 = vld [vmem:[%s2950_s1 + $0x28] sm:$0xff]  }
   0x4   :  { %v2178_v3 = vld [vmem:[%s2950_s1 + $0xb8] sm:$0xff]   ;;  %1856 = vmatpush3.bf16.msra.mxu0 %v2177_v2  ;;  %v2182_v7 = vld [vmem:[%s2950_s1 + $0xb0] sm:$0xff]   ;;  %v2186_v11 = vld [vmem:[%s2950_s1 + $0xa8] sm:$0xff]  }
   0x5   :  { %1920 = vmatpush3.bf16.msra.mxu1 %v2178_v3  ;;  %1857 = vmatprep.subr.bf16.mxu0 %v2179_v4  ;;  %v2187_v12 = vld [vmem:[%s2950_s1 + $0x60] sm:$0xff]   ;;  %v2191_v16 = vld [vmem:[%s2950_s1 + $0x58] sm:$0xff]   ;;  %v2195_v20 = vld [vmem:[%s2950_s1 + $0x50] sm:$0xff]  }
   0x6   :  { %1921 = vmatprep.subr.bf16.mxu1 %v2180_v5  ;;  %v2188_v13 = vld [vmem:[%s2950_s1 + $0xe0] sm:$0xff]   ;;  %v2192_v17 = vld [vmem:[%s2950_s1 + $0xd8] sm:$0xff]   ;;  %v2196_v21 = vld [vmem:[%s2950_s1 + $0xd0] sm:$0xff]  }
   0x7   :  { %v2189_v14 = vld [vmem:[%s2950_s1 + $0x20] sm:$0xff]   ;;  %v2193_v18 = vld [vmem:[%s2950_s1 + $0x18] sm:$0xff]   ;;  %v2197_v22 = vld [vmem:[%s2950_s1 + $0x10] sm:$0xff]  }
   0x8   :  { %1858 = vmatpush3.bf16.msra.mxu0 %v2181_v6  ;;  %v2190_v15 = vld [vmem:[%s2950_s1 + $0xa0] sm:$0xff]   ;;  %v2194_v19 = vld [vmem:[%s2950_s1 + $0x98] sm:$0xff]   ;;  %v2198_v23 = vld [vmem:[%s2950_s1 + $0x90] sm:$0xff]  }
   0x9   :  { %1922 = vmatpush3.bf16.msra.mxu1 %v2182_v7  ;;  %1859 = vmatprep.subr.bf16.mxu0 %v2183_v8  ;;  %v2199_v24 = vld [vmem:[%s2950_s1 + $0x48] sm:$0xff]   ;;  %v2203_v28 = vld [vmem:[%s2950_s1 + $0x40] sm:$0xff]   ;;  %v2213_v36 = vld [vmem:[%s2950_s1 + $0x178] sm:$0xff]  }
   0xa   :  { %1923 = vmatprep.subr.bf16.mxu1 %v2184_v9  ;;  %v2200_v25 = vld [vmem:[%s2950_s1 + $0xc8] sm:$0xff]   ;;  %v2204_v29 = vld [vmem:[%s2950_s1 + $0xc0] sm:$0xff]   ;;  %v2214_v37 = vld [vmem:[%s2950_s1 + $0x1f8] sm:$0xff]  }
   0xb   :  { %v2201_v26 = vld [vmem:[%s2950_s1 + $0x8] sm:$0xff]   ;;  %v2205_v30 = vld [vmem:[%s2950_s1] sm:$0xff]   ;;  %v2215_v38 = vld [vmem:[%s2950_s1 + $0x138] sm:$0xff]  }
   0xc   :  { %1860 = vmatpush3.bf16.msra.mxu0 %v2185_v10  ;;  %v2202_v27 = vld [vmem:[%s2950_s1 + $0x88] sm:$0xff]   ;;  %v2206_v31 = vld [vmem:[%s2950_s1 + $0x80] sm:$0xff]   ;;  %v2216_v39 = vld [vmem:[%s2950_s1 + $0x1b8] sm:$0xff]  }
   0xd   :  { %1924 = vmatpush3.bf16.msra.mxu1 %v2186_v11  ;;  %1861 = vmatprep.subr.bf16.mxu0 %v2187_v12  ;;  %v2207_v32 = vld [vmem:[%s2951_s0] ss:$36 sps:$4 sm:$0xff]   ;;  %v2210_v34 = vld [vmem:[%s2951_s0 + $0x8] ss:$36 sps:$4 sm:$0xff]   ;;  %v2219_v41 = vld [vmem:[%s2951_s0 + $0x54] ss:$36 sps:$4 sm:$0xff]  }
   0xe   :  { %1925 = vmatprep.subr.bf16.mxu1 %v2188_v13  ;;  %v2209_v33 = vld [vmem:[%s2951_s0 + $0x4] ss:$36 sps:$4 sm:$0xff]   ;;  %v2212_v35 = vld [vmem:[%s2951_s0 + $0xc] ss:$36 sps:$4 sm:$0xff]   ;;  %v2227_v48 = vld [vmem:[%s2951_s0 + $0x94] ss:$36 sps:$4 sm:$0xff]  }
   0xf   :  { %1078 = vmatprep.mubr.bf16.mxu0 %v2209_v33  ;;  %1175 = vmatprep.mubr.bf16.mxu1 %v2212_v35  ;;  %v2217_v40 = vld [vmem:[%s2951_s0 + $0x4c] ss:$36 sps:$4 sm:$0xff]   ;;  %v2229_v49 = vld [vmem:[%s2951_s0 + $0x9c] ss:$36 sps:$4 sm:$0xff]   ;;  %v2239_v57 = vld [vmem:[%s2951_s0 + $0xe4] ss:$36 sps:$4 sm:$0xff]  }
  0x10   :  { %1862 = vmatpush3.bf16.msra.mxu0 %v2189_v14  ;;  %v2221_v42 = vld [vmem:[%s2951_s0 + $0x48] ss:$36 sps:$4 sm:$0xff]   ;;  %v2222_v43 = vld [vmem:[%s2951_s0 + $0x50] ss:$36 sps:$4 sm:$0xff]   ;;  %v2232_v51 = vld [vmem:[%s2951_s0 + $0x98] ss:$36 sps:$4 sm:$0xff]  }
  0x11   :  { %1926 = vmatpush3.bf16.msra.mxu1 %v2190_v15  ;;  %1863 = vmatprep.subr.bf16.mxu0 %v2191_v16  ;;  %v2223_v44 = vld [vmem:[%s2950_s1 + $0x170] sm:$0xff]   ;;  %v2233_v52 = vld [vmem:[%s2950_s1 + $0x168] sm:$0xff]   ;;  %v2237_v56 = vld [vmem:[%s2951_s0 + $0xdc] ss:$36 sps:$4 sm:$0xff]  }
  0x12   :  { %1927 = vmatprep.subr.bf16.mxu1 %v2192_v17  ;;  %v2224_v45 = vld [vmem:[%s2950_s1 + $0x1f0] sm:$0xff]   ;;  %v2234_v53 = vld [vmem:[%s2950_s1 + $0x1e8] sm:$0xff]   ;;  %v2241_v58 = vld [vmem:[%s2951_s0 + $0xd8] ss:$36 sps:$4 sm:$0xff]  }
  0x13   :  { %v2225_v46 = vld [vmem:[%s2950_s1 + $0x130] sm:$0xff]   ;;  %v2235_v54 = vld [vmem:[%s2950_s1 + $0x128] sm:$0xff]   ;;  %v2242_v59 = vld [vmem:[%s2951_s0 + $0xe0] ss:$36 sps:$4 sm:$0xff]  }
  0x14   :  { %1864 = vmatpush3.bf16.msra.mxu0 %v2193_v18  ;;  %v2226_v47 = vld [vmem:[%s2950_s1 + $0x1b0] sm:$0xff]   ;;  %v2236_v55 = vld [vmem:[%s2950_s1 + $0x1a8] sm:$0xff]   ;;  %v2243_v60 = vld [vmem:[%s2950_s1 + $0x160] sm:$0xff]  }
  0x15   :  { %1928 = vmatpush3.bf16.msra.mxu1 %v2194_v19  ;;  %1865 = vmatprep.subr.bf16.mxu0 %v2195_v20  ;;  %v2231_v50 = vld [vmem:[%s2951_s0 + $0x90] ss:$36 sps:$4 sm:$0xff]   ;;  %v2244_v61 = vld [vmem:[%s2950_s1 + $0x1e0] sm:$0xff]   ;;  %v2253_v3 = vld [vmem:[%s2950_s1 + $0x158] sm:$0xff]  }
  0x16   :  { %1929 = vmatprep.subr.bf16.mxu1 %v2196_v21  ;;  %v2245_v62 = vld [vmem:[%s2950_s1 + $0x120] sm:$0xff]   ;;  %v2249_v1 = vld [vmem:[%s2951_s0 + $0x12c] ss:$36 sps:$4 sm:$0xff]   ;;  %v2254_v5 = vld [vmem:[%s2950_s1 + $0x1d8] sm:$0xff]  }
  0x17   :  { %v2246_v63 = vld [vmem:[%s2950_s1 + $0x1a0] sm:$0xff]   ;;  %v2252_v4 = vld [vmem:[%s2951_s0 + $0x128] ss:$36 sps:$4 sm:$0xff]   ;;  %v2255_v6 = vld [vmem:[%s2950_s1 + $0x118] sm:$0xff]  }
  0x18   :  { %1866 = vmatpush3.bf16.msra.mxu0 %v2197_v22  ;;  %v2247_v0 = vld [vmem:[%s2951_s0 + $0x124] ss:$36 sps:$4 sm:$0xff]   ;;  %v2256_v7 = vld [vmem:[%s2950_s1 + $0x198] sm:$0xff]   ;;  %v2257_v8 = vld [vmem:[%s2951_s0 + $0x16c] ss:$36 sps:$4 sm:$0xff]  }
  0x19   :  { %1930 = vmatpush3.bf16.msra.mxu1 %v2198_v23  ;;  %1867 = vmatprep.subr.bf16.mxu0 %v2199_v24  ;;  %v2251_v2 = vld [vmem:[%s2951_s0 + $0x120] ss:$36 sps:$4 sm:$0xff]   ;;  %v2259_v9 = vld [vmem:[%s2951_s0 + $0x174] ss:$36 sps:$4 sm:$0xff]   ;;  %v2261_v12 = vld [vmem:[%s2951_s0 + $0x168] ss:$36 sps:$4 sm:$0xff]  }
  0x1a   :  { %1931 = vmatprep.subr.bf16.mxu1 %v2200_v25  ;;  %v2263_v10 = vld [vmem:[%s2950_s1 + $0x150] sm:$0xff]   ;;  %v2269_v17 = vld [vmem:[%s2951_s0 + $0x1bc] ss:$36 sps:$4 sm:$0xff]   ;;  %v2273_v18 = vld [vmem:[%s2950_s1 + $0x148] sm:$0xff]  }
  0x1b   :  { %v2264_v11 = vld [vmem:[%s2950_s1 + $0x1d0] sm:$0xff]   ;;  %v2274_v19 = vld [vmem:[%s2950_s1 + $0x1c8] sm:$0xff]   ;;  %v2272_v23 = vld [vmem:[%s2951_s0 + $0x1b8] ss:$36 sps:$4 sm:$0xff]  }
  0x1c   :  { %1868 = vmatpush3.bf16.msra.mxu0 %v2201_v26  ;;  %v2265_v13 = vld [vmem:[%s2950_s1 + $0x110] sm:$0xff]   ;;  %v2275_v20 = vld [vmem:[%s2950_s1 + $0x108] sm:$0xff]   ;;  %v2277_v24 = vld [vmem:[%s2951_s0 + $0x1fc] ss:$36 sps:$4 sm:$0xff]  }
  0x1d   :  { %1932 = vmatpush3.bf16.msra.mxu1 %v2202_v27  ;;  %1869 = vmatprep.subr.bf16.mxu0 %v2203_v28  ;;  %v2266_v14 = vld [vmem:[%s2950_s1 + $0x190] sm:$0xff]   ;;  %v2276_v21 = vld [vmem:[%s2950_s1 + $0x188] sm:$0xff]   ;;  %v2283_v26 = vld [vmem:[%s2950_s1 + $0x140] sm:$0xff]  }
  0x1e   :  { %1933 = vmatprep.subr.bf16.mxu1 %v2204_v29  ;;  %v2262_v15 = vld [vmem:[%s2951_s0 + $0x170] ss:$36 sps:$4 sm:$0xff]   ;;  %v2279_v25 = vld [vmem:[%s2951_s0 + $0x204] ss:$36 sps:$4 sm:$0xff]  }
  0x1f   :  { %v2267_v16 = vld [vmem:[%s2951_s0 + $0x1b4] ss:$36 sps:$4 sm:$0xff]   ;;  %v2284_v27 = vld [vmem:[%s2950_s1 + $0x1c0] sm:$0xff]  }
  0x20   :  { %1870 = vmatpush3.bf16.msra.mxu0 %v2205_v30  ;;  %v2271_v22 = vld [vmem:[%s2951_s0 + $0x1b0] ss:$36 sps:$4 sm:$0xff]   ;;  %v2285_v28 = vld [vmem:[%s2950_s1 + $0x100] sm:$0xff]   ;;  %v2281_v30 = vld [vmem:[%s2951_s0 + $0x1f8] ss:$36 sps:$4 sm:$0xff]  }
  0x21   :  { %1934 = vmatpush3.bf16.msra.mxu1 %v2206_v31  ;;  %1983 = vmatprep.subr.bf16.mxu0 %v2213_v36  ;;  %v2286_v29 = vld [vmem:[%s2950_s1 + $0x180] sm:$0xff]   ;;  %v2289_v33 = vld [vmem:[%s2951_s0 + $0x14] ss:$36 sps:$4 sm:$0xff]  }
  0x22   :  { %2047 = vmatprep.subr.bf16.mxu1 %v2214_v37  ;;  %v2282_v31 = vld [vmem:[%s2951_s0 + $0x200] ss:$36 sps:$4 sm:$0xff]   ;;  %v2287_v35 = vld [vmem:[%s2951_s0 + $0x10] ss:$36 sps:$4 sm:$0xff]   ;;  %v2290_v36 = vld [vmem:[%s2951_s0 + $0x18] ss:$36 sps:$4 sm:$0xff]  }
  0x23   :  { %1079 = vmatmul.mubr.bf16.vlgmr.msra.gmra.mxu0 %v2207_v32  ;;  %v2293_v32 = vld [vmem:[%s2950_s1 + $0x238] sm:$0xff]  }
  0x24   :  { %1176 = vmatmul.mubr.bf16.vlgmr.msra.gmra.mxu1 %v2210_v34  ;;  %1984 = vmatpush3.bf16.msra.mxu0 %v2215_v38  ;;  %v2292_v34 = vld [vmem:[%s2951_s0 + $0x1c] ss:$36 sps:$4 sm:$0xff]   ;;  %v2296_v38 = vld [vmem:[%s2951_s0 + $0x64] ss:$36 sps:$4 sm:$0xff]  }
  0x25   :  { %2048 = vmatpush3.bf16.msra.mxu1 %v2216_v39  ;;  %1086 = vmatprep.mubr.bf16.mxu0 %v2217_v40  ;;  %v2294_v37 = vld [vmem:[%s2951_s0 + $0x5c] ss:$36 sps:$4 sm:$0xff]   ;;  %v2300_v39 = vld [vmem:[%s2950_s1 + $0x230] sm:$0xff]   ;;  %v2307_v40 = vld [vmem:[%s2950_s1 + $0x228] sm:$0xff]  }
  0x26   :  { %1183 = vmatprep.mubr.bf16.mxu1 %v2219_v41  ;;  %1985 = vmatprep.subr.bf16.mxu0 %v2223_v44  ;;  %v2298_v41 = vld [vmem:[%s2951_s0 + $0x58] ss:$36 sps:$4 sm:$0xff]   ;;  %v2303_v44 = vld [vmem:[%s2951_s0 + $0xac] ss:$36 sps:$4 sm:$0xff]  }
  0x27   :  { %2049 = vmatprep.subr.bf16.mxu1 %v2224_v45  ;;  %v2314_v45 = vld [vmem:[%s2950_s1 + $0x220] sm:$0xff]  }
  0x28   :  { %1986 = vmatpush3.bf16.msra.mxu0 %v2225_v46  ;;  %v2321_v46 = vld [vmem:[%s2950_s1 + $0x218] sm:$0xff]  }
  0x29   :  { %2050 = vmatpush3.bf16.msra.mxu1 %v2226_v47  ;;  %1987 = vmatprep.subr.bf16.mxu0 %v2233_v52  ;;  %v2305_v47 = vld [vmem:[%s2951_s0 + $0xa0] ss:$36 sps:$4 sm:$0xff]   ;;  %v2312_v52 = vld [vmem:[%s2951_s0 + $0xe8] ss:$36 sps:$4 sm:$0xff]  }
  0x2a   :  { %2051 = vmatprep.subr.bf16.mxu1 %v2234_v53  ;;  %v2335_v53 = vld [vmem:[%s2950_s1 + $0x208] sm:$0xff]  }
  0x2b   :  { %1087 = vmatmul.mubr.bf16.gmra.mxu0 %v2221_v42  ;;  %v2299_v42 = vld [vmem:[%s2951_s0 + $0x60] ss:$36 sps:$4 sm:$0xff]  }
  0x2c   :  { %1184 = vmatmul.mubr.bf16.gmra.mxu1 %v2222_v43  ;;  %1094 = vmatprep.mubr.bf16.mxu0 %v2227_v48  ;;  %v2301_v43 = vld [vmem:[%s2951_s0 + $0xa4] ss:$36 sps:$4 sm:$0xff]  }
  0x2d   :  { %1191 = vmatprep.mubr.bf16.mxu1 %v2229_v49  ;;  %1988 = vmatpush3.bf16.msra.mxu0 %v2235_v54  ;;  %v2306_v48 = vld [vmem:[%s2951_s0 + $0xa8] ss:$36 sps:$4 sm:$0xff]   ;;  %v2313_v54 = vld [vmem:[%s2951_s0 + $0xf0] ss:$36 sps:$4 sm:$0xff]  }
  0x2e   :  { %2052 = vmatpush3.bf16.msra.mxu1 %v2236_v55  ;;  %1989 = vmatprep.subr.bf16.mxu0 %v2243_v60  ;;  %v2308_v49 = vld [vmem:[%s2951_s0 + $0xec] ss:$36 sps:$4 sm:$0xff]   ;;  %v2315_v55 = vld [vmem:[%s2951_s0 + $0x134] ss:$36 sps:$4 sm:$0xff]   ;;  %v2322_v60 = vld [vmem:[%s2951_s0 + $0x17c] ss:$36 sps:$4 sm:$0xff]  }
  0x2f   :  { %2053 = vmatprep.subr.bf16.mxu1 %v2244_v61  ;;  %v2324_v61 = vld [vmem:[%s2951_s0 + $0x184] ss:$36 sps:$4 sm:$0xff]  }
  0x31   :  { %1990 = vmatpush3.bf16.msra.mxu0 %v2245_v62  ;;  %v2326_v62 = vld [vmem:[%s2951_s0 + $0x178] ss:$36 sps:$4 sm:$0xff]  }
  0x32   :  { %2054 = vmatpush3.bf16.msra.mxu1 %v2246_v63  ;;  %1991 = vmatprep.subr.bf16.mxu0 %v2253_v3  ;;  %v2327_v63 = vld [vmem:[%s2951_s0 + $0x180] ss:$36 sps:$4 sm:$0xff]   ;;  %v2334_v3 = vld [vmem:[%s2951_s0 + $0x1c8] ss:$36 sps:$4 sm:$0xff]  }
  0x33   :  { %1095 = vmatmul.mubr.bf16.gmra.mxu0 %v2231_v50  ;;  %2055 = vmatprep.subr.bf16.mxu1 %v2254_v5  ;;  %v2310_v50 = vld [vmem:[%s2951_s0 + $0xf4] ss:$36 sps:$4 sm:$0xff]  }
  0x34   :  { %1192 = vmatmul.mubr.bf16.gmra.mxu1 %v2232_v51  ;;  %1102 = vmatprep.mubr.bf16.mxu0 %v2237_v56  ;;  %v2328_v51 = vld [vmem:[%s2950_s1 + $0x210] sm:$0xff]   ;;  %v2317_v56 = vld [vmem:[%s2951_s0 + $0x13c] ss:$36 sps:$4 sm:$0xff]  }
  0x35   :  { %1199 = vmatprep.mubr.bf16.mxu1 %v2239_v57  ;;  %1992 = vmatpush3.bf16.msra.mxu0 %v2255_v6  ;;  %v2342_v57 = vld [vmem:[%s2950_s1 + $0x200] sm:$0xff]   ;;  %v2338_v5 = vld [vmem:[%s2951_s0 + $0x214] ss:$36 sps:$4 sm:$0xff]   ;;  %v2340_v6 = vld [vmem:[%s2951_s0 + $0x208] ss:$36 sps:$4 sm:$0xff]  }
  0x36   :  { %2056 = vmatpush3.bf16.msra.mxu1 %v2256_v7  ;;  %1993 = vmatprep.subr.bf16.mxu0 %v2263_v10  ;;  %v2341_v7 = vld [vmem:[%s2951_s0 + $0x210] ss:$36 sps:$4 sm:$0xff]   ;;  %v2345_v10 = vld [vmem:[%s2951_s0 + $0x68] ss:$36 sps:$4 sm:$0xff]  }
  0x37   :  { %2057 = vmatprep.subr.bf16.mxu1 %v2264_v11  ;;  %v2346_v11 = vld [vmem:[%s2951_s0 + $0x188] ss:$36 sps:$4 sm:$0xff]  }
  0x39   :  { %1994 = vmatpush3.bf16.msra.mxu0 %v2265_v13  ;;  %v2348_v13 = vld [vmem:[%s2951_s0 + $0x1d0] ss:$36 sps:$4 sm:$0xff]  }
  0x3a   :  { %2058 = vmatpush3.bf16.msra.mxu1 %v2266_v14  ;;  %1995 = vmatprep.subr.bf16.mxu0 %v2273_v18  ;;  %v2349_v14 = vld [vmem:[%s2951_s0 + $0xf8] ss:$36 sps:$4 sm:$0xff]   ;;  %v2806_v18 = vld [vmem:[%s2952_s2] ss:$0 sm:$0xff] }
  0x3b   :  { %1103 = vmatmul.mubr.bf16.gmra.mxu0 %v2241_v58  ;;  %2059 = vmatprep.subr.bf16.mxu1 %v2274_v19  ;;  %v2319_v58 = vld [vmem:[%s2951_s0 + $0x130] ss:$36 sps:$4 sm:$0xff]  }
  0x3c   :  { %1200 = vmatmul.mubr.bf16.gmra.mxu1 %v2242_v59  ;;  %1110 = vmatprep.mubr.bf16.mxu0 %v2247_v0  ;;  %v2320_v59 = vld [vmem:[%s2951_s0 + $0x138] ss:$36 sps:$4 sm:$0xff]   ;;  %v2329_v0 = vld [vmem:[%s2951_s0 + $0x1c4] ss:$36 sps:$4 sm:$0xff]  }
  0x3d   :  { %1207 = vmatprep.mubr.bf16.mxu1 %v2249_v1  ;;  %1996 = vmatpush3.bf16.msra.mxu0 %v2275_v20  ;;  %v2331_v1 = vld [vmem:[%s2951_s0 + $0x1cc] ss:$36 sps:$4 sm:$0xff]  }
  0x3e   :  { %2060 = vmatpush3.bf16.msra.mxu1 %v2276_v21  ;;  %1997 = vmatprep.subr.bf16.mxu0 %v2283_v26 }
  0x3f   :  { %2061 = vmatprep.subr.bf16.mxu1 %v2284_v27 }
  0x41   :  { %1998 = vmatpush3.bf16.msra.mxu0 %v2285_v28 }
  0x42   :  { %2062 = vmatpush3.bf16.msra.mxu1 %v2286_v29  ;;  %2127 = vmatprep.subr.bf16.mxu0 %v2293_v32 }
  0x43   :  { %1111 = vmatmul.mubr.bf16.gmra.mxu0 %v2251_v2  ;;  %2159 = vmatprep.subr.bf16.mxu1 %v2293_v32  ;;  %v2333_v2 = vld [vmem:[%s2951_s0 + $0x1c0] ss:$36 sps:$4 sm:$0xff]  }
  0x44   :  { %1208 = vmatmul.mubr.bf16.gmra.mxu1 %v2252_v4  ;;  %1118 = vmatprep.mubr.bf16.mxu0 %v2257_v8  ;;  %v2336_v4 = vld [vmem:[%s2951_s0 + $0x20c] ss:$36 sps:$4 sm:$0xff]   ;;  %v2343_v8 = vld [vmem:[%s2951_s0 + $0x20] ss:$36 sps:$4 sm:$0xff]  }
  0x45   :  { %1215 = vmatprep.mubr.bf16.mxu1 %v2259_v9  ;;  %v2344_v9 = vld [vmem:[%s2951_s0 + $0x140] ss:$36 sps:$4 sm:$0xff]  }
  0x4b   :  { %1119 = vmatmul.mubr.bf16.gmra.mxu0 %v2261_v12  ;;  %v2347_v12 = vld [vmem:[%s2951_s0 + $0xb0] ss:$36 sps:$4 sm:$0xff]  }
  0x4c   :  { %1216 = vmatmul.mubr.bf16.gmra.mxu1 %v2262_v15  ;;  %1126 = vmatprep.mubr.bf16.mxu0 %v2267_v16  ;;  %v2350_v15 = vld [vmem:[%s2951_s0 + $0x218] ss:$36 sps:$4 sm:$0xff]  }
  0x4d   :  { %1223 = vmatprep.mubr.bf16.mxu1 %v2269_v17 }
  0x53   :  { %1127 = vmatmul.mubr.bf16.gmra.mxu0 %v2271_v22 }
  0x54   :  { %1224 = vmatmul.mubr.bf16.gmra.mxu1 %v2272_v23  ;;  %1134 = vmatprep.mubr.bf16.mxu0 %v2277_v24 }
  0x55   :  { %1231 = vmatprep.mubr.bf16.mxu1 %v2279_v25 }
  0x5b   :  { %1135 = vmatmul.mubr.bf16.gmra.mxu0 %v2281_v30 }
  0x5c   :  { %1232 = vmatmul.mubr.bf16.gmra.mxu1 %v2282_v31  ;;  %1272 = vmatprep.mubr.bf16.mxu0 %v2289_v33 }
  0x5d   :  { %1369 = vmatprep.mubr.bf16.mxu1 %v2292_v34 }
  0x63   :  { %1273 = vmatmul.mubr.bf16.vlgmr.msra.gmra.mxu0 %v2287_v35 }
  0x64   :  { %1370 = vmatmul.mubr.bf16.vlgmr.msra.gmra.mxu1 %v2290_v36  ;;  %2128 = vmatpush3.bf16.msra.mxu0 %v2293_v32 }
  0x65   :  { %2167 = vmatpush3.bf16.msra.mxu1 %v2293_v32  ;;  %1280 = vmatprep.mubr.bf16.mxu0 %v2294_v37 }
  0x66   :  { %1377 = vmatprep.mubr.bf16.mxu1 %v2296_v38  ;;  %2129 = vmatprep.subr.bf16.mxu0 %v2300_v39 }
  0x67   :  { %2160 = vmatprep.subr.bf16.mxu1 %v2300_v39 }
  0x68   :  { %2130 = vmatpush3.bf16.msra.mxu0 %v2300_v39 }
  0x69   :  { %2168 = vmatpush3.bf16.msra.mxu1 %v2300_v39  ;;  %2131 = vmatprep.subr.bf16.mxu0 %v2307_v40 }
  0x6a   :  { %2161 = vmatprep.subr.bf16.mxu1 %v2307_v40 }
  0x6b   :  { %1281 = vmatmul.mubr.bf16.gmra.mxu0 %v2298_v41 }
  0x6c   :  { %1378 = vmatmul.mubr.bf16.gmra.mxu1 %v2299_v42  ;;  %1288 = vmatprep.mubr.bf16.mxu0 %v2301_v43 }
  0x6d   :  { %1385 = vmatprep.mubr.bf16.mxu1 %v2303_v44  ;;  %2132 = vmatpush3.bf16.msra.mxu0 %v2307_v40 }
  0x6e   :  { %2169 = vmatpush3.bf16.msra.mxu1 %v2307_v40  ;;  %2133 = vmatprep.subr.bf16.mxu0 %v2314_v45 }
  0x6f   :  { %2162 = vmatprep.subr.bf16.mxu1 %v2314_v45 }
  0x71   :  { %2134 = vmatpush3.bf16.msra.mxu0 %v2314_v45 }
  0x72   :  { %2170 = vmatpush3.bf16.msra.mxu1 %v2314_v45  ;;  %2135 = vmatprep.subr.bf16.mxu0 %v2321_v46 }
  0x73   :  { %1289 = vmatmul.mubr.bf16.gmra.mxu0 %v2305_v47  ;;  %2163 = vmatprep.subr.bf16.mxu1 %v2321_v46 }
  0x74   :  { %1386 = vmatmul.mubr.bf16.gmra.mxu1 %v2306_v48  ;;  %1296 = vmatprep.mubr.bf16.mxu0 %v2308_v49 }
  0x75   :  { %1393 = vmatprep.mubr.bf16.mxu1 %v2310_v50  ;;  %2136 = vmatpush3.bf16.msra.mxu0 %v2321_v46 }
  0x76   :  { %2171 = vmatpush3.bf16.msra.mxu1 %v2321_v46  ;;  %2137 = vmatprep.subr.bf16.mxu0 %v2328_v51 }
  0x77   :  { %2164 = vmatprep.subr.bf16.mxu1 %v2328_v51 }
  0x79   :  { %2138 = vmatpush3.bf16.msra.mxu0 %v2328_v51 }
  0x7a   :  { %2172 = vmatpush3.bf16.msra.mxu1 %v2328_v51  ;;  %2139 = vmatprep.subr.bf16.mxu0 %v2335_v53 }
  0x7b   :  { %1297 = vmatmul.mubr.bf16.gmra.mxu0 %v2312_v52  ;;  %2165 = vmatprep.subr.bf16.mxu1 %v2335_v53 }
  0x7c   :  { %1394 = vmatmul.mubr.bf16.gmra.mxu1 %v2313_v54  ;;  %1304 = vmatprep.mubr.bf16.mxu0 %v2315_v55 }
  0x7d   :  { %1401 = vmatprep.mubr.bf16.mxu1 %v2317_v56  ;;  %2140 = vmatpush3.bf16.msra.mxu0 %v2335_v53 }
  0x7e   :  { %2173 = vmatpush3.bf16.msra.mxu1 %v2335_v53  ;;  %2141 = vmatprep.subr.bf16.mxu0 %v2342_v57 }
  0x7f   :  { %2166 = vmatprep.subr.bf16.mxu1 %v2342_v57 }
  0x81   :  { %2142 = vmatpush3.bf16.msra.mxu0 %v2342_v57 }
  0x82   :  { %2174 = vmatpush3.bf16.msra.mxu1 %v2342_v57 }
  0x83   :  { %1305 = vmatmul.mubr.bf16.gmra.mxu0 %v2319_v58 }
  0x84   :  { %1402 = vmatmul.mubr.bf16.gmra.mxu1 %v2320_v59  ;;  %1312 = vmatprep.mubr.bf16.mxu0 %v2322_v60 }
  0x85   :  { %1409 = vmatprep.mubr.bf16.mxu1 %v2324_v61 }
  0x8b   :  { %1313 = vmatmul.mubr.bf16.gmra.mxu0 %v2326_v62 }
  0x8c   :  { %1410 = vmatmul.mubr.bf16.gmra.mxu1 %v2327_v63  ;;  %1320 = vmatprep.mubr.bf16.mxu0 %v2329_v0 }
  0x8d   :  { %1417 = vmatprep.mubr.bf16.mxu1 %v2331_v1 }
  0x93   :  { %1321 = vmatmul.mubr.bf16.gmra.mxu0 %v2333_v2 }
  0x94   :  { %1418 = vmatmul.mubr.bf16.gmra.mxu1 %v2334_v3  ;;  %1328 = vmatprep.mubr.bf16.mxu0 %v2336_v4 }
  0x95   :  { %1425 = vmatprep.mubr.bf16.mxu1 %v2338_v5 }
  0x9b   :  { %1329 = vmatmul.mubr.bf16.gmra.mxu0 %v2340_v6 }
  0x9c   :  { %1426 = vmatmul.mubr.bf16.gmra.mxu1 %v2341_v7  ;;  %2143 = vmatprep.mubr.bf16.mxu0 %v2343_v8 }
  0x9d   :  { %2151 = vmatprep.mubr.bf16.mxu1 %v2344_v9 }
  0xa3   :  { %2144 = vmatmul.mubr.bf16.vlgmr.msra.gmra.mxu0 %v2345_v10 }
  0xa4   :  { %2152 = vmatmul.mubr.bf16.vlgmr.msra.gmra.mxu1 %v2346_v11  ;;  %2147 = vmatprep.mubr.bf16.mxu0 %v2347_v12 }
  0xa5   :  { %2155 = vmatprep.mubr.bf16.mxu1 %v2348_v13 }
  0xab   :  { %2148 = vmatmul.mubr.bf16.gmra.mxu0 %v2349_v14 }
  0xac   :  { %2156 = vmatmul.mubr.bf16.gmra.mxu1 %v2350_v15 }
  0xe3   :  { %v1871_v16 = vpop.f32.mrf.mxu0 }
  0xe4   :  { %v1935_v17 = vpop.f32.mrf.mxu1 }
  0xe5   :  { %v1872_v19 = vpop.f32.mrf.mxu0 }
  0xe6   :  { %v1873_v20 = vadd.f32 %v1872_v19, %v1871_v16  ;;  %v1936_v21 = vpop.f32.mrf.mxu1 }
  0xe7   :  { %v1937_v22 = vadd.f32 %v1936_v21, %v1935_v17  ;;  %v1874_v23 = vpop.f32.mrf.mxu0 }
  0xe8   :  { %v1081_v24 = vadd.f32 %v1873_v20, %v2806_v18  ;;  %v1938_v25 = vpop.f32.mrf.mxu1 }
  0xe9   :  { %v1875_v26 = vpop.f32.mrf.mxu0 }
  0xea   :  { %v2809_v27 = vadd.f32 %v1937_v22, %v1081_v24  ;;  %v1876_v28 = vadd.f32 %v1875_v26, %v1874_v23  ;;  %v1939_v29 = vpop.f32.mrf.mxu1 }
  0xeb   :  { %v1940_v30 = vadd.f32 %v1939_v29, %v1938_v25  ;;  %v1877_v31 = vpop.f32.mrf.mxu0 }
  0xec   :  { %v1084_v32 = vadd.f32 %v1876_v28, %v2806_v18  ;;  %v1941_v33 = vpop.f32.mrf.mxu1 }
  0xed   :  { %v1878_v34 = vpop.f32.mrf.mxu0 }
  0xee   :  { %v2812_v35 = vadd.f32 %v1940_v30, %v1084_v32  ;;  %v1879_v36 = vadd.f32 %v1878_v34, %v1877_v31  ;;  %v1942_v37 = vpop.f32.mrf.mxu1 }
  0xef   :  { %v1943_v38 = vadd.f32 %v1942_v37, %v1941_v33  ;;  %v1880_v39 = vpop.f32.mrf.mxu0 }
  0xf0   :  { %v1089_v40 = vadd.f32 %v1879_v36, %v2806_v18  ;;  %v1944_v41 = vpop.f32.mrf.mxu1 }
  0xf1   :  { %v1881_v42 = vpop.f32.mrf.mxu0 }
  0xf2   :  { %v2815_v43 = vadd.f32 %v1943_v38, %v1089_v40  ;;  %v1882_v44 = vadd.f32 %v1881_v42, %v1880_v39  ;;  %v1945_v45 = vpop.f32.mrf.mxu1 }
  0xf3   :  { %v1946_v46 = vadd.f32 %v1945_v45, %v1944_v41  ;;  %v1883_v47 = vpop.f32.mrf.mxu0 }
  0xf4   :  { %v1092_v48 = vadd.f32 %v1882_v44, %v2806_v18  ;;  %v1947_v49 = vpop.f32.mrf.mxu1 }
  0xf5   :  { %v1884_v50 = vpop.f32.mrf.mxu0 }
  0xf6   :  { %v2818_v51 = vadd.f32 %v1946_v46, %v1092_v48  ;;  %v1885_v52 = vadd.f32 %v1884_v50, %v1883_v47  ;;  %v1948_v53 = vpop.f32.mrf.mxu1 }
  0xf7   :  { %v1949_v54 = vadd.f32 %v1948_v53, %v1947_v49  ;;  %v1886_v55 = vpop.f32.mrf.mxu0 }
  0xf8   :  { %v1097_v56 = vadd.f32 %v1885_v52, %v2806_v18  ;;  %v1950_v57 = vpop.f32.mrf.mxu1 }
  0xf9   :  { %v1887_v58 = vpop.f32.mrf.mxu0 }
  0xfa   :  { %v2821_v59 = vadd.f32 %v1949_v54, %v1097_v56  ;;  %v1888_v60 = vadd.f32 %v1887_v58, %v1886_v55  ;;  %v1951_v61 = vpop.f32.mrf.mxu1 }
  0xfb   :  { %v1952_v62 = vadd.f32 %v1951_v61, %v1950_v57  ;;  %v1889_v63 = vpop.f32.mrf.mxu0 }
  0xfc   :  { %v1100_v0 = vadd.f32 %v1888_v60, %v2806_v18  ;;  %v1953_v1 = vpop.f32.mrf.mxu1 }
  0xfd   :  { %v1890_v2 = vpop.f32.mrf.mxu0 }
  0xfe   :  { %v2824_v3 = vadd.f32 %v1952_v62, %v1100_v0  ;;  %v1891_v4 = vadd.f32 %v1890_v2, %v1889_v63  ;;  %v1954_v5 = vpop.f32.mrf.mxu1 }
  0xff   :  { %v1955_v6 = vadd.f32 %v1954_v5, %v1953_v1  ;;  %v1892_v7 = vpop.f32.mrf.mxu0 }
 0x100   :  { %2954 = vst [vmem:[#allocation2_spill] sm:$0xff] %v2824_v3  ;;  %v1105_v8 = vadd.f32 %v1891_v4, %v2806_v18  ;;  %v1956_v9 = vpop.f32.mrf.mxu1 }
 0x101   :  { %v1893_v10 = vpop.f32.mrf.mxu0 }
 0x102   :  { %v2827_v11 = vadd.f32 %v1955_v6, %v1105_v8  ;;  %v1894_v12 = vadd.f32 %v1893_v10, %v1892_v7  ;;  %v1957_v13 = vpop.f32.mrf.mxu1 }
 0x103   :  { %v1958_v14 = vadd.f32 %v1957_v13, %v1956_v9  ;;  %v1895_v15 = vpop.f32.mrf.mxu0 }
 0x104   :  { %v1108_v16 = vadd.f32 %v1894_v12, %v2806_v18  ;;  %v1959_v17 = vpop.f32.mrf.mxu1 }
 0x105   :  { %v1896_v19 = vpop.f32.mrf.mxu0 }
 0x106   :  { %v2830_v20 = vadd.f32 %v1958_v14, %v1108_v16  ;;  %v1897_v21 = vadd.f32 %v1896_v19, %v1895_v15  ;;  %v1960_v22 = vpop.f32.mrf.mxu1 }
 0x107   :  { %v1961_v23 = vadd.f32 %v1960_v22, %v1959_v17  ;;  %v1898_v24 = vpop.f32.mrf.mxu0 }
 0x108   :  { %2955 = vst [vmem:[#allocation3_spill] sm:$0xff] %v2830_v20  ;;  %v1113_v25 = vadd.f32 %v1897_v21, %v2806_v18  ;;  %v1962_v26 = vpop.f32.mrf.mxu1 }
 0x109   :  { %v1899_v28 = vpop.f32.mrf.mxu0 }
 0x10a   :  { %v2833_v29 = vadd.f32 %v1961_v23, %v1113_v25  ;;  %v1900_v30 = vadd.f32 %v1899_v28, %v1898_v24  ;;  %v1963_v31 = vpop.f32.mrf.mxu1 }
 0x10b   :  { %v1964_v32 = vadd.f32 %v1963_v31, %v1962_v26  ;;  %v1901_v33 = vpop.f32.mrf.mxu0 }
 0x10c   :  { %v1116_v34 = vadd.f32 %v1900_v30, %v2806_v18  ;;  %v1965_v36 = vpop.f32.mrf.mxu1 }
 0x10d   :  { %v1902_v37 = vpop.f32.mrf.mxu0 }
 0x10e   :  { %v2836_v38 = vadd.f32 %v1964_v32, %v1116_v34  ;;  %v1903_v39 = vadd.f32 %v1902_v37, %v1901_v33  ;;  %v1966_v40 = vpop.f32.mrf.mxu1 }
 0x10f   :  { %v1967_v41 = vadd.f32 %v1966_v40, %v1965_v36  ;;  %v1904_v42 = vpop.f32.mrf.mxu0 }
 0x110   :  { %2956 = vst [vmem:[#allocation4_spill] sm:$0xff] %v2836_v38  ;;  %v1121_v44 = vadd.f32 %v1903_v39, %v2806_v18  ;;  %v1968_v45 = vpop.f32.mrf.mxu1 }
 0x111   :  { %v1905_v46 = vpop.f32.mrf.mxu0 }
 0x112   :  { %v2839_v47 = vadd.f32 %v1967_v41, %v1121_v44  ;;  %v1906_v48 = vadd.f32 %v1905_v46, %v1904_v42  ;;  %v1969_v49 = vpop.f32.mrf.mxu1 }
 0x113   :  { %v1970_v50 = vadd.f32 %v1969_v49, %v1968_v45  ;;  %v1907_v52 = vpop.f32.mrf.mxu0 }
 0x114   :  { %v1124_v53 = vadd.f32 %v1906_v48, %v2806_v18  ;;  %v1971_v54 = vpop.f32.mrf.mxu1 }
 0x115   :  { %v1908_v55 = vpop.f32.mrf.mxu0 }
 0x116   :  { %v2842_v56 = vadd.f32 %v1970_v50, %v1124_v53  ;;  %v1909_v57 = vadd.f32 %v1908_v55, %v1907_v52  ;;  %v1972_v58 = vpop.f32.mrf.mxu1 }
 0x117   :  { %v1973_v60 = vadd.f32 %v1972_v58, %v1971_v54  ;;  %v1910_v61 = vpop.f32.mrf.mxu0 }
 0x118   :  { %2957 = vst [vmem:[#allocation5_spill] sm:$0xff] %v2842_v56  ;;  %v1129_v62 = vadd.f32 %v1909_v57, %v2806_v18  ;;  %v1974_v63 = vpop.f32.mrf.mxu1 }
 0x119   :  { %v1911_v0 = vpop.f32.mrf.mxu0 }
 0x11a   :  { %v2845_v1 = vadd.f32 %v1973_v60, %v1129_v62  ;;  %v1912_v2 = vadd.f32 %v1911_v0, %v1910_v61  ;;  %v1975_v4 = vpop.f32.mrf.mxu1 }
 0x11b   :  { %v1976_v5 = vadd.f32 %v1975_v4, %v1974_v63  ;;  %v1913_v6 = vpop.f32.mrf.mxu0 }
 0x11c   :  { %2958 = vst [vmem:[#allocation6_spill] sm:$0xff] %v2845_v1  ;;  %v1132_v7 = vadd.f32 %v1912_v2, %v2806_v18  ;;  %v1977_v8 = vpop.f32.mrf.mxu1 }
 0x11d   :  { %v1914_v9 = vpop.f32.mrf.mxu0 }
 0x11e   :  { %v2848_v10 = vadd.f32 %v1976_v5, %v1132_v7  ;;  %v1915_v12 = vadd.f32 %v1914_v9, %v1913_v6  ;;  %v1978_v13 = vpop.f32.mrf.mxu1 }
 0x11f   :  { %v1979_v14 = vadd.f32 %v1978_v13, %v1977_v8  ;;  %v1916_v15 = vpop.f32.mrf.mxu0 }
 0x120   :  { %2959 = vst [vmem:[#allocation7_spill] sm:$0xff] %v2848_v10  ;;  %v1137_v16 = vadd.f32 %v1915_v12, %v2806_v18  ;;  %v1980_v17 = vpop.f32.mrf.mxu1 }
 0x121   :  { %v1917_v19 = vpop.f32.mrf.mxu0 }
 0x122   :  { %v2851_v21 = vadd.f32 %v1979_v14, %v1137_v16  ;;  %v1918_v22 = vadd.f32 %v1917_v19, %v1916_v15  ;;  %v1981_v23 = vpop.f32.mrf.mxu1 }
 0x123   :  { %v1982_v24 = vadd.f32 %v1981_v23, %v1980_v17  ;;  %v1999_v25 = vpop.f32.mrf.mxu0 }
 0x124   :  { %2960 = vst [vmem:[#allocation8_spill] sm:$0xff] %v2851_v21  ;;  %v1140_v26 = vadd.f32 %v1918_v22, %v2806_v18  ;;  %v2063_v28 = vpop.f32.mrf.mxu1 }
 0x125   :  { %v2000_v30 = vpop.f32.mrf.mxu0 }
 0x126   :  { %v2854_v31 = vadd.f32 %v1982_v24, %v1140_v26  ;;  %v2001_v32 = vadd.f32 %v2000_v30, %v1999_v25  ;;  %v2064_v33 = vpop.f32.mrf.mxu1 }
 0x127   :  { %v2002_v34 = vpop.f32.mrf.mxu0  ;;  %v2065_v37 = vadd.f32 %v2064_v33, %v2063_v28 }
 0x128   :  { %2961 = vst [vmem:[#allocation9_spill] sm:$0xff] %v2854_v31  ;;  %v1275_v36 = vadd.f32 %v2001_v32, %v2809_v27  ;;  %v2857_v39 = vpop.f32.mrf.mxu1 }
 0x129   :  { %v2003_v40 = vpop.f32.mrf.mxu0 }
 0x12a   :  { %v2859_v41 = vpop.f32.mrf.mxu1  ;;  %v2861_v42 = vadd.f32 %v2065_v37, %v1275_v36  ;;  %v2004_v10 = vadd.f32 %v2003_v40, %v2002_v34 }
 0x12b   :  { %v2005_v44 = vpop.f32.mrf.mxu0 }
 0x12c   :  { %2962 = vst [vmem:[#allocation10_spill] sm:$0xff] %v2861_v42  ;;  %v2069_v45 = vpop.f32.mrf.mxu1  ;;  %v1278_v56 = vadd.f32 %v2004_v10, %v2812_v35 }
 0x12d   :  { %v2006_v18 = vpop.f32.mrf.mxu0 }
 0x12e   :  { %v2070_v46 = vpop.f32.mrf.mxu1  ;;  %v2007_v42 = vadd.f32 %v2006_v18, %v2005_v44  ;;  %v2068_v44 = vadd.f32 %v2859_v41, %v2857_v39 }
 0x12f   :  { %v2008_v48 = vpop.f32.mrf.mxu0  ;;  %v2071_v18 = vadd.f32 %v2070_v46, %v2069_v45 }
 0x130   :  { %v2072_v49 = vpop.f32.mrf.mxu1 }
 0x131   :  { %v2009_v50 = vpop.f32.mrf.mxu0 }
 0x132   :  { %v2073_v52 = vpop.f32.mrf.mxu1  ;;  %v2010_v21 = vadd.f32 %v2009_v50, %v2008_v48 }
 0x133   :  { %v2011_v53 = vpop.f32.mrf.mxu0  ;;  %v2074_v48 = vadd.f32 %v2073_v52, %v2072_v49 }
 0x134   :  { %v2075_v54 = vpop.f32.mrf.mxu1 }
 0x135   :  { %v2012_v55 = vpop.f32.mrf.mxu0 }
 0x136   :  { %v2076_v27 = vpop.f32.mrf.mxu1 }
 0x137   :  { %v2014_v57 = vpop.f32.mrf.mxu0 }
 0x138   :  { %v2863_v58 = vpop.f32.mrf.mxu1 }
 0x139   :  { %v2015_v60 = vpop.f32.mrf.mxu0 }
 0x13a   :  { %v2865_v61 = vpop.f32.mrf.mxu1  ;;  %v2016_v35 = vadd.f32 %v2015_v60, %v2014_v57 }
 0x13b   :  { %v2017_v62 = vpop.f32.mrf.mxu0  ;;  %v2899_v41 = vadd.f32 %v2865_v61, %v2863_v58 }
 0x13c   :  { %v2867_v63 = vpop.f32.mrf.mxu1 }
 0x13d   :  { %v2018_v0 = vpop.f32.mrf.mxu0 }
 0x13e   :  { %v2082_v2 = vpop.f32.mrf.mxu1  ;;  %v2019_v38 = vadd.f32 %v2018_v0, %v2017_v62 }
 0x13f   :  { %v2020_v4 = vpop.f32.mrf.mxu0  ;;  %v2083_v45 = vadd.f32 %v2082_v2, %v2867_v63 }
 0x140   :  { %v2869_v5 = vpop.f32.mrf.mxu1 }
 0x141   :  { %2963 = vst [vmem:[#allocation11_spill] sm:$0xff] %v2869_v5  ;;  %v2021_v6 = vpop.f32.mrf.mxu0 }
 0x142   :  { %v2871_v7 = vpop.f32.mrf.mxu1  ;;  %v2022_v46 = vadd.f32 %v2021_v6, %v2020_v4 }
 0x143   :  { %2964 = vst [vmem:[#allocation12_spill] sm:$0xff] %v2871_v7  ;;  %v2023_v8 = vpop.f32.mrf.mxu0  ;;  %v2013_v7 = vadd.f32 %v2012_v55, %v2011_v53  ;;  %v2077_v55 = vadd.f32 %v2076_v27, %v2075_v54  ;;  %v2971_v27 = vld [vmem:[#allocation5_spill] sm:$0xff] }
 0x144   :  { %v2873_v9 = vpop.f32.mrf.mxu1 }
 0x145   :  { %2965 = vst [vmem:[#allocation13_spill] sm:$0xff] %v2873_v9  ;;  %v2024_v12 = vpop.f32.mrf.mxu0  ;;  %v1291_v34 = vadd.f32 %v2013_v7, %v2821_v59 }
 0x146   :  { %v2088_v13 = vpop.f32.mrf.mxu1  ;;  %v2025_v50 = vadd.f32 %v2024_v12, %v2023_v8 }
 0x147   :  { %v2026_v14 = vpop.f32.mrf.mxu0  ;;  %v2895_v39 = vadd.f32 %v2077_v55, %v1291_v34  ;;  %v2981_v55 = vld [vmem:[#allocation7_spill] sm:$0xff] }
 0x148   :  { %v2090_v15 = vpop.f32.mrf.mxu1  ;;  %v1307_v49 = vadd.f32 %v2025_v50, %v2833_v29 }
 0x149   :  { %v2027_v16 = vpop.f32.mrf.mxu0 }
 0x14a   :  { %v2091_v17 = vpop.f32.mrf.mxu1  ;;  %v2028_v10 = vadd.f32 %v2027_v16, %v2026_v14 }
 0x14b   :  { %v2029_v19 = vpop.f32.mrf.mxu0  ;;  %v2092_v14 = vadd.f32 %v2091_v17, %v2090_v15 }
 0x14c   :  { %v2093_v22 = vpop.f32.mrf.mxu1  ;;  %v2972_v8 = vld [vmem:[#allocation13_spill] sm:$0xff] }
 0x14d   :  { %v2030_v23 = vpop.f32.mrf.mxu0  ;;  %v2089_v12 = vadd.f32 %v2088_v13, %v2972_v8 }
 0x14e   :  { %v2094_v24 = vpop.f32.mrf.mxu1  ;;  %v2031_v40 = vadd.f32 %v2030_v23, %v2029_v19  ;;  %v2973_v23 = vld [vmem:[#allocation3_spill] sm:$0xff] }
 0x14f   :  { %v2032_v25 = vpop.f32.mrf.mxu0  ;;  %v2095_v54 = vadd.f32 %v2094_v24, %v2093_v22  ;;  %v1404_v24 = vadd.f32 %v2089_v12, %v1307_v49 }
 0x150   :  { %v2096_v26 = vpop.f32.mrf.mxu1  ;;  %v1315_v59 = vadd.f32 %v2031_v40, %v2839_v47 }
 0x151   :  { %v2033_v28 = vpop.f32.mrf.mxu0 }
 0x152   :  { %v2097_v30 = vpop.f32.mrf.mxu1  ;;  %v2034_v62 = vadd.f32 %v2033_v28, %v2032_v25  ;;  %v1412_v29 = vadd.f32 %v2095_v54, %v1315_v59  ;;  %v1302_v25 = vadd.f32 %v2022_v46, %v2973_v23  ;;  %v2974_v28 = vld [vmem:[#allocation11_spill] sm:$0xff]  ;;  %v2982_v46 = vld [vmem:[#allocation9_spill] sm:$0xff] }
 0x153   :  { %v2035_v32 = vpop.f32.mrf.mxu0  ;;  %v2098_v63 = vadd.f32 %v2097_v30, %v2096_v26  ;;  %v2978_v30 = vld [vmem:[#allocation8_spill] sm:$0xff] }
 0x154   :  { %v2875_v33 = vpop.f32.mrf.mxu1  ;;  %v1318_v57 = vadd.f32 %v2034_v62, %v2971_v27 }
 0x155   :  { %2966 = vst [vmem:[#allocation14_spill] sm:$0xff] %v2875_v33  ;;  %v2036_v36 = vpop.f32.mrf.mxu0  ;;  %v1283_v33 = vadd.f32 %v2007_v42, %v2815_v43  ;;  %v1299_v43 = vadd.f32 %v2019_v38, %v2827_v11  ;;  %v2969_v38 = vld [vmem:[#allocation2_spill] sm:$0xff] }
 0x156   :  { %v2877_v37 = vpop.f32.mrf.mxu1  ;;  %v2904_v52 = vadd.f32 %v2016_v35, %v2969_v38  ;;  %v2037_v2 = vadd.f32 %v2036_v36, %v2035_v32  ;;  %v1415_v15 = vadd.f32 %v2098_v63, %v1318_v57 }
 0x157   :  { %2967 = vst [vmem:[#allocation15_spill] sm:$0xff] %v2877_v37  ;;  %v2038_v31 = vpop.f32.mrf.mxu0  ;;  %v1286_v37 = vadd.f32 %v2010_v21, %v2818_v51  ;;  %v1375_v51 = vadd.f32 %v2068_v44, %v1278_v56  ;;  %v1380_v7 = vadd.f32 %v2071_v18, %v1283_v33  ;;  %v2970_v56 = vld [vmem:[#allocation4_spill] sm:$0xff]  ;;  %v1396_v16 = vadd.f32 %v2083_v45, %v1299_v43 }
 0x158   :  { %v2879_v1 = vpop.f32.mrf.mxu1  ;;  %v1310_v47 = vadd.f32 %v2028_v10, %v2970_v56  ;;  %v2975_v33 = vld [vmem:[#allocation12_spill] sm:$0xff] }
 0x159   :  { %2968 = vst [vmem:[#allocation16_spill] sm:$0xff] %v2879_v1  ;;  %v2039_v5 = vpop.f32.mrf.mxu0  ;;  %v1383_v19 = vadd.f32 %v2074_v48, %v1286_v37  ;;  %v2086_v37 = vadd.f32 %v2975_v33, %v2974_v28  ;;  %v2980_v48 = vld [vmem:[#allocation6_spill] sm:$0xff] }
 0x15a   :  { %v2881_v20 = vpop.f32.mrf.mxu1  ;;  %v2040_v4 = vadd.f32 %v2039_v5, %v2038_v31  ;;  %v2979_v5 = vld [vmem:[#allocation10_spill] sm:$0xff]  ;;  %v1323_v50 = vadd.f32 %v2037_v2, %v2980_v48 }
 0x15b   :  { %v2041_v9 = vpop.f32.mrf.mxu0 }
 0x15c   :  { %v2884_v3 = vpop.f32.mrf.mxu1  ;;  %v1326_v35 = vadd.f32 %v2040_v4, %v2981_v55  ;;  %v1399_v4 = vadd.f32 %v2086_v37, %v1302_v25  ;;  %v1391_v25 = vadd.f32 %v2899_v41, %v2904_v52 }
 0x15d   :  { %v2042_v1 = vpop.f32.mrf.mxu0 }
 0x15e   :  { %v2106_v53 = vpop.f32.mrf.mxu1  ;;  %v2043_v58 = vadd.f32 %v2042_v1, %v2041_v9  ;;  %v1407_v1 = vadd.f32 %v2092_v14, %v1310_v47  ;;  %v2976_v9 = vld [vmem:[#allocation14_spill] sm:$0xff]  ;;  %v2977_v17 = vld [vmem:[#allocation15_spill] sm:$0xff] }
 0x15f   :  { %v2044_v0 = vpop.f32.mrf.mxu0  ;;  %v2101_v26 = vadd.f32 %v2977_v17, %v2976_v9  ;;  %v2107_v43 = vadd.f32 %v2106_v53, %v2884_v3 }
 0x160   :  { %v2892_v42 = vpop.f32.mrf.mxu1  ;;  %v1331_v31 = vadd.f32 %v2043_v58, %v2978_v30 }
 0x161   :  { %v2045_v21 = vpop.f32.mrf.mxu0  ;;  %v1420_v63 = vadd.f32 %v2101_v26, %v1323_v50 }
 0x162   :  { %v2109_v11 = vpop.f32.mrf.mxu1  ;;  %v2046_v40 = vadd.f32 %v2045_v21, %v2044_v0 }
 0x163   :  { %v2145_v60 = vpop.f32.mrf.mxu0  ;;  %v2110_v12 = vadd.f32 %v2109_v11, %v2892_v42 }
 0x164   :  { %v2153_v61 = vpop.f32.mrf.mxu1  ;;  %v1477_v22 = vadd.f32 %v2145_v60, %v1380_v7  ;;  %v1334_v49 = vadd.f32 %v2046_v40, %v2982_v46  ;;  %v1428_v60 = vadd.f32 %v2107_v43, %v1331_v31 }
 0x165   :  { %v1468_v6 = vpop.f32.mrf.mxu0  ;;  %v1509_v44 = vadd.f32 %v2153_v61, %v1412_v29  ;;  %v2983_v29 = vld [vmem:[#allocation16_spill] sm:$0xff] }
 0x166   :  { %v1500_v34 = vpop.f32.mrf.mxu1  ;;  %v1469_v32 = vadd.f32 %v1468_v6, %v2979_v5  ;;  %v1533_v59 = vmax.f32 %v1477_v22, 0.0  ;;  %v2104_v6 = vadd.f32 %v2881_v20, %v2983_v29  ;;  %v1431_v28 = vadd.f32 %v2110_v12, %v1334_v49 }
 0x167   :  { %v2146_v13 = vpop.f32.mrf.mxu0  ;;  %v1501_v10 = vadd.f32 %v1500_v34, %v1404_v24  ;;  %v1541_v38 = vmax.f32 %v1509_v44, 0.0 }
 0x168   :  { %v1480_v36 = vadd.f32 %v2146_v13, %v1383_v19  ;;  %v2154_v18 = vpop.f32.mrf.mxu1  ;;  %v1531_v54 = vmax.f32 %v1469_v32, 0.0  ;;  %v1423_v34 = vadd.f32 %v2104_v6, %v1326_v35 }
 0x169   :  { %v1512_v62 = vadd.f32 %v2154_v18, %v1415_v15  ;;  %v1471_v0 = vpop.f32.mrf.mxu0  ;;  %v1539_v14 = vmax.f32 %v1501_v10, 0.0 }
 0x16a   :  { %v1534_v21 = vmax.f32 %v1480_v36, 0.0  ;;  %v1472_v7 = vadd.f32 %v1471_v0, %v1375_v51  ;;  %v1503_v45 = vpop.f32.mrf.mxu1 }
 0x16b   :  { %v1542_v56 = vmax.f32 %v1512_v62, 0.0  ;;  %v1504_v47 = vadd.f32 %v1503_v45, %v1407_v1  ;;  %v2149_v19 = vpop.f32.mrf.mxu0 }
 0x16c   :  { %v1816_v27 = vpack.c.bf16 %v1534_v21, %v1533_v59  ;;  %v1532_v57 = vmax.f32 %v1472_v7, 0.0  ;;  %v2157_v8 = vpop.f32.mrf.mxu1  ;;  %v1493_v61 = vadd.f32 %v2149_v19, %v1396_v16 }
 0x16d   :  { %v1836_v58 = vpack.c.bf16 %v1542_v56, %v1541_v38  ;;  %v1540_v3 = vmax.f32 %v1504_v47, 0.0  ;;  %v1484_v53 = vpop.f32.mrf.mxu0  ;;  %v1525_v11 = vadd.f32 %v2157_v8, %v1428_v60 }
 0x16e   :  { %1848 = vst [vmem:[%s2953_s3 + $0x8] sm:$0xff] %v1816_v27   ;;  %v1811_v51 = vpack.c.bf16 %v1532_v57, %v1531_v54  ;;  %v1516_v2 = vpop.f32.mrf.mxu1  ;;  %v1485_v16 = vadd.f32 %v1484_v53, %v2895_v39  ;;  %v1537_v40 = vmax.f32 %v1493_v61, 0.0 }
 0x16f   :  { %1852 = vst [vmem:[%s2953_s3 + $0x28] sm:$0xff] %v1836_v58   ;;  %v1831_v42 = vpack.c.bf16 %v1540_v3, %v1539_v14  ;;  %v2150_v23 = vpop.f32.mrf.mxu0  ;;  %v1517_v20 = vadd.f32 %v1516_v2, %v1420_v63  ;;  %v1545_v1 = vmax.f32 %v1525_v11, 0.0 }
 0x170   :  { %1812 = vst [vmem:[%s2953_s3] sm:$0xff] %v1811_v51   ;;  %v1496_v33 = vadd.f32 %v2150_v23, %v1399_v4  ;;  %v2158_v22 = vpop.f32.mrf.mxu1  ;;  %v1535_v17 = vmax.f32 %v1485_v16, 0.0 }
 0x171   :  { %1851 = vst [vmem:[%s2953_s3 + $0x20] sm:$0xff] %v1831_v42   ;;  %v1528_v37 = vadd.f32 %v2158_v22, %v1431_v28  ;;  %v1487_v24 = vpop.f32.mrf.mxu0  ;;  %v1543_v31 = vmax.f32 %v1517_v20, 0.0 }
 0x172   :  { %v1538_v44 = vmax.f32 %v1496_v33, 0.0  ;;  %v1488_v13 = vadd.f32 %v1487_v24, %v1391_v25  ;;  %v1519_v15 = vpop.f32.mrf.mxu1 }
 0x173   :  { %v1546_v9 = vmax.f32 %v1528_v37, 0.0  ;;  %v1520_v39 = vadd.f32 %v1519_v15, %v1423_v34 }
 0x174   :  { %v1826_v26 = vpack.c.bf16 %v1538_v44, %v1537_v40  ;;  %v1536_v30 = vmax.f32 %v1488_v13, 0.0 }
 0x175   :  { %v1846_v41 = vpack.c.bf16 %v1546_v9, %v1545_v1  ;;  %v1544_v52 = vmax.f32 %v1520_v39, 0.0 }
 0x176   :  { %1850 = vst [vmem:[%s2953_s3 + $0x18] sm:$0xff] %v1826_v26   ;;  %v1821_v5 = vpack.c.bf16 %v1536_v30, %v1535_v17 }
 0x177   :  { %1854 = vst [vmem:[%s2953_s3 + $0x38] sm:$0xff] %v1846_v41   ;;  %v1841_v32 = vpack.c.bf16 %v1544_v52, %v1543_v31 }
 0x178   :  { %1849 = vst [vmem:[%s2953_s3 + $0x10] sm:$0xff] %v1821_v5  }
 0x179   :  { %1853 = vst [vmem:[%s2953_s3 + $0x30] sm:$0xff] %v1841_v32  }

// kernel: generator_forward.15
= control target key start
LH: loop header
LB: loop body
LE: loop exit
PB: predicated region body
PF: predicated region fallthrough
CT: control target
= control target key end

     0   :  { %s2419_s12 = smov 0   ;;  %s2421_s13 = smov 0   ;;  %s2920_s0 = inlined_call_operand.vmem [shape: bf16[32,1152], index: 0, kind: input, shape index: {}]   ;;  %s2921_s1 = inlined_call_operand.vmem [shape: bf16[1152,256], index: 1, kind: input, shape index: {}]   ;;  %s2922_s2 = inlined_call_operand.vmem [shape: f32[1,256], index: 2, kind: input, shape index: {}]   ;;  %s2923_s3 = inlined_call_operand.vmem [shape: bf16[32,256], index: 3, kind: output, shape index: {}]  }
   0x1   :  { %s2423_s14 = smov 0   ;;  %s2425_s15 = smov 0  }
   0x2   :  { %s2427_s16 = smov 0  }
   0x3 LB: > { %s22_s17 = sadd.s32 1, %s2393_s15  ;;  %s1955_s18 = sadd.s32 4294967295, %s2397_s16   ;;  %s2397_s16 = sphi %s2427_s16, %s13_s16   ;;  %s2393_s15 = sphi %s2425_s15, %s2928_s15   ;;  %s2389_s14 = sphi %s2423_s14, %s2927_s14   ;;  %s2385_s13 = sphi %s2421_s13, %s2926_s13   ;;  %s2381_s12 = sphi %s2419_s12, %s2925_s12  }
   0x4   : > { %p23_p0 = scmp.ge.s32.totalorder %s22_s17, 2  ;;  %p65_p1 = scmp.ne.s32.totalorder %s2385_s13, %s2381_s12 }
   0x5   : > { %p66_p2 = scmp.eq.s32.totalorder %s2397_s16, 0  ;;  %p123_p4 = scmp.eq.s32.totalorder %s1955_s18, 1 }
   0x6   : > { %s2930_s17 = smov (%p23_p0, %s22_s17), 0  ;;  %s58_s20 = sadd.s32 1, %s2385_s13 }
   0x7   : > { %p67_p3 = por %p66_p2, %p65_p1  ;;  %s55_s19 = ssub.s32 %s2393_s15, %s2930_s17 }
   0x8   : > { %p56_p5 = scmp.eq.s32.totalorder %s55_s19, 0  ;;  %p2454_p6 = por %p123_p4, %p65_p1 }
   0x9   : > { %p1959_p7 = scmp.ge.s32.totalorder %s2397_s16, 2 }
   0xa   : > { %s2459_s22 = scalar_select %p56_p5, %s2385_s13, %s58_s20  }
   0xb   : > { %155 = sbr.rel (%p1959_p7) target bundleno = 116 (0x74), region = 20 }
  0x10   : > { %158 = sbr.rel (!%p67_p3) target bundleno = 116 (0x74), region = 24  ;;  %s160_s23 = sand.u32 (%p67_p3), 1, %s2385_s13  }
  0x11   : > { %s1960_s24 = sshll.u32 (%p67_p3), %s2393_s15, 2  ;;  %s2219_s25 = smul.u32 (%p67_p3), 576, %s160_s23 }
  0x12   : > { %s2467_s28 = scalar_lea.vmem (%p67_p3), %s2921_s1, %s1960_s24 }
  0x13   : > { %v181_v0 = vld [vmem:[%s2467_s28] sm:$0xf] (%p67_p3)  ;;  %v183_v1 = vld [vmem:[%s2467_s28 + $0x8] sm:$0xf] (%p67_p3)  ;;  %v185_v2 = vld [vmem:[%s2467_s28 + $0x10] sm:$0xf] (%p67_p3) }
  0x14   : > { %v187_v3 = vld [vmem:[%s2467_s28 + $0x18] sm:$0xf] (%p67_p3)  ;;  %v189_v4 = vld [vmem:[%s2467_s28 + $0x20] sm:$0xf] (%p67_p3)  ;;  %s2474_s29 = scalar_lea.vmem (%p67_p3), [#allocation2], %s2219_s25 }
  0x15   : > { %182 = vst [vmem:[%s2474_s29] sm:$0xf] %v181_v0  ;;  %184 = vst [vmem:[%s2474_s29 + $0x4] sm:$0xf] %v183_v1  ;;  %v191_v5 = vld [vmem:[%s2467_s28 + $0x28] sm:$0xf] }
  0x16   : > { %186 = vst [vmem:[%s2474_s29 + $0x8] sm:$0xf] %v185_v2  ;;  %188 = vst [vmem:[%s2474_s29 + $0xc] sm:$0xf] %v187_v3  ;;  %v193_v6 = vld [vmem:[%s2467_s28 + $0x30] sm:$0xf] }
  0x17   : > { %190 = vst [vmem:[%s2474_s29 + $0x10] sm:$0xf] %v189_v4  ;;  %v195_v7 = vld [vmem:[%s2467_s28 + $0x38] sm:$0xf]  ;;  %192 = vst [vmem:[%s2474_s29 + $0x14] sm:$0xf] %v191_v5 }
  0x18   : > { %194 = vst [vmem:[%s2474_s29 + $0x18] sm:$0xf] %v193_v6  ;;  %196 = vst [vmem:[%s2474_s29 + $0x1c] sm:$0xf] %v195_v7  ;;  %v197_v8 = vld [vmem:[%s2467_s28 + $0x40] sm:$0xf] }
  0x19   : > { %v199_v9 = vld [vmem:[%s2467_s28 + $0x48] sm:$0xf]  ;;  %v201_v10 = vld [vmem:[%s2467_s28 + $0x50] sm:$0xf]  ;;  %198 = vst [vmem:[%s2474_s29 + $0x20] sm:$0xf] %v197_v8 }
  0x1a   : > { %200 = vst [vmem:[%s2474_s29 + $0x24] sm:$0xf] %v199_v9  ;;  %202 = vst [vmem:[%s2474_s29 + $0x28] sm:$0xf] %v201_v10  ;;  %v203_v11 = vld [vmem:[%s2467_s28 + $0x58] sm:$0xf] }
  0x1b   : > { %v205_v12 = vld [vmem:[%s2467_s28 + $0x60] sm:$0xf]  ;;  %v207_v13 = vld [vmem:[%s2467_s28 + $0x68] sm:$0xf]  ;;  %204 = vst [vmem:[%s2474_s29 + $0x2c] sm:$0xf] %v203_v11 }
  0x1c   : > { %206 = vst [vmem:[%s2474_s29 + $0x30] sm:$0xf] %v205_v12  ;;  %208 = vst [vmem:[%s2474_s29 + $0x34] sm:$0xf] %v207_v13  ;;  %v209_v14 = vld [vmem:[%s2467_s28 + $0x70] sm:$0xf] }
  0x1d   : > { %v211_v15 = vld [vmem:[%s2467_s28 + $0x78] sm:$0xf]  ;;  %v213_v16 = vld [vmem:[%s2467_s28 + $0x80] sm:$0xf]  ;;  %210 = vst [vmem:[%s2474_s29 + $0x38] sm:$0xf] %v209_v14 }
  0x1e   : > { %212 = vst [vmem:[%s2474_s29 + $0x3c] sm:$0xf] %v211_v15  ;;  %214 = vst [vmem:[%s2474_s29 + $0x40] sm:$0xf] %v213_v16  ;;  %v215_v17 = vld [vmem:[%s2467_s28 + $0x88] sm:$0xf] }
  0x1f   : > { %v217_v18 = vld [vmem:[%s2467_s28 + $0x90] sm:$0xf]  ;;  %v219_v19 = vld [vmem:[%s2467_s28 + $0x98] sm:$0xf]  ;;  %216 = vst [vmem:[%s2474_s29 + $0x44] sm:$0xf] %v215_v17 }
  0x20   : > { %218 = vst [vmem:[%s2474_s29 + $0x48] sm:$0xf] %v217_v18  ;;  %220 = vst [vmem:[%s2474_s29 + $0x4c] sm:$0xf] %v219_v19  ;;  %v221_v20 = vld [vmem:[%s2467_s28 + $0xa0] sm:$0xf] }
  0x21   : > { %v223_v21 = vld [vmem:[%s2467_s28 + $0xa8] sm:$0xf]  ;;  %v225_v22 = vld [vmem:[%s2467_s28 + $0xb0] sm:$0xf]  ;;  %222 = vst [vmem:[%s2474_s29 + $0x50] sm:$0xf] %v221_v20 }
  0x22   : > { %224 = vst [vmem:[%s2474_s29 + $0x54] sm:$0xf] %v223_v21  ;;  %226 = vst [vmem:[%s2474_s29 + $0x58] sm:$0xf] %v225_v22  ;;  %v227_v23 = vld [vmem:[%s2467_s28 + $0xb8] sm:$0xf] }
  0x23   : > { %v229_v24 = vld [vmem:[%s2467_s28 + $0xc0] sm:$0xf]  ;;  %v231_v25 = vld [vmem:[%s2467_s28 + $0xc8] sm:$0xf]  ;;  %228 = vst [vmem:[%s2474_s29 + $0x5c] sm:$0xf] %v227_v23 }
  0x24   : > { %230 = vst [vmem:[%s2474_s29 + $0x60] sm:$0xf] %v229_v24  ;;  %232 = vst [vmem:[%s2474_s29 + $0x64] sm:$0xf] %v231_v25  ;;  %v233_v26 = vld [vmem:[%s2467_s28 + $0xd0] sm:$0xf] }
  0x25   : > { %v235_v27 = vld [vmem:[%s2467_s28 + $0xd8] sm:$0xf]  ;;  %v237_v28 = vld [vmem:[%s2467_s28 + $0xe0] sm:$0xf]  ;;  %234 = vst [vmem:[%s2474_s29 + $0x68] sm:$0xf] %v233_v26 }
  0x26   : > { %236 = vst [vmem:[%s2474_s29 + $0x6c] sm:$0xf] %v235_v27  ;;  %238 = vst [vmem:[%s2474_s29 + $0x70] sm:$0xf] %v237_v28  ;;  %v239_v29 = vld [vmem:[%s2467_s28 + $0xe8] sm:$0xf] }
  0x27   : > { %v241_v30 = vld [vmem:[%s2467_s28 + $0xf0] sm:$0xf]  ;;  %v243_v31 = vld [vmem:[%s2467_s28 + $0xf8] sm:$0xf]  ;;  %240 = vst [vmem:[%s2474_s29 + $0x74] sm:$0xf] %v239_v29 }
  0x28   : > { %242 = vst [vmem:[%s2474_s29 + $0x78] sm:$0xf] %v241_v30  ;;  %244 = vst [vmem:[%s2474_s29 + $0x7c] sm:$0xf] %v243_v31  ;;  %v245_v32 = vld [vmem:[%s2467_s28 + $0x100] sm:$0xf] }
  0x29   : > { %v247_v33 = vld [vmem:[%s2467_s28 + $0x108] sm:$0xf]  ;;  %v249_v34 = vld [vmem:[%s2467_s28 + $0x110] sm:$0xf]  ;;  %246 = vst [vmem:[%s2474_s29 + $0x80] sm:$0xf] %v245_v32 }
  0x2a   : > { %248 = vst [vmem:[%s2474_s29 + $0x84] sm:$0xf] %v247_v33  ;;  %250 = vst [vmem:[%s2474_s29 + $0x88] sm:$0xf] %v249_v34  ;;  %v251_v35 = vld [vmem:[%s2467_s28 + $0x118] sm:$0xf] }
  0x2b   : > { %v253_v36 = vld [vmem:[%s2467_s28 + $0x120] sm:$0xf]  ;;  %v255_v37 = vld [vmem:[%s2467_s28 + $0x128] sm:$0xf]  ;;  %252 = vst [vmem:[%s2474_s29 + $0x8c] sm:$0xf] %v251_v35 }
  0x2c   : > { %254 = vst [vmem:[%s2474_s29 + $0x90] sm:$0xf] %v253_v36  ;;  %256 = vst [vmem:[%s2474_s29 + $0x94] sm:$0xf] %v255_v37  ;;  %v257_v38 = vld [vmem:[%s2467_s28 + $0x130] sm:$0xf] }
  0x2d   : > { %v259_v39 = vld [vmem:[%s2467_s28 + $0x138] sm:$0xf]  ;;  %v261_v40 = vld [vmem:[%s2467_s28 + $0x140] sm:$0xf]  ;;  %258 = vst [vmem:[%s2474_s29 + $0x98] sm:$0xf] %v257_v38 }
  0x2e   : > { %260 = vst [vmem:[%s2474_s29 + $0x9c] sm:$0xf] %v259_v39  ;;  %262 = vst [vmem:[%s2474_s29 + $0xa0] sm:$0xf] %v261_v40  ;;  %v263_v41 = vld [vmem:[%s2467_s28 + $0x148] sm:$0xf] }
  0x2f   : > { %v265_v42 = vld [vmem:[%s2467_s28 + $0x150] sm:$0xf]  ;;  %v267_v43 = vld [vmem:[%s2467_s28 + $0x158] sm:$0xf]  ;;  %264 = vst [vmem:[%s2474_s29 + $0xa4] sm:$0xf] %v263_v41 }
  0x30   : > { %266 = vst [vmem:[%s2474_s29 + $0xa8] sm:$0xf] %v265_v42  ;;  %268 = vst [vmem:[%s2474_s29 + $0xac] sm:$0xf] %v267_v43  ;;  %v269_v44 = vld [vmem:[%s2467_s28 + $0x160] sm:$0xf] }
  0x31   : > { %v271_v45 = vld [vmem:[%s2467_s28 + $0x168] sm:$0xf]  ;;  %v273_v46 = vld [vmem:[%s2467_s28 + $0x170] sm:$0xf]  ;;  %270 = vst [vmem:[%s2474_s29 + $0xb0] sm:$0xf] %v269_v44 }
  0x32   : > { %272 = vst [vmem:[%s2474_s29 + $0xb4] sm:$0xf] %v271_v45  ;;  %274 = vst [vmem:[%s2474_s29 + $0xb8] sm:$0xf] %v273_v46  ;;  %v275_v47 = vld [vmem:[%s2467_s28 + $0x178] sm:$0xf] }
  0x33   : > { %v277_v48 = vld [vmem:[%s2467_s28 + $0x180] sm:$0xf]  ;;  %v279_v49 = vld [vmem:[%s2467_s28 + $0x188] sm:$0xf]  ;;  %276 = vst [vmem:[%s2474_s29 + $0xbc] sm:$0xf] %v275_v47 }
  0x34   : > { %278 = vst [vmem:[%s2474_s29 + $0xc0] sm:$0xf] %v277_v48  ;;  %280 = vst [vmem:[%s2474_s29 + $0xc4] sm:$0xf] %v279_v49  ;;  %v281_v50 = vld [vmem:[%s2467_s28 + $0x190] sm:$0xf] }
  0x35   : > { %v283_v51 = vld [vmem:[%s2467_s28 + $0x198] sm:$0xf]  ;;  %v285_v52 = vld [vmem:[%s2467_s28 + $0x1a0] sm:$0xf]  ;;  %282 = vst [vmem:[%s2474_s29 + $0xc8] sm:$0xf] %v281_v50 }
  0x36   : > { %284 = vst [vmem:[%s2474_s29 + $0xcc] sm:$0xf] %v283_v51  ;;  %286 = vst [vmem:[%s2474_s29 + $0xd0] sm:$0xf] %v285_v52  ;;  %v287_v53 = vld [vmem:[%s2467_s28 + $0x1a8] sm:$0xf] }
  0x37   : > { %v289_v54 = vld [vmem:[%s2467_s28 + $0x1b0] sm:$0xf]  ;;  %v291_v55 = vld [vmem:[%s2467_s28 + $0x1b8] sm:$0xf]  ;;  %288 = vst [vmem:[%s2474_s29 + $0xd4] sm:$0xf] %v287_v53 }
  0x38   : > { %290 = vst [vmem:[%s2474_s29 + $0xd8] sm:$0xf] %v289_v54  ;;  %292 = vst [vmem:[%s2474_s29 + $0xdc] sm:$0xf] %v291_v55  ;;  %v293_v56 = vld [vmem:[%s2467_s28 + $0x1c0] sm:$0xf] }
  0x39   : > { %v295_v57 = vld [vmem:[%s2467_s28 + $0x1c8] sm:$0xf]  ;;  %v297_v58 = vld [vmem:[%s2467_s28 + $0x1d0] sm:$0xf]  ;;  %294 = vst [vmem:[%s2474_s29 + $0xe0] sm:$0xf] %v293_v56 }
  0x3a   : > { %296 = vst [vmem:[%s2474_s29 + $0xe4] sm:$0xf] %v295_v57  ;;  %298 = vst [vmem:[%s2474_s29 + $0xe8] sm:$0xf] %v297_v58  ;;  %v299_v59 = vld [vmem:[%s2467_s28 + $0x1d8] sm:$0xf] }
  0x3b   : > { %v301_v60 = vld [vmem:[%s2467_s28 + $0x1e0] sm:$0xf]  ;;  %v303_v61 = vld [vmem:[%s2467_s28 + $0x1e8] sm:$0xf]  ;;  %300 = vst [vmem:[%s2474_s29 + $0xec] sm:$0xf] %v299_v59 }
  0x3c   : > { %302 = vst [vmem:[%s2474_s29 + $0xf0] sm:$0xf] %v301_v60  ;;  %304 = vst [vmem:[%s2474_s29 + $0xf4] sm:$0xf] %v303_v61  ;;  %v305_v62 = vld [vmem:[%s2467_s28 + $0x1f0] sm:$0xf] }
  0x3d   : > { %v307_v63 = vld [vmem:[%s2467_s28 + $0x1f8] sm:$0xf]  ;;  %v309_v0 = vld [vmem:[%s2467_s28 + $0x200] sm:$0xf]  ;;  %306 = vst [vmem:[%s2474_s29 + $0xf8] sm:$0xf] %v305_v62 }
  0x3e   : > { %308 = vst [vmem:[%s2474_s29 + $0xfc] sm:$0xf] %v307_v63  ;;  %310 = vst [vmem:[%s2474_s29 + $0x100] sm:$0xf] %v309_v0  ;;  %v311_v1 = vld [vmem:[%s2467_s28 + $0x208] sm:$0xf] }
  0x3f   : > { %v313_v2 = vld [vmem:[%s2467_s28 + $0x210] sm:$0xf]  ;;  %v315_v3 = vld [vmem:[%s2467_s28 + $0x218] sm:$0xf]  ;;  %312 = vst [vmem:[%s2474_s29 + $0x104] sm:$0xf] %v311_v1 }
  0x40   : > { %314 = vst [vmem:[%s2474_s29 + $0x108] sm:$0xf] %v313_v2  ;;  %316 = vst [vmem:[%s2474_s29 + $0x10c] sm:$0xf] %v315_v3  ;;  %v317_v4 = vld [vmem:[%s2467_s28 + $0x220] sm:$0xf] }
  0x41   : > { %v319_v5 = vld [vmem:[%s2467_s28 + $0x228] sm:$0xf]  ;;  %v321_v6 = vld [vmem:[%s2467_s28 + $0x230] sm:$0xf]  ;;  %318 = vst [vmem:[%s2474_s29 + $0x110] sm:$0xf] %v317_v4 }
  0x42   : > { %320 = vst [vmem:[%s2474_s29 + $0x114] sm:$0xf] %v319_v5  ;;  %322 = vst [vmem:[%s2474_s29 + $0x118] sm:$0xf] %v321_v6  ;;  %v323_v7 = vld [vmem:[%s2467_s28 + $0x238] sm:$0xf] }
  0x43   : > { %v325_v8 = vld [vmem:[%s2467_s28 + $0x240] sm:$0xf]  ;;  %v327_v9 = vld [vmem:[%s2467_s28 + $0x248] sm:$0xf]  ;;  %324 = vst [vmem:[%s2474_s29 + $0x11c] sm:$0xf] %v323_v7 }
  0x44   : > { %326 = vst [vmem:[%s2474_s29 + $0x120] sm:$0xf] %v325_v8  ;;  %328 = vst [vmem:[%s2474_s29 + $0x124] sm:$0xf] %v327_v9  ;;  %v329_v10 = vld [vmem:[%s2467_s28 + $0x250] sm:$0xf] }
  0x45   : > { %v331_v11 = vld [vmem:[%s2467_s28 + $0x258] sm:$0xf]  ;;  %v333_v12 = vld [vmem:[%s2467_s28 + $0x260] sm:$0xf]  ;;  %330 = vst [vmem:[%s2474_s29 + $0x128] sm:$0xf] %v329_v10 }
  0x46   : > { %332 = vst [vmem:[%s2474_s29 + $0x12c] sm:$0xf] %v331_v11  ;;  %334 = vst [vmem:[%s2474_s29 + $0x130] sm:$0xf] %v333_v12  ;;  %v335_v13 = vld [vmem:[%s2467_s28 + $0x268] sm:$0xf] }
  0x47   : > { %v337_v14 = vld [vmem:[%s2467_s28 + $0x270] sm:$0xf]  ;;  %v339_v15 = vld [vmem:[%s2467_s28 + $0x278] sm:$0xf]  ;;  %336 = vst [vmem:[%s2474_s29 + $0x134] sm:$0xf] %v335_v13 }
  0x48   : > { %338 = vst [vmem:[%s2474_s29 + $0x138] sm:$0xf] %v337_v14  ;;  %340 = vst [vmem:[%s2474_s29 + $0x13c] sm:$0xf] %v339_v15  ;;  %v341_v16 = vld [vmem:[%s2467_s28 + $0x280] sm:$0xf] }
  0x49   : > { %v343_v17 = vld [vmem:[%s2467_s28 + $0x288] sm:$0xf]  ;;  %v345_v18 = vld [vmem:[%s2467_s28 + $0x290] sm:$0xf]  ;;  %342 = vst [vmem:[%s2474_s29 + $0x140] sm:$0xf] %v341_v16 }
  0x4a   : > { %344 = vst [vmem:[%s2474_s29 + $0x144] sm:$0xf] %v343_v17  ;;  %346 = vst [vmem:[%s2474_s29 + $0x148] sm:$0xf] %v345_v18  ;;  %v347_v19 = vld [vmem:[%s2467_s28 + $0x298] sm:$0xf] }
  0x4b   : > { %v349_v20 = vld [vmem:[%s2467_s28 + $0x2a0] sm:$0xf]  ;;  %v351_v21 = vld [vmem:[%s2467_s28 + $0x2a8] sm:$0xf]  ;;  %348 = vst [vmem:[%s2474_s29 + $0x14c] sm:$0xf] %v347_v19 }
  0x4c   : > { %350 = vst [vmem:[%s2474_s29 + $0x150] sm:$0xf] %v349_v20  ;;  %352 = vst [vmem:[%s2474_s29 + $0x154] sm:$0xf] %v351_v21  ;;  %v353_v22 = vld [vmem:[%s2467_s28 + $0x2b0] sm:$0xf] }
  0x4d   : > { %v355_v23 = vld [vmem:[%s2467_s28 + $0x2b8] sm:$0xf]  ;;  %v357_v24 = vld [vmem:[%s2467_s28 + $0x2c0] sm:$0xf]  ;;  %354 = vst [vmem:[%s2474_s29 + $0x158] sm:$0xf] %v353_v22 }
  0x4e   : > { %356 = vst [vmem:[%s2474_s29 + $0x15c] sm:$0xf] %v355_v23  ;;  %358 = vst [vmem:[%s2474_s29 + $0x160] sm:$0xf] %v357_v24  ;;  %v359_v25 = vld [vmem:[%s2467_s28 + $0x2c8] sm:$0xf] }
  0x4f   : > { %v361_v26 = vld [vmem:[%s2467_s28 + $0x2d0] sm:$0xf]  ;;  %v363_v27 = vld [vmem:[%s2467_s28 + $0x2d8] sm:$0xf]  ;;  %360 = vst [vmem:[%s2474_s29 + $0x164] sm:$0xf] %v359_v25 }
  0x50   : > { %362 = vst [vmem:[%s2474_s29 + $0x168] sm:$0xf] %v361_v26  ;;  %364 = vst [vmem:[%s2474_s29 + $0x16c] sm:$0xf] %v363_v27  ;;  %v365_v28 = vld [vmem:[%s2467_s28 + $0x2e0] sm:$0xf] }
  0x51   : > { %v367_v29 = vld [vmem:[%s2467_s28 + $0x2e8] sm:$0xf]  ;;  %v369_v30 = vld [vmem:[%s2467_s28 + $0x2f0] sm:$0xf]  ;;  %366 = vst [vmem:[%s2474_s29 + $0x170] sm:$0xf] %v365_v28 }
  0x52   : > { %368 = vst [vmem:[%s2474_s29 + $0x174] sm:$0xf] %v367_v29  ;;  %370 = vst [vmem:[%s2474_s29 + $0x178] sm:$0xf] %v369_v30  ;;  %v371_v31 = vld [vmem:[%s2467_s28 + $0x2f8] sm:$0xf] }
  0x53   : > { %v373_v32 = vld [vmem:[%s2467_s28 + $0x300] sm:$0xf]  ;;  %v375_v33 = vld [vmem:[%s2467_s28 + $0x308] sm:$0xf]  ;;  %372 = vst [vmem:[%s2474_s29 + $0x17c] sm:$0xf] %v371_v31 }
  0x54   : > { %374 = vst [vmem:[%s2474_s29 + $0x180] sm:$0xf] %v373_v32  ;;  %376 = vst [vmem:[%s2474_s29 + $0x184] sm:$0xf] %v375_v33  ;;  %v377_v34 = vld [vmem:[%s2467_s28 + $0x310] sm:$0xf] }
  0x55   : > { %v379_v35 = vld [vmem:[%s2467_s28 + $0x318] sm:$0xf]  ;;  %v381_v36 = vld [vmem:[%s2467_s28 + $0x320] sm:$0xf]  ;;  %378 = vst [vmem:[%s2474_s29 + $0x188] sm:$0xf] %v377_v34 }
  0x56   : > { %380 = vst [vmem:[%s2474_s29 + $0x18c] sm:$0xf] %v379_v35  ;;  %382 = vst [vmem:[%s2474_s29 + $0x190] sm:$0xf] %v381_v36  ;;  %v383_v37 = vld [vmem:[%s2467_s28 + $0x328] sm:$0xf] }
  0x57   : > { %v385_v38 = vld [vmem:[%s2467_s28 + $0x330] sm:$0xf]  ;;  %v387_v39 = vld [vmem:[%s2467_s28 + $0x338] sm:$0xf]  ;;  %384 = vst [vmem:[%s2474_s29 + $0x194] sm:$0xf] %v383_v37 }
  0x58   : > { %386 = vst [vmem:[%s2474_s29 + $0x198] sm:$0xf] %v385_v38  ;;  %388 = vst [vmem:[%s2474_s29 + $0x19c] sm:$0xf] %v387_v39  ;;  %v389_v40 = vld [vmem:[%s2467_s28 + $0x340] sm:$0xf] }
  0x59   : > { %v391_v41 = vld [vmem:[%s2467_s28 + $0x348] sm:$0xf]  ;;  %v393_v42 = vld [vmem:[%s2467_s28 + $0x350] sm:$0xf]  ;;  %390 = vst [vmem:[%s2474_s29 + $0x1a0] sm:$0xf] %v389_v40 }
  0x5a   : > { %392 = vst [vmem:[%s2474_s29 + $0x1a4] sm:$0xf] %v391_v41  ;;  %394 = vst [vmem:[%s2474_s29 + $0x1a8] sm:$0xf] %v393_v42  ;;  %v395_v43 = vld [vmem:[%s2467_s28 + $0x358] sm:$0xf] }
  0x5b   : > { %v397_v44 = vld [vmem:[%s2467_s28 + $0x360] sm:$0xf]  ;;  %v399_v45 = vld [vmem:[%s2467_s28 + $0x368] sm:$0xf]  ;;  %396 = vst [vmem:[%s2474_s29 + $0x1ac] sm:$0xf] %v395_v43 }
  0x5c   : > { %398 = vst [vmem:[%s2474_s29 + $0x1b0] sm:$0xf] %v397_v44  ;;  %400 = vst [vmem:[%s2474_s29 + $0x1b4] sm:$0xf] %v399_v45  ;;  %v401_v46 = vld [vmem:[%s2467_s28 + $0x370] sm:$0xf] }
  0x5d   : > { %v403_v47 = vld [vmem:[%s2467_s28 + $0x378] sm:$0xf]  ;;  %v405_v48 = vld [vmem:[%s2467_s28 + $0x380] sm:$0xf]  ;;  %402 = vst [vmem:[%s2474_s29 + $0x1b8] sm:$0xf] %v401_v46 }
  0x5e   : > { %404 = vst [vmem:[%s2474_s29 + $0x1bc] sm:$0xf] %v403_v47  ;;  %406 = vst [vmem:[%s2474_s29 + $0x1c0] sm:$0xf] %v405_v48  ;;  %v407_v49 = vld [vmem:[%s2467_s28 + $0x388] sm:$0xf] }
  0x5f   : > { %v409_v50 = vld [vmem:[%s2467_s28 + $0x390] sm:$0xf]  ;;  %v411_v51 = vld [vmem:[%s2467_s28 + $0x398] sm:$0xf]  ;;  %408 = vst [vmem:[%s2474_s29 + $0x1c4] sm:$0xf] %v407_v49 }
  0x60   : > { %410 = vst [vmem:[%s2474_s29 + $0x1c8] sm:$0xf] %v409_v50  ;;  %412 = vst [vmem:[%s2474_s29 + $0x1cc] sm:$0xf] %v411_v51  ;;  %v413_v52 = vld [vmem:[%s2467_s28 + $0x3a0] sm:$0xf] }
  0x61   : > { %v415_v53 = vld [vmem:[%s2467_s28 + $0x3a8] sm:$0xf]  ;;  %v417_v54 = vld [vmem:[%s2467_s28 + $0x3b0] sm:$0xf]  ;;  %414 = vst [vmem:[%s2474_s29 + $0x1d0] sm:$0xf] %v413_v52 }
  0x62   : > { %416 = vst [vmem:[%s2474_s29 + $0x1d4] sm:$0xf] %v415_v53  ;;  %418 = vst [vmem:[%s2474_s29 + $0x1d8] sm:$0xf] %v417_v54  ;;  %v419_v55 = vld [vmem:[%s2467_s28 + $0x3b8] sm:$0xf] }
  0x63   : > { %v421_v56 = vld [vmem:[%s2467_s28 + $0x3c0] sm:$0xf]  ;;  %v423_v57 = vld [vmem:[%s2467_s28 + $0x3c8] sm:$0xf]  ;;  %420 = vst [vmem:[%s2474_s29 + $0x1dc] sm:$0xf] %v419_v55 }
  0x64   : > { %422 = vst [vmem:[%s2474_s29 + $0x1e0] sm:$0xf] %v421_v56  ;;  %424 = vst [vmem:[%s2474_s29 + $0x1e4] sm:$0xf] %v423_v57  ;;  %v425_v58 = vld [vmem:[%s2467_s28 + $0x3d0] sm:$0xf] }
  0x65   : > { %v427_v59 = vld [vmem:[%s2467_s28 + $0x3d8] sm:$0xf]  ;;  %v429_v60 = vld [vmem:[%s2467_s28 + $0x3e0] sm:$0xf]  ;;  %426 = vst [vmem:[%s2474_s29 + $0x1e8] sm:$0xf] %v425_v58 }
  0x66   : > { %428 = vst [vmem:[%s2474_s29 + $0x1ec] sm:$0xf] %v427_v59  ;;  %430 = vst [vmem:[%s2474_s29 + $0x1f0] sm:$0xf] %v429_v60  ;;  %v431_v61 = vld [vmem:[%s2467_s28 + $0x3e8] sm:$0xf] }
  0x67   : > { %v433_v62 = vld [vmem:[%s2467_s28 + $0x3f0] sm:$0xf]  ;;  %v435_v63 = vld [vmem:[%s2467_s28 + $0x3f8] sm:$0xf]  ;;  %432 = vst [vmem:[%s2474_s29 + $0x1f4] sm:$0xf] %v431_v61 }
  0x68   : > { %434 = vst [vmem:[%s2474_s29 + $0x1f8] sm:$0xf] %v433_v62  ;;  %436 = vst [vmem:[%s2474_s29 + $0x1fc] sm:$0xf] %v435_v63  ;;  %v437_v0 = vld [vmem:[%s2467_s28 + $0x400] sm:$0xf] }
  0x69   : > { %v439_v1 = vld [vmem:[%s2467_s28 + $0x408] sm:$0xf]  ;;  %v441_v2 = vld [vmem:[%s2467_s28 + $0x410] sm:$0xf]  ;;  %438 = vst [vmem:[%s2474_s29 + $0x200] sm:$0xf] %v437_v0 }
  0x6a   : > { %440 = vst [vmem:[%s2474_s29 + $0x204] sm:$0xf] %v439_v1  ;;  %442 = vst [vmem:[%s2474_s29 + $0x208] sm:$0xf] %v441_v2  ;;  %v443_v3 = vld [vmem:[%s2467_s28 + $0x418] sm:$0xf] }
  0x6b   : > { %v445_v4 = vld [vmem:[%s2467_s28 + $0x420] sm:$0xf]  ;;  %v447_v5 = vld [vmem:[%s2467_s28 + $0x428] sm:$0xf]  ;;  %444 = vst [vmem:[%s2474_s29 + $0x20c] sm:$0xf] %v443_v3 }
  0x6c   : > { %446 = vst [vmem:[%s2474_s29 + $0x210] sm:$0xf] %v445_v4  ;;  %448 = vst [vmem:[%s2474_s29 + $0x214] sm:$0xf] %v447_v5  ;;  %v449_v6 = vld [vmem:[%s2467_s28 + $0x430] sm:$0xf] }
  0x6d   : > { %v451_v7 = vld [vmem:[%s2467_s28 + $0x438] sm:$0xf]  ;;  %v453_v8 = vld [vmem:[%s2467_s28 + $0x440] sm:$0xf]  ;;  %450 = vst [vmem:[%s2474_s29 + $0x218] sm:$0xf] %v449_v6 }
  0x6e   : > { %452 = vst [vmem:[%s2474_s29 + $0x21c] sm:$0xf] %v451_v7  ;;  %454 = vst [vmem:[%s2474_s29 + $0x220] sm:$0xf] %v453_v8  ;;  %v455_v9 = vld [vmem:[%s2467_s28 + $0x448] sm:$0xf] }
  0x6f   : > { %v457_v10 = vld [vmem:[%s2467_s28 + $0x450] sm:$0xf]  ;;  %v459_v11 = vld [vmem:[%s2467_s28 + $0x458] sm:$0xf]  ;;  %456 = vst [vmem:[%s2474_s29 + $0x224] sm:$0xf] %v455_v9 }
  0x70   : > { %458 = vst [vmem:[%s2474_s29 + $0x228] sm:$0xf] %v457_v10  ;;  %460 = vst [vmem:[%s2474_s29 + $0x22c] sm:$0xf] %v459_v11  ;;  %v461_v12 = vld [vmem:[%s2467_s28 + $0x460] sm:$0xf] }
  0x71   : > { %v463_v13 = vld [vmem:[%s2467_s28 + $0x468] sm:$0xf]  ;;  %v465_v14 = vld [vmem:[%s2467_s28 + $0x470] sm:$0xf]  ;;  %462 = vst [vmem:[%s2474_s29 + $0x230] sm:$0xf] %v461_v12 }
  0x72   : > { %464 = vst [vmem:[%s2474_s29 + $0x234] sm:$0xf] %v463_v13  ;;  %466 = vst [vmem:[%s2474_s29 + $0x238] sm:$0xf] %v465_v14  ;;  %v467_v15 = vld [vmem:[%s2467_s28 + $0x478] sm:$0xf] }
  0x73   : > { %468 = vst [vmem:[%s2474_s29 + $0x23c] sm:$0xf] %v467_v15 }
  0x74 PF: > { %p1961_p8 = scmp.ge.s32.totalorder %s2397_s16, 1  ;;  %p785_p9 = scmp.lt.s32.totalorder %s2397_s16, 3 }
  0x76   : > { %p786_p10 = pnand %p1961_p8, %p785_p9 }
  0x77   : > { %s792_s30 = sand.u32 (!%p786_p10), 1, %s2381_s12   ;;  %p830_p11 = scmp.lt.s32.totalorder (!%p786_p10), %s2389_s14, 1 }
  0x78   : > { %789 = sbr.rel (%p786_p10) target bundleno = 437 (0x1b5), region = 69  ;;  %s1962_s11 = sshll.u32 (!%p786_p10), %s792_s30, 4 }
  0x79   : > { %s2220_s4 = smul.u32 (!%p786_p10), 576, %s792_s30  ;;  %s822_s18 = scalar_lea.vmem (!%p786_p10), [#allocation3], %s1962_s11 }
  0x7b   : > { %s2770_s9 = scalar_lea.vmem (!%p786_p10), [#allocation2], %s2220_s4 }
  0x7d   : > { %v2294_v16 = vld [vmem:[%s2920_s0 + $0x4] ss:$36 sps:$4 sm:$0xff]   ;;  %v2299_v17 = vld [vmem:[%s2920_s0 + $0xc] ss:$36 sps:$4 sm:$0xff]   ;;  %v2261_v18 = vld [vmem:[%s2770_s9 + $0x78] sm:$0xff]   ;;  %s2059_s19 = sshll.u32 (%p2454_p6), %s2389_s14, 2 }
  0x7e   : > { %1562 = vmatprep.mubr.bf16.mxu0 %v2294_v16  ;;  %1611 = vmatprep.mubr.bf16.mxu1 %v2299_v17  ;;  %v2262_v19 = vld [vmem:[%s2770_s9 + $0x38] sm:$0xff]   ;;  %v2265_v22 = vld [vmem:[%s2770_s9 + $0x70] sm:$0xff]   ;;  %v2269_v26 = vld [vmem:[%s2770_s9 + $0x68] sm:$0xff]   ;;  %s1810_s20 = scalar_lea.vmem (%p2454_p6), %s2923_s3, %s2059_s19 }
  0x7f   : > { %2077 = vmatprep.subr.bf16.mxu0 %v2261_v18  ;;  %v2263_v20 = vld [vmem:[%s2770_s9 + $0xf8] sm:$0xff]   ;;  %v2266_v23 = vld [vmem:[%s2770_s9 + $0x30] sm:$0xff]   ;;  %v2270_v27 = vld [vmem:[%s2770_s9 + $0x28] sm:$0xff]  }
  0x80   : > { %2078 = vmatpush3.bf16.msra.mxu0 %v2262_v19  ;;  %v2264_v21 = vld [vmem:[%s2770_s9 + $0xb8] sm:$0xff]   ;;  %2105 = vmatprep.subr.bf16.mxu1 %v2263_v20  ;;  %v2267_v24 = vld [vmem:[%s2770_s9 + $0xf0] sm:$0xff]   ;;  %v2271_v28 = vld [vmem:[%s2770_s9 + $0xe8] sm:$0xff]  }
  0x81   : > { %2106 = vmatpush3.bf16.msra.mxu1 %v2264_v21  ;;  %2079 = vmatprep.subr.bf16.mxu0 %v2265_v22  ;;  %v2268_v25 = vld [vmem:[%s2770_s9 + $0xb0] sm:$0xff]   ;;  %v2272_v29 = vld [vmem:[%s2770_s9 + $0xa8] sm:$0xff]   ;;  %v2273_v30 = vld [vmem:[%s2770_s9 + $0x60] sm:$0xff]  }
  0x82   : > { %2107 = vmatprep.subr.bf16.mxu1 %v2267_v24  ;;  %v2274_v31 = vld [vmem:[%s2770_s9 + $0x20] sm:$0xff]   ;;  %v2277_v34 = vld [vmem:[%s2770_s9 + $0x58] sm:$0xff]   ;;  %v2281_v38 = vld [vmem:[%s2770_s9 + $0x50] sm:$0xff]  }
  0x83   : > { %v2275_v32 = vld [vmem:[%s2770_s9 + $0xe0] sm:$0xff]   ;;  %v2278_v35 = vld [vmem:[%s2770_s9 + $0x18] sm:$0xff]   ;;  %v2282_v39 = vld [vmem:[%s2770_s9 + $0x10] sm:$0xff]  }
  0x84   : > { %2080 = vmatpush3.bf16.msra.mxu0 %v2266_v23  ;;  %v2276_v33 = vld [vmem:[%s2770_s9 + $0xa0] sm:$0xff]   ;;  %v2279_v36 = vld [vmem:[%s2770_s9 + $0xd8] sm:$0xff]   ;;  %v2283_v40 = vld [vmem:[%s2770_s9 + $0xd0] sm:$0xff]  }
  0x85   : > { %2108 = vmatpush3.bf16.msra.mxu1 %v2268_v25  ;;  %2081 = vmatprep.subr.bf16.mxu0 %v2269_v26  ;;  %v2280_v37 = vld [vmem:[%s2770_s9 + $0x98] sm:$0xff]   ;;  %v2284_v41 = vld [vmem:[%s2770_s9 + $0x90] sm:$0xff]   ;;  %v2285_v42 = vld [vmem:[%s2770_s9 + $0x48] sm:$0xff]  }
  0x86   : > { %2109 = vmatprep.subr.bf16.mxu1 %v2271_v28  ;;  %v2286_v43 = vld [vmem:[%s2770_s9 + $0x8] sm:$0xff]   ;;  %v2289_v46 = vld [vmem:[%s2770_s9 + $0x40] sm:$0xff]   ;;  %v2296_v53 = vld [vmem:[%s2770_s9 + $0x178] sm:$0xff]  }
  0x87   : > { %v2287_v44 = vld [vmem:[%s2770_s9 + $0xc8] sm:$0xff]   ;;  %v2292_v47 = vld [vmem:[%s2920_s0] ss:$36 sps:$4 sm:$0xff]   ;;  %v2300_v54 = vld [vmem:[%s2770_s9 + $0x138] sm:$0xff]  }
  0x88   : > { %2082 = vmatpush3.bf16.msra.mxu0 %v2270_v27  ;;  %v2288_v45 = vld [vmem:[%s2770_s9 + $0x88] sm:$0xff]   ;;  %v2290_v48 = vld [vmem:[%s2770_s9] sm:$0xff]   ;;  %v2301_v55 = vld [vmem:[%s2770_s9 + $0x1f8] sm:$0xff]  }
  0x89   : > { %2110 = vmatpush3.bf16.msra.mxu1 %v2272_v29  ;;  %2083 = vmatprep.subr.bf16.mxu0 %v2273_v30  ;;  %v2317_v49 = vld [vmem:[%s2920_s0 + $0x4c] ss:$36 sps:$4 sm:$0xff]   ;;  %v2291_v50 = vld [vmem:[%s2770_s9 + $0xc0] sm:$0xff]   ;;  %v2302_v56 = vld [vmem:[%s2770_s9 + $0x1b8] sm:$0xff]  }
  0x8a   : > { %2111 = vmatprep.subr.bf16.mxu1 %v2275_v32  ;;  %v2297_v51 = vld [vmem:[%s2920_s0 + $0x8] ss:$36 sps:$4 sm:$0xff]   ;;  %v2295_v52 = vld [vmem:[%s2770_s9 + $0x80] sm:$0xff]   ;;  %v2303_v57 = vld [vmem:[%s2770_s9 + $0x170] sm:$0xff]  }
  0x8b   : > { %v2320_v58 = vld [vmem:[%s2920_s0 + $0x48] ss:$36 sps:$4 sm:$0xff]   ;;  %v2304_v59 = vld [vmem:[%s2770_s9 + $0x130] sm:$0xff]   ;;  %v2311_v2 = vld [vmem:[%s2770_s9 + $0x160] sm:$0xff]  }
  0x8c   : > { %2084 = vmatpush3.bf16.msra.mxu0 %v2274_v31  ;;  %v2305_v60 = vld [vmem:[%s2770_s9 + $0x1f0] sm:$0xff]   ;;  %v2307_v62 = vld [vmem:[%s2770_s9 + $0x168] sm:$0xff]   ;;  %v2312_v3 = vld [vmem:[%s2770_s9 + $0x120] sm:$0xff]  }
  0x8d   : > { %2112 = vmatpush3.bf16.msra.mxu1 %v2276_v33  ;;  %2085 = vmatprep.subr.bf16.mxu0 %v2277_v34  ;;  %v2306_v61 = vld [vmem:[%s2770_s9 + $0x1b0] sm:$0xff]   ;;  %v2308_v63 = vld [vmem:[%s2770_s9 + $0x128] sm:$0xff]   ;;  %v2313_v4 = vld [vmem:[%s2770_s9 + $0x1e0] sm:$0xff]  }
  0x8e   : > { %2113 = vmatprep.subr.bf16.mxu1 %v2279_v36  ;;  %v2309_v0 = vld [vmem:[%s2770_s9 + $0x1e8] sm:$0xff]   ;;  %v2314_v5 = vld [vmem:[%s2770_s9 + $0x1a0] sm:$0xff]   ;;  %v2315_v6 = vld [vmem:[%s2770_s9 + $0x158] sm:$0xff]  }
  0x8f   : > { %v2310_v1 = vld [vmem:[%s2770_s9 + $0x1a8] sm:$0xff]   ;;  %v2316_v7 = vld [vmem:[%s2770_s9 + $0x118] sm:$0xff]   ;;  %v2324_v11 = vld [vmem:[%s2770_s9 + $0x150] sm:$0xff]  }
  0x90   : > { %2086 = vmatpush3.bf16.msra.mxu0 %v2278_v35  ;;  %v2319_v8 = vld [vmem:[%s2770_s9 + $0x1d8] sm:$0xff]   ;;  %v2325_v12 = vld [vmem:[%s2920_s0 + $0x50] ss:$36 sps:$4 sm:$0xff]   ;;  %v2329_v16 = vld [vmem:[%s2770_s9 + $0x148] sm:$0xff]  }
  0x91   : > { %2114 = vmatpush3.bf16.msra.mxu1 %v2280_v37  ;;  %2087 = vmatprep.subr.bf16.mxu0 %v2281_v38  ;;  %v2321_v9 = vld [vmem:[%s2770_s9 + $0x198] sm:$0xff]   ;;  %v2326_v13 = vld [vmem:[%s2770_s9 + $0x110] sm:$0xff]   ;;  %v2330_v17 = vld [vmem:[%s2770_s9 + $0x108] sm:$0xff]  }
  0x92   : > { %2115 = vmatprep.subr.bf16.mxu1 %v2283_v40  ;;  %v2322_v10 = vld [vmem:[%s2920_s0 + $0x54] ss:$36 sps:$4 sm:$0xff]   ;;  %v2331_v18 = vld [vmem:[%s2770_s9 + $0x1c8] sm:$0xff]   ;;  %v2333_v20 = vld [vmem:[%s2770_s9 + $0x140] sm:$0xff]  }
  0x93   : > { %v2327_v14 = vld [vmem:[%s2770_s9 + $0x1d0] sm:$0xff]   ;;  %v2332_v19 = vld [vmem:[%s2770_s9 + $0x188] sm:$0xff]   ;;  %v2334_v21 = vld [vmem:[%s2770_s9 + $0x100] sm:$0xff]  }
  0x94   : > { %2088 = vmatpush3.bf16.msra.mxu0 %v2282_v39  ;;  %v2328_v15 = vld [vmem:[%s2770_s9 + $0x190] sm:$0xff]   ;;  %v2335_v22 = vld [vmem:[%s2770_s9 + $0x1c0] sm:$0xff]   ;;  %v2340_v26 = vld [vmem:[%s2770_s9 + $0x238] sm:$0xff]  }
  0x95   : > { %2116 = vmatpush3.bf16.msra.mxu1 %v2284_v41  ;;  %2089 = vmatprep.subr.bf16.mxu0 %v2285_v42  ;;  %v2336_v23 = vld [vmem:[%s2920_s0 + $0x10] ss:$36 sps:$4 sm:$0xff]   ;;  %v2339_v25 = vld [vmem:[%s2770_s9 + $0x180] sm:$0xff]   ;;  %v2341_v27 = vld [vmem:[%s2920_s0 + $0x18] ss:$36 sps:$4 sm:$0xff]  }
  0x96   : > { %2117 = vmatprep.subr.bf16.mxu1 %v2287_v44  ;;  %v2338_v24 = vld [vmem:[%s2920_s0 + $0x14] ss:$36 sps:$4 sm:$0xff]   ;;  %v2343_v28 = vld [vmem:[%s2920_s0 + $0x1c] ss:$36 sps:$4 sm:$0xff]   ;;  %v2348_v32 = vld [vmem:[%s2770_s9 + $0x228] sm:$0xff]  }
  0x97   : > { %v2344_v29 = vld [vmem:[%s2770_s9 + $0x230] sm:$0xff]   ;;  %v2345_v30 = vld [vmem:[%s2920_s0 + $0x5c] ss:$36 sps:$4 sm:$0xff]   ;;  %v2349_v33 = vld [vmem:[%s2920_s0 + $0x64] ss:$36 sps:$4 sm:$0xff]  }
  0x98   : > { %2090 = vmatpush3.bf16.msra.mxu0 %v2286_v43  ;;  %v2347_v31 = vld [vmem:[%s2920_s0 + $0x58] ss:$36 sps:$4 sm:$0xff]   ;;  %v2351_v34 = vld [vmem:[%s2920_s0 + $0x60] ss:$36 sps:$4 sm:$0xff]   ;;  %v2354_v38 = vld [vmem:[%s2770_s9 + $0x210] sm:$0xff]  }
  0x99   : > { %2118 = vmatpush3.bf16.msra.mxu1 %v2288_v45  ;;  %2091 = vmatprep.subr.bf16.mxu0 %v2289_v46  ;;  %v2352_v35 = vld [vmem:[%s2770_s9 + $0x220] sm:$0xff]   ;;  %v2353_v36 = vld [vmem:[%s2770_s9 + $0x218] sm:$0xff]   ;;  %v2355_v39 = vld [vmem:[%s2770_s9 + $0x208] sm:$0xff]  }
  0x9a   : > { %2119 = vmatprep.subr.bf16.mxu1 %v2291_v50  ;;  %v2357_v37 = vld [vmem:[%s2920_s0 + $0x20] ss:$36 sps:$4 sm:$0xff]   ;;  %v2358_v41 = vld [vmem:[%s2920_s0 + $0x68] ss:$36 sps:$4 sm:$0xff]  }
  0x9b   : > { %v2356_v40 = vld [vmem:[%s2770_s9 + $0x200] sm:$0xff]   ;;  %s831_s9 = scalar_select %p830_p11, %s2389_s14, 1 }
  0x9c   : > { %2092 = vmatpush3.bf16.msra.mxu0 %v2290_v48 }
  0x9d   : > { %2120 = vmatpush3.bf16.msra.mxu1 %v2295_v52  ;;  %2133 = vmatprep.subr.bf16.mxu0 %v2296_v53  ;;  %s832_s10 = scalar_lea.vmem %s2922_s2, %s831_s9 }
  0x9e   : > { %2161 = vmatprep.subr.bf16.mxu1 %v2301_v55 }
  0x9f   : > { %1563 = vmatmul.mubr.bf16.vlgmr.msra.gmra.mxu0 %v2292_v47 }
  0xa0   : > { %2134 = vmatpush3.bf16.msra.mxu0 %v2300_v54  ;;  %1570 = vmatprep.mubr.bf16.mxu0 %v2317_v49 }
  0xa1   : > { %1612 = vmatmul.mubr.bf16.vlgmr.msra.gmra.mxu1 %v2297_v51  ;;  %2135 = vmatprep.subr.bf16.mxu0 %v2303_v57 }
  0xa2   : > { %2162 = vmatpush3.bf16.msra.mxu1 %v2302_v56  ;;  %1619 = vmatprep.mubr.bf16.mxu1 %v2322_v10 }
  0xa3   : > { %2163 = vmatprep.subr.bf16.mxu1 %v2305_v60 }
  0xa4   : > { %2136 = vmatpush3.bf16.msra.mxu0 %v2304_v59 }
  0xa5   : > { %2137 = vmatprep.subr.bf16.mxu0 %v2307_v62 }
  0xa6   : > { %2164 = vmatpush3.bf16.msra.mxu1 %v2306_v61 }
  0xa7   : > { %1571 = vmatmul.mubr.bf16.gmra.mxu0 %v2320_v58  ;;  %2165 = vmatprep.subr.bf16.mxu1 %v2309_v0 }
  0xa8   : > { %2138 = vmatpush3.bf16.msra.mxu0 %v2308_v63  ;;  %1660 = vmatprep.mubr.bf16.mxu0 %v2338_v24 }
  0xa9   : > { %2139 = vmatprep.subr.bf16.mxu0 %v2311_v2  ;;  %1620 = vmatmul.mubr.bf16.gmra.mxu1 %v2325_v12 }
  0xaa   : > { %2166 = vmatpush3.bf16.msra.mxu1 %v2310_v1  ;;  %1709 = vmatprep.mubr.bf16.mxu1 %v2343_v28 }
  0xab   : > { %2167 = vmatprep.subr.bf16.mxu1 %v2313_v4 }
  0xac   : > { %2140 = vmatpush3.bf16.msra.mxu0 %v2312_v3 }
  0xad   : > { %2141 = vmatprep.subr.bf16.mxu0 %v2315_v6 }
  0xae   : > { %2168 = vmatpush3.bf16.msra.mxu1 %v2314_v5 }
  0xaf   : > { %2169 = vmatprep.subr.bf16.mxu1 %v2319_v8 }
  0xb0   : > { %2142 = vmatpush3.bf16.msra.mxu0 %v2316_v7 }
  0xb1   : > { %2143 = vmatprep.subr.bf16.mxu0 %v2324_v11 }
  0xb2   : > { %2170 = vmatpush3.bf16.msra.mxu1 %v2321_v9  ;;  %v1963_v9 = vld [vmem:[%s832_s10] ss:$0 sm:$0xff] }
  0xb3   : > { %2171 = vmatprep.subr.bf16.mxu1 %v2327_v14 }
  0xb4   : > { %2144 = vmatpush3.bf16.msra.mxu0 %v2326_v13 }
  0xb5   : > { %2145 = vmatprep.subr.bf16.mxu0 %v2329_v16 }
  0xb6   : > { %2172 = vmatpush3.bf16.msra.mxu1 %v2328_v15 }
  0xb7   : > { %2173 = vmatprep.subr.bf16.mxu1 %v2331_v18 }
  0xb8   : > { %2146 = vmatpush3.bf16.msra.mxu0 %v2330_v17 }
  0xb9   : > { %2147 = vmatprep.subr.bf16.mxu0 %v2333_v20 }
  0xba   : > { %2174 = vmatpush3.bf16.msra.mxu1 %v2332_v19 }
  0xbb   : > { %2175 = vmatprep.subr.bf16.mxu1 %v2335_v22 }
  0xbc   : > { %2148 = vmatpush3.bf16.msra.mxu0 %v2334_v21 }
  0xbd   : > { %2199 = vmatprep.subr.bf16.mxu0 %v2340_v26 }
  0xbe   : > { %2176 = vmatpush3.bf16.msra.mxu1 %v2339_v25 }
  0xbf   : > { %1661 = vmatmul.mubr.bf16.vlgmr.msra.gmra.mxu0 %v2336_v23 }
  0xc0   : > { %2200 = vmatpush3.bf16.msra.mxu0 %v2340_v26  ;;  %1668 = vmatprep.mubr.bf16.mxu0 %v2345_v30 }
  0xc1   : > { %1710 = vmatmul.mubr.bf16.vlgmr.msra.gmra.mxu1 %v2341_v27  ;;  %2201 = vmatprep.subr.bf16.mxu0 %v2344_v29 }
  0xc2   : > { %1717 = vmatprep.mubr.bf16.mxu1 %v2349_v33 }
  0xc4   : > { %2202 = vmatpush3.bf16.msra.mxu0 %v2344_v29 }
  0xc5   : > { %2203 = vmatprep.subr.bf16.mxu0 %v2348_v32 }
  0xc7   : > { %1669 = vmatmul.mubr.bf16.gmra.mxu0 %v2347_v31 }
  0xc8   : > { %2204 = vmatpush3.bf16.msra.mxu0 %v2348_v32  ;;  %2215 = vmatprep.mubr.bf16.mxu0 %v2357_v37 }
  0xc9   : > { %1718 = vmatmul.mubr.bf16.gmra.mxu1 %v2351_v34  ;;  %2205 = vmatprep.subr.bf16.mxu0 %v2352_v35 }
  0xcc   : > { %2206 = vmatpush3.bf16.msra.mxu0 %v2352_v35 }
  0xcd   : > { %2207 = vmatprep.subr.bf16.mxu0 %v2353_v36 }
  0xd0   : > { %2208 = vmatpush3.bf16.msra.mxu0 %v2353_v36 }
  0xd1   : > { %2209 = vmatprep.subr.bf16.mxu0 %v2354_v38 }
  0xd4   : > { %2210 = vmatpush3.bf16.msra.mxu0 %v2354_v38 }
  0xd5   : > { %2211 = vmatprep.subr.bf16.mxu0 %v2355_v39 }
  0xd8   : > { %2212 = vmatpush3.bf16.msra.mxu0 %v2355_v39 }
  0xd9   : > { %2213 = vmatprep.subr.bf16.mxu0 %v2356_v40 }
  0xdc   : > { %2214 = vmatpush3.bf16.msra.mxu0 %v2356_v40 }
  0xdf   : > { %2216 = vmatmul.mubr.bf16.vlgmr.msra.gmra.mxu0 %v2358_v41 }
 0x15f   : > { %v2093_v42 = vpop.f32.mrf.mxu0 }
 0x161   : > { %v2121_v43 = vpop.f32.mrf.mxu1  ;;  %v2094_v44 = vpop.f32.mrf.mxu0 }
 0x162   : > { %v2095_v6 = vadd.f32 %v2094_v44, %v2093_v42 }
 0x163   : > { %v2122_v45 = vpop.f32.mrf.mxu1  ;;  %v2096_v46 = vpop.f32.mrf.mxu0 }
 0x164   : > { %v1565_v14 = vadd.f32 %v2095_v6, %v1963_v9  ;;  %v2123_v15 = vadd.f32 %v2122_v45, %v2121_v43 }
 0x165   : > { %v2124_v47 = vpop.f32.mrf.mxu1  ;;  %v2097_v48 = vpop.f32.mrf.mxu0 }
 0x166   : > { %v2098_v11 = vadd.f32 %v2097_v48, %v2096_v46  ;;  %v1614_v26 = vadd.f32 %v2123_v15, %v1565_v14 }
 0x167   : > { %v2099_v49 = vpop.f32.mrf.mxu0  ;;  %v2125_v50 = vpop.f32.mrf.mxu1 }
 0x168   : > { %v1568_v21 = vadd.f32 %v2098_v11, %v1963_v9  ;;  %v2126_v22 = vadd.f32 %v2125_v50, %v2124_v47 }
 0x169   : > { %v2127_v51 = vpop.f32.mrf.mxu1  ;;  %v2100_v52 = vpop.f32.mrf.mxu0 }
 0x16a   : > { %v2101_v5 = vadd.f32 %v2100_v52, %v2099_v49  ;;  %v1617_v32 = vadd.f32 %v2126_v22, %v1568_v21 }
 0x16b   : > { %v2128_v53 = vpop.f32.mrf.mxu1  ;;  %v2102_v54 = vpop.f32.mrf.mxu0 }
 0x16c   : > { %v1573_v12 = vadd.f32 %v2101_v5, %v1963_v9  ;;  %v2129_v13 = vadd.f32 %v2128_v53, %v2127_v51 }
 0x16d   : > { %v2130_v55 = vpop.f32.mrf.mxu1  ;;  %v2103_v56 = vpop.f32.mrf.mxu0 }
 0x16e   : > { %v2104_v10 = vadd.f32 %v2103_v56, %v2102_v54  ;;  %v1622_v23 = vadd.f32 %v2129_v13, %v1573_v12 }
 0x16f   : > { %v2131_v58 = vpop.f32.mrf.mxu1 }
 0x170   : > { %v1576_v18 = vadd.f32 %v2104_v10, %v1963_v9  ;;  %v2132_v19 = vadd.f32 %v2131_v58, %v2130_v55 }
 0x172   : > { %v1625_v28 = vadd.f32 %v2132_v19, %v1576_v18 }
 0x17f   : > { %v2149_v57 = vpop.f32.mrf.mxu0 }
 0x181   : > { %v2150_v59 = vpop.f32.mrf.mxu0  ;;  %v2177_v60 = vpop.f32.mrf.mxu1 }
 0x182   : > { %v2151_v24 = vadd.f32 %v2150_v59, %v2149_v57 }
 0x183   : > { %v2152_v61 = vpop.f32.mrf.mxu0  ;;  %v2178_v62 = vpop.f32.mrf.mxu1 }
 0x184   : > { %v1663_v33 = vadd.f32 %v2151_v24, %v1614_v26  ;;  %v2179_v34 = vadd.f32 %v2178_v62, %v2177_v60 }
 0x185   : > { %v2153_v63 = vpop.f32.mrf.mxu0  ;;  %v2180_v0 = vpop.f32.mrf.mxu1 }
 0x186   : > { %v2154_v29 = vadd.f32 %v2153_v63, %v2152_v61  ;;  %v1712_v43 = vadd.f32 %v2179_v34, %v1663_v33 }
 0x187   : > { %v2155_v1 = vpop.f32.mrf.mxu0  ;;  %v2181_v2 = vpop.f32.mrf.mxu1 }
 0x188   : > { %v1666_v38 = vadd.f32 %v2154_v29, %v1617_v32  ;;  %v2182_v39 = vadd.f32 %v2181_v2, %v2180_v0 }
 0x189   : > { %v2156_v3 = vpop.f32.mrf.mxu0  ;;  %v2183_v4 = vpop.f32.mrf.mxu1 }
 0x18a   : > { %v2157_v20 = vadd.f32 %v2156_v3, %v2155_v1  ;;  %v1715_v48 = vadd.f32 %v2182_v39, %v1666_v38 }
 0x18b   : > { %v2158_v7 = vpop.f32.mrf.mxu0  ;;  %v2184_v8 = vpop.f32.mrf.mxu1 }
 0x18c   : > { %v1671_v30 = vadd.f32 %v2157_v20, %v1622_v23  ;;  %v2185_v31 = vadd.f32 %v2184_v8, %v2183_v4 }
 0x18d   : > { %v2159_v16 = vpop.f32.mrf.mxu0  ;;  %v2186_v17 = vpop.f32.mrf.mxu1 }
 0x18e   : > { %v2160_v25 = vadd.f32 %v2159_v16, %v2158_v7  ;;  %v1720_v40 = vadd.f32 %v2185_v31, %v1671_v30 }
 0x18f   : > { %v2187_v27 = vpop.f32.mrf.mxu1 }
 0x190   : > { %v1674_v35 = vadd.f32 %v2160_v25, %v1625_v28  ;;  %v2188_v36 = vadd.f32 %v2187_v27, %v2186_v17 }
 0x192   : > { %v1723_v44 = vadd.f32 %v2188_v36, %v1674_v35 }
 0x19f   : > { %v2217_v37 = vpop.f32.mrf.mxu0 }
 0x1a0   : > { %v1769_v42 = vadd.f32 %v2217_v37, %v1720_v40 }
 0x1a1   : > { %v1760_v41 = vpop.f32.mrf.mxu0 }
 0x1a2   : > { %v1761_v46 = vadd.f32 %v1760_v41, %v1712_v43  ;;  %v1777_v50 = vmax.f32 %v1769_v42, 0.0 }
 0x1a3   : > { %v2218_v45 = vpop.f32.mrf.mxu0 }
 0x1a4   : > { %v1772_v47 = vadd.f32 %v2218_v45, %v1723_v44  ;;  %v1775_v53 = vmax.f32 %v1761_v46, 0.0 }
 0x1a5   : > { %v1763_v49 = vpop.f32.mrf.mxu0 }
 0x1a6   : > { %v1778_v51 = vmax.f32 %v1772_v47, 0.0  ;;  %v1764_v52 = vadd.f32 %v1763_v49, %v1715_v48 }
 0x1a8   : > { %v2074_v54 = vpack.c.bf16 %v1778_v51, %v1777_v50  ;;  %v1776_v55 = vmax.f32 %v1764_v52, 0.0  ;;  %1805 = sbr.rel (!%p2454_p6) target bundleno = 437 (0x1b5), region = 77 }
 0x1aa   : > { %2076 = vst [vmem:[%s822_s18 + $0x8] sm:$0xff] %v2074_v54   ;;  %v2069_v56 = vpack.c.bf16 %v1776_v55, %v1775_v53 }
 0x1ac   : > { %2070 = vst [vmem:[%s822_s18] sm:$0xff] %v2069_v56  }
 0x1b1   : > { %v1831_v59 = vld [vmem:[%s822_s18 + $0x8] sm:$0xf]  ;;  %v1833_v60 = vld [vmem:[%s822_s18 + $0xc] sm:$0xf] }
 0x1b2   : > { %1832 = vst [vmem:[%s1810_s20 + $0x10] sm:$0xf] %v1831_v59  ;;  %1834 = vst [vmem:[%s1810_s20 + $0x18] sm:$0xf] %v1833_v60 }
 0x1b3   : > { %v1827_v57 = vld [vmem:[%s822_s18] sm:$0xf]  ;;  %v1829_v58 = vld [vmem:[%s822_s18 + $0x4] sm:$0xf] }
 0x1b4   : > { %1828 = vst [vmem:[%s1810_s20] sm:$0xf] %v1827_v57  ;;  %1830 = vst [vmem:[%s1810_s20 + $0x8] sm:$0xf] %v1829_v58 }
 0x1b5 PF: > { %s13_s16 = sadd.s32 1, %s2397_s16   ;;  %s2925_s12 = smov %s2385_s13 }
 0x1b6   : > { %p10_p12 = scmp.ge.s32.totalorder %s13_s16, 4   ;;  %s2926_s13 = smov %s2459_s22 }
 0x1b7   : > { %s2927_s14 = smov %s2393_s15  ;;  %s2928_s15 = smov %s2930_s17 }
 0x1b8   :  { %12 = sbr.rel (!%p10_p12) target bundleno = 3 (0x3), region = 155 }

// kernel: generator_forward.16
= control target key start
LH: loop header
LB: loop body
LE: loop exit
PB: predicated region body
PF: predicated region fallthrough
CT: control target
= control target key end

     0   :  { %s4187_s12 = smov 0   ;;  %s4189_s13 = smov 0   ;;  %s5150_s0 = inlined_call_operand.vmem [shape: bf16[32,2304], index: 0, kind: input, shape index: {}]   ;;  %s5151_s1 = inlined_call_operand.vmem [shape: bf16[2304,256], index: 1, kind: input, shape index: {}]   ;;  %s5152_s2 = inlined_call_operand.vmem [shape: f32[1,256], index: 2, kind: input, shape index: {}]   ;;  %s5153_s3 = inlined_call_operand.vmem [shape: bf16[32,256], index: 3, kind: output, shape index: {}]  }
   0x1   :  { %s4191_s14 = smov 0   ;;  %s4193_s15 = smov 0  }
   0x2   :  { %s4195_s16 = smov 0  }
   0x3 LB: > { %s22_s17 = sadd.s32 1, %s4161_s15  ;;  %s3407_s18 = sadd.s32 4294967295, %s4165_s16   ;;  %s4165_s16 = sphi %s4195_s16, %s13_s16   ;;  %s4161_s15 = sphi %s4193_s15, %s5170_s15   ;;  %s4157_s14 = sphi %s4191_s14, %s5169_s14   ;;  %s4153_s13 = sphi %s4189_s13, %s5168_s13   ;;  %s4149_s12 = sphi %s4187_s12, %s5167_s12  }
   0x4   : > { %p23_p0 = scmp.ge.s32.totalorder %s22_s17, 2  ;;  %p65_p1 = scmp.ne.s32.totalorder %s4153_s13, %s4149_s12 }
   0x5   : > { %p66_p2 = scmp.eq.s32.totalorder %s4165_s16, 0  ;;  %p123_p4 = scmp.eq.s32.totalorder %s3407_s18, 1 }
   0x6   : > { %s5172_s17 = smov (%p23_p0, %s22_s17), 0  ;;  %s58_s20 = sadd.s32 1, %s4153_s13 }
   0x7   : > { %p67_p3 = por %p66_p2, %p65_p1  ;;  %s55_s19 = ssub.s32 %s4161_s15, %s5172_s17 }
   0x8   : > { %p56_p5 = scmp.eq.s32.totalorder %s55_s19, 0  ;;  %p4222_p6 = por %p123_p4, %p65_p1 }
   0x9   : > { %p3411_p7 = scmp.ge.s32.totalorder %s4165_s16, 2 }
   0xa   : > { %s4227_s22 = scalar_select %p56_p5, %s4153_s13, %s58_s20  }
   0xb   : > { %155 = sbr.rel (%p3411_p7) target bundleno = 212 (0xd4), region = 20 }
  0x10   : > { %158 = sbr.rel (!%p67_p3) target bundleno = 212 (0xd4), region = 24  ;;  %s160_s23 = sand.u32 (%p67_p3), 1, %s4153_s13  }
  0x11   : > { %s3412_s24 = sshll.u32 (%p67_p3), %s4161_s15, 2  ;;  %s3887_s25 = smul.u32 (%p67_p3), 1152, %s160_s23 }
  0x12   : > { %s4235_s28 = scalar_lea.vmem (%p67_p3), %s5151_s1, %s3412_s24 }
  0x13   : > { %v181_v0 = vld [vmem:[%s4235_s28] sm:$0xf] (%p67_p3)  ;;  %v183_v1 = vld [vmem:[%s4235_s28 + $0x8] sm:$0xf] (%p67_p3)  ;;  %v185_v2 = vld [vmem:[%s4235_s28 + $0x10] sm:$0xf] (%p67_p3) }
  0x14   : > { %v187_v3 = vld [vmem:[%s4235_s28 + $0x18] sm:$0xf] (%p67_p3)  ;;  %v189_v4 = vld [vmem:[%s4235_s28 + $0x20] sm:$0xf] (%p67_p3)  ;;  %s4242_s29 = scalar_lea.vmem (%p67_p3), [#allocation2], %s3887_s25 }
  0x15   : > { %182 = vst [vmem:[%s4242_s29] sm:$0xf] %v181_v0  ;;  %184 = vst [vmem:[%s4242_s29 + $0x4] sm:$0xf] %v183_v1  ;;  %v191_v5 = vld [vmem:[%s4235_s28 + $0x28] sm:$0xf] }
  0x16   : > { %186 = vst [vmem:[%s4242_s29 + $0x8] sm:$0xf] %v185_v2  ;;  %188 = vst [vmem:[%s4242_s29 + $0xc] sm:$0xf] %v187_v3  ;;  %v193_v6 = vld [vmem:[%s4235_s28 + $0x30] sm:$0xf] }
  0x17   : > { %190 = vst [vmem:[%s4242_s29 + $0x10] sm:$0xf] %v189_v4  ;;  %v195_v7 = vld [vmem:[%s4235_s28 + $0x38] sm:$0xf]  ;;  %192 = vst [vmem:[%s4242_s29 + $0x14] sm:$0xf] %v191_v5 }
  0x18   : > { %194 = vst [vmem:[%s4242_s29 + $0x18] sm:$0xf] %v193_v6  ;;  %196 = vst [vmem:[%s4242_s29 + $0x1c] sm:$0xf] %v195_v7  ;;  %v197_v8 = vld [vmem:[%s4235_s28 + $0x40] sm:$0xf] }
  0x19   : > { %v199_v9 = vld [vmem:[%s4235_s28 + $0x48] sm:$0xf]  ;;  %v201_v10 = vld [vmem:[%s4235_s28 + $0x50] sm:$0xf]  ;;  %198 = vst [vmem:[%s4242_s29 + $0x20] sm:$0xf] %v197_v8 }
  0x1a   : > { %200 = vst [vmem:[%s4242_s29 + $0x24] sm:$0xf] %v199_v9  ;;  %202 = vst [vmem:[%s4242_s29 + $0x28] sm:$0xf] %v201_v10  ;;  %v203_v11 = vld [vmem:[%s4235_s28 + $0x58] sm:$0xf] }
  0x1b   : > { %v205_v12 = vld [vmem:[%s4235_s28 + $0x60] sm:$0xf]  ;;  %v207_v13 = vld [vmem:[%s4235_s28 + $0x68] sm:$0xf]  ;;  %204 = vst [vmem:[%s4242_s29 + $0x2c] sm:$0xf] %v203_v11 }
  0x1c   : > { %206 = vst [vmem:[%s4242_s29 + $0x30] sm:$0xf] %v205_v12  ;;  %208 = vst [vmem:[%s4242_s29 + $0x34] sm:$0xf] %v207_v13  ;;  %v209_v14 = vld [vmem:[%s4235_s28 + $0x70] sm:$0xf] }
  0x1d   : > { %v211_v15 = vld [vmem:[%s4235_s28 + $0x78] sm:$0xf]  ;;  %v213_v16 = vld [vmem:[%s4235_s28 + $0x80] sm:$0xf]  ;;  %210 = vst [vmem:[%s4242_s29 + $0x38] sm:$0xf] %v209_v14 }
  0x1e   : > { %212 = vst [vmem:[%s4242_s29 + $0x3c] sm:$0xf] %v211_v15  ;;  %214 = vst [vmem:[%s4242_s29 + $0x40] sm:$0xf] %v213_v16  ;;  %v215_v17 = vld [vmem:[%s4235_s28 + $0x88] sm:$0xf] }
  0x1f   : > { %v217_v18 = vld [vmem:[%s4235_s28 + $0x90] sm:$0xf]  ;;  %v219_v19 = vld [vmem:[%s4235_s28 + $0x98] sm:$0xf]  ;;  %216 = vst [vmem:[%s4242_s29 + $0x44] sm:$0xf] %v215_v17 }
  0x20   : > { %218 = vst [vmem:[%s4242_s29 + $0x48] sm:$0xf] %v217_v18  ;;  %220 = vst [vmem:[%s4242_s29 + $0x4c] sm:$0xf] %v219_v19  ;;  %v221_v20 = vld [vmem:[%s4235_s28 + $0xa0] sm:$0xf] }
  0x21   : > { %v223_v21 = vld [vmem:[%s4235_s28 + $0xa8] sm:$0xf]  ;;  %v225_v22 = vld [vmem:[%s4235_s28 + $0xb0] sm:$0xf]  ;;  %222 = vst [vmem:[%s4242_s29 + $0x50] sm:$0xf] %v221_v20 }
  0x22   : > { %224 = vst [vmem:[%s4242_s29 + $0x54] sm:$0xf] %v223_v21  ;;  %226 = vst [vmem:[%s4242_s29 + $0x58] sm:$0xf] %v225_v22  ;;  %v227_v23 = vld [vmem:[%s4235_s28 + $0xb8] sm:$0xf] }
  0x23   : > { %v229_v24 = vld [vmem:[%s4235_s28 + $0xc0] sm:$0xf]  ;;  %v231_v25 = vld [vmem:[%s4235_s28 + $0xc8] sm:$0xf]  ;;  %228 = vst [vmem:[%s4242_s29 + $0x5c] sm:$0xf] %v227_v23 }
  0x24   : > { %230 = vst [vmem:[%s4242_s29 + $0x60] sm:$0xf] %v229_v24  ;;  %232 = vst [vmem:[%s4242_s29 + $0x64] sm:$0xf] %v231_v25  ;;  %v233_v26 = vld [vmem:[%s4235_s28 + $0xd0] sm:$0xf] }
  0x25   : > { %v235_v27 = vld [vmem:[%s4235_s28 + $0xd8] sm:$0xf]  ;;  %v237_v28 = vld [vmem:[%s4235_s28 + $0xe0] sm:$0xf]  ;;  %234 = vst [vmem:[%s4242_s29 + $0x68] sm:$0xf] %v233_v26 }
  0x26   : > { %236 = vst [vmem:[%s4242_s29 + $0x6c] sm:$0xf] %v235_v27  ;;  %238 = vst [vmem:[%s4242_s29 + $0x70] sm:$0xf] %v237_v28  ;;  %v239_v29 = vld [vmem:[%s4235_s28 + $0xe8] sm:$0xf] }
  0x27   : > { %v241_v30 = vld [vmem:[%s4235_s28 + $0xf0] sm:$0xf]  ;;  %v243_v31 = vld [vmem:[%s4235_s28 + $0xf8] sm:$0xf]  ;;  %240 = vst [vmem:[%s4242_s29 + $0x74] sm:$0xf] %v239_v29 }
  0x28   : > { %242 = vst [vmem:[%s4242_s29 + $0x78] sm:$0xf] %v241_v30  ;;  %244 = vst [vmem:[%s4242_s29 + $0x7c] sm:$0xf] %v243_v31  ;;  %v245_v32 = vld [vmem:[%s4235_s28 + $0x100] sm:$0xf] }
  0x29   : > { %v247_v33 = vld [vmem:[%s4235_s28 + $0x108] sm:$0xf]  ;;  %v249_v34 = vld [vmem:[%s4235_s28 + $0x110] sm:$0xf]  ;;  %246 = vst [vmem:[%s4242_s29 + $0x80] sm:$0xf] %v245_v32 }
  0x2a   : > { %248 = vst [vmem:[%s4242_s29 + $0x84] sm:$0xf] %v247_v33  ;;  %250 = vst [vmem:[%s4242_s29 + $0x88] sm:$0xf] %v249_v34  ;;  %v251_v35 = vld [vmem:[%s4235_s28 + $0x118] sm:$0xf] }
  0x2b   : > { %v253_v36 = vld [vmem:[%s4235_s28 + $0x120] sm:$0xf]  ;;  %v255_v37 = vld [vmem:[%s4235_s28 + $0x128] sm:$0xf]  ;;  %252 = vst [vmem:[%s4242_s29 + $0x8c] sm:$0xf] %v251_v35 }
  0x2c   : > { %254 = vst [vmem:[%s4242_s29 + $0x90] sm:$0xf] %v253_v36  ;;  %256 = vst [vmem:[%s4242_s29 + $0x94] sm:$0xf] %v255_v37  ;;  %v257_v38 = vld [vmem:[%s4235_s28 + $0x130] sm:$0xf] }
  0x2d   : > { %v259_v39 = vld [vmem:[%s4235_s28 + $0x138] sm:$0xf]  ;;  %v261_v40 = vld [vmem:[%s4235_s28 + $0x140] sm:$0xf]  ;;  %258 = vst [vmem:[%s4242_s29 + $0x98] sm:$0xf] %v257_v38 }
  0x2e   : > { %260 = vst [vmem:[%s4242_s29 + $0x9c] sm:$0xf] %v259_v39  ;;  %262 = vst [vmem:[%s4242_s29 + $0xa0] sm:$0xf] %v261_v40  ;;  %v263_v41 = vld [vmem:[%s4235_s28 + $0x148] sm:$0xf] }
  0x2f   : > { %v265_v42 = vld [vmem:[%s4235_s28 + $0x150] sm:$0xf]  ;;  %v267_v43 = vld [vmem:[%s4235_s28 + $0x158] sm:$0xf]  ;;  %264 = vst [vmem:[%s4242_s29 + $0xa4] sm:$0xf] %v263_v41 }
  0x30   : > { %266 = vst [vmem:[%s4242_s29 + $0xa8] sm:$0xf] %v265_v42  ;;  %268 = vst [vmem:[%s4242_s29 + $0xac] sm:$0xf] %v267_v43  ;;  %v269_v44 = vld [vmem:[%s4235_s28 + $0x160] sm:$0xf] }
  0x31   : > { %v271_v45 = vld [vmem:[%s4235_s28 + $0x168] sm:$0xf]  ;;  %v273_v46 = vld [vmem:[%s4235_s28 + $0x170] sm:$0xf]  ;;  %270 = vst [vmem:[%s4242_s29 + $0xb0] sm:$0xf] %v269_v44 }
  0x32   : > { %272 = vst [vmem:[%s4242_s29 + $0xb4] sm:$0xf] %v271_v45  ;;  %274 = vst [vmem:[%s4242_s29 + $0xb8] sm:$0xf] %v273_v46  ;;  %v275_v47 = vld [vmem:[%s4235_s28 + $0x178] sm:$0xf] }
  0x33   : > { %v277_v48 = vld [vmem:[%s4235_s28 + $0x180] sm:$0xf]  ;;  %v279_v49 = vld [vmem:[%s4235_s28 + $0x188] sm:$0xf]  ;;  %276 = vst [vmem:[%s4242_s29 + $0xbc] sm:$0xf] %v275_v47 }
  0x34   : > { %278 = vst [vmem:[%s4242_s29 + $0xc0] sm:$0xf] %v277_v48  ;;  %280 = vst [vmem:[%s4242_s29 + $0xc4] sm:$0xf] %v279_v49  ;;  %v281_v50 = vld [vmem:[%s4235_s28 + $0x190] sm:$0xf] }
  0x35   : > { %v283_v51 = vld [vmem:[%s4235_s28 + $0x198] sm:$0xf]  ;;  %v285_v52 = vld [vmem:[%s4235_s28 + $0x1a0] sm:$0xf]  ;;  %282 = vst [vmem:[%s4242_s29 + $0xc8] sm:$0xf] %v281_v50 }
  0x36   : > { %284 = vst [vmem:[%s4242_s29 + $0xcc] sm:$0xf] %v283_v51  ;;  %286 = vst [vmem:[%s4242_s29 + $0xd0] sm:$0xf] %v285_v52  ;;  %v287_v53 = vld [vmem:[%s4235_s28 + $0x1a8] sm:$0xf] }
  0x37   : > { %v289_v54 = vld [vmem:[%s4235_s28 + $0x1b0] sm:$0xf]  ;;  %v291_v55 = vld [vmem:[%s4235_s28 + $0x1b8] sm:$0xf]  ;;  %288 = vst [vmem:[%s4242_s29 + $0xd4] sm:$0xf] %v287_v53 }
  0x38   : > { %290 = vst [vmem:[%s4242_s29 + $0xd8] sm:$0xf] %v289_v54  ;;  %292 = vst [vmem:[%s4242_s29 + $0xdc] sm:$0xf] %v291_v55  ;;  %v293_v56 = vld [vmem:[%s4235_s28 + $0x1c0] sm:$0xf] }
  0x39   : > { %v295_v57 = vld [vmem:[%s4235_s28 + $0x1c8] sm:$0xf]  ;;  %v297_v58 = vld [vmem:[%s4235_s28 + $0x1d0] sm:$0xf]  ;;  %294 = vst [vmem:[%s4242_s29 + $0xe0] sm:$0xf] %v293_v56 }
  0x3a   : > { %296 = vst [vmem:[%s4242_s29 + $0xe4] sm:$0xf] %v295_v57  ;;  %298 = vst [vmem:[%s4242_s29 + $0xe8] sm:$0xf] %v297_v58  ;;  %v299_v59 = vld [vmem:[%s4235_s28 + $0x1d8] sm:$0xf] }
  0x3b   : > { %v301_v60 = vld [vmem:[%s4235_s28 + $0x1e0] sm:$0xf]  ;;  %v303_v61 = vld [vmem:[%s4235_s28 + $0x1e8] sm:$0xf]  ;;  %300 = vst [vmem:[%s4242_s29 + $0xec] sm:$0xf] %v299_v59 }
  0x3c   : > { %302 = vst [vmem:[%s4242_s29 + $0xf0] sm:$0xf] %v301_v60  ;;  %304 = vst [vmem:[%s4242_s29 + $0xf4] sm:$0xf] %v303_v61  ;;  %v305_v62 = vld [vmem:[%s4235_s28 + $0x1f0] sm:$0xf] }
  0x3d   : > { %v307_v63 = vld [vmem:[%s4235_s28 + $0x1f8] sm:$0xf]  ;;  %v309_v0 = vld [vmem:[%s4235_s28 + $0x200] sm:$0xf]  ;;  %306 = vst [vmem:[%s4242_s29 + $0xf8] sm:$0xf] %v305_v62 }
  0x3e   : > { %308 = vst [vmem:[%s4242_s29 + $0xfc] sm:$0xf] %v307_v63  ;;  %310 = vst [vmem:[%s4242_s29 + $0x100] sm:$0xf] %v309_v0  ;;  %v311_v1 = vld [vmem:[%s4235_s28 + $0x208] sm:$0xf] }
  0x3f   : > { %v313_v2 = vld [vmem:[%s4235_s28 + $0x210] sm:$0xf]  ;;  %v315_v3 = vld [vmem:[%s4235_s28 + $0x218] sm:$0xf]  ;;  %312 = vst [vmem:[%s4242_s29 + $0x104] sm:$0xf] %v311_v1 }
  0x40   : > { %314 = vst [vmem:[%s4242_s29 + $0x108] sm:$0xf] %v313_v2  ;;  %316 = vst [vmem:[%s4242_s29 + $0x10c] sm:$0xf] %v315_v3  ;;  %v317_v4 = vld [vmem:[%s4235_s28 + $0x220] sm:$0xf] }
  0x41   : > { %v319_v5 = vld [vmem:[%s4235_s28 + $0x228] sm:$0xf]  ;;  %v321_v6 = vld [vmem:[%s4235_s28 + $0x230] sm:$0xf]  ;;  %318 = vst [vmem:[%s4242_s29 + $0x110] sm:$0xf] %v317_v4 }
  0x42   : > { %320 = vst [vmem:[%s4242_s29 + $0x114] sm:$0xf] %v319_v5  ;;  %322 = vst [vmem:[%s4242_s29 + $0x118] sm:$0xf] %v321_v6  ;;  %v323_v7 = vld [vmem:[%s4235_s28 + $0x238] sm:$0xf] }
  0x43   : > { %v325_v8 = vld [vmem:[%s4235_s28 + $0x240] sm:$0xf]  ;;  %v327_v9 = vld [vmem:[%s4235_s28 + $0x248] sm:$0xf]  ;;  %324 = vst [vmem:[%s4242_s29 + $0x11c] sm:$0xf] %v323_v7 }
  0x44   : > { %326 = vst [vmem:[%s4242_s29 + $0x120] sm:$0xf] %v325_v8  ;;  %328 = vst [vmem:[%s4242_s29 + $0x124] sm:$0xf] %v327_v9  ;;  %v329_v10 = vld [vmem:[%s4235_s28 + $0x250] sm:$0xf] }
  0x45   : > { %v331_v11 = vld [vmem:[%s4235_s28 + $0x258] sm:$0xf]  ;;  %v333_v12 = vld [vmem:[%s4235_s28 + $0x260] sm:$0xf]  ;;  %330 = vst [vmem:[%s4242_s29 + $0x128] sm:$0xf] %v329_v10 }
  0x46   : > { %332 = vst [vmem:[%s4242_s29 + $0x12c] sm:$0xf] %v331_v11  ;;  %334 = vst [vmem:[%s4242_s29 + $0x130] sm:$0xf] %v333_v12  ;;  %v335_v13 = vld [vmem:[%s4235_s28 + $0x268] sm:$0xf] }
  0x47   : > { %v337_v14 = vld [vmem:[%s4235_s28 + $0x270] sm:$0xf]  ;;  %v339_v15 = vld [vmem:[%s4235_s28 + $0x278] sm:$0xf]  ;;  %336 = vst [vmem:[%s4242_s29 + $0x134] sm:$0xf] %v335_v13 }
  0x48   : > { %338 = vst [vmem:[%s4242_s29 + $0x138] sm:$0xf] %v337_v14  ;;  %340 = vst [vmem:[%s4242_s29 + $0x13c] sm:$0xf] %v339_v15  ;;  %v341_v16 = vld [vmem:[%s4235_s28 + $0x280] sm:$0xf] }
  0x49   : > { %v343_v17 = vld [vmem:[%s4235_s28 + $0x288] sm:$0xf]  ;;  %v345_v18 = vld [vmem:[%s4235_s28 + $0x290] sm:$0xf]  ;;  %342 = vst [vmem:[%s4242_s29 + $0x140] sm:$0xf] %v341_v16 }
  0x4a   : > { %344 = vst [vmem:[%s4242_s29 + $0x144] sm:$0xf] %v343_v17  ;;  %346 = vst [vmem:[%s4242_s29 + $0x148] sm:$0xf] %v345_v18  ;;  %v347_v19 = vld [vmem:[%s4235_s28 + $0x298] sm:$0xf] }
  0x4b   : > { %v349_v20 = vld [vmem:[%s4235_s28 + $0x2a0] sm:$0xf]  ;;  %v351_v21 = vld [vmem:[%s4235_s28 + $0x2a8] sm:$0xf]  ;;  %348 = vst [vmem:[%s4242_s29 + $0x14c] sm:$0xf] %v347_v19 }
  0x4c   : > { %350 = vst [vmem:[%s4242_s29 + $0x150] sm:$0xf] %v349_v20  ;;  %352 = vst [vmem:[%s4242_s29 + $0x154] sm:$0xf] %v351_v21  ;;  %v353_v22 = vld [vmem:[%s4235_s28 + $0x2b0] sm:$0xf] }
  0x4d   : > { %v355_v23 = vld [vmem:[%s4235_s28 + $0x2b8] sm:$0xf]  ;;  %v357_v24 = vld [vmem:[%s4235_s28 + $0x2c0] sm:$0xf]  ;;  %354 = vst [vmem:[%s4242_s29 + $0x158] sm:$0xf] %v353_v22 }
  0x4e   : > { %356 = vst [vmem:[%s4242_s29 + $0x15c] sm:$0xf] %v355_v23  ;;  %358 = vst [vmem:[%s4242_s29 + $0x160] sm:$0xf] %v357_v24  ;;  %v359_v25 = vld [vmem:[%s4235_s28 + $0x2c8] sm:$0xf] }
  0x4f   : > { %v361_v26 = vld [vmem:[%s4235_s28 + $0x2d0] sm:$0xf]  ;;  %v363_v27 = vld [vmem:[%s4235_s28 + $0x2d8] sm:$0xf]  ;;  %360 = vst [vmem:[%s4242_s29 + $0x164] sm:$0xf] %v359_v25 }
  0x50   : > { %362 = vst [vmem:[%s4242_s29 + $0x168] sm:$0xf] %v361_v26  ;;  %364 = vst [vmem:[%s4242_s29 + $0x16c] sm:$0xf] %v363_v27  ;;  %v365_v28 = vld [vmem:[%s4235_s28 + $0x2e0] sm:$0xf] }
  0x51   : > { %v367_v29 = vld [vmem:[%s4235_s28 + $0x2e8] sm:$0xf]  ;;  %v369_v30 = vld [vmem:[%s4235_s28 + $0x2f0] sm:$0xf]  ;;  %366 = vst [vmem:[%s4242_s29 + $0x170] sm:$0xf] %v365_v28 }
  0x52   : > { %368 = vst [vmem:[%s4242_s29 + $0x174] sm:$0xf] %v367_v29  ;;  %370 = vst [vmem:[%s4242_s29 + $0x178] sm:$0xf] %v369_v30  ;;  %v371_v31 = vld [vmem:[%s4235_s28 + $0x2f8] sm:$0xf] }
  0x53   : > { %v373_v32 = vld [vmem:[%s4235_s28 + $0x300] sm:$0xf]  ;;  %v375_v33 = vld [vmem:[%s4235_s28 + $0x308] sm:$0xf]  ;;  %372 = vst [vmem:[%s4242_s29 + $0x17c] sm:$0xf] %v371_v31 }
  0x54   : > { %374 = vst [vmem:[%s4242_s29 + $0x180] sm:$0xf] %v373_v32  ;;  %376 = vst [vmem:[%s4242_s29 + $0x184] sm:$0xf] %v375_v33  ;;  %v377_v34 = vld [vmem:[%s4235_s28 + $0x310] sm:$0xf] }
  0x55   : > { %v379_v35 = vld [vmem:[%s4235_s28 + $0x318] sm:$0xf]  ;;  %v381_v36 = vld [vmem:[%s4235_s28 + $0x320] sm:$0xf]  ;;  %378 = vst [vmem:[%s4242_s29 + $0x188] sm:$0xf] %v377_v34 }
  0x56   : > { %380 = vst [vmem:[%s4242_s29 + $0x18c] sm:$0xf] %v379_v35  ;;  %382 = vst [vmem:[%s4242_s29 + $0x190] sm:$0xf] %v381_v36  ;;  %v383_v37 = vld [vmem:[%s4235_s28 + $0x328] sm:$0xf] }
  0x57   : > { %v385_v38 = vld [vmem:[%s4235_s28 + $0x330] sm:$0xf]  ;;  %v387_v39 = vld [vmem:[%s4235_s28 + $0x338] sm:$0xf]  ;;  %384 = vst [vmem:[%s4242_s29 + $0x194] sm:$0xf] %v383_v37 }
  0x58   : > { %386 = vst [vmem:[%s4242_s29 + $0x198] sm:$0xf] %v385_v38  ;;  %388 = vst [vmem:[%s4242_s29 + $0x19c] sm:$0xf] %v387_v39  ;;  %v389_v40 = vld [vmem:[%s4235_s28 + $0x340] sm:$0xf] }
  0x59   : > { %v391_v41 = vld [vmem:[%s4235_s28 + $0x348] sm:$0xf]  ;;  %v393_v42 = vld [vmem:[%s4235_s28 + $0x350] sm:$0xf]  ;;  %390 = vst [vmem:[%s4242_s29 + $0x1a0] sm:$0xf] %v389_v40 }
  0x5a   : > { %392 = vst [vmem:[%s4242_s29 + $0x1a4] sm:$0xf] %v391_v41  ;;  %394 = vst [vmem:[%s4242_s29 + $0x1a8] sm:$0xf] %v393_v42  ;;  %v395_v43 = vld [vmem:[%s4235_s28 + $0x358] sm:$0xf] }
  0x5b   : > { %v397_v44 = vld [vmem:[%s4235_s28 + $0x360] sm:$0xf]  ;;  %v399_v45 = vld [vmem:[%s4235_s28 + $0x368] sm:$0xf]  ;;  %396 = vst [vmem:[%s4242_s29 + $0x1ac] sm:$0xf] %v395_v43 }
  0x5c   : > { %398 = vst [vmem:[%s4242_s29 + $0x1b0] sm:$0xf] %v397_v44  ;;  %400 = vst [vmem:[%s4242_s29 + $0x1b4] sm:$0xf] %v399_v45  ;;  %v401_v46 = vld [vmem:[%s4235_s28 + $0x370] sm:$0xf] }
  0x5d   : > { %v403_v47 = vld [vmem:[%s4235_s28 + $0x378] sm:$0xf]  ;;  %v405_v48 = vld [vmem:[%s4235_s28 + $0x380] sm:$0xf]  ;;  %402 = vst [vmem:[%s4242_s29 + $0x1b8] sm:$0xf] %v401_v46 }
  0x5e   : > { %404 = vst [vmem:[%s4242_s29 + $0x1bc] sm:$0xf] %v403_v47  ;;  %406 = vst [vmem:[%s4242_s29 + $0x1c0] sm:$0xf] %v405_v48  ;;  %v407_v49 = vld [vmem:[%s4235_s28 + $0x388] sm:$0xf] }
  0x5f   : > { %v409_v50 = vld [vmem:[%s4235_s28 + $0x390] sm:$0xf]  ;;  %v411_v51 = vld [vmem:[%s4235_s28 + $0x398] sm:$0xf]  ;;  %408 = vst [vmem:[%s4242_s29 + $0x1c4] sm:$0xf] %v407_v49 }
  0x60   : > { %410 = vst [vmem:[%s4242_s29 + $0x1c8] sm:$0xf] %v409_v50  ;;  %412 = vst [vmem:[%s4242_s29 + $0x1cc] sm:$0xf] %v411_v51  ;;  %v413_v52 = vld [vmem:[%s4235_s28 + $0x3a0] sm:$0xf] }
  0x61   : > { %v415_v53 = vld [vmem:[%s4235_s28 + $0x3a8] sm:$0xf]  ;;  %v417_v54 = vld [vmem:[%s4235_s28 + $0x3b0] sm:$0xf]  ;;  %414 = vst [vmem:[%s4242_s29 + $0x1d0] sm:$0xf] %v413_v52 }
  0x62   : > { %416 = vst [vmem:[%s4242_s29 + $0x1d4] sm:$0xf] %v415_v53  ;;  %418 = vst [vmem:[%s4242_s29 + $0x1d8] sm:$0xf] %v417_v54  ;;  %v419_v55 = vld [vmem:[%s4235_s28 + $0x3b8] sm:$0xf] }
  0x63   : > { %v421_v56 = vld [vmem:[%s4235_s28 + $0x3c0] sm:$0xf]  ;;  %v423_v57 = vld [vmem:[%s4235_s28 + $0x3c8] sm:$0xf]  ;;  %420 = vst [vmem:[%s4242_s29 + $0x1dc] sm:$0xf] %v419_v55 }
  0x64   : > { %422 = vst [vmem:[%s4242_s29 + $0x1e0] sm:$0xf] %v421_v56  ;;  %424 = vst [vmem:[%s4242_s29 + $0x1e4] sm:$0xf] %v423_v57  ;;  %v425_v58 = vld [vmem:[%s4235_s28 + $0x3d0] sm:$0xf] }
  0x65   : > { %v427_v59 = vld [vmem:[%s4235_s28 + $0x3d8] sm:$0xf]  ;;  %v429_v60 = vld [vmem:[%s4235_s28 + $0x3e0] sm:$0xf]  ;;  %426 = vst [vmem:[%s4242_s29 + $0x1e8] sm:$0xf] %v425_v58 }
  0x66   : > { %428 = vst [vmem:[%s4242_s29 + $0x1ec] sm:$0xf] %v427_v59  ;;  %430 = vst [vmem:[%s4242_s29 + $0x1f0] sm:$0xf] %v429_v60  ;;  %v431_v61 = vld [vmem:[%s4235_s28 + $0x3e8] sm:$0xf] }
  0x67   : > { %v433_v62 = vld [vmem:[%s4235_s28 + $0x3f0] sm:$0xf]  ;;  %v435_v63 = vld [vmem:[%s4235_s28 + $0x3f8] sm:$0xf]  ;;  %432 = vst [vmem:[%s4242_s29 + $0x1f4] sm:$0xf] %v431_v61 }
  0x68   : > { %434 = vst [vmem:[%s4242_s29 + $0x1f8] sm:$0xf] %v433_v62  ;;  %436 = vst [vmem:[%s4242_s29 + $0x1fc] sm:$0xf] %v435_v63  ;;  %v437_v0 = vld [vmem:[%s4235_s28 + $0x400] sm:$0xf] }
  0x69   : > { %v439_v1 = vld [vmem:[%s4235_s28 + $0x408] sm:$0xf]  ;;  %v441_v2 = vld [vmem:[%s4235_s28 + $0x410] sm:$0xf]  ;;  %438 = vst [vmem:[%s4242_s29 + $0x200] sm:$0xf] %v437_v0 }
  0x6a   : > { %440 = vst [vmem:[%s4242_s29 + $0x204] sm:$0xf] %v439_v1  ;;  %442 = vst [vmem:[%s4242_s29 + $0x208] sm:$0xf] %v441_v2  ;;  %v443_v3 = vld [vmem:[%s4235_s28 + $0x418] sm:$0xf] }
  0x6b   : > { %v445_v4 = vld [vmem:[%s4235_s28 + $0x420] sm:$0xf]  ;;  %v447_v5 = vld [vmem:[%s4235_s28 + $0x428] sm:$0xf]  ;;  %444 = vst [vmem:[%s4242_s29 + $0x20c] sm:$0xf] %v443_v3 }
  0x6c   : > { %446 = vst [vmem:[%s4242_s29 + $0x210] sm:$0xf] %v445_v4  ;;  %448 = vst [vmem:[%s4242_s29 + $0x214] sm:$0xf] %v447_v5  ;;  %v449_v6 = vld [vmem:[%s4235_s28 + $0x430] sm:$0xf] }
  0x6d   : > { %v451_v7 = vld [vmem:[%s4235_s28 + $0x438] sm:$0xf]  ;;  %v453_v8 = vld [vmem:[%s4235_s28 + $0x440] sm:$0xf]  ;;  %450 = vst [vmem:[%s4242_s29 + $0x218] sm:$0xf] %v449_v6 }
  0x6e   : > { %452 = vst [vmem:[%s4242_s29 + $0x21c] sm:$0xf] %v451_v7  ;;  %454 = vst [vmem:[%s4242_s29 + $0x220] sm:$0xf] %v453_v8  ;;  %v455_v9 = vld [vmem:[%s4235_s28 + $0x448] sm:$0xf] }
  0x6f   : > { %v457_v10 = vld [vmem:[%s4235_s28 + $0x450] sm:$0xf]  ;;  %v459_v11 = vld [vmem:[%s4235_s28 + $0x458] sm:$0xf]  ;;  %456 = vst [vmem:[%s4242_s29 + $0x224] sm:$0xf] %v455_v9 }
  0x70   : > { %458 = vst [vmem:[%s4242_s29 + $0x228] sm:$0xf] %v457_v10  ;;  %460 = vst [vmem:[%s4242_s29 + $0x22c] sm:$0xf] %v459_v11  ;;  %v461_v12 = vld [vmem:[%s4235_s28 + $0x460] sm:$0xf] }
  0x71   : > { %v463_v13 = vld [vmem:[%s4235_s28 + $0x468] sm:$0xf]  ;;  %v465_v14 = vld [vmem:[%s4235_s28 + $0x470] sm:$0xf]  ;;  %462 = vst [vmem:[%s4242_s29 + $0x230] sm:$0xf] %v461_v12 }
  0x72   : > { %464 = vst [vmem:[%s4242_s29 + $0x234] sm:$0xf] %v463_v13  ;;  %466 = vst [vmem:[%s4242_s29 + $0x238] sm:$0xf] %v465_v14  ;;  %v467_v15 = vld [vmem:[%s4235_s28 + $0x478] sm:$0xf] }
  0x73   : > { %v469_v16 = vld [vmem:[%s4235_s28 + $0x480] sm:$0xf]  ;;  %v471_v17 = vld [vmem:[%s4235_s28 + $0x488] sm:$0xf]  ;;  %468 = vst [vmem:[%s4242_s29 + $0x23c] sm:$0xf] %v467_v15 }
  0x74   : > { %470 = vst [vmem:[%s4242_s29 + $0x240] sm:$0xf] %v469_v16  ;;  %472 = vst [vmem:[%s4242_s29 + $0x244] sm:$0xf] %v471_v17  ;;  %v473_v18 = vld [vmem:[%s4235_s28 + $0x490] sm:$0xf] }
  0x75   : > { %v475_v19 = vld [vmem:[%s4235_s28 + $0x498] sm:$0xf]  ;;  %v477_v20 = vld [vmem:[%s4235_s28 + $0x4a0] sm:$0xf]  ;;  %474 = vst [vmem:[%s4242_s29 + $0x248] sm:$0xf] %v473_v18 }
  0x76   : > { %476 = vst [vmem:[%s4242_s29 + $0x24c] sm:$0xf] %v475_v19  ;;  %478 = vst [vmem:[%s4242_s29 + $0x250] sm:$0xf] %v477_v20  ;;  %v479_v21 = vld [vmem:[%s4235_s28 + $0x4a8] sm:$0xf] }
  0x77   : > { %v481_v22 = vld [vmem:[%s4235_s28 + $0x4b0] sm:$0xf]  ;;  %v483_v23 = vld [vmem:[%s4235_s28 + $0x4b8] sm:$0xf]  ;;  %480 = vst [vmem:[%s4242_s29 + $0x254] sm:$0xf] %v479_v21 }
  0x78   : > { %482 = vst [vmem:[%s4242_s29 + $0x258] sm:$0xf] %v481_v22  ;;  %484 = vst [vmem:[%s4242_s29 + $0x25c] sm:$0xf] %v483_v23  ;;  %v485_v24 = vld [vmem:[%s4235_s28 + $0x4c0] sm:$0xf] }
  0x79   : > { %v487_v25 = vld [vmem:[%s4235_s28 + $0x4c8] sm:$0xf]  ;;  %v489_v26 = vld [vmem:[%s4235_s28 + $0x4d0] sm:$0xf]  ;;  %486 = vst [vmem:[%s4242_s29 + $0x260] sm:$0xf] %v485_v24 }
  0x7a   : > { %488 = vst [vmem:[%s4242_s29 + $0x264] sm:$0xf] %v487_v25  ;;  %490 = vst [vmem:[%s4242_s29 + $0x268] sm:$0xf] %v489_v26  ;;  %v491_v27 = vld [vmem:[%s4235_s28 + $0x4d8] sm:$0xf] }
  0x7b   : > { %v493_v28 = vld [vmem:[%s4235_s28 + $0x4e0] sm:$0xf]  ;;  %v495_v29 = vld [vmem:[%s4235_s28 + $0x4e8] sm:$0xf]  ;;  %492 = vst [vmem:[%s4242_s29 + $0x26c] sm:$0xf] %v491_v27 }
  0x7c   : > { %494 = vst [vmem:[%s4242_s29 + $0x270] sm:$0xf] %v493_v28  ;;  %496 = vst [vmem:[%s4242_s29 + $0x274] sm:$0xf] %v495_v29  ;;  %v497_v30 = vld [vmem:[%s4235_s28 + $0x4f0] sm:$0xf] }
  0x7d   : > { %v499_v31 = vld [vmem:[%s4235_s28 + $0x4f8] sm:$0xf]  ;;  %v501_v32 = vld [vmem:[%s4235_s28 + $0x500] sm:$0xf]  ;;  %498 = vst [vmem:[%s4242_s29 + $0x278] sm:$0xf] %v497_v30 }
  0x7e   : > { %500 = vst [vmem:[%s4242_s29 + $0x27c] sm:$0xf] %v499_v31  ;;  %502 = vst [vmem:[%s4242_s29 + $0x280] sm:$0xf] %v501_v32  ;;  %v503_v33 = vld [vmem:[%s4235_s28 + $0x508] sm:$0xf] }
  0x7f   : > { %v505_v34 = vld [vmem:[%s4235_s28 + $0x510] sm:$0xf]  ;;  %v507_v35 = vld [vmem:[%s4235_s28 + $0x518] sm:$0xf]  ;;  %504 = vst [vmem:[%s4242_s29 + $0x284] sm:$0xf] %v503_v33 }
  0x80   : > { %506 = vst [vmem:[%s4242_s29 + $0x288] sm:$0xf] %v505_v34  ;;  %508 = vst [vmem:[%s4242_s29 + $0x28c] sm:$0xf] %v507_v35  ;;  %v509_v36 = vld [vmem:[%s4235_s28 + $0x520] sm:$0xf] }
  0x81   : > { %v511_v37 = vld [vmem:[%s4235_s28 + $0x528] sm:$0xf]  ;;  %v513_v38 = vld [vmem:[%s4235_s28 + $0x530] sm:$0xf]  ;;  %510 = vst [vmem:[%s4242_s29 + $0x290] sm:$0xf] %v509_v36 }
  0x82   : > { %512 = vst [vmem:[%s4242_s29 + $0x294] sm:$0xf] %v511_v37  ;;  %514 = vst [vmem:[%s4242_s29 + $0x298] sm:$0xf] %v513_v38  ;;  %v515_v39 = vld [vmem:[%s4235_s28 + $0x538] sm:$0xf] }
  0x83   : > { %v517_v40 = vld [vmem:[%s4235_s28 + $0x540] sm:$0xf]  ;;  %v519_v41 = vld [vmem:[%s4235_s28 + $0x548] sm:$0xf]  ;;  %516 = vst [vmem:[%s4242_s29 + $0x29c] sm:$0xf] %v515_v39 }
  0x84   : > { %518 = vst [vmem:[%s4242_s29 + $0x2a0] sm:$0xf] %v517_v40  ;;  %520 = vst [vmem:[%s4242_s29 + $0x2a4] sm:$0xf] %v519_v41  ;;  %v521_v42 = vld [vmem:[%s4235_s28 + $0x550] sm:$0xf] }
  0x85   : > { %v523_v43 = vld [vmem:[%s4235_s28 + $0x558] sm:$0xf]  ;;  %v525_v44 = vld [vmem:[%s4235_s28 + $0x560] sm:$0xf]  ;;  %522 = vst [vmem:[%s4242_s29 + $0x2a8] sm:$0xf] %v521_v42 }
  0x86   : > { %524 = vst [vmem:[%s4242_s29 + $0x2ac] sm:$0xf] %v523_v43  ;;  %526 = vst [vmem:[%s4242_s29 + $0x2b0] sm:$0xf] %v525_v44  ;;  %v527_v45 = vld [vmem:[%s4235_s28 + $0x568] sm:$0xf] }
  0x87   : > { %v529_v46 = vld [vmem:[%s4235_s28 + $0x570] sm:$0xf]  ;;  %v531_v47 = vld [vmem:[%s4235_s28 + $0x578] sm:$0xf]  ;;  %528 = vst [vmem:[%s4242_s29 + $0x2b4] sm:$0xf] %v527_v45 }
  0x88   : > { %530 = vst [vmem:[%s4242_s29 + $0x2b8] sm:$0xf] %v529_v46  ;;  %532 = vst [vmem:[%s4242_s29 + $0x2bc] sm:$0xf] %v531_v47  ;;  %v533_v48 = vld [vmem:[%s4235_s28 + $0x580] sm:$0xf] }
  0x89   : > { %v535_v49 = vld [vmem:[%s4235_s28 + $0x588] sm:$0xf]  ;;  %v537_v50 = vld [vmem:[%s4235_s28 + $0x590] sm:$0xf]  ;;  %534 = vst [vmem:[%s4242_s29 + $0x2c0] sm:$0xf] %v533_v48 }
  0x8a   : > { %536 = vst [vmem:[%s4242_s29 + $0x2c4] sm:$0xf] %v535_v49  ;;  %538 = vst [vmem:[%s4242_s29 + $0x2c8] sm:$0xf] %v537_v50  ;;  %v539_v51 = vld [vmem:[%s4235_s28 + $0x598] sm:$0xf] }
  0x8b   : > { %v541_v52 = vld [vmem:[%s4235_s28 + $0x5a0] sm:$0xf]  ;;  %v543_v53 = vld [vmem:[%s4235_s28 + $0x5a8] sm:$0xf]  ;;  %540 = vst [vmem:[%s4242_s29 + $0x2cc] sm:$0xf] %v539_v51 }
  0x8c   : > { %542 = vst [vmem:[%s4242_s29 + $0x2d0] sm:$0xf] %v541_v52  ;;  %544 = vst [vmem:[%s4242_s29 + $0x2d4] sm:$0xf] %v543_v53  ;;  %v545_v54 = vld [vmem:[%s4235_s28 + $0x5b0] sm:$0xf] }
  0x8d   : > { %v547_v55 = vld [vmem:[%s4235_s28 + $0x5b8] sm:$0xf]  ;;  %v549_v56 = vld [vmem:[%s4235_s28 + $0x5c0] sm:$0xf]  ;;  %546 = vst [vmem:[%s4242_s29 + $0x2d8] sm:$0xf] %v545_v54 }
  0x8e   : > { %548 = vst [vmem:[%s4242_s29 + $0x2dc] sm:$0xf] %v547_v55  ;;  %550 = vst [vmem:[%s4242_s29 + $0x2e0] sm:$0xf] %v549_v56  ;;  %v551_v57 = vld [vmem:[%s4235_s28 + $0x5c8] sm:$0xf] }
  0x8f   : > { %v553_v58 = vld [vmem:[%s4235_s28 + $0x5d0] sm:$0xf]  ;;  %v555_v59 = vld [vmem:[%s4235_s28 + $0x5d8] sm:$0xf]  ;;  %552 = vst [vmem:[%s4242_s29 + $0x2e4] sm:$0xf] %v551_v57 }
  0x90   : > { %554 = vst [vmem:[%s4242_s29 + $0x2e8] sm:$0xf] %v553_v58  ;;  %556 = vst [vmem:[%s4242_s29 + $0x2ec] sm:$0xf] %v555_v59  ;;  %v557_v60 = vld [vmem:[%s4235_s28 + $0x5e0] sm:$0xf] }
  0x91   : > { %v559_v61 = vld [vmem:[%s4235_s28 + $0x5e8] sm:$0xf]  ;;  %v561_v62 = vld [vmem:[%s4235_s28 + $0x5f0] sm:$0xf]  ;;  %558 = vst [vmem:[%s4242_s29 + $0x2f0] sm:$0xf] %v557_v60 }
  0x92   : > { %560 = vst [vmem:[%s4242_s29 + $0x2f4] sm:$0xf] %v559_v61  ;;  %562 = vst [vmem:[%s4242_s29 + $0x2f8] sm:$0xf] %v561_v62  ;;  %v563_v63 = vld [vmem:[%s4235_s28 + $0x5f8] sm:$0xf] }
  0x93   : > { %v565_v0 = vld [vmem:[%s4235_s28 + $0x600] sm:$0xf]  ;;  %v567_v1 = vld [vmem:[%s4235_s28 + $0x608] sm:$0xf]  ;;  %564 = vst [vmem:[%s4242_s29 + $0x2fc] sm:$0xf] %v563_v63 }
  0x94   : > { %566 = vst [vmem:[%s4242_s29 + $0x300] sm:$0xf] %v565_v0  ;;  %568 = vst [vmem:[%s4242_s29 + $0x304] sm:$0xf] %v567_v1  ;;  %v569_v2 = vld [vmem:[%s4235_s28 + $0x610] sm:$0xf] }
  0x95   : > { %v571_v3 = vld [vmem:[%s4235_s28 + $0x618] sm:$0xf]  ;;  %v573_v4 = vld [vmem:[%s4235_s28 + $0x620] sm:$0xf]  ;;  %570 = vst [vmem:[%s4242_s29 + $0x308] sm:$0xf] %v569_v2 }
  0x96   : > { %572 = vst [vmem:[%s4242_s29 + $0x30c] sm:$0xf] %v571_v3  ;;  %574 = vst [vmem:[%s4242_s29 + $0x310] sm:$0xf] %v573_v4  ;;  %v575_v5 = vld [vmem:[%s4235_s28 + $0x628] sm:$0xf] }
  0x97   : > { %v577_v6 = vld [vmem:[%s4235_s28 + $0x630] sm:$0xf]  ;;  %v579_v7 = vld [vmem:[%s4235_s28 + $0x638] sm:$0xf]  ;;  %576 = vst [vmem:[%s4242_s29 + $0x314] sm:$0xf] %v575_v5 }
  0x98   : > { %578 = vst [vmem:[%s4242_s29 + $0x318] sm:$0xf] %v577_v6  ;;  %580 = vst [vmem:[%s4242_s29 + $0x31c] sm:$0xf] %v579_v7  ;;  %v581_v8 = vld [vmem:[%s4235_s28 + $0x640] sm:$0xf] }
  0x99   : > { %v583_v9 = vld [vmem:[%s4235_s28 + $0x648] sm:$0xf]  ;;  %v585_v10 = vld [vmem:[%s4235_s28 + $0x650] sm:$0xf]  ;;  %582 = vst [vmem:[%s4242_s29 + $0x320] sm:$0xf] %v581_v8 }
  0x9a   : > { %584 = vst [vmem:[%s4242_s29 + $0x324] sm:$0xf] %v583_v9  ;;  %586 = vst [vmem:[%s4242_s29 + $0x328] sm:$0xf] %v585_v10  ;;  %v587_v11 = vld [vmem:[%s4235_s28 + $0x658] sm:$0xf] }
  0x9b   : > { %v589_v12 = vld [vmem:[%s4235_s28 + $0x660] sm:$0xf]  ;;  %v591_v13 = vld [vmem:[%s4235_s28 + $0x668] sm:$0xf]  ;;  %588 = vst [vmem:[%s4242_s29 + $0x32c] sm:$0xf] %v587_v11 }
  0x9c   : > { %590 = vst [vmem:[%s4242_s29 + $0x330] sm:$0xf] %v589_v12  ;;  %592 = vst [vmem:[%s4242_s29 + $0x334] sm:$0xf] %v591_v13  ;;  %v593_v14 = vld [vmem:[%s4235_s28 + $0x670] sm:$0xf] }
  0x9d   : > { %v595_v15 = vld [vmem:[%s4235_s28 + $0x678] sm:$0xf]  ;;  %v597_v16 = vld [vmem:[%s4235_s28 + $0x680] sm:$0xf]  ;;  %594 = vst [vmem:[%s4242_s29 + $0x338] sm:$0xf] %v593_v14 }
  0x9e   : > { %596 = vst [vmem:[%s4242_s29 + $0x33c] sm:$0xf] %v595_v15  ;;  %598 = vst [vmem:[%s4242_s29 + $0x340] sm:$0xf] %v597_v16  ;;  %v599_v17 = vld [vmem:[%s4235_s28 + $0x688] sm:$0xf] }
  0x9f   : > { %v601_v18 = vld [vmem:[%s4235_s28 + $0x690] sm:$0xf]  ;;  %v603_v19 = vld [vmem:[%s4235_s28 + $0x698] sm:$0xf]  ;;  %600 = vst [vmem:[%s4242_s29 + $0x344] sm:$0xf] %v599_v17 }
  0xa0   : > { %602 = vst [vmem:[%s4242_s29 + $0x348] sm:$0xf] %v601_v18  ;;  %604 = vst [vmem:[%s4242_s29 + $0x34c] sm:$0xf] %v603_v19  ;;  %v605_v20 = vld [vmem:[%s4235_s28 + $0x6a0] sm:$0xf] }
  0xa1   : > { %v607_v21 = vld [vmem:[%s4235_s28 + $0x6a8] sm:$0xf]  ;;  %v609_v22 = vld [vmem:[%s4235_s28 + $0x6b0] sm:$0xf]  ;;  %606 = vst [vmem:[%s4242_s29 + $0x350] sm:$0xf] %v605_v20 }
  0xa2   : > { %608 = vst [vmem:[%s4242_s29 + $0x354] sm:$0xf] %v607_v21  ;;  %610 = vst [vmem:[%s4242_s29 + $0x358] sm:$0xf] %v609_v22  ;;  %v611_v23 = vld [vmem:[%s4235_s28 + $0x6b8] sm:$0xf] }
  0xa3   : > { %v613_v24 = vld [vmem:[%s4235_s28 + $0x6c0] sm:$0xf]  ;;  %v615_v25 = vld [vmem:[%s4235_s28 + $0x6c8] sm:$0xf]  ;;  %612 = vst [vmem:[%s4242_s29 + $0x35c] sm:$0xf] %v611_v23 }
  0xa4   : > { %614 = vst [vmem:[%s4242_s29 + $0x360] sm:$0xf] %v613_v24  ;;  %616 = vst [vmem:[%s4242_s29 + $0x364] sm:$0xf] %v615_v25  ;;  %v617_v26 = vld [vmem:[%s4235_s28 + $0x6d0] sm:$0xf] }
  0xa5   : > { %v619_v27 = vld [vmem:[%s4235_s28 + $0x6d8] sm:$0xf]  ;;  %v621_v28 = vld [vmem:[%s4235_s28 + $0x6e0] sm:$0xf]  ;;  %618 = vst [vmem:[%s4242_s29 + $0x368] sm:$0xf] %v617_v26 }
  0xa6   : > { %620 = vst [vmem:[%s4242_s29 + $0x36c] sm:$0xf] %v619_v27  ;;  %622 = vst [vmem:[%s4242_s29 + $0x370] sm:$0xf] %v621_v28  ;;  %v623_v29 = vld [vmem:[%s4235_s28 + $0x6e8] sm:$0xf] }
  0xa7   : > { %v625_v30 = vld [vmem:[%s4235_s28 + $0x6f0] sm:$0xf]  ;;  %v627_v31 = vld [vmem:[%s4235_s28 + $0x6f8] sm:$0xf]  ;;  %624 = vst [vmem:[%s4242_s29 + $0x374] sm:$0xf] %v623_v29 }
  0xa8   : > { %626 = vst [vmem:[%s4242_s29 + $0x378] sm:$0xf] %v625_v30  ;;  %628 = vst [vmem:[%s4242_s29 + $0x37c] sm:$0xf] %v627_v31  ;;  %v629_v32 = vld [vmem:[%s4235_s28 + $0x700] sm:$0xf] }
  0xa9   : > { %v631_v33 = vld [vmem:[%s4235_s28 + $0x708] sm:$0xf]  ;;  %v633_v34 = vld [vmem:[%s4235_s28 + $0x710] sm:$0xf]  ;;  %630 = vst [vmem:[%s4242_s29 + $0x380] sm:$0xf] %v629_v32 }
  0xaa   : > { %632 = vst [vmem:[%s4242_s29 + $0x384] sm:$0xf] %v631_v33  ;;  %634 = vst [vmem:[%s4242_s29 + $0x388] sm:$0xf] %v633_v34  ;;  %v635_v35 = vld [vmem:[%s4235_s28 + $0x718] sm:$0xf] }
  0xab   : > { %v637_v36 = vld [vmem:[%s4235_s28 + $0x720] sm:$0xf]  ;;  %v639_v37 = vld [vmem:[%s4235_s28 + $0x728] sm:$0xf]  ;;  %636 = vst [vmem:[%s4242_s29 + $0x38c] sm:$0xf] %v635_v35 }
  0xac   : > { %638 = vst [vmem:[%s4242_s29 + $0x390] sm:$0xf] %v637_v36  ;;  %640 = vst [vmem:[%s4242_s29 + $0x394] sm:$0xf] %v639_v37  ;;  %v641_v38 = vld [vmem:[%s4235_s28 + $0x730] sm:$0xf] }
  0xad   : > { %v643_v39 = vld [vmem:[%s4235_s28 + $0x738] sm:$0xf]  ;;  %v645_v40 = vld [vmem:[%s4235_s28 + $0x740] sm:$0xf]  ;;  %642 = vst [vmem:[%s4242_s29 + $0x398] sm:$0xf] %v641_v38 }
  0xae   : > { %644 = vst [vmem:[%s4242_s29 + $0x39c] sm:$0xf] %v643_v39  ;;  %646 = vst [vmem:[%s4242_s29 + $0x3a0] sm:$0xf] %v645_v40  ;;  %v647_v41 = vld [vmem:[%s4235_s28 + $0x748] sm:$0xf] }
  0xaf   : > { %v649_v42 = vld [vmem:[%s4235_s28 + $0x750] sm:$0xf]  ;;  %v651_v43 = vld [vmem:[%s4235_s28 + $0x758] sm:$0xf]  ;;  %648 = vst [vmem:[%s4242_s29 + $0x3a4] sm:$0xf] %v647_v41 }
  0xb0   : > { %650 = vst [vmem:[%s4242_s29 + $0x3a8] sm:$0xf] %v649_v42  ;;  %652 = vst [vmem:[%s4242_s29 + $0x3ac] sm:$0xf] %v651_v43  ;;  %v653_v44 = vld [vmem:[%s4235_s28 + $0x760] sm:$0xf] }
  0xb1   : > { %v655_v45 = vld [vmem:[%s4235_s28 + $0x768] sm:$0xf]  ;;  %v657_v46 = vld [vmem:[%s4235_s28 + $0x770] sm:$0xf]  ;;  %654 = vst [vmem:[%s4242_s29 + $0x3b0] sm:$0xf] %v653_v44 }
  0xb2   : > { %656 = vst [vmem:[%s4242_s29 + $0x3b4] sm:$0xf] %v655_v45  ;;  %658 = vst [vmem:[%s4242_s29 + $0x3b8] sm:$0xf] %v657_v46  ;;  %v659_v47 = vld [vmem:[%s4235_s28 + $0x778] sm:$0xf] }
  0xb3   : > { %v661_v48 = vld [vmem:[%s4235_s28 + $0x780] sm:$0xf]  ;;  %v663_v49 = vld [vmem:[%s4235_s28 + $0x788] sm:$0xf]  ;;  %660 = vst [vmem:[%s4242_s29 + $0x3bc] sm:$0xf] %v659_v47 }
  0xb4   : > { %662 = vst [vmem:[%s4242_s29 + $0x3c0] sm:$0xf] %v661_v48  ;;  %664 = vst [vmem:[%s4242_s29 + $0x3c4] sm:$0xf] %v663_v49  ;;  %v665_v50 = vld [vmem:[%s4235_s28 + $0x790] sm:$0xf] }
  0xb5   : > { %v667_v51 = vld [vmem:[%s4235_s28 + $0x798] sm:$0xf]  ;;  %v669_v52 = vld [vmem:[%s4235_s28 + $0x7a0] sm:$0xf]  ;;  %666 = vst [vmem:[%s4242_s29 + $0x3c8] sm:$0xf] %v665_v50 }
  0xb6   : > { %668 = vst [vmem:[%s4242_s29 + $0x3cc] sm:$0xf] %v667_v51  ;;  %670 = vst [vmem:[%s4242_s29 + $0x3d0] sm:$0xf] %v669_v52  ;;  %v671_v53 = vld [vmem:[%s4235_s28 + $0x7a8] sm:$0xf] }
  0xb7   : > { %v673_v54 = vld [vmem:[%s4235_s28 + $0x7b0] sm:$0xf]  ;;  %v675_v55 = vld [vmem:[%s4235_s28 + $0x7b8] sm:$0xf]  ;;  %672 = vst [vmem:[%s4242_s29 + $0x3d4] sm:$0xf] %v671_v53 }
  0xb8   : > { %674 = vst [vmem:[%s4242_s29 + $0x3d8] sm:$0xf] %v673_v54  ;;  %676 = vst [vmem:[%s4242_s29 + $0x3dc] sm:$0xf] %v675_v55  ;;  %v677_v56 = vld [vmem:[%s4235_s28 + $0x7c0] sm:$0xf] }
  0xb9   : > { %v679_v57 = vld [vmem:[%s4235_s28 + $0x7c8] sm:$0xf]  ;;  %v681_v58 = vld [vmem:[%s4235_s28 + $0x7d0] sm:$0xf]  ;;  %678 = vst [vmem:[%s4242_s29 + $0x3e0] sm:$0xf] %v677_v56 }
  0xba   : > { %680 = vst [vmem:[%s4242_s29 + $0x3e4] sm:$0xf] %v679_v57  ;;  %682 = vst [vmem:[%s4242_s29 + $0x3e8] sm:$0xf] %v681_v58  ;;  %v683_v59 = vld [vmem:[%s4235_s28 + $0x7d8] sm:$0xf] }
  0xbb   : > { %v685_v60 = vld [vmem:[%s4235_s28 + $0x7e0] sm:$0xf]  ;;  %v687_v61 = vld [vmem:[%s4235_s28 + $0x7e8] sm:$0xf]  ;;  %684 = vst [vmem:[%s4242_s29 + $0x3ec] sm:$0xf] %v683_v59 }
  0xbc   : > { %686 = vst [vmem:[%s4242_s29 + $0x3f0] sm:$0xf] %v685_v60  ;;  %688 = vst [vmem:[%s4242_s29 + $0x3f4] sm:$0xf] %v687_v61  ;;  %v689_v62 = vld [vmem:[%s4235_s28 + $0x7f0] sm:$0xf] }
  0xbd   : > { %v691_v63 = vld [vmem:[%s4235_s28 + $0x7f8] sm:$0xf]  ;;  %v693_v0 = vld [vmem:[%s4235_s28 + $0x800] sm:$0xf]  ;;  %690 = vst [vmem:[%s4242_s29 + $0x3f8] sm:$0xf] %v689_v62 }
  0xbe   : > { %692 = vst [vmem:[%s4242_s29 + $0x3fc] sm:$0xf] %v691_v63  ;;  %694 = vst [vmem:[%s4242_s29 + $0x400] sm:$0xf] %v693_v0  ;;  %v695_v1 = vld [vmem:[%s4235_s28 + $0x808] sm:$0xf] }
  0xbf   : > { %v697_v2 = vld [vmem:[%s4235_s28 + $0x810] sm:$0xf]  ;;  %v699_v3 = vld [vmem:[%s4235_s28 + $0x818] sm:$0xf]  ;;  %696 = vst [vmem:[%s4242_s29 + $0x404] sm:$0xf] %v695_v1 }
  0xc0   : > { %698 = vst [vmem:[%s4242_s29 + $0x408] sm:$0xf] %v697_v2  ;;  %700 = vst [vmem:[%s4242_s29 + $0x40c] sm:$0xf] %v699_v3  ;;  %v701_v4 = vld [vmem:[%s4235_s28 + $0x820] sm:$0xf] }
  0xc1   : > { %v703_v5 = vld [vmem:[%s4235_s28 + $0x828] sm:$0xf]  ;;  %v705_v6 = vld [vmem:[%s4235_s28 + $0x830] sm:$0xf]  ;;  %702 = vst [vmem:[%s4242_s29 + $0x410] sm:$0xf] %v701_v4 }
  0xc2   : > { %704 = vst [vmem:[%s4242_s29 + $0x414] sm:$0xf] %v703_v5  ;;  %706 = vst [vmem:[%s4242_s29 + $0x418] sm:$0xf] %v705_v6  ;;  %v707_v7 = vld [vmem:[%s4235_s28 + $0x838] sm:$0xf] }
  0xc3   : > { %v709_v8 = vld [vmem:[%s4235_s28 + $0x840] sm:$0xf]  ;;  %v711_v9 = vld [vmem:[%s4235_s28 + $0x848] sm:$0xf]  ;;  %708 = vst [vmem:[%s4242_s29 + $0x41c] sm:$0xf] %v707_v7 }
  0xc4   : > { %710 = vst [vmem:[%s4242_s29 + $0x420] sm:$0xf] %v709_v8  ;;  %712 = vst [vmem:[%s4242_s29 + $0x424] sm:$0xf] %v711_v9  ;;  %v713_v10 = vld [vmem:[%s4235_s28 + $0x850] sm:$0xf] }
  0xc5   : > { %v715_v11 = vld [vmem:[%s4235_s28 + $0x858] sm:$0xf]  ;;  %v717_v12 = vld [vmem:[%s4235_s28 + $0x860] sm:$0xf]  ;;  %714 = vst [vmem:[%s4242_s29 + $0x428] sm:$0xf] %v713_v10 }
  0xc6   : > { %716 = vst [vmem:[%s4242_s29 + $0x42c] sm:$0xf] %v715_v11  ;;  %718 = vst [vmem:[%s4242_s29 + $0x430] sm:$0xf] %v717_v12  ;;  %v719_v13 = vld [vmem:[%s4235_s28 + $0x868] sm:$0xf] }
  0xc7   : > { %v721_v14 = vld [vmem:[%s4235_s28 + $0x870] sm:$0xf]  ;;  %v723_v15 = vld [vmem:[%s4235_s28 + $0x878] sm:$0xf]  ;;  %720 = vst [vmem:[%s4242_s29 + $0x434] sm:$0xf] %v719_v13 }
  0xc8   : > { %722 = vst [vmem:[%s4242_s29 + $0x438] sm:$0xf] %v721_v14  ;;  %724 = vst [vmem:[%s4242_s29 + $0x43c] sm:$0xf] %v723_v15  ;;  %v725_v16 = vld [vmem:[%s4235_s28 + $0x880] sm:$0xf] }
  0xc9   : > { %v727_v17 = vld [vmem:[%s4235_s28 + $0x888] sm:$0xf]  ;;  %v729_v18 = vld [vmem:[%s4235_s28 + $0x890] sm:$0xf]  ;;  %726 = vst [vmem:[%s4242_s29 + $0x440] sm:$0xf] %v725_v16 }
  0xca   : > { %728 = vst [vmem:[%s4242_s29 + $0x444] sm:$0xf] %v727_v17  ;;  %730 = vst [vmem:[%s4242_s29 + $0x448] sm:$0xf] %v729_v18  ;;  %v731_v19 = vld [vmem:[%s4235_s28 + $0x898] sm:$0xf] }
  0xcb   : > { %v733_v20 = vld [vmem:[%s4235_s28 + $0x8a0] sm:$0xf]  ;;  %v735_v21 = vld [vmem:[%s4235_s28 + $0x8a8] sm:$0xf]  ;;  %732 = vst [vmem:[%s4242_s29 + $0x44c] sm:$0xf] %v731_v19 }
  0xcc   : > { %734 = vst [vmem:[%s4242_s29 + $0x450] sm:$0xf] %v733_v20  ;;  %736 = vst [vmem:[%s4242_s29 + $0x454] sm:$0xf] %v735_v21  ;;  %v737_v22 = vld [vmem:[%s4235_s28 + $0x8b0] sm:$0xf] }
  0xcd   : > { %v739_v23 = vld [vmem:[%s4235_s28 + $0x8b8] sm:$0xf]  ;;  %v741_v24 = vld [vmem:[%s4235_s28 + $0x8c0] sm:$0xf]  ;;  %738 = vst [vmem:[%s4242_s29 + $0x458] sm:$0xf] %v737_v22 }
  0xce   : > { %740 = vst [vmem:[%s4242_s29 + $0x45c] sm:$0xf] %v739_v23  ;;  %742 = vst [vmem:[%s4242_s29 + $0x460] sm:$0xf] %v741_v24  ;;  %v743_v25 = vld [vmem:[%s4235_s28 + $0x8c8] sm:$0xf] }
  0xcf   : > { %v745_v26 = vld [vmem:[%s4235_s28 + $0x8d0] sm:$0xf]  ;;  %v747_v27 = vld [vmem:[%s4235_s28 + $0x8d8] sm:$0xf]  ;;  %744 = vst [vmem:[%s4242_s29 + $0x464] sm:$0xf] %v743_v25 }
  0xd0   : > { %746 = vst [vmem:[%s4242_s29 + $0x468] sm:$0xf] %v745_v26  ;;  %748 = vst [vmem:[%s4242_s29 + $0x46c] sm:$0xf] %v747_v27  ;;  %v749_v28 = vld [vmem:[%s4235_s28 + $0x8e0] sm:$0xf] }
  0xd1   : > { %v751_v29 = vld [vmem:[%s4235_s28 + $0x8e8] sm:$0xf]  ;;  %v753_v30 = vld [vmem:[%s4235_s28 + $0x8f0] sm:$0xf]  ;;  %750 = vst [vmem:[%s4242_s29 + $0x470] sm:$0xf] %v749_v28 }
  0xd2   : > { %752 = vst [vmem:[%s4242_s29 + $0x474] sm:$0xf] %v751_v29  ;;  %754 = vst [vmem:[%s4242_s29 + $0x478] sm:$0xf] %v753_v30  ;;  %v755_v31 = vld [vmem:[%s4235_s28 + $0x8f8] sm:$0xf] }
  0xd3   : > { %756 = vst [vmem:[%s4242_s29 + $0x47c] sm:$0xf] %v755_v31 }
  0xd4 PF: > { %p3413_p8 = scmp.ge.s32.totalorder %s4165_s16, 1  ;;  %p1361_p9 = scmp.lt.s32.totalorder %s4165_s16, 3 }
  0xd6   : > { %p1362_p10 = pnand %p3413_p8, %p1361_p9 }
  0xd8   : > { %1365 = sbr.rel (%p1362_p10) target bundleno = 605 (0x25d), region = 69 }
  0xdd   : > { %s1368_s30 = sand.u32 1, %s4149_s12   ;;  %v3963_v32 = vld [vmem:[%s5150_s0 + $0x4] ss:$72 sps:$4 sm:$0xff]   ;;  %v3961_v0 = vld [vmem:[%s5150_s0] ss:$72 sps:$4 sm:$0xff]   ;;  %p1406_p11 = scmp.lt.s32.totalorder %s4157_s14, 1 }
  0xde   : > { %s3888_s4 = smul.u32 1152, %s1368_s30  ;;  %v3966_v33 = vld [vmem:[%s5150_s0 + $0xc] ss:$72 sps:$4 sm:$0xff]   ;;  %2818 = vmatprep.mubr.bf16.mxu0 %v3963_v32  ;;  %v3964_v2 = vld [vmem:[%s5150_s0 + $0x8] ss:$72 sps:$4 sm:$0xff]   ;;  %s3414_s19 = sshll.u32 %s1368_s30, 4 }
  0xdf   : > { %2867 = vmatprep.mubr.bf16.mxu1 %v3966_v33  ;;  %v3983_v4 = vld [vmem:[%s5150_s0 + $0x94] ss:$72 sps:$4 sm:$0xff]   ;;  %v3987_v11 = vld [vmem:[%s5150_s0 + $0x90] ss:$72 sps:$4 sm:$0xff]   ;;  %s1398_s20 = scalar_lea.vmem [#allocation3], %s3414_s19  ;;  %s3601_s23 = sshll.u32 (%p4222_p6), %s4157_s14, 2 }
  0xe0   : > { %s4826_s9 = scalar_lea.vmem [#allocation2], %s3888_s4  ;;  %v3990_v26 = vld [vmem:[%s5150_s0 + $0x9c] ss:$72 sps:$4 sm:$0xff]   ;;  %v3992_v27 = vld [vmem:[%s5150_s0 + $0x98] ss:$72 sps:$4 sm:$0xff]   ;;  %s3262_s24 = scalar_lea.vmem (%p4222_p6), %s5153_s3, %s3601_s23 }
  0xe1   : > { %v3929_v34 = vld [vmem:[%s4826_s9 + $0x78] sm:$0xff]   ;;  %v3933_v38 = vld [vmem:[%s4826_s9 + $0x70] sm:$0xff]   ;;  %v3937_v42 = vld [vmem:[%s4826_s9 + $0x68] sm:$0xff]  }
  0xe2   : > { %v3930_v35 = vld [vmem:[%s4826_s9 + $0xf8] sm:$0xff]   ;;  %3619 = vmatprep.subr.bf16.mxu0 %v3929_v34  ;;  %v3934_v39 = vld [vmem:[%s4826_s9 + $0xf0] sm:$0xff]   ;;  %v3938_v43 = vld [vmem:[%s4826_s9 + $0xe8] sm:$0xff]  }
  0xe3   : > { %v3931_v36 = vld [vmem:[%s4826_s9 + $0x38] sm:$0xff]   ;;  %3647 = vmatprep.subr.bf16.mxu1 %v3930_v35  ;;  %v3935_v40 = vld [vmem:[%s4826_s9 + $0x30] sm:$0xff]   ;;  %v3939_v44 = vld [vmem:[%s4826_s9 + $0x28] sm:$0xff]  }
  0xe4   : > { %v3932_v37 = vld [vmem:[%s4826_s9 + $0xb8] sm:$0xff]   ;;  %3620 = vmatpush3.bf16.msra.mxu0 %v3931_v36  ;;  %v3936_v41 = vld [vmem:[%s4826_s9 + $0xb0] sm:$0xff]   ;;  %v3940_v45 = vld [vmem:[%s4826_s9 + $0xa8] sm:$0xff]  }
  0xe5   : > { %3648 = vmatpush3.bf16.msra.mxu1 %v3932_v37  ;;  %3621 = vmatprep.subr.bf16.mxu0 %v3933_v38  ;;  %v3941_v46 = vld [vmem:[%s4826_s9 + $0x60] sm:$0xff]   ;;  %v3945_v50 = vld [vmem:[%s4826_s9 + $0x58] sm:$0xff]   ;;  %v3949_v54 = vld [vmem:[%s4826_s9 + $0x50] sm:$0xff]  }
  0xe6   : > { %3649 = vmatprep.subr.bf16.mxu1 %v3934_v39  ;;  %v3942_v47 = vld [vmem:[%s4826_s9 + $0xe0] sm:$0xff]   ;;  %v3946_v51 = vld [vmem:[%s4826_s9 + $0xd8] sm:$0xff]   ;;  %v3950_v55 = vld [vmem:[%s4826_s9 + $0xd0] sm:$0xff]  }
  0xe7   : > { %v3943_v48 = vld [vmem:[%s4826_s9 + $0x20] sm:$0xff]   ;;  %v3947_v52 = vld [vmem:[%s4826_s9 + $0x18] sm:$0xff]   ;;  %v3951_v56 = vld [vmem:[%s4826_s9 + $0x10] sm:$0xff]  }
  0xe8   : > { %3622 = vmatpush3.bf16.msra.mxu0 %v3935_v40  ;;  %v3944_v49 = vld [vmem:[%s4826_s9 + $0xa0] sm:$0xff]   ;;  %v3948_v53 = vld [vmem:[%s4826_s9 + $0x98] sm:$0xff]   ;;  %v3952_v57 = vld [vmem:[%s4826_s9 + $0x90] sm:$0xff]  }
  0xe9   : > { %3650 = vmatpush3.bf16.msra.mxu1 %v3936_v41  ;;  %3623 = vmatprep.subr.bf16.mxu0 %v3937_v42  ;;  %v3953_v58 = vld [vmem:[%s4826_s9 + $0x48] sm:$0xff]   ;;  %v3957_v62 = vld [vmem:[%s4826_s9 + $0x40] sm:$0xff]   ;;  %v3967_v5 = vld [vmem:[%s4826_s9 + $0x178] sm:$0xff]  }
  0xea   : > { %3651 = vmatprep.subr.bf16.mxu1 %v3938_v43  ;;  %v3954_v59 = vld [vmem:[%s4826_s9 + $0xc8] sm:$0xff]   ;;  %v3958_v63 = vld [vmem:[%s4826_s9 + $0xc0] sm:$0xff]   ;;  %v3968_v6 = vld [vmem:[%s4826_s9 + $0x1f8] sm:$0xff]  }
  0xeb   : > { %v3955_v60 = vld [vmem:[%s4826_s9 + $0x8] sm:$0xff]   ;;  %v3959_v1 = vld [vmem:[%s4826_s9] sm:$0xff]   ;;  %v3969_v7 = vld [vmem:[%s4826_s9 + $0x138] sm:$0xff]  }
  0xec   : > { %3624 = vmatpush3.bf16.msra.mxu0 %v3939_v44  ;;  %v3956_v61 = vld [vmem:[%s4826_s9 + $0x88] sm:$0xff]   ;;  %v3960_v3 = vld [vmem:[%s4826_s9 + $0x80] sm:$0xff]   ;;  %v3970_v8 = vld [vmem:[%s4826_s9 + $0x1b8] sm:$0xff]  }
  0xed   : > { %3652 = vmatpush3.bf16.msra.mxu1 %v3940_v45  ;;  %3625 = vmatprep.subr.bf16.mxu0 %v3941_v46  ;;  %v3971_v9 = vld [vmem:[%s4826_s9 + $0x170] sm:$0xff]   ;;  %v3975_v14 = vld [vmem:[%s4826_s9 + $0x168] sm:$0xff]   ;;  %v3979_v18 = vld [vmem:[%s4826_s9 + $0x160] sm:$0xff]  }
  0xee   : > { %3653 = vmatprep.subr.bf16.mxu1 %v3942_v47  ;;  %v3972_v10 = vld [vmem:[%s4826_s9 + $0x1f0] sm:$0xff]   ;;  %v3976_v15 = vld [vmem:[%s4826_s9 + $0x1e8] sm:$0xff]   ;;  %v3980_v19 = vld [vmem:[%s4826_s9 + $0x1e0] sm:$0xff]  }
  0xef   : > { %v3973_v12 = vld [vmem:[%s4826_s9 + $0x130] sm:$0xff]   ;;  %v3977_v16 = vld [vmem:[%s4826_s9 + $0x128] sm:$0xff]   ;;  %v3981_v20 = vld [vmem:[%s4826_s9 + $0x120] sm:$0xff]  }
  0xf0   : > { %3626 = vmatpush3.bf16.msra.mxu0 %v3943_v48  ;;  %v3974_v13 = vld [vmem:[%s4826_s9 + $0x1b0] sm:$0xff]   ;;  %v3978_v17 = vld [vmem:[%s4826_s9 + $0x1a8] sm:$0xff]   ;;  %v3982_v21 = vld [vmem:[%s4826_s9 + $0x1a0] sm:$0xff]  }
  0xf1   : > { %3654 = vmatpush3.bf16.msra.mxu1 %v3944_v49  ;;  %3627 = vmatprep.subr.bf16.mxu0 %v3945_v50  ;;  %v3985_v22 = vld [vmem:[%s4826_s9 + $0x158] sm:$0xff]   ;;  %v3993_v28 = vld [vmem:[%s4826_s9 + $0x150] sm:$0xff]   ;;  %v3997_v32 = vld [vmem:[%s4826_s9 + $0x148] sm:$0xff]  }
  0xf2   : > { %3655 = vmatprep.subr.bf16.mxu1 %v3946_v51  ;;  %v3986_v23 = vld [vmem:[%s4826_s9 + $0x1d8] sm:$0xff]   ;;  %v3994_v29 = vld [vmem:[%s4826_s9 + $0x1d0] sm:$0xff]   ;;  %v3998_v33 = vld [vmem:[%s4826_s9 + $0x1c8] sm:$0xff]  }
  0xf3   : > { %v3988_v24 = vld [vmem:[%s4826_s9 + $0x118] sm:$0xff]   ;;  %v3995_v30 = vld [vmem:[%s4826_s9 + $0x110] sm:$0xff]   ;;  %v3999_v34 = vld [vmem:[%s4826_s9 + $0x108] sm:$0xff]  }
  0xf4   : > { %3628 = vmatpush3.bf16.msra.mxu0 %v3947_v52  ;;  %v3989_v25 = vld [vmem:[%s4826_s9 + $0x198] sm:$0xff]   ;;  %v3996_v31 = vld [vmem:[%s4826_s9 + $0x190] sm:$0xff]   ;;  %v4000_v35 = vld [vmem:[%s4826_s9 + $0x188] sm:$0xff]  }
  0xf5   : > { %3656 = vmatpush3.bf16.msra.mxu1 %v3948_v53  ;;  %3629 = vmatprep.subr.bf16.mxu0 %v3949_v54  ;;  %v4001_v36 = vld [vmem:[%s4826_s9 + $0x140] sm:$0xff]   ;;  %v4005_v40 = vld [vmem:[%s5150_s0 + $0x10] ss:$72 sps:$4 sm:$0xff]   ;;  %v4007_v41 = vld [vmem:[%s5150_s0 + $0x14] ss:$72 sps:$4 sm:$0xff]  }
  0xf6   : > { %3657 = vmatprep.subr.bf16.mxu1 %v3950_v55  ;;  %v4002_v37 = vld [vmem:[%s4826_s9 + $0x1c0] sm:$0xff]   ;;  %v4011_v44 = vld [vmem:[%s4826_s9 + $0x278] sm:$0xff]   ;;  %v4015_v48 = vld [vmem:[%s4826_s9 + $0x270] sm:$0xff]  }
  0xf7   : > { %v4003_v38 = vld [vmem:[%s4826_s9 + $0x100] sm:$0xff]   ;;  %v4012_v45 = vld [vmem:[%s4826_s9 + $0x2f8] sm:$0xff]   ;;  %v4016_v49 = vld [vmem:[%s4826_s9 + $0x2f0] sm:$0xff]  }
  0xf8   : > { %3630 = vmatpush3.bf16.msra.mxu0 %v3951_v56  ;;  %v4004_v39 = vld [vmem:[%s4826_s9 + $0x180] sm:$0xff]   ;;  %v4013_v46 = vld [vmem:[%s4826_s9 + $0x238] sm:$0xff]   ;;  %v4017_v50 = vld [vmem:[%s4826_s9 + $0x230] sm:$0xff]  }
  0xf9   : > { %3658 = vmatpush3.bf16.msra.mxu1 %v3952_v57  ;;  %3631 = vmatprep.subr.bf16.mxu0 %v3953_v58  ;;  %v4008_v42 = vld [vmem:[%s5150_s0 + $0x18] ss:$72 sps:$4 sm:$0xff]   ;;  %v4010_v43 = vld [vmem:[%s5150_s0 + $0x1c] ss:$72 sps:$4 sm:$0xff]   ;;  %v4018_v51 = vld [vmem:[%s4826_s9 + $0x2b0] sm:$0xff]  }
  0xfa   : > { %3659 = vmatprep.subr.bf16.mxu1 %v3954_v59  ;;  %v4014_v47 = vld [vmem:[%s4826_s9 + $0x2b8] sm:$0xff]   ;;  %v4019_v52 = vld [vmem:[%s5150_s0 + $0xa4] ss:$72 sps:$4 sm:$0xff]   ;;  %v4021_v53 = vld [vmem:[%s5150_s0 + $0xa0] ss:$72 sps:$4 sm:$0xff]  }
  0xfb   : > { %v4022_v54 = vld [vmem:[%s4826_s9 + $0x268] sm:$0xff]  }
  0xfc   : > { %3632 = vmatpush3.bf16.msra.mxu0 %v3955_v60  ;;  %v4023_v55 = vld [vmem:[%s4826_s9 + $0x2e8] sm:$0xff]   ;;  %v4029_v60 = vld [vmem:[%s4826_s9 + $0x260] sm:$0xff]  }
  0xfd   : > { %3660 = vmatpush3.bf16.msra.mxu1 %v3956_v61  ;;  %3633 = vmatprep.subr.bf16.mxu0 %v3957_v62  ;;  %v4024_v56 = vld [vmem:[%s5150_s0 + $0xac] ss:$72 sps:$4 sm:$0xff]   ;;  %v4028_v59 = vld [vmem:[%s5150_s0 + $0xa8] ss:$72 sps:$4 sm:$0xff]   ;;  %v4030_v61 = vld [vmem:[%s4826_s9 + $0x2e0] sm:$0xff]  }
  0xfe   : > { %3661 = vmatprep.subr.bf16.mxu1 %v3958_v63  ;;  %v4026_v57 = vld [vmem:[%s4826_s9 + $0x228] sm:$0xff]   ;;  %v4031_v62 = vld [vmem:[%s4826_s9 + $0x220] sm:$0xff]  }
  0xff   : > { %v4027_v58 = vld [vmem:[%s4826_s9 + $0x2a8] sm:$0xff]   ;;  %v4032_v63 = vld [vmem:[%s4826_s9 + $0x2a0] sm:$0xff]  }
 0x100   : > { %3634 = vmatpush3.bf16.msra.mxu0 %v3959_v1  ;;  %v4034_v1 = vld [vmem:[%s4826_s9 + $0x2d8] sm:$0xff]  }
 0x101   : > { %3662 = vmatpush3.bf16.msra.mxu1 %v3960_v3  ;;  %3675 = vmatprep.subr.bf16.mxu0 %v3967_v5  ;;  %v4036_v3 = vld [vmem:[%s4826_s9 + $0x298] sm:$0xff]   ;;  %v4038_v5 = vld [vmem:[%s4826_s9 + $0x2d0] sm:$0xff]  }
 0x102   : > { %3703 = vmatprep.subr.bf16.mxu1 %v3968_v6  ;;  %v4039_v6 = vld [vmem:[%s4826_s9 + $0x210] sm:$0xff]  }
 0x103   : > { %2819 = vmatmul.mubr.bf16.vlgmr.msra.gmra.mxu0 %v3961_v0  ;;  %v4033_v0 = vld [vmem:[%s4826_s9 + $0x258] sm:$0xff]  }
 0x104   : > { %2868 = vmatmul.mubr.bf16.vlgmr.msra.gmra.mxu1 %v3964_v2  ;;  %3676 = vmatpush3.bf16.msra.mxu0 %v3969_v7  ;;  %v4035_v2 = vld [vmem:[%s4826_s9 + $0x218] sm:$0xff]   ;;  %v4040_v7 = vld [vmem:[%s4826_s9 + $0x290] sm:$0xff]  }
 0x105   : > { %3704 = vmatpush3.bf16.msra.mxu1 %v3970_v8  ;;  %2826 = vmatprep.mubr.bf16.mxu0 %v3983_v4  ;;  %v4037_v4 = vld [vmem:[%s4826_s9 + $0x250] sm:$0xff]   ;;  %v4041_v8 = vld [vmem:[%s4826_s9 + $0x248] sm:$0xff]  }
 0x106   : > { %3677 = vmatprep.subr.bf16.mxu0 %v3971_v9  ;;  %3705 = vmatprep.subr.bf16.mxu1 %v3972_v10  ;;  %v4042_v9 = vld [vmem:[%s4826_s9 + $0x2c8] sm:$0xff]  }
 0x107   : > { %2875 = vmatprep.mubr.bf16.mxu1 %v3990_v26  ;;  %v4043_v10 = vld [vmem:[%s4826_s9 + $0x208] sm:$0xff]   ;;  %v4061_v26 = vld [vmem:[%s4826_s9 + $0x330] sm:$0xff]  }
 0x108   : > { %3678 = vmatpush3.bf16.msra.mxu0 %v3973_v12  ;;  %v4045_v12 = vld [vmem:[%s4826_s9 + $0x240] sm:$0xff]  }
 0x109   : > { %3706 = vmatpush3.bf16.msra.mxu1 %v3974_v13  ;;  %3679 = vmatprep.subr.bf16.mxu0 %v3975_v14  ;;  %v4046_v13 = vld [vmem:[%s4826_s9 + $0x2c0] sm:$0xff]  }
 0x10a   : > { %3707 = vmatprep.subr.bf16.mxu1 %v3976_v15  ;;  %v4047_v14 = vld [vmem:[%s4826_s9 + $0x200] sm:$0xff]  }
 0x10b   : > { %2827 = vmatmul.mubr.bf16.gmra.mxu0 %v3987_v11  ;;  %v4044_v11 = vld [vmem:[%s4826_s9 + $0x288] sm:$0xff]   ;;  %v4048_v15 = vld [vmem:[%s4826_s9 + $0x280] sm:$0xff]  }
 0x10c   : > { %3680 = vmatpush3.bf16.msra.mxu0 %v3977_v16  ;;  %2876 = vmatmul.mubr.bf16.gmra.mxu1 %v3992_v27  ;;  %v4049_v16 = vld [vmem:[%s5150_s0 + $0x20] ss:$72 sps:$4 sm:$0xff]   ;;  %v4062_v27 = vld [vmem:[%s4826_s9 + $0x3b0] sm:$0xff]  }
 0x10d   : > { %3708 = vmatpush3.bf16.msra.mxu1 %v3978_v17  ;;  %3681 = vmatprep.subr.bf16.mxu0 %v3979_v18  ;;  %v4051_v17 = vld [vmem:[%s5150_s0 + $0x24] ss:$72 sps:$4 sm:$0xff]   ;;  %v4052_v18 = vld [vmem:[%s5150_s0 + $0x28] ss:$72 sps:$4 sm:$0xff]  }
 0x10e   : > { %3709 = vmatprep.subr.bf16.mxu1 %v3980_v19  ;;  %2916 = vmatprep.mubr.bf16.mxu0 %v4007_v41  ;;  %v4054_v19 = vld [vmem:[%s5150_s0 + $0x2c] ss:$72 sps:$4 sm:$0xff]   ;;  %v4078_v41 = vld [vmem:[%s4826_s9 + $0x3d8] sm:$0xff]  }
 0x10f   : > { %2965 = vmatprep.mubr.bf16.mxu1 %v4010_v43  ;;  %v4080_v43 = vld [vmem:[%s4826_s9 + $0x398] sm:$0xff]  }
 0x110   : > { %3682 = vmatpush3.bf16.msra.mxu0 %v3981_v20  ;;  %v4055_v20 = vld [vmem:[%s4826_s9 + $0x378] sm:$0xff]  }
 0x111   : > { %3710 = vmatpush3.bf16.msra.mxu1 %v3982_v21  ;;  %3683 = vmatprep.subr.bf16.mxu0 %v3985_v22  ;;  %v4056_v21 = vld [vmem:[%s4826_s9 + $0x3f8] sm:$0xff]  }
 0x112   : > { %3711 = vmatprep.subr.bf16.mxu1 %v3986_v23  ;;  %v4057_v22 = vld [vmem:[%s4826_s9 + $0x338] sm:$0xff]  }
 0x113   : > { %v4058_v23 = vld [vmem:[%s4826_s9 + $0x3b8] sm:$0xff]  }
 0x114   : > { %3684 = vmatpush3.bf16.msra.mxu0 %v3988_v24  ;;  %v4059_v24 = vld [vmem:[%s4826_s9 + $0x370] sm:$0xff]  }
 0x115   : > { %3712 = vmatpush3.bf16.msra.mxu1 %v3989_v25  ;;  %3685 = vmatprep.subr.bf16.mxu0 %v3993_v28  ;;  %v4060_v25 = vld [vmem:[%s4826_s9 + $0x3f0] sm:$0xff]  }
 0x116   : > { %3713 = vmatprep.subr.bf16.mxu1 %v3994_v29  ;;  %v4063_v28 = vld [vmem:[%s5150_s0 + $0xb4] ss:$72 sps:$4 sm:$0xff]   ;;  %v4065_v29 = vld [vmem:[%s5150_s0 + $0xb0] ss:$72 sps:$4 sm:$0xff]  }
 0x118   : > { %3686 = vmatpush3.bf16.msra.mxu0 %v3995_v30  ;;  %v4066_v30 = vld [vmem:[%s4826_s9 + $0x368] sm:$0xff]  }
 0x119   : > { %3714 = vmatpush3.bf16.msra.mxu1 %v3996_v31  ;;  %3687 = vmatprep.subr.bf16.mxu0 %v3997_v32  ;;  %v4067_v31 = vld [vmem:[%s4826_s9 + $0x3e8] sm:$0xff]   ;;  %v4068_v32 = vld [vmem:[%s5150_s0 + $0xbc] ss:$72 sps:$4 sm:$0xff]  }
 0x11a   : > { %3715 = vmatprep.subr.bf16.mxu1 %v3998_v33  ;;  %v4070_v33 = vld [vmem:[%s4826_s9 + $0x328] sm:$0xff]  }
 0x11c   : > { %3688 = vmatpush3.bf16.msra.mxu0 %v3999_v34  ;;  %v4071_v34 = vld [vmem:[%s4826_s9 + $0x3a8] sm:$0xff]  }
 0x11d   : > { %3716 = vmatpush3.bf16.msra.mxu1 %v4000_v35  ;;  %3689 = vmatprep.subr.bf16.mxu0 %v4001_v36  ;;  %v4072_v35 = vld [vmem:[%s5150_s0 + $0xb8] ss:$72 sps:$4 sm:$0xff]  }
 0x11e   : > { %3717 = vmatprep.subr.bf16.mxu1 %v4002_v37  ;;  %v4073_v36 = vld [vmem:[%s4826_s9 + $0x360] sm:$0xff]  }
 0x11f   : > { %v4074_v37 = vld [vmem:[%s4826_s9 + $0x3e0] sm:$0xff]  }
 0x120   : > { %3690 = vmatpush3.bf16.msra.mxu0 %v4003_v38  ;;  %v4075_v38 = vld [vmem:[%s4826_s9 + $0x320] sm:$0xff]  }
 0x121   : > { %3718 = vmatpush3.bf16.msra.mxu1 %v4004_v39  ;;  %3731 = vmatprep.subr.bf16.mxu0 %v4011_v44  ;;  %v4076_v39 = vld [vmem:[%s4826_s9 + $0x3a0] sm:$0xff]   ;;  %v4081_v44 = vld [vmem:[%s4826_s9 + $0x350] sm:$0xff]  }
 0x122   : > { %3759 = vmatprep.subr.bf16.mxu1 %v4012_v45  ;;  %v4082_v45 = vld [vmem:[%s4826_s9 + $0x3d0] sm:$0xff]  }
 0x123   : > { %2917 = vmatmul.mubr.bf16.vlgmr.msra.gmra.mxu0 %v4005_v40  ;;  %v4077_v40 = vld [vmem:[%s4826_s9 + $0x358] sm:$0xff]  }
 0x124   : > { %2966 = vmatmul.mubr.bf16.vlgmr.msra.gmra.mxu1 %v4008_v42  ;;  %3732 = vmatpush3.bf16.msra.mxu0 %v4013_v46  ;;  %v4079_v42 = vld [vmem:[%s4826_s9 + $0x318] sm:$0xff]   ;;  %v4083_v46 = vld [vmem:[%s4826_s9 + $0x310] sm:$0xff]  }
 0x125   : > { %3760 = vmatpush3.bf16.msra.mxu1 %v4014_v47  ;;  %3733 = vmatprep.subr.bf16.mxu0 %v4015_v48  ;;  %v4084_v47 = vld [vmem:[%s4826_s9 + $0x390] sm:$0xff]   ;;  %v4085_v48 = vld [vmem:[%s4826_s9 + $0x348] sm:$0xff]  }
 0x126   : > { %3761 = vmatprep.subr.bf16.mxu1 %v4016_v49  ;;  %2924 = vmatprep.mubr.bf16.mxu0 %v4019_v52  ;;  %v4086_v49 = vld [vmem:[%s4826_s9 + $0x3c8] sm:$0xff]   ;;  %v4089_v52 = vld [vmem:[%s4826_s9 + $0x340] sm:$0xff]  }
 0x127   : > { %2973 = vmatprep.mubr.bf16.mxu1 %v4024_v56  ;;  %v4093_v56 = vld [vmem:[%s5150_s0 + $0x30] ss:$72 sps:$4 sm:$0xff]  }
 0x128   : > { %3734 = vmatpush3.bf16.msra.mxu0 %v4017_v50  ;;  %v4087_v50 = vld [vmem:[%s4826_s9 + $0x308] sm:$0xff]  }
 0x129   : > { %3762 = vmatpush3.bf16.msra.mxu1 %v4018_v51  ;;  %3735 = vmatprep.subr.bf16.mxu0 %v4022_v54  ;;  %v4088_v51 = vld [vmem:[%s4826_s9 + $0x388] sm:$0xff]   ;;  %v4091_v54 = vld [vmem:[%s4826_s9 + $0x300] sm:$0xff]  }
 0x12a   : > { %3763 = vmatprep.subr.bf16.mxu1 %v4023_v55  ;;  %v4092_v55 = vld [vmem:[%s4826_s9 + $0x380] sm:$0xff]  }
 0x12b   : > { %2925 = vmatmul.mubr.bf16.gmra.mxu0 %v4021_v53  ;;  %v4090_v53 = vld [vmem:[%s4826_s9 + $0x3c0] sm:$0xff]  }
 0x12c   : > { %3736 = vmatpush3.bf16.msra.mxu0 %v4026_v57  ;;  %2974 = vmatmul.mubr.bf16.gmra.mxu1 %v4028_v59  ;;  %v4095_v57 = vld [vmem:[%s5150_s0 + $0x34] ss:$72 sps:$4 sm:$0xff]  }
 0x12d   : > { %3764 = vmatpush3.bf16.msra.mxu1 %v4027_v58  ;;  %3737 = vmatprep.subr.bf16.mxu0 %v4029_v60  ;;  %v4096_v58 = vld [vmem:[%s5150_s0 + $0x38] ss:$72 sps:$4 sm:$0xff]   ;;  %v4098_v59 = vld [vmem:[%s5150_s0 + $0x3c] ss:$72 sps:$4 sm:$0xff]  }
 0x12e   : > { %3765 = vmatprep.subr.bf16.mxu1 %v4030_v61  ;;  %3014 = vmatprep.mubr.bf16.mxu0 %v4051_v17  ;;  %v4099_v60 = vld [vmem:[%s4826_s9 + $0x478] sm:$0xff]   ;;  %v4120_v17 = vld [vmem:[%s4826_s9 + $0x400] sm:$0xff]  }
 0x12f   : > { %3063 = vmatprep.mubr.bf16.mxu1 %v4054_v19  ;;  %v4100_v61 = vld [vmem:[%s4826_s9 + $0x438] sm:$0xff]  }
 0x130   : > { %3738 = vmatpush3.bf16.msra.mxu0 %v4031_v62  ;;  %v4101_v62 = vld [vmem:[%s4826_s9 + $0x470] sm:$0xff]  }
 0x131   : > { %3766 = vmatpush3.bf16.msra.mxu1 %v4032_v63  ;;  %3739 = vmatprep.subr.bf16.mxu0 %v4033_v0  ;;  %v4102_v63 = vld [vmem:[%s4826_s9 + $0x430] sm:$0xff]   ;;  %v4103_v0 = vld [vmem:[%s5150_s0 + $0xc4] ss:$72 sps:$4 sm:$0xff]  }
 0x132   : > { %3767 = vmatprep.subr.bf16.mxu1 %v4034_v1  ;;  %v4105_v1 = vld [vmem:[%s5150_s0 + $0xc0] ss:$72 sps:$4 sm:$0xff]   ;;  %v4124_v19 = vld [vmem:[%s5150_s0 + $0xd0] ss:$72 sps:$4 sm:$0xff]  }
 0x134   : > { %3740 = vmatpush3.bf16.msra.mxu0 %v4035_v2  ;;  %v4106_v2 = vld [vmem:[%s4826_s9 + $0x468] sm:$0xff]  }
 0x135   : > { %3768 = vmatpush3.bf16.msra.mxu1 %v4036_v3  ;;  %3741 = vmatprep.subr.bf16.mxu0 %v4037_v4  ;;  %v4107_v3 = vld [vmem:[%s5150_s0 + $0xcc] ss:$72 sps:$4 sm:$0xff]  }
 0x136   : > { %3769 = vmatprep.subr.bf16.mxu1 %v4038_v5  ;;  %v4109_v4 = vld [vmem:[%s4826_s9 + $0x428] sm:$0xff]  }
 0x137   : > { %v4110_v5 = vld [vmem:[%s5150_s0 + $0xc8] ss:$72 sps:$4 sm:$0xff]  }
 0x138   : > { %3742 = vmatpush3.bf16.msra.mxu0 %v4039_v6  ;;  %v4111_v6 = vld [vmem:[%s4826_s9 + $0x460] sm:$0xff]  }
 0x139   : > { %3770 = vmatpush3.bf16.msra.mxu1 %v4040_v7  ;;  %3743 = vmatprep.subr.bf16.mxu0 %v4041_v8  ;;  %v4112_v7 = vld [vmem:[%s4826_s9 + $0x420] sm:$0xff]   ;;  %v4113_v8 = vld [vmem:[%s4826_s9 + $0x458] sm:$0xff]  }
 0x13a   : > { %3771 = vmatprep.subr.bf16.mxu1 %v4042_v9  ;;  %v4114_v9 = vld [vmem:[%s4826_s9 + $0x418] sm:$0xff]  }
 0x13c   : > { %3744 = vmatpush3.bf16.msra.mxu0 %v4043_v10  ;;  %v4115_v10 = vld [vmem:[%s4826_s9 + $0x450] sm:$0xff]  }
 0x13d   : > { %3772 = vmatpush3.bf16.msra.mxu1 %v4044_v11  ;;  %3745 = vmatprep.subr.bf16.mxu0 %v4045_v12  ;;  %v4116_v11 = vld [vmem:[%s4826_s9 + $0x410] sm:$0xff]   ;;  %v4123_v12 = vld [vmem:[%s5150_s0 + $0x44] ss:$72 sps:$4 sm:$0xff]  }
 0x13e   : > { %3773 = vmatprep.subr.bf16.mxu1 %v4046_v13  ;;  %v4117_v13 = vld [vmem:[%s4826_s9 + $0x448] sm:$0xff]  }
 0x140   : > { %3746 = vmatpush3.bf16.msra.mxu0 %v4047_v14  ;;  %v4126_v14 = vld [vmem:[%s5150_s0 + $0xd4] ss:$72 sps:$4 sm:$0xff]  }
 0x141   : > { %3774 = vmatpush3.bf16.msra.mxu1 %v4048_v15  ;;  %3787 = vmatprep.subr.bf16.mxu0 %v4055_v20  ;;  %v4118_v15 = vld [vmem:[%s4826_s9 + $0x408] sm:$0xff]  }
 0x142   : > { %3815 = vmatprep.subr.bf16.mxu1 %v4056_v21 }
 0x143   : > { %3015 = vmatmul.mubr.bf16.vlgmr.msra.gmra.mxu0 %v4049_v16  ;;  %v4119_v16 = vld [vmem:[%s4826_s9 + $0x440] sm:$0xff]   ;;  %s1407_s9 = scalar_select %p1406_p11, %s4157_s14, 1 }
 0x144   : > { %3064 = vmatmul.mubr.bf16.vlgmr.msra.gmra.mxu1 %v4052_v18  ;;  %3788 = vmatpush3.bf16.msra.mxu0 %v4057_v22  ;;  %v4121_v18 = vld [vmem:[%s5150_s0 + $0x40] ss:$72 sps:$4 sm:$0xff]  }
 0x145   : > { %3816 = vmatpush3.bf16.msra.mxu1 %v4058_v23  ;;  %3789 = vmatprep.subr.bf16.mxu0 %v4059_v24  ;;  %s1408_s18 = scalar_lea.vmem %s5152_s2, %s1407_s9 }
 0x146   : > { %3817 = vmatprep.subr.bf16.mxu1 %v4060_v25  ;;  %3022 = vmatprep.mubr.bf16.mxu0 %v4063_v28 }
 0x147   : > { %3071 = vmatprep.mubr.bf16.mxu1 %v4068_v32 }
 0x148   : > { %3790 = vmatpush3.bf16.msra.mxu0 %v4061_v26 }
 0x149   : > { %3818 = vmatpush3.bf16.msra.mxu1 %v4062_v27  ;;  %3791 = vmatprep.subr.bf16.mxu0 %v4066_v30 }
 0x14a   : > { %3819 = vmatprep.subr.bf16.mxu1 %v4067_v31 }
 0x14b   : > { %3023 = vmatmul.mubr.bf16.gmra.mxu0 %v4065_v29 }
 0x14c   : > { %3792 = vmatpush3.bf16.msra.mxu0 %v4070_v33  ;;  %3072 = vmatmul.mubr.bf16.gmra.mxu1 %v4072_v35 }
 0x14d   : > { %3820 = vmatpush3.bf16.msra.mxu1 %v4071_v34  ;;  %3793 = vmatprep.subr.bf16.mxu0 %v4073_v36 }
 0x14e   : > { %3821 = vmatprep.subr.bf16.mxu1 %v4074_v37  ;;  %3112 = vmatprep.mubr.bf16.mxu0 %v4095_v57 }
 0x14f   : > { %3161 = vmatprep.mubr.bf16.mxu1 %v4098_v59 }
 0x150   : > { %3794 = vmatpush3.bf16.msra.mxu0 %v4075_v38 }
 0x151   : > { %3822 = vmatpush3.bf16.msra.mxu1 %v4076_v39  ;;  %3795 = vmatprep.subr.bf16.mxu0 %v4077_v40 }
 0x152   : > { %3823 = vmatprep.subr.bf16.mxu1 %v4078_v41 }
 0x154   : > { %3796 = vmatpush3.bf16.msra.mxu0 %v4079_v42 }
 0x155   : > { %3824 = vmatpush3.bf16.msra.mxu1 %v4080_v43  ;;  %3797 = vmatprep.subr.bf16.mxu0 %v4081_v44 }
 0x156   : > { %3825 = vmatprep.subr.bf16.mxu1 %v4082_v45 }
 0x158   : > { %3798 = vmatpush3.bf16.msra.mxu0 %v4083_v46 }
 0x159   : > { %3826 = vmatpush3.bf16.msra.mxu1 %v4084_v47  ;;  %3799 = vmatprep.subr.bf16.mxu0 %v4085_v48 }
 0x15a   : > { %3827 = vmatprep.subr.bf16.mxu1 %v4086_v49 }
 0x15c   : > { %3800 = vmatpush3.bf16.msra.mxu0 %v4087_v50 }
 0x15d   : > { %3828 = vmatpush3.bf16.msra.mxu1 %v4088_v51  ;;  %3801 = vmatprep.subr.bf16.mxu0 %v4089_v52 }
 0x15e   : > { %3829 = vmatprep.subr.bf16.mxu1 %v4090_v53 }
 0x160   : > { %3802 = vmatpush3.bf16.msra.mxu0 %v4091_v54 }
 0x161   : > { %3830 = vmatpush3.bf16.msra.mxu1 %v4092_v55  ;;  %3843 = vmatprep.subr.bf16.mxu0 %v4099_v60 }
 0x162   : > { %3871 = vmatprep.subr.bf16.mxu1 %v4099_v60 }
 0x163   : > { %3113 = vmatmul.mubr.bf16.vlgmr.msra.gmra.mxu0 %v4093_v56 }
 0x164   : > { %3162 = vmatmul.mubr.bf16.vlgmr.msra.gmra.mxu1 %v4096_v58  ;;  %3844 = vmatpush3.bf16.msra.mxu0 %v4100_v61 }
 0x165   : > { %3879 = vmatpush3.bf16.msra.mxu1 %v4100_v61  ;;  %3845 = vmatprep.subr.bf16.mxu0 %v4101_v62 }
 0x166   : > { %3872 = vmatprep.subr.bf16.mxu1 %v4101_v62  ;;  %3120 = vmatprep.mubr.bf16.mxu0 %v4103_v0 }
 0x167   : > { %3169 = vmatprep.mubr.bf16.mxu1 %v4107_v3 }
 0x168   : > { %3846 = vmatpush3.bf16.msra.mxu0 %v4102_v63 }
 0x169   : > { %3880 = vmatpush3.bf16.msra.mxu1 %v4102_v63  ;;  %3847 = vmatprep.subr.bf16.mxu0 %v4106_v2 }
 0x16a   : > { %3873 = vmatprep.subr.bf16.mxu1 %v4106_v2 }
 0x16b   : > { %3121 = vmatmul.mubr.bf16.gmra.mxu0 %v4105_v1 }
 0x16c   : > { %3848 = vmatpush3.bf16.msra.mxu0 %v4109_v4  ;;  %3170 = vmatmul.mubr.bf16.gmra.mxu1 %v4110_v5 }
 0x16d   : > { %3881 = vmatpush3.bf16.msra.mxu1 %v4109_v4  ;;  %3849 = vmatprep.subr.bf16.mxu0 %v4111_v6 }
 0x16e   : > { %3874 = vmatprep.subr.bf16.mxu1 %v4111_v6  ;;  %3210 = vmatprep.mubr.bf16.mxu0 %v4123_v12 }
 0x16f   : > { %3218 = vmatprep.mubr.bf16.mxu1 %v4126_v14 }
 0x170   : > { %3850 = vmatpush3.bf16.msra.mxu0 %v4112_v7 }
 0x171   : > { %3882 = vmatpush3.bf16.msra.mxu1 %v4112_v7  ;;  %3851 = vmatprep.subr.bf16.mxu0 %v4113_v8 }
 0x172   : > { %3875 = vmatprep.subr.bf16.mxu1 %v4113_v8 }
 0x174   : > { %3852 = vmatpush3.bf16.msra.mxu0 %v4114_v9 }
 0x175   : > { %3883 = vmatpush3.bf16.msra.mxu1 %v4114_v9  ;;  %3853 = vmatprep.subr.bf16.mxu0 %v4115_v10 }
 0x176   : > { %3876 = vmatprep.subr.bf16.mxu1 %v4115_v10  ;;  %v3415_v10 = vld [vmem:[%s1408_s18] ss:$0 sm:$0xff] }
 0x178   : > { %3854 = vmatpush3.bf16.msra.mxu0 %v4116_v11 }
 0x179   : > { %3884 = vmatpush3.bf16.msra.mxu1 %v4116_v11  ;;  %3855 = vmatprep.subr.bf16.mxu0 %v4117_v13 }
 0x17a   : > { %3877 = vmatprep.subr.bf16.mxu1 %v4117_v13 }
 0x17c   : > { %3856 = vmatpush3.bf16.msra.mxu0 %v4118_v15 }
 0x17d   : > { %3885 = vmatpush3.bf16.msra.mxu1 %v4118_v15  ;;  %3857 = vmatprep.subr.bf16.mxu0 %v4119_v16 }
 0x17e   : > { %3878 = vmatprep.subr.bf16.mxu1 %v4119_v16 }
 0x180   : > { %3858 = vmatpush3.bf16.msra.mxu0 %v4120_v17 }
 0x181   : > { %3886 = vmatpush3.bf16.msra.mxu1 %v4120_v17 }
 0x183   : > { %3211 = vmatmul.mubr.bf16.vlgmr.msra.gmra.mxu0 %v4121_v18 }
 0x184   : > { %3219 = vmatmul.mubr.bf16.vlgmr.msra.gmra.mxu1 %v4124_v19 }
 0x1c3   : > { %v3635_v20 = vpop.f32.mrf.mxu0 }
 0x1c4   : > { %v5074_v22 = vpop.f32.mrf.mxu1 }
 0x1c5   : > { %v3636_v21 = vpop.f32.mrf.mxu0 }
 0x1c6   : > { %v3664_v24 = vpop.f32.mrf.mxu1  ;;  %v3637_v9 = vadd.f32 %v3636_v21, %v3635_v20 }
 0x1c7   : > { %v3638_v23 = vpop.f32.mrf.mxu0  ;;  %v3665_v19 = vadd.f32 %v3664_v24, %v5074_v22 }
 0x1c8   : > { %v5076_v27 = vpop.f32.mrf.mxu1  ;;  %v2821_v16 = vadd.f32 %v3637_v9, %v3415_v10 }
 0x1c9   : > { %v3639_v25 = vpop.f32.mrf.mxu0 }
 0x1ca   : > { %v5078_v29 = vpop.f32.mrf.mxu1  ;;  %v3640_v12 = vadd.f32 %v3639_v25, %v3638_v23  ;;  %v2870_v21 = vadd.f32 %v3665_v19, %v2821_v16 }
 0x1cb   : > { %v3641_v26 = vpop.f32.mrf.mxu0  ;;  %v3668_v23 = vadd.f32 %v5078_v29, %v5076_v27 }
 0x1cc   : > { %v3669_v30 = vpop.f32.mrf.mxu1 }
 0x1cd   : > { %v3642_v28 = vpop.f32.mrf.mxu0 }
 0x1ce   : > { %v3670_v32 = vpop.f32.mrf.mxu1  ;;  %v3643_v11 = vadd.f32 %v3642_v28, %v3641_v26 }
 0x1cf   : > { %v3644_v31 = vpop.f32.mrf.mxu0  ;;  %v3671_v18 = vadd.f32 %v3670_v32, %v3669_v30 }
 0x1d0   : > { %v3672_v35 = vpop.f32.mrf.mxu1  ;;  %v2829_v17 = vadd.f32 %v3643_v11, %v3415_v10 }
 0x1d1   : > { %v3645_v33 = vpop.f32.mrf.mxu0 }
 0x1d2   : > { %v3673_v37 = vpop.f32.mrf.mxu1  ;;  %v3646_v15 = vadd.f32 %v3645_v33, %v3644_v31  ;;  %v2878_v28 = vadd.f32 %v3671_v18, %v2829_v17 }
 0x1e3   : > { %v3691_v34 = vpop.f32.mrf.mxu0 }
 0x1e4   : > { %v5080_v38 = vpop.f32.mrf.mxu1 }
 0x1e5   : > { %v3692_v36 = vpop.f32.mrf.mxu0 }
 0x1e6   : > { %v5082_v40 = vpop.f32.mrf.mxu1 }
 0x1e7   : > { %v3694_v39 = vpop.f32.mrf.mxu0 }
 0x1e8   : > { %v5084_v42 = vpop.f32.mrf.mxu1 }
 0x1e9   : > { %v3695_v41 = vpop.f32.mrf.mxu0 }
 0x1ea   : > { %v5086_v44 = vpop.f32.mrf.mxu1  ;;  %v3696_v25 = vadd.f32 %v3695_v41, %v3694_v39 }
 0x1eb   : > { %v3697_v43 = vpop.f32.mrf.mxu0  ;;  %v3724_v29 = vadd.f32 %v5086_v44, %v5084_v42 }
 0x1ec   : > { %v3725_v46 = vpop.f32.mrf.mxu1 }
 0x1ed   : > { %v3698_v45 = vpop.f32.mrf.mxu0 }
 0x1ee   : > { %v3726_v48 = vpop.f32.mrf.mxu1  ;;  %v3699_v20 = vadd.f32 %v3698_v45, %v3697_v43 }
 0x1ef   : > { %v3700_v47 = vpop.f32.mrf.mxu0 }
 0x1f0   : > { %v3728_v50 = vpop.f32.mrf.mxu1  ;;  %v2927_v24 = vadd.f32 %v3699_v20, %v2878_v28 }
 0x1f1   : > { %v3701_v49 = vpop.f32.mrf.mxu0 }
 0x1f2   : > { %v3729_v52 = vpop.f32.mrf.mxu1  ;;  %v3702_v31 = vadd.f32 %v3701_v49, %v3700_v47 }
 0x1f3   : > { %v3730_v45 = vadd.f32 %v3729_v52, %v3728_v50 }
 0x203   : > { %v3747_v51 = vpop.f32.mrf.mxu0 }
 0x204   : > { %v5088_v54 = vpop.f32.mrf.mxu1 }
 0x205   : > { %v3748_v53 = vpop.f32.mrf.mxu0 }
 0x206   : > { %v5090_v56 = vpop.f32.mrf.mxu1 }
 0x207   : > { %v3750_v55 = vpop.f32.mrf.mxu0  ;;  %5155 = vst [vmem:[#allocation4_spill] sm:$0xff] %v5090_v56  ;;  %v3674_v56 = vadd.f32 %v3673_v37, %v3672_v35  ;;  %v3749_v35 = vadd.f32 %v3748_v53, %v3747_v51 }
 0x208   : > { %v5092_v58 = vpop.f32.mrf.mxu1 }
 0x209   : > { %v3751_v57 = vpop.f32.mrf.mxu0  ;;  %5156 = vst [vmem:[#allocation5_spill] sm:$0xff] %v5092_v58 }
 0x20a   : > { %v5094_v60 = vpop.f32.mrf.mxu1  ;;  %v3752_v39 = vadd.f32 %v3751_v57, %v3750_v55 }
 0x20b   : > { %v3753_v59 = vpop.f32.mrf.mxu0  ;;  %5157 = vst [vmem:[#allocation6_spill] sm:$0xff] %v5094_v60  ;;  %v3693_v60 = vadd.f32 %v3692_v36, %v3691_v34  ;;  %v3727_v34 = vadd.f32 %v3726_v48, %v3725_v46  ;;  %v3721_v36 = vadd.f32 %v5082_v40, %v5080_v38 }
 0x20c   : > { %v3781_v62 = vpop.f32.mrf.mxu1 }
 0x20d   : > { %v3754_v61 = vpop.f32.mrf.mxu0  ;;  %v2919_v30 = vadd.f32 %v3693_v60, %v2870_v21  ;;  %v2976_v47 = vadd.f32 %v3727_v34, %v2927_v24 }
 0x20e   : > { %v3782_v0 = vpop.f32.mrf.mxu1  ;;  %v5161_v40 = vld [vmem:[#allocation4_spill] sm:$0xff] }
 0x20f   : > { %v3756_v63 = vpop.f32.mrf.mxu0  ;;  %v2968_v27 = vadd.f32 %v3721_v36, %v2919_v30  ;;  %v3783_v38 = vadd.f32 %v3782_v0, %v3781_v62  ;;  %v3777_v51 = vadd.f32 %v5161_v40, %v5088_v54 }
 0x210   : > { %v5096_v2 = vpop.f32.mrf.mxu1  ;;  %v5163_v55 = vld [vmem:[#allocation5_spill] sm:$0xff] }
 0x211   : > { %v3757_v1 = vpop.f32.mrf.mxu0  ;;  %5158 = vst [vmem:[#allocation7_spill] sm:$0xff] %v5096_v2  ;;  %v3017_v60 = vadd.f32 %v3749_v35, %v2968_v27 }
 0x212   : > { %v3785_v4 = vpop.f32.mrf.mxu1  ;;  %v3758_v49 = vadd.f32 %v3757_v1, %v3756_v63  ;;  %v5164_v57 = vld [vmem:[#allocation6_spill] sm:$0xff] }
 0x213   : > { %v3066_v44 = vadd.f32 %v3777_v51, %v3017_v60  ;;  %v3780_v63 = vadd.f32 %v5164_v57, %v5163_v55 }
 0x223   : > { %v3803_v3 = vpop.f32.mrf.mxu0 }
 0x224   : > { %v5100_v5 = vpop.f32.mrf.mxu1 }
 0x225   : > { %5159 = vst [vmem:[#allocation8_spill] sm:$0xff] %v5100_v5  ;;  %v3804_v6 = vpop.f32.mrf.mxu0  ;;  %v2824_v5 = vadd.f32 %v3640_v12, %v3415_v10 }
 0x226   : > { %v5105_v7 = vpop.f32.mrf.mxu1  ;;  %v3805_v50 = vadd.f32 %v3804_v6, %v3803_v3 }
 0x227   : > { %5160 = vst [vmem:[#allocation9_spill] sm:$0xff] %v5105_v7  ;;  %v3806_v8 = vpop.f32.mrf.mxu0  ;;  %v2832_v7 = vadd.f32 %v3646_v15, %v3415_v10  ;;  %v2873_v33 = vadd.f32 %v3668_v23, %v2824_v5  ;;  %v3755_v10 = vadd.f32 %v3754_v61, %v3753_v59  ;;  %v5162_v61 = vld [vmem:[#allocation7_spill] sm:$0xff] }
 0x228   : > { %v5107_v13 = vpop.f32.mrf.mxu1  ;;  %v3115_v0 = vadd.f32 %v3805_v50, %v3066_v44 }
 0x229   : > { %v3807_v14 = vpop.f32.mrf.mxu0  ;;  %v2881_v22 = vadd.f32 %v3674_v56, %v2832_v7  ;;  %v2922_v9 = vadd.f32 %v3696_v25, %v2873_v33  ;;  %v3025_v5 = vadd.f32 %v3755_v10, %v2976_v47  ;;  %v3786_v7 = vadd.f32 %v3785_v4, %v5162_v61 }
 0x22a   : > { %v5110_v58 = vpop.f32.mrf.mxu1  ;;  %v3808_v1 = vadd.f32 %v3807_v14, %v3806_v8 }
 0x22b   : > { %v3809_v2 = vpop.f32.mrf.mxu0  ;;  %v2930_v43 = vadd.f32 %v3702_v31, %v2881_v22  ;;  %v2971_v56 = vadd.f32 %v3724_v29, %v2922_v9  ;;  %v3074_v12 = vadd.f32 %v3783_v38, %v3025_v5  ;;  %v3836_v33 = vadd.f32 %v5110_v58, %v5107_v13 }
 0x22c   : > { %v3837_v26 = vpop.f32.mrf.mxu1  ;;  %v5165_v19 = vld [vmem:[#allocation8_spill] sm:$0xff] }
 0x22d   : > { %v3810_v32 = vpop.f32.mrf.mxu0  ;;  %v2979_v48 = vadd.f32 %v3730_v45, %v2930_v43  ;;  %v3020_v53 = vadd.f32 %v3752_v39, %v2971_v56 }
 0x22e   : > { %v3838_v37 = vpop.f32.mrf.mxu1  ;;  %v3811_v42 = vadd.f32 %v3810_v32, %v3809_v2  ;;  %v5166_v20 = vld [vmem:[#allocation9_spill] sm:$0xff] }
 0x22f   : > { %v3812_v41 = vpop.f32.mrf.mxu0  ;;  %v3028_v59 = vadd.f32 %v3758_v49, %v2979_v48  ;;  %v3069_v62 = vadd.f32 %v3780_v63, %v3020_v53  ;;  %v3839_v3 = vadd.f32 %v3838_v37, %v3837_v26  ;;  %v3833_v4 = vadd.f32 %v5166_v20, %v5165_v19 }
 0x230   : > { %v3840_v46 = vpop.f32.mrf.mxu1  ;;  %v3123_v18 = vadd.f32 %v3811_v42, %v3074_v12 }
 0x231   : > { %v3813_v52 = vpop.f32.mrf.mxu0  ;;  %v3077_v54 = vadd.f32 %v3786_v7, %v3028_v59  ;;  %v3118_v2 = vadd.f32 %v3808_v1, %v3069_v62  ;;  %v3164_v31 = vadd.f32 %v3833_v4, %v3115_v0 }
 0x232   : > { %v3841_v11 = vpop.f32.mrf.mxu1  ;;  %v3814_v15 = vadd.f32 %v3813_v52, %v3812_v41  ;;  %v3172_v32 = vadd.f32 %v3839_v3, %v3123_v18 }
 0x233   : > { %v3842_v8 = vadd.f32 %v3841_v11, %v3840_v46  ;;  %v3167_v26 = vadd.f32 %v3836_v33, %v3118_v2 }
 0x234   : > { %v3126_v25 = vadd.f32 %v3814_v15, %v3077_v54 }
 0x236   : > { %v3175_v9 = vadd.f32 %v3842_v8, %v3126_v25 }
 0x243   : > { %v3859_v16 = vpop.f32.mrf.mxu0 }
 0x244   : > { %v3865_v17 = vpop.f32.mrf.mxu1 }
 0x245   : > { %v3860_v6 = vpop.f32.mrf.mxu0 }
 0x246   : > { %v3861_v21 = vadd.f32 %v3860_v6, %v3859_v16  ;;  %v3866_v23 = vpop.f32.mrf.mxu1 }
 0x247   : > { %v3867_v14 = vadd.f32 %v3866_v23, %v3865_v17  ;;  %v3862_v28 = vpop.f32.mrf.mxu0 }
 0x248   : > { %v3868_v30 = vpop.f32.mrf.mxu1  ;;  %v3213_v24 = vadd.f32 %v3861_v21, %v3164_v31 }
 0x249   : > { %v3863_v22 = vpop.f32.mrf.mxu0  ;;  %v3221_v35 = vadd.f32 %v3867_v14, %v3172_v32 }
 0x24a   : > { %v3864_v34 = vadd.f32 %v3863_v22, %v3862_v28  ;;  %v3869_v36 = vpop.f32.mrf.mxu1  ;;  %v3227_v10 = vmax.f32 %v3213_v24, 0.0 }
 0x24b   : > { %v3870_v37 = vadd.f32 %v3869_v36, %v3868_v30  ;;  %v3229_v29 = vmax.f32 %v3221_v35, 0.0 }
 0x24c   : > { %v3216_v43 = vadd.f32 %v3864_v34, %v3167_v26 }
 0x24d   : > { %v3224_v45 = vadd.f32 %v3870_v37, %v3175_v9 }
 0x24e   : > { %v3228_v27 = vmax.f32 %v3216_v43, 0.0 }
 0x24f   : > { %v3230_v39 = vmax.f32 %v3224_v45, 0.0  ;;  %3257 = sbr.rel (!%p4222_p6) target bundleno = 605 (0x25d), region = 77 }
 0x250   : > { %v3611_v41 = vpack.c.bf16 %v3228_v27, %v3227_v10 }
 0x251   : > { %v3616_v58 = vpack.c.bf16 %v3230_v39, %v3229_v29 }
 0x252   : > { %3612 = vst [vmem:[%s1398_s20] sm:$0xff] %v3611_v41  }
 0x253   : > { %3618 = vst [vmem:[%s1398_s20 + $0x8] sm:$0xff] %v3616_v58  }
 0x259   : > { %v3279_v13 = vld [vmem:[%s1398_s20] sm:$0xf]  ;;  %v3281_v47 = vld [vmem:[%s1398_s20 + $0x4] sm:$0xf] }
 0x25a   : > { %v3283_v49 = vld [vmem:[%s1398_s20 + $0x8] sm:$0xf]  ;;  %v3285_v56 = vld [vmem:[%s1398_s20 + $0xc] sm:$0xf]  ;;  %3280 = vst [vmem:[%s3262_s24] sm:$0xf] %v3279_v13 }
 0x25b   : > { %3282 = vst [vmem:[%s3262_s24 + $0x8] sm:$0xf] %v3281_v47  ;;  %3284 = vst [vmem:[%s3262_s24 + $0x10] sm:$0xf] %v3283_v49 }
 0x25c   : > { %3286 = vst [vmem:[%s3262_s24 + $0x18] sm:$0xf] %v3285_v56 }
 0x25d PF: > { %s13_s16 = sadd.s32 1, %s4165_s16   ;;  %s5167_s12 = smov %s4153_s13 }
 0x25e   : > { %p10_p12 = scmp.ge.s32.totalorder %s13_s16, 4   ;;  %s5168_s13 = smov %s4227_s22 }
 0x25f   : > { %s5169_s14 = smov %s4161_s15  ;;  %s5170_s15 = smov %s5172_s17 }
 0x260   :  { %12 = sbr.rel (!%p10_p12) target bundleno = 3 (0x3), region = 155 }

// kernel: generator_forward.20
= control target key start
LH: loop header
LB: loop body
LE: loop exit
PB: predicated region body
PF: predicated region fallthrough
CT: control target
= control target key end

     0   :  { %s1335_s12 = smov 0   ;;  %s1337_s13 = smov 0   ;;  %s1635_s0 = inlined_call_operand.vmem [shape: bf16[32,256], index: 0, kind: input, shape index: {}]   ;;  %s1636_s1 = inlined_call_operand.vmem [shape: bf16[256,1152], index: 1, kind: input, shape index: {}]   ;;  %s1637_s2 = inlined_call_operand.vmem [shape: f32[1,1152], index: 2, kind: input, shape index: {}]   ;;  %s1638_s3 = inlined_call_operand.vmem [shape: f32[32,1152], index: 3, kind: output, shape index: {}]  }
   0x1   :  { %s1339_s14 = smov 0   ;;  %s1341_s15 = smov 0  }
   0x2   :  { %s1343_s16 = smov 0  }
   0x3 LB: > { %s22_s17 = sadd.s32 1, %s1309_s15  ;;  %s1006_s18 = sadd.s32 4294967295, %s1313_s16   ;;  %s1313_s16 = sphi %s1343_s16, %s13_s16   ;;  %s1309_s15 = sphi %s1341_s15, %s1643_s15   ;;  %s1305_s14 = sphi %s1339_s14, %s1642_s14   ;;  %s1301_s13 = sphi %s1337_s13, %s1641_s13   ;;  %s1297_s12 = sphi %s1335_s12, %s1640_s12  }
   0x4   : > { %p23_p0 = scmp.ge.s32.totalorder %s22_s17, 3  ;;  %p65_p1 = scmp.ne.s32.totalorder %s1301_s13, %s1297_s12 }
   0x5   : > { %p66_p2 = scmp.eq.s32.totalorder %s1313_s16, 0  ;;  %p123_p4 = scmp.eq.s32.totalorder %s1006_s18, 2 }
   0x6   : > { %s1645_s17 = smov (%p23_p0, %s22_s17), 0  ;;  %s58_s20 = sadd.s32 1, %s1301_s13 }
   0x7   : > { %p67_p3 = por %p66_p2, %p65_p1  ;;  %s55_s19 = ssub.s32 %s1309_s15, %s1645_s17 }
   0x8   : > { %p56_p5 = scmp.eq.s32.totalorder %s55_s19, 0  ;;  %p1370_p6 = por %p123_p4, %p65_p1 }
   0x9   : > { %p1010_p7 = scmp.ge.s32.totalorder %s1313_s16, 3 }
   0xa   : > { %s1375_s22 = scalar_select %p56_p5, %s1301_s13, %s58_s20  }
   0xb   : > { %155 = sbr.rel (%p1010_p7) target bundleno = 58 (0x3a), region = 20 }
  0x10   : > { %158 = sbr.rel (!%p67_p3) target bundleno = 58 (0x3a), region = 24  ;;  %s160_s23 = sand.u32 (%p67_p3), 1, %s1301_s13  }
  0x11   : > { %s1132_s24 = smul.u32 (%p67_p3), 12, %s1309_s15 }
  0x12   : > { %s1162_s25 = smul.u32 (%p67_p3), 384, %s160_s23 }
  0x13   : > { %s1383_s28 = scalar_lea.vmem (%p67_p3), %s1636_s1, %s1132_s24 }
  0x14   : > { %v180_v0 = vld [vmem:[%s1383_s28] sm:$0xff] (%p67_p3)  ;;  %v184_v2 = vld [vmem:[%s1383_s28 + $0x48] sm:$0xff] (%p67_p3)  ;;  %s1388_s29 = scalar_lea.vmem (%p67_p3), [#allocation2], %s1162_s25  ;;  %v188_v4 = vld [vmem:[%s1383_s28 + $0x90] sm:$0xff] (%p67_p3) }
  0x15   : > { %v182_v1 = vld [vmem:[%s1383_s28 + $0x24] sm:$0xff]  ;;  %181 = vst [vmem:[%s1388_s29] sm:$0xff] %v180_v0  ;;  %185 = vst [vmem:[%s1388_s29 + $0x18] sm:$0xff] %v184_v2  ;;  %v186_v3 = vld [vmem:[%s1383_s28 + $0x6c] sm:$0xff] }
  0x16   : > { %183 = vst [vmem:[%s1388_s29 + $0xc] sm:$0xff] %v182_v1  ;;  %v190_v5 = vld [vmem:[%s1383_s28 + $0xb4] sm:$0xff]  ;;  %187 = vst [vmem:[%s1388_s29 + $0x24] sm:$0xff] %v186_v3  ;;  %v194_v7 = vld [vmem:[%s1383_s28 + $0xfc] sm:$0xff] }
  0x17   : > { %189 = vst [vmem:[%s1388_s29 + $0x30] sm:$0xff] %v188_v4  ;;  %191 = vst [vmem:[%s1388_s29 + $0x3c] sm:$0xff] %v190_v5  ;;  %v192_v6 = vld [vmem:[%s1383_s28 + $0xd8] sm:$0xff]  ;;  %v196_v8 = vld [vmem:[%s1383_s28 + $0x120] sm:$0xff] }
  0x18   : > { %193 = vst [vmem:[%s1388_s29 + $0x48] sm:$0xff] %v192_v6  ;;  %195 = vst [vmem:[%s1388_s29 + $0x54] sm:$0xff] %v194_v7  ;;  %v198_v9 = vld [vmem:[%s1383_s28 + $0x144] sm:$0xff]  ;;  %v202_v11 = vld [vmem:[%s1383_s28 + $0x18c] sm:$0xff] }
  0x19   : > { %197 = vst [vmem:[%s1388_s29 + $0x60] sm:$0xff] %v196_v8  ;;  %v200_v10 = vld [vmem:[%s1383_s28 + $0x168] sm:$0xff]  ;;  %199 = vst [vmem:[%s1388_s29 + $0x6c] sm:$0xff] %v198_v9  ;;  %v204_v12 = vld [vmem:[%s1383_s28 + $0x1b0] sm:$0xff] }
  0x1a   : > { %201 = vst [vmem:[%s1388_s29 + $0x78] sm:$0xff] %v200_v10  ;;  %203 = vst [vmem:[%s1388_s29 + $0x84] sm:$0xff] %v202_v11  ;;  %v206_v13 = vld [vmem:[%s1383_s28 + $0x1d4] sm:$0xff]  ;;  %v210_v15 = vld [vmem:[%s1383_s28 + $0x21c] sm:$0xff] }
  0x1b   : > { %v208_v14 = vld [vmem:[%s1383_s28 + $0x1f8] sm:$0xff]  ;;  %205 = vst [vmem:[%s1388_s29 + $0x90] sm:$0xff] %v204_v12  ;;  %207 = vst [vmem:[%s1388_s29 + $0x9c] sm:$0xff] %v206_v13  ;;  %v212_v16 = vld [vmem:[%s1383_s28 + $0x240] sm:$0xff] }
  0x1c   : > { %209 = vst [vmem:[%s1388_s29 + $0xa8] sm:$0xff] %v208_v14  ;;  %v214_v17 = vld [vmem:[%s1383_s28 + $0x264] sm:$0xff]  ;;  %211 = vst [vmem:[%s1388_s29 + $0xb4] sm:$0xff] %v210_v15  ;;  %v218_v19 = vld [vmem:[%s1383_s28 + $0x2ac] sm:$0xff] }
  0x1d   : > { %213 = vst [vmem:[%s1388_s29 + $0xc0] sm:$0xff] %v212_v16  ;;  %215 = vst [vmem:[%s1388_s29 + $0xcc] sm:$0xff] %v214_v17  ;;  %v216_v18 = vld [vmem:[%s1383_s28 + $0x288] sm:$0xff]  ;;  %v220_v20 = vld [vmem:[%s1383_s28 + $0x2d0] sm:$0xff] }
  0x1e   : > { %217 = vst [vmem:[%s1388_s29 + $0xd8] sm:$0xff] %v216_v18  ;;  %219 = vst [vmem:[%s1388_s29 + $0xe4] sm:$0xff] %v218_v19  ;;  %v222_v21 = vld [vmem:[%s1383_s28 + $0x2f4] sm:$0xff]  ;;  %v226_v23 = vld [vmem:[%s1383_s28 + $0x33c] sm:$0xff] }
  0x1f   : > { %221 = vst [vmem:[%s1388_s29 + $0xf0] sm:$0xff] %v220_v20  ;;  %v224_v22 = vld [vmem:[%s1383_s28 + $0x318] sm:$0xff]  ;;  %223 = vst [vmem:[%s1388_s29 + $0xfc] sm:$0xff] %v222_v21  ;;  %v228_v24 = vld [vmem:[%s1383_s28 + $0x360] sm:$0xff] }
  0x20   : > { %225 = vst [vmem:[%s1388_s29 + $0x108] sm:$0xff] %v224_v22  ;;  %227 = vst [vmem:[%s1388_s29 + $0x114] sm:$0xff] %v226_v23  ;;  %v230_v25 = vld [vmem:[%s1383_s28 + $0x384] sm:$0xff]  ;;  %v234_v27 = vld [vmem:[%s1383_s28 + $0x3cc] sm:$0xff] }
  0x21   : > { %v232_v26 = vld [vmem:[%s1383_s28 + $0x3a8] sm:$0xff]  ;;  %229 = vst [vmem:[%s1388_s29 + $0x120] sm:$0xff] %v228_v24  ;;  %231 = vst [vmem:[%s1388_s29 + $0x12c] sm:$0xff] %v230_v25  ;;  %v236_v28 = vld [vmem:[%s1383_s28 + $0x3f0] sm:$0xff] }
  0x22   : > { %233 = vst [vmem:[%s1388_s29 + $0x138] sm:$0xff] %v232_v26  ;;  %v238_v29 = vld [vmem:[%s1383_s28 + $0x414] sm:$0xff]  ;;  %235 = vst [vmem:[%s1388_s29 + $0x144] sm:$0xff] %v234_v27  ;;  %v242_v31 = vld [vmem:[%s1383_s28 + $0x45c] sm:$0xff] }
  0x23   : > { %237 = vst [vmem:[%s1388_s29 + $0x150] sm:$0xff] %v236_v28  ;;  %239 = vst [vmem:[%s1388_s29 + $0x15c] sm:$0xff] %v238_v29  ;;  %v240_v30 = vld [vmem:[%s1383_s28 + $0x438] sm:$0xff]  ;;  %v1012_v32 = vld [vmem:[%s1383_s28 + $0x8] sm:$0xf] }
  0x24   : > { %241 = vst [vmem:[%s1388_s29 + $0x168] sm:$0xff] %v240_v30  ;;  %243 = vst [vmem:[%s1388_s29 + $0x174] sm:$0xff] %v242_v31  ;;  %v1014_v33 = vld [vmem:[%s1383_s28 + $0x2c] sm:$0xf]  ;;  %v1016_v34 = vld [vmem:[%s1383_s28 + $0x50] sm:$0xf] }
  0x25   : > { %1013 = vst [vmem:[%s1388_s29 + $0x8] sm:$0xf] %v1012_v32  ;;  %v1018_v35 = vld [vmem:[%s1383_s28 + $0x74] sm:$0xf]  ;;  %1015 = vst [vmem:[%s1388_s29 + $0x14] sm:$0xf] %v1014_v33 }
  0x26   : > { %1017 = vst [vmem:[%s1388_s29 + $0x20] sm:$0xf] %v1016_v34  ;;  %1019 = vst [vmem:[%s1388_s29 + $0x2c] sm:$0xf] %v1018_v35  ;;  %v1020_v36 = vld [vmem:[%s1383_s28 + $0x98] sm:$0xf] }
  0x27   : > { %v1022_v37 = vld [vmem:[%s1383_s28 + $0xbc] sm:$0xf]  ;;  %v1024_v38 = vld [vmem:[%s1383_s28 + $0xe0] sm:$0xf]  ;;  %1021 = vst [vmem:[%s1388_s29 + $0x38] sm:$0xf] %v1020_v36 }
  0x28   : > { %1023 = vst [vmem:[%s1388_s29 + $0x44] sm:$0xf] %v1022_v37  ;;  %1025 = vst [vmem:[%s1388_s29 + $0x50] sm:$0xf] %v1024_v38  ;;  %v1026_v39 = vld [vmem:[%s1383_s28 + $0x104] sm:$0xf] }
  0x29   : > { %v1028_v40 = vld [vmem:[%s1383_s28 + $0x128] sm:$0xf]  ;;  %v1030_v41 = vld [vmem:[%s1383_s28 + $0x14c] sm:$0xf]  ;;  %1027 = vst [vmem:[%s1388_s29 + $0x5c] sm:$0xf] %v1026_v39 }
  0x2a   : > { %1029 = vst [vmem:[%s1388_s29 + $0x68] sm:$0xf] %v1028_v40  ;;  %1031 = vst [vmem:[%s1388_s29 + $0x74] sm:$0xf] %v1030_v41  ;;  %v1032_v42 = vld [vmem:[%s1383_s28 + $0x170] sm:$0xf] }
  0x2b   : > { %v1034_v43 = vld [vmem:[%s1383_s28 + $0x194] sm:$0xf]  ;;  %v1036_v44 = vld [vmem:[%s1383_s28 + $0x1b8] sm:$0xf]  ;;  %1033 = vst [vmem:[%s1388_s29 + $0x80] sm:$0xf] %v1032_v42 }
  0x2c   : > { %1035 = vst [vmem:[%s1388_s29 + $0x8c] sm:$0xf] %v1034_v43  ;;  %1037 = vst [vmem:[%s1388_s29 + $0x98] sm:$0xf] %v1036_v44  ;;  %v1038_v45 = vld [vmem:[%s1383_s28 + $0x1dc] sm:$0xf] }
  0x2d   : > { %v1040_v46 = vld [vmem:[%s1383_s28 + $0x200] sm:$0xf]  ;;  %v1042_v47 = vld [vmem:[%s1383_s28 + $0x224] sm:$0xf]  ;;  %1039 = vst [vmem:[%s1388_s29 + $0xa4] sm:$0xf] %v1038_v45 }
  0x2e   : > { %1041 = vst [vmem:[%s1388_s29 + $0xb0] sm:$0xf] %v1040_v46  ;;  %1043 = vst [vmem:[%s1388_s29 + $0xbc] sm:$0xf] %v1042_v47  ;;  %v1044_v48 = vld [vmem:[%s1383_s28 + $0x248] sm:$0xf] }
  0x2f   : > { %v1046_v49 = vld [vmem:[%s1383_s28 + $0x26c] sm:$0xf]  ;;  %v1048_v50 = vld [vmem:[%s1383_s28 + $0x290] sm:$0xf]  ;;  %1045 = vst [vmem:[%s1388_s29 + $0xc8] sm:$0xf] %v1044_v48 }
  0x30   : > { %1047 = vst [vmem:[%s1388_s29 + $0xd4] sm:$0xf] %v1046_v49  ;;  %1049 = vst [vmem:[%s1388_s29 + $0xe0] sm:$0xf] %v1048_v50  ;;  %v1050_v51 = vld [vmem:[%s1383_s28 + $0x2b4] sm:$0xf] }
  0x31   : > { %v1052_v52 = vld [vmem:[%s1383_s28 + $0x2d8] sm:$0xf]  ;;  %v1054_v53 = vld [vmem:[%s1383_s28 + $0x2fc] sm:$0xf]  ;;  %1051 = vst [vmem:[%s1388_s29 + $0xec] sm:$0xf] %v1050_v51 }
  0x32   : > { %1053 = vst [vmem:[%s1388_s29 + $0xf8] sm:$0xf] %v1052_v52  ;;  %1055 = vst [vmem:[%s1388_s29 + $0x104] sm:$0xf] %v1054_v53  ;;  %v1056_v54 = vld [vmem:[%s1383_s28 + $0x320] sm:$0xf] }
  0x33   : > { %v1058_v55 = vld [vmem:[%s1383_s28 + $0x344] sm:$0xf]  ;;  %v1060_v56 = vld [vmem:[%s1383_s28 + $0x368] sm:$0xf]  ;;  %1057 = vst [vmem:[%s1388_s29 + $0x110] sm:$0xf] %v1056_v54 }
  0x34   : > { %1059 = vst [vmem:[%s1388_s29 + $0x11c] sm:$0xf] %v1058_v55  ;;  %1061 = vst [vmem:[%s1388_s29 + $0x128] sm:$0xf] %v1060_v56  ;;  %v1062_v57 = vld [vmem:[%s1383_s28 + $0x38c] sm:$0xf] }
  0x35   : > { %v1064_v58 = vld [vmem:[%s1383_s28 + $0x3b0] sm:$0xf]  ;;  %v1066_v59 = vld [vmem:[%s1383_s28 + $0x3d4] sm:$0xf]  ;;  %1063 = vst [vmem:[%s1388_s29 + $0x134] sm:$0xf] %v1062_v57 }
  0x36   : > { %1065 = vst [vmem:[%s1388_s29 + $0x140] sm:$0xf] %v1064_v58  ;;  %1067 = vst [vmem:[%s1388_s29 + $0x14c] sm:$0xf] %v1066_v59  ;;  %v1068_v60 = vld [vmem:[%s1383_s28 + $0x3f8] sm:$0xf] }
  0x37   : > { %v1070_v61 = vld [vmem:[%s1383_s28 + $0x41c] sm:$0xf]  ;;  %v1072_v62 = vld [vmem:[%s1383_s28 + $0x440] sm:$0xf]  ;;  %1069 = vst [vmem:[%s1388_s29 + $0x158] sm:$0xf] %v1068_v60 }
  0x38   : > { %1071 = vst [vmem:[%s1388_s29 + $0x164] sm:$0xf] %v1070_v61  ;;  %1073 = vst [vmem:[%s1388_s29 + $0x170] sm:$0xf] %v1072_v62  ;;  %v1074_v63 = vld [vmem:[%s1383_s28 + $0x464] sm:$0xf] }
  0x39   : > { %1075 = vst [vmem:[%s1388_s29 + $0x17c] sm:$0xf] %v1074_v63 }
  0x3a PF: > { %p1076_p8 = scmp.ge.s32.totalorder %s1313_s16, 1  ;;  %p328_p9 = scmp.lt.s32.totalorder %s1313_s16, 4 }
  0x3c   : > { %p329_p10 = pnand %p1076_p8, %p328_p9 }
  0x3d   : > { %s335_s30 = sand.u32 (!%p329_p10), 1, %s1297_s12   ;;  %s375_s20 = smul.u32 (!%p329_p10), 3, %s1305_s14 }
  0x3e   : > { %332 = sbr.rel (%p329_p10) target bundleno = 351 (0x15f), region = 54 }
  0x3f   : > { %s1163_s4 = smul.u32 (!%p329_p10), 384, %s335_s30  ;;  %p376_p11 = scmp.lt.s32.totalorder (!%p329_p10), %s375_s20, 8 }
  0x40   : > { %s1164_s26 = smul.u32 (!%p329_p10), 96, %s335_s30 }
  0x41   : > { %s1523_s7 = scalar_lea.vmem (!%p329_p10), [#allocation2], %s1163_s4 }
  0x42   : > { %s1588_s27 = scalar_lea.vmem (!%p329_p10), [#allocation3], %s1164_s26 }
  0x43   : > { %v1265_v0 = vld [vmem:[%s1635_s0 + $0x4] ss:$8 sps:$4 sm:$0xff]   ;;  %v1207_v2 = vld [vmem:[%s1523_s7 + $0xa8] ss:$12 sps:$4 sm:$0xff]   ;;  %v1210_v4 = vld [vmem:[%s1523_s7 + $0x90] ss:$12 sps:$4 sm:$0xff]   ;;  %v453_v52 = vlaneseq }
  0x44   : > { %829 = vmatprep.mubr.bf16.mxu1 %v1265_v0  ;;  %776 = vmatprep.mubr.bf16.mxu0 %v1265_v0  ;;  %v1205_v1 = vld [vmem:[%s1523_s7 + $0xac] ss:$12 sps:$4 sm:$0xff]   ;;  %v1208_v3 = vld [vmem:[%s1523_s7 + $0x94] ss:$12 sps:$4 sm:$0xff]   ;;  %v1211_v5 = vld [vmem:[%s1523_s7 + $0x7c] ss:$12 sps:$4 sm:$0xff]  }
  0x45   : > { %744 = vmatprep.subr.bf16.mxu0 %v1205_v1  ;;  %v1213_v6 = vld [vmem:[%s1523_s7 + $0x78] ss:$12 sps:$4 sm:$0xff]   ;;  %v1225_v8 = vld [vmem:[%s1523_s7 + $0x170] ss:$12 sps:$4 sm:$0xff]   ;;  %v1216_v9 = vld [vmem:[%s1523_s7 + $0x60] ss:$12 sps:$4 sm:$0xff]  }
  0x46   : > { %745 = vmatpush1.bf16.msra.mxu0 %v1207_v2  ;;  %v1214_v7 = vld [vmem:[%s1523_s7 + $0x64] ss:$12 sps:$4 sm:$0xff]   ;;  %1134 = vmatprep.subr.bf16.mxu1 %v1225_v8  ;;  %v1217_v11 = vld [vmem:[%s1523_s7 + $0x4c] ss:$12 sps:$4 sm:$0xff]   ;;  %v1219_v14 = vld [vmem:[%s1523_s7 + $0x48] ss:$12 sps:$4 sm:$0xff]  }
  0x47   : > { %746 = vmatprep.subr.bf16.mxu0 %v1208_v3  ;;  %v1227_v10 = vld [vmem:[%s1523_s7 + $0xb0] ss:$12 sps:$4 sm:$0xff]   ;;  %v1230_v12 = vld [vmem:[%s1523_s7 + $0x158] ss:$12 sps:$4 sm:$0xff]   ;;  %v1220_v15 = vld [vmem:[%s1523_s7 + $0x34] ss:$12 sps:$4 sm:$0xff]  }
  0x48   : > { %1135 = vmatpush3.bf16.msra.mxu1 %v1227_v10  ;;  %v1232_v13 = vld [vmem:[%s1523_s7 + $0x98] ss:$12 sps:$4 sm:$0xff]   ;;  %v1235_v16 = vld [vmem:[%s1523_s7 + $0x140] ss:$12 sps:$4 sm:$0xff]   ;;  %v1222_v18 = vld [vmem:[%s1523_s7 + $0x30] ss:$12 sps:$4 sm:$0xff]  }
  0x49   : > { %1136 = vmatprep.subr.bf16.mxu1 %v1230_v12  ;;  %v1237_v17 = vld [vmem:[%s1523_s7 + $0x80] ss:$12 sps:$4 sm:$0xff]   ;;  %v1240_v19 = vld [vmem:[%s1523_s7 + $0x128] ss:$12 sps:$4 sm:$0xff]   ;;  %v1226_v22 = vld [vmem:[%s1523_s7 + $0x18] ss:$12 sps:$4 sm:$0xff]  }
  0x4a   : > { %747 = vmatpush1.bf16.msra.mxu0 %v1210_v4  ;;  %v1223_v20 = vld [vmem:[%s1523_s7 + $0x1c] ss:$12 sps:$4 sm:$0xff]   ;;  %v1228_v24 = vld [vmem:[%s1523_s7 + $0x4] ss:$12 sps:$4 sm:$0xff]   ;;  %v1231_v27 = vld [vmem:[%s1523_s7] ss:$12 sps:$4 sm:$0xff]  }
  0x4b   : > { %748 = vmatprep.subr.bf16.mxu0 %v1211_v5  ;;  %v1242_v21 = vld [vmem:[%s1523_s7 + $0x68] ss:$12 sps:$4 sm:$0xff]   ;;  %v1245_v23 = vld [vmem:[%s1523_s7 + $0x110] ss:$12 sps:$4 sm:$0xff]   ;;  %v1250_v26 = vld [vmem:[%s1523_s7 + $0xf8] ss:$12 sps:$4 sm:$0xff]  }
  0x4c   : > { %1137 = vmatpush3.bf16.msra.mxu1 %v1232_v13  ;;  %v1247_v25 = vld [vmem:[%s1523_s7 + $0x50] ss:$12 sps:$4 sm:$0xff]   ;;  %v1233_v28 = vld [vmem:[%s1523_s7 + $0x16c] ss:$12 sps:$4 sm:$0xff]   ;;  %v1236_v31 = vld [vmem:[%s1523_s7 + $0x168] ss:$12 sps:$4 sm:$0xff]  }
  0x4d   : > { %1138 = vmatprep.subr.bf16.mxu1 %v1235_v16  ;;  %v1252_v29 = vld [vmem:[%s1523_s7 + $0x38] ss:$12 sps:$4 sm:$0xff]   ;;  %v1255_v30 = vld [vmem:[%s1523_s7 + $0xe0] ss:$12 sps:$4 sm:$0xff]   ;;  %v1260_v34 = vld [vmem:[%s1523_s7 + $0xc8] ss:$12 sps:$4 sm:$0xff]  }
  0x4e   : > { %749 = vmatpush1.bf16.msra.mxu0 %v1213_v6  ;;  %v1238_v32 = vld [vmem:[%s1523_s7 + $0x154] ss:$12 sps:$4 sm:$0xff]   ;;  %v1241_v35 = vld [vmem:[%s1523_s7 + $0x150] ss:$12 sps:$4 sm:$0xff]   ;;  %v1246_v38 = vld [vmem:[%s1523_s7 + $0x138] ss:$12 sps:$4 sm:$0xff]  }
  0x4f   : > { %750 = vmatprep.subr.bf16.mxu0 %v1214_v7  ;;  %v1257_v33 = vld [vmem:[%s1523_s7 + $0x20] ss:$12 sps:$4 sm:$0xff]   ;;  %v1243_v36 = vld [vmem:[%s1523_s7 + $0x13c] ss:$12 sps:$4 sm:$0xff]   ;;  %v1248_v39 = vld [vmem:[%s1523_s7 + $0x124] ss:$12 sps:$4 sm:$0xff]  }
  0x50   : > { %1139 = vmatpush3.bf16.msra.mxu1 %v1237_v17  ;;  %v1262_v37 = vld [vmem:[%s1523_s7 + $0x8] ss:$12 sps:$4 sm:$0xff]   ;;  %v1251_v42 = vld [vmem:[%s1523_s7 + $0x120] ss:$12 sps:$4 sm:$0xff]   ;;  %v1274_v46 = vld [vmem:[%s1635_s0 + $0x10] ss:$8 sps:$4 sm:$0xff]  }
  0x51   : > { %1140 = vmatprep.subr.bf16.mxu1 %v1240_v19  ;;  %v1263_v40 = vld [vmem:[%s1635_s0] ss:$8 sps:$4 sm:$0xff]   ;;  %v1272_v41 = vld [vmem:[%s1635_s0 + $0x14] ss:$8 sps:$4 sm:$0xff]   ;;  %v1253_v43 = vld [vmem:[%s1523_s7 + $0x10c] ss:$12 sps:$4 sm:$0xff]  }
  0x52   : > { %751 = vmatpush1.bf16.msra.mxu0 %v1216_v9  ;;  %v1256_v44 = vld [vmem:[%s1523_s7 + $0x108] ss:$12 sps:$4 sm:$0xff]   ;;  %v1261_v47 = vld [vmem:[%s1523_s7 + $0xf0] ss:$12 sps:$4 sm:$0xff]   ;;  %v1268_v49 = vld [vmem:[%s1523_s7 + $0xd8] ss:$12 sps:$4 sm:$0xff]  }
  0x53   : > { %752 = vmatprep.subr.bf16.mxu0 %v1217_v11  ;;  %v1258_v45 = vld [vmem:[%s1523_s7 + $0xf4] ss:$12 sps:$4 sm:$0xff]   ;;  %v1266_v48 = vld [vmem:[%s1523_s7 + $0xdc] ss:$12 sps:$4 sm:$0xff]   ;;  %v1269_v50 = vld [vmem:[%s1523_s7 + $0xc4] ss:$12 sps:$4 sm:$0xff]  }
  0x54   : > { %1141 = vmatpush3.bf16.msra.mxu1 %v1242_v21  ;;  %v1271_v51 = vld [vmem:[%s1523_s7 + $0xc0] ss:$12 sps:$4 sm:$0xff]   ;;  %s1647_s20 = smov (!%p376_p11, %s375_s20), 8  ;;  %v454_v53 = vshrl.u32 %v453_v52, 7  ;;  %s1133_s12 = smul.u32 (%p1370_p6), 24, %s1305_s14 }
  0x55   : > { %1142 = vmatprep.subr.bf16.mxu1 %v1245_v23  ;;  %s378_s25 = scalar_lea.vmem %s1637_s2, %s1647_s20 }
  0x56   : > { %753 = vmatpush1.bf16.msra.mxu0 %v1219_v14  ;;  %v463_v54 = vsub.s32 2, %v454_v53  ;;  %v451_v55 = vld [vmem:[%s378_s25] sm:$0x7]  ;;  %v455_v7 = vsub.s32 0, %v454_v53  ;;  %v459_v9 = vsub.s32 1, %v454_v53  ;;  %s870_s29 = scalar_lea.vmem (%p1370_p6), %s1638_s3, %s1133_s12 }
  0x57   : > { %754 = vmatprep.subr.bf16.mxu0 %v1220_v15 }
  0x58   : > { %1143 = vmatpush3.bf16.msra.mxu1 %v1247_v25  ;;  %v464_v57 = vrot.slane %v451_v55, %v463_v54  ;;  %v456_v11 = vrot.slane %v451_v55, %v455_v7  ;;  %v460_v12 = vrot.slane %v451_v55, %v459_v9 }
  0x59   : > { %1144 = vmatprep.subr.bf16.mxu1 %v1250_v26 }
  0x5a   : > { %755 = vmatpush1.bf16.msra.mxu0 %v1222_v18 }
  0x5b   : > { %756 = vmatprep.subr.bf16.mxu0 %v1223_v20 }
  0x5c   : > { %1145 = vmatpush3.bf16.msra.mxu1 %v1252_v29 }
  0x5d   : > { %1146 = vmatprep.subr.bf16.mxu1 %v1255_v30 }
  0x5e   : > { %757 = vmatpush1.bf16.msra.mxu0 %v1226_v22 }
  0x5f   : > { %758 = vmatprep.subr.bf16.mxu0 %v1228_v24 }
  0x60   : > { %1147 = vmatpush3.bf16.msra.mxu1 %v1257_v33 }
  0x61   : > { %1148 = vmatprep.subr.bf16.mxu1 %v1260_v34 }
  0x62   : > { %759 = vmatpush1.bf16.msra.mxu0 %v1231_v27 }
  0x63   : > { %760 = vmatprep.subr.bf16.mxu0 %v1233_v28 }
  0x64   : > { %1149 = vmatpush3.bf16.msra.mxu1 %v1262_v37 }
  0x66   : > { %761 = vmatpush2.bf16.msra.mxu0 %v1236_v31 }
  0x67   : > { %762 = vmatprep.subr.bf16.mxu0 %v1238_v32  ;;  %830 = vmatmul.mubr.bf16.vlgmr.msra.gmra.mxu1 %v1263_v40 }
  0x68   : > { %837 = vmatprep.mubr.bf16.mxu1 %v1272_v41 }
  0x6a   : > { %763 = vmatpush2.bf16.msra.mxu0 %v1241_v35 }
  0x6b   : > { %764 = vmatprep.subr.bf16.mxu0 %v1243_v36 }
  0x6e   : > { %765 = vmatpush2.bf16.msra.mxu0 %v1246_v38 }
  0x6f   : > { %766 = vmatprep.subr.bf16.mxu0 %v1248_v39  ;;  %838 = vmatmul.mubr.bf16.gmra.mxu1 %v1274_v46 }
  0x72   : > { %767 = vmatpush2.bf16.msra.mxu0 %v1251_v42 }
  0x73   : > { %768 = vmatprep.subr.bf16.mxu0 %v1253_v43 }
  0x76   : > { %769 = vmatpush2.bf16.msra.mxu0 %v1256_v44 }
  0x77   : > { %770 = vmatprep.subr.bf16.mxu0 %v1258_v45 }
  0x7a   : > { %771 = vmatpush2.bf16.msra.mxu0 %v1261_v47 }
  0x7b   : > { %772 = vmatprep.subr.bf16.mxu0 %v1266_v48 }
  0x7e   : > { %773 = vmatpush2.bf16.msra.mxu0 %v1268_v49 }
  0x7f   : > { %774 = vmatprep.subr.bf16.mxu0 %v1269_v50 }
  0x82   : > { %775 = vmatpush2.bf16.msra.mxu0 %v1271_v51 }
  0x85   : > { %777 = vmatmul.mubr.bf16.vlgmr.msra.gmra.mxu0 %v1263_v40 }
  0x86   : > { %786 = vmatprep.mubr.bf16.mxu0 %v1272_v41 }
  0x8d   : > { %787 = vmatmul.mubr.bf16.gmra.mxu0 %v1274_v46 }
 0x127   : > { %v1150_v56 = vpop.f32.mrf.mxu1 }
 0x129   : > { %v1151_v58 = vpop.f32.mrf.mxu1 }
 0x12a   : > { %v1152_v59 = vadd.f32 %v1151_v58, %v1150_v56 }
 0x12b   : > { %v1153_v60 = vpop.f32.mrf.mxu1 }
 0x12c   : > { %v832_v61 = vadd.f32 %v1152_v59, %v464_v57 }
 0x12d   : > { %v1154_v62 = vpop.f32.mrf.mxu1 }
 0x12e   : > { %848 = vst [vmem:[%s1588_s27 + $0x10] sm:$0xff] %v832_v61  ;;  %v1155_v63 = vadd.f32 %v1154_v62, %v1153_v60 }
 0x12f   : > { %v1156_v0 = vpop.f32.mrf.mxu1 }
 0x130   : > { %v835_v1 = vadd.f32 %v1155_v63, %v464_v57 }
 0x131   : > { %v1157_v2 = vpop.f32.mrf.mxu1 }
 0x132   : > { %851 = vst [vmem:[%s1588_s27 + $0x28] sm:$0xff] %v835_v1  ;;  %v1158_v3 = vadd.f32 %v1157_v2, %v1156_v0 }
 0x133   : > { %v1159_v4 = vpop.f32.mrf.mxu1 }
 0x134   : > { %v840_v5 = vadd.f32 %v1158_v3, %v464_v57 }
 0x135   : > { %v1160_v6 = vpop.f32.mrf.mxu1  ;;  %v887_v31 = vld [vmem:[%s1588_s27 + $0x10] sm:$0xff] (%p1370_p6) }
 0x136   : > { %854 = vst [vmem:[%s1588_s27 + $0x40] sm:$0xff] %v840_v5  ;;  %v1161_v8 = vadd.f32 %v1160_v6, %v1159_v4  ;;  %888 = vst [vmem:[%s870_s29 + $0x10] sm:$0xff] (%p1370_p6), %v887_v31 }
 0x138   : > { %v843_v10 = vadd.f32 %v1161_v8, %v464_v57 }
 0x139   : > { %v893_v34 = vld [vmem:[%s1588_s27 + $0x28] sm:$0xff] (%p1370_p6) }
 0x13a   : > { %857 = vst [vmem:[%s1588_s27 + $0x58] sm:$0xff] %v843_v10  ;;  %894 = vst [vmem:[%s870_s29 + $0x58] sm:$0xff] (%p1370_p6), %v893_v34 }
 0x13d   : > { %v899_v37 = vld [vmem:[%s1588_s27 + $0x40] sm:$0xff] (%p1370_p6) }
 0x13e   : > { %900 = vst [vmem:[%s870_s29 + $0xa0] sm:$0xff] (%p1370_p6), %v899_v37 }
 0x141   : > { %v905_v40 = vld [vmem:[%s1588_s27 + $0x58] sm:$0xff] (%p1370_p6) }
 0x142   : > { %906 = vst [vmem:[%s870_s29 + $0xe8] sm:$0xff] (%p1370_p6), %v905_v40 }
 0x145   : > { %v778_v13 = vpop.f32.mrf.mxu0 }
 0x146   : > { %v779_v14 = vadd.f32 %v778_v13, %v456_v11 }
 0x147   : > { %v780_v15 = vpop.f32.mrf.mxu0 }
 0x148   : > { %846 = vst [vmem:[%s1588_s27] sm:$0xff] %v779_v14  ;;  %v781_v16 = vadd.f32 %v780_v15, %v460_v12 }
 0x149   : > { %v782_v17 = vpop.f32.mrf.mxu0 }
 0x14a   : > { %847 = vst [vmem:[%s1588_s27 + $0x8] sm:$0xff] %v781_v16  ;;  %v783_v18 = vadd.f32 %v782_v17, %v456_v11 }
 0x14b   : > { %v784_v19 = vpop.f32.mrf.mxu0 }
 0x14c   : > { %849 = vst [vmem:[%s1588_s27 + $0x18] sm:$0xff] %v783_v18  ;;  %v785_v20 = vadd.f32 %v784_v19, %v460_v12 }
 0x14d   : > { %v788_v21 = vpop.f32.mrf.mxu0 }
 0x14e   : > { %850 = vst [vmem:[%s1588_s27 + $0x20] sm:$0xff] %v785_v20  ;;  %v789_v22 = vadd.f32 %v788_v21, %v456_v11 }
 0x14f   : > { %v790_v23 = vpop.f32.mrf.mxu0  ;;  %v883_v29 = vld [vmem:[%s1588_s27] sm:$0xff] (%p1370_p6) }
 0x150   : > { %852 = vst [vmem:[%s1588_s27 + $0x30] sm:$0xff] %v789_v22  ;;  %v791_v24 = vadd.f32 %v790_v23, %v460_v12  ;;  %884 = vst [vmem:[%s870_s29] sm:$0xff] (%p1370_p6), %v883_v29 }
 0x151   : > { %v792_v25 = vpop.f32.mrf.mxu0  ;;  %v885_v30 = vld [vmem:[%s1588_s27 + $0x8] sm:$0xff] (%p1370_p6) }
 0x152   : > { %853 = vst [vmem:[%s1588_s27 + $0x38] sm:$0xff] %v791_v24  ;;  %v793_v26 = vadd.f32 %v792_v25, %v456_v11  ;;  %864 = sbr.rel (!%p1370_p6) target bundleno = 351 (0x15f), region = 62  ;;  %886 = vst [vmem:[%s870_s29 + $0x8] sm:$0xff] (%p1370_p6), %v885_v30 }
 0x153   : > { %v794_v27 = vpop.f32.mrf.mxu0  ;;  %v889_v32 = vld [vmem:[%s1588_s27 + $0x18] sm:$0xff] (%p1370_p6) }
 0x154   : > { %855 = vst [vmem:[%s1588_s27 + $0x48] sm:$0xff] %v793_v26  ;;  %v795_v28 = vadd.f32 %v794_v27, %v460_v12  ;;  %890 = vst [vmem:[%s870_s29 + $0x48] sm:$0xff] (%p1370_p6), %v889_v32 }
 0x155   : > { %v891_v33 = vld [vmem:[%s1588_s27 + $0x20] sm:$0xff] (%p1370_p6) }
 0x156   : > { %856 = vst [vmem:[%s1588_s27 + $0x50] sm:$0xff] %v795_v28  ;;  %892 = vst [vmem:[%s870_s29 + $0x50] sm:$0xff] (%p1370_p6), %v891_v33 }
 0x157   : > { %v895_v35 = vld [vmem:[%s1588_s27 + $0x30] sm:$0xff] }
 0x158   : > { %896 = vst [vmem:[%s870_s29 + $0x90] sm:$0xff] %v895_v35 }
 0x159   : > { %v897_v36 = vld [vmem:[%s1588_s27 + $0x38] sm:$0xff] }
 0x15a   : > { %898 = vst [vmem:[%s870_s29 + $0x98] sm:$0xff] %v897_v36 }
 0x15b   : > { %v901_v38 = vld [vmem:[%s1588_s27 + $0x48] sm:$0xff] }
 0x15c   : > { %902 = vst [vmem:[%s870_s29 + $0xd8] sm:$0xff] %v901_v38 }
 0x15d   : > { %v903_v39 = vld [vmem:[%s1588_s27 + $0x50] sm:$0xff] }
 0x15e   : > { %904 = vst [vmem:[%s870_s29 + $0xe0] sm:$0xff] %v903_v39 }
 0x15f PF: > { %s13_s16 = sadd.s32 1, %s1313_s16   ;;  %s1640_s12 = smov %s1301_s13 }
 0x160   : > { %p10_p12 = scmp.ge.s32.totalorder %s13_s16, 5   ;;  %s1641_s13 = smov %s1375_s22 }
 0x161   : > { %s1642_s14 = smov %s1309_s15  ;;  %s1643_s15 = smov %s1645_s17 }
 0x162   :  { %12 = sbr.rel (!%p10_p12) target bundleno = 3 (0x3), region = 128 }

// kernel: generator_forward.22
= control target key start
LH: loop header
LB: loop body
LE: loop exit
PB: predicated region body
PF: predicated region fallthrough
CT: control target
= control target key end

     0   :  { %v947_v1 = vmov 0   ;;  %v81_v49 = vlaneseq  ;;  %vm689_vm0 = vcmask 523264   ;;  %s1487_s1 = inlined_call_operand.vmem [shape: bf16[128,576], index: 1, kind: input, shape index: {}]   ;;  %s1488_s0 = inlined_call_operand.vmem [shape: bf16[128,128], index: 0, kind: input, shape index: {}]   ;;  %s1489_s2 = inlined_call_operand.vmem [shape: f32[1,576], index: 2, kind: input, shape index: {}]   ;;  %s1490_s3 = inlined_call_operand.vmem [shape: f32[128,576], index: 3, kind: output, shape index: {}]  }
   0x1   :  { %v883_v0 = vld [vmem:[%s1487_s1 + $0x11c] ss:$20 sps:$4 sm:$0xff]   ;;  %394 = vmatprep.mubr.bf16.mxu0 %v947_v1  ;;  %507 = vmatprep.mubr.bf16.mxu1 %v947_v1  ;;  %v885_v2 = vld [vmem:[%s1487_s1 + $0x124] ss:$20 sps:$4 sm:$0xff]   ;;  %v888_v4 = vld [vmem:[%s1487_s1 + $0x120] ss:$20 sps:$4 sm:$0xff]  }
   0x2   :  { %362 = vmatprep.subr.bf16.mxu0 %v883_v0  ;;  %v887_v3 = vld [vmem:[%s1487_s1 + $0x118] ss:$20 sps:$4 sm:$0xff]   ;;  %475 = vmatprep.subr.bf16.mxu1 %v885_v2  ;;  %v889_v5 = vld [vmem:[%s1487_s1 + $0xf4] ss:$20 sps:$4 sm:$0xff]   ;;  %v891_v6 = vld [vmem:[%s1487_s1 + $0xfc] ss:$20 sps:$4 sm:$0xff]  }
   0x3   :  { %363 = vmatpush1.bf16.msra.mxu0 %v887_v3  ;;  %476 = vmatpush1.bf16.msra.mxu1 %v888_v4  ;;  %v893_v7 = vld [vmem:[%s1487_s1 + $0xf0] ss:$20 sps:$4 sm:$0xff]   ;;  %v894_v8 = vld [vmem:[%s1487_s1 + $0xf8] ss:$20 sps:$4 sm:$0xff]   ;;  %v897_v10 = vld [vmem:[%s1487_s1 + $0xd4] ss:$20 sps:$4 sm:$0xff]  }
   0x4   :  { %364 = vmatprep.subr.bf16.mxu0 %v889_v5  ;;  %477 = vmatprep.subr.bf16.mxu1 %v891_v6  ;;  %v895_v9 = vld [vmem:[%s1487_s1 + $0xcc] ss:$20 sps:$4 sm:$0xff]   ;;  %v899_v11 = vld [vmem:[%s1487_s1 + $0xc8] ss:$20 sps:$4 sm:$0xff]   ;;  %v900_v12 = vld [vmem:[%s1487_s1 + $0xd0] ss:$20 sps:$4 sm:$0xff]  }
   0x5   :  { %v901_v13 = vld [vmem:[%s1487_s1 + $0xa4] ss:$20 sps:$4 sm:$0xff]   ;;  %v903_v14 = vld [vmem:[%s1487_s1 + $0xac] ss:$20 sps:$4 sm:$0xff]   ;;  %v906_v16 = vld [vmem:[%s1487_s1 + $0xa8] ss:$20 sps:$4 sm:$0xff]  }
   0x6   :  { %v905_v15 = vld [vmem:[%s1487_s1 + $0xa0] ss:$20 sps:$4 sm:$0xff]   ;;  %v907_v17 = vld [vmem:[%s1487_s1 + $0x7c] ss:$20 sps:$4 sm:$0xff]   ;;  %v909_v18 = vld [vmem:[%s1487_s1 + $0x84] ss:$20 sps:$4 sm:$0xff]  }
   0x7   :  { %365 = vmatpush1.bf16.msra.mxu0 %v893_v7  ;;  %478 = vmatpush1.bf16.msra.mxu1 %v894_v8  ;;  %v911_v19 = vld [vmem:[%s1487_s1 + $0x78] ss:$20 sps:$4 sm:$0xff]   ;;  %v912_v20 = vld [vmem:[%s1487_s1 + $0x80] ss:$20 sps:$4 sm:$0xff]   ;;  %v915_v22 = vld [vmem:[%s1487_s1 + $0x5c] ss:$20 sps:$4 sm:$0xff]  }
   0x8   :  { %366 = vmatprep.subr.bf16.mxu0 %v895_v9  ;;  %479 = vmatprep.subr.bf16.mxu1 %v897_v10  ;;  %v913_v21 = vld [vmem:[%s1487_s1 + $0x54] ss:$20 sps:$4 sm:$0xff]   ;;  %v917_v23 = vld [vmem:[%s1487_s1 + $0x50] ss:$20 sps:$4 sm:$0xff]   ;;  %v918_v24 = vld [vmem:[%s1487_s1 + $0x58] ss:$20 sps:$4 sm:$0xff]  }
   0x9   :  { %v919_v25 = vld [vmem:[%s1487_s1 + $0x2c] ss:$20 sps:$4 sm:$0xff]   ;;  %v921_v26 = vld [vmem:[%s1487_s1 + $0x34] ss:$20 sps:$4 sm:$0xff]   ;;  %v924_v28 = vld [vmem:[%s1487_s1 + $0x30] ss:$20 sps:$4 sm:$0xff]  }
   0xa   :  { %v923_v27 = vld [vmem:[%s1487_s1 + $0x28] ss:$20 sps:$4 sm:$0xff]   ;;  %v925_v29 = vld [vmem:[%s1487_s1 + $0x4] ss:$20 sps:$4 sm:$0xff]   ;;  %v927_v30 = vld [vmem:[%s1487_s1 + $0xc] ss:$20 sps:$4 sm:$0xff]  }
   0xb   :  { %367 = vmatpush1.bf16.msra.mxu0 %v899_v11  ;;  %480 = vmatpush1.bf16.msra.mxu1 %v900_v12  ;;  %v929_v31 = vld [vmem:[%s1487_s1] ss:$20 sps:$4 sm:$0xff]   ;;  %v930_v32 = vld [vmem:[%s1487_s1 + $0x8] ss:$20 sps:$4 sm:$0xff]   ;;  %v936_v36 = vld [vmem:[%s1487_s1 + $0xd8] ss:$20 sps:$4 sm:$0xff]  }
   0xc   :  { %368 = vmatprep.subr.bf16.mxu0 %v901_v13  ;;  %481 = vmatprep.subr.bf16.mxu1 %v903_v14  ;;  %v932_v33 = vld [vmem:[%s1487_s1 + $0x128] ss:$20 sps:$4 sm:$0xff]   ;;  %v1072_v34 = vld [vmem:[%s1488_s0] sm:$0xff]   ;;  %v935_v40 = vld [vmem:[%s1488_s0 + $0x10] sm:$0xff]   ;;  %v82_v50 = vshrl.u32 %v81_v49, 7 }
   0xd   :  { %v934_v35 = vld [vmem:[%s1487_s1 + $0x100] ss:$20 sps:$4 sm:$0xff]   ;;  %v1087_v37 = vld [vmem:[%s1488_s0 + $0x8] sm:$0xff]   ;;  %v938_v38 = vld [vmem:[%s1487_s1 + $0xb0] ss:$20 sps:$4 sm:$0xff]  }
   0xe   :  { %v940_v39 = vld [vmem:[%s1487_s1 + $0x88] ss:$20 sps:$4 sm:$0xff]   ;;  %v942_v41 = vld [vmem:[%s1487_s1 + $0x60] ss:$20 sps:$4 sm:$0xff]   ;;  %v944_v42 = vld [vmem:[%s1487_s1 + $0x38] ss:$20 sps:$4 sm:$0xff]  }
   0xf   :  { %369 = vmatpush1.bf16.msra.mxu0 %v905_v15  ;;  %482 = vmatpush1.bf16.msra.mxu1 %v906_v16  ;;  %v937_v43 = vld [vmem:[%s1488_s0 + $0x18] sm:$0xff]   ;;  %v946_v44 = vld [vmem:[%s1487_s1 + $0x10] ss:$20 sps:$4 sm:$0xff]   ;;  %v941_v46 = vld [vmem:[%s1488_s0 + $0x28] sm:$0xff]   ;;  %v99_v51 = vsub.s32 4, %v82_v50  ;;  %v83_v54 = vsub.s32 0, %v82_v50 }
  0x10   :  { %370 = vmatprep.subr.bf16.mxu0 %v907_v17  ;;  %483 = vmatprep.subr.bf16.mxu1 %v909_v18  ;;  %v939_v45 = vld [vmem:[%s1488_s0 + $0x20] sm:$0xff]   ;;  %v943_v47 = vld [vmem:[%s1488_s0 + $0x30] sm:$0xff]   ;;  %v945_v48 = vld [vmem:[%s1488_s0 + $0x38] sm:$0xff]   ;;  %v91_v55 = vsub.s32 2, %v82_v50  ;;  %v87_v56 = vsub.s32 1, %v82_v50  ;;  %v95_v57 = vsub.s32 3, %v82_v50 }
  0x11   :  { %v79_v52 = vld [vmem:[%s1489_s2] sm:$0x1f] }
  0x12   :  { %v1141_v53 = vrot.slane %v79_v52, %v99_v51  ;;  %v1143_v58 = vrot.slane %v79_v52, %v83_v54  ;;  %v1145_v59 = vrot.slane %v79_v52, %v91_v55  ;;  %v1147_v60 = vrot.slane %v79_v52, %v87_v56 }
  0x13   :  { %371 = vmatpush1.bf16.msra.mxu0 %v911_v19  ;;  %484 = vmatpush1.bf16.msra.mxu1 %v912_v20  ;;  %v1149_v61 = vrot.slane %v79_v52, %v95_v57 }
  0x14   :  { %372 = vmatprep.subr.bf16.mxu0 %v913_v21  ;;  %485 = vmatprep.subr.bf16.mxu1 %v915_v22 }
  0x17   :  { %373 = vmatpush1.bf16.msra.mxu0 %v917_v23  ;;  %486 = vmatpush1.bf16.msra.mxu1 %v918_v24 }
  0x18   :  { %374 = vmatprep.subr.bf16.mxu0 %v919_v25  ;;  %487 = vmatprep.subr.bf16.mxu1 %v921_v26 }
  0x1b   :  { %375 = vmatpush1.bf16.msra.mxu0 %v923_v27  ;;  %488 = vmatpush1.bf16.msra.mxu1 %v924_v28 }
  0x1c   :  { %376 = vmatprep.subr.bf16.mxu0 %v925_v29  ;;  %489 = vmatprep.subr.bf16.mxu1 %v927_v30 }
  0x1f   :  { %377 = vmatpush1.bf16.msra.mxu0 %v929_v31  ;;  %490 = vmatpush1.bf16.msra.mxu1 %v930_v32 }
  0x20   :  { %834 = vmatprep.subr.bf16.mxu0 %v932_v33  ;;  %866 = vmatprep.subr.bf16.mxu1 %v932_v33 }
  0x22   :  { %395 = vmatmul.mubr.bf16.vlgmr.msra.gmra.mxu0 %v1072_v34  ;;  %508 = vmatmul.mubr.bf16.vlgmr.msra.gmra.mxu1 %v1072_v34 }
  0x23   :  { %835 = vmatpush3.bf16.msra.mxu0 %v932_v33  ;;  %874 = vmatpush3.bf16.msra.mxu1 %v932_v33 }
  0x24   :  { %404 = vmatprep.mubr.bf16.mxu0 %v947_v1  ;;  %517 = vmatprep.mubr.bf16.mxu1 %v947_v1 }
  0x25   :  { %836 = vmatprep.subr.bf16.mxu0 %v934_v35  ;;  %867 = vmatprep.subr.bf16.mxu1 %v934_v35 }
  0x27   :  { %837 = vmatpush3.bf16.msra.mxu0 %v934_v35  ;;  %875 = vmatpush3.bf16.msra.mxu1 %v934_v35 }
  0x28   :  { %838 = vmatprep.subr.bf16.mxu0 %v936_v36  ;;  %868 = vmatprep.subr.bf16.mxu1 %v936_v36 }
  0x2a   :  { %405 = vmatmul.mubr.bf16.gmra.mxu0 %v1087_v37  ;;  %518 = vmatmul.mubr.bf16.gmra.mxu1 %v1087_v37 }
  0x2b   :  { %414 = vmatprep.mubr.bf16.mxu0 %v947_v1  ;;  %527 = vmatprep.mubr.bf16.mxu1 %v947_v1 }
  0x2c   :  { %839 = vmatpush3.bf16.msra.mxu0 %v936_v36  ;;  %876 = vmatpush3.bf16.msra.mxu1 %v936_v36 }
  0x2d   :  { %840 = vmatprep.subr.bf16.mxu0 %v938_v38  ;;  %869 = vmatprep.subr.bf16.mxu1 %v938_v38 }
  0x30   :  { %841 = vmatpush3.bf16.msra.mxu0 %v938_v38  ;;  %877 = vmatpush3.bf16.msra.mxu1 %v938_v38 }
  0x31   :  { %842 = vmatprep.subr.bf16.mxu0 %v940_v39  ;;  %870 = vmatprep.subr.bf16.mxu1 %v940_v39 }
  0x32   :  { %415 = vmatmul.mubr.bf16.gmra.mxu0 %v935_v40  ;;  %528 = vmatmul.mubr.bf16.gmra.mxu1 %v935_v40 }
  0x33   :  { %424 = vmatprep.mubr.bf16.mxu0 %v947_v1  ;;  %537 = vmatprep.mubr.bf16.mxu1 %v947_v1 }
  0x34   :  { %843 = vmatpush3.bf16.msra.mxu0 %v940_v39  ;;  %878 = vmatpush3.bf16.msra.mxu1 %v940_v39 }
  0x35   :  { %844 = vmatprep.subr.bf16.mxu0 %v942_v41  ;;  %871 = vmatprep.subr.bf16.mxu1 %v942_v41 }
  0x38   :  { %845 = vmatpush3.bf16.msra.mxu0 %v942_v41  ;;  %879 = vmatpush3.bf16.msra.mxu1 %v942_v41 }
  0x39   :  { %846 = vmatprep.subr.bf16.mxu0 %v944_v42  ;;  %872 = vmatprep.subr.bf16.mxu1 %v944_v42 }
  0x3a   :  { %425 = vmatmul.mubr.bf16.gmra.mxu0 %v937_v43  ;;  %538 = vmatmul.mubr.bf16.gmra.mxu1 %v937_v43 }
  0x3b   :  { %434 = vmatprep.mubr.bf16.mxu0 %v947_v1  ;;  %547 = vmatprep.mubr.bf16.mxu1 %v947_v1 }
  0x3c   :  { %847 = vmatpush3.bf16.msra.mxu0 %v944_v42  ;;  %880 = vmatpush3.bf16.msra.mxu1 %v944_v42 }
  0x3d   :  { %848 = vmatprep.subr.bf16.mxu0 %v946_v44  ;;  %873 = vmatprep.subr.bf16.mxu1 %v946_v44 }
  0x40   :  { %849 = vmatpush3.bf16.msra.mxu0 %v946_v44  ;;  %881 = vmatpush3.bf16.msra.mxu1 %v946_v44 }
  0x42   :  { %435 = vmatmul.mubr.bf16.gmra.mxu0 %v939_v45  ;;  %548 = vmatmul.mubr.bf16.gmra.mxu1 %v939_v45 }
  0x43   :  { %444 = vmatprep.mubr.bf16.mxu0 %v947_v1  ;;  %557 = vmatprep.mubr.bf16.mxu1 %v947_v1 }
  0x4a   :  { %445 = vmatmul.mubr.bf16.gmra.mxu0 %v941_v46  ;;  %558 = vmatmul.mubr.bf16.gmra.mxu1 %v941_v46 }
  0x4b   :  { %454 = vmatprep.mubr.bf16.mxu0 %v947_v1  ;;  %567 = vmatprep.mubr.bf16.mxu1 %v947_v1 }
  0x52   :  { %455 = vmatmul.mubr.bf16.gmra.mxu0 %v943_v47  ;;  %568 = vmatmul.mubr.bf16.gmra.mxu1 %v943_v47 }
  0x53   :  { %464 = vmatprep.mubr.bf16.mxu0 %v947_v1  ;;  %577 = vmatprep.mubr.bf16.mxu1 %v947_v1 }
  0x5a   :  { %465 = vmatmul.mubr.bf16.gmra.mxu0 %v945_v48  ;;  %578 = vmatmul.mubr.bf16.gmra.mxu1 %v945_v48 }
  0x5b   :  { %850 = vmatprep.mubr.bf16.mxu0 %v1072_v34  ;;  %858 = vmatprep.mubr.bf16.mxu1 %v939_v45 }
  0x62   :  { %851 = vmatmul.mubr.bf16.vlgmr.msra.gmra.mxu0 %v1087_v37  ;;  %859 = vmatmul.mubr.bf16.vlgmr.msra.gmra.mxu1 %v941_v46 }
  0x63   :  { %854 = vmatprep.mubr.bf16.mxu0 %v935_v40  ;;  %862 = vmatprep.mubr.bf16.mxu1 %v943_v47 }
  0x6a   :  { %855 = vmatmul.mubr.bf16.gmra.mxu0 %v937_v43  ;;  %863 = vmatmul.mubr.bf16.gmra.mxu1 %v945_v48 }
  0xe2   :  { %v396_v62 = vpop.f32.mrf.mxu0  ;;  %v509_v63 = vpop.f32.mrf.mxu1 }
  0xe3   :  { %v397_v0 = vadd.f32 %v396_v62, %v1143_v58  ;;  %v510_v1 = vadd.f32 %v509_v63, %v1145_v59 }
  0xe4   :  { %v398_v2 = vpop.f32.mrf.mxu0  ;;  %v511_v3 = vpop.f32.mrf.mxu1 }
  0xe5   :  { %685 = vst [vmem:[%s1490_s3] sm:$0xff] %v397_v0  ;;  %687 = vst [vmem:[%s1490_s3 + $0x10] sm:$0xff] %v510_v1  ;;  %v399_v4 = vadd.f32 %v398_v2, %v1147_v60  ;;  %v512_v5 = vadd.f32 %v511_v3, %v1149_v61 }
  0xe6   :  { %v400_v6 = vpop.f32.mrf.mxu0  ;;  %v513_v7 = vpop.f32.mrf.mxu1 }
  0xe7   :  { %686 = vst [vmem:[%s1490_s3 + $0x8] sm:$0xff] %v399_v4  ;;  %688 = vst [vmem:[%s1490_s3 + $0x18] sm:$0xff] %v512_v5  ;;  %v401_v8 = vadd.f32 %v400_v6, %v1143_v58  ;;  %v514_v9 = vadd.f32 %v513_v7, %v1145_v59 }
  0xe8   :  { %v402_v10 = vpop.f32.mrf.mxu0  ;;  %v515_v11 = vpop.f32.mrf.mxu1 }
  0xe9   :  { %691 = vst [vmem:[%s1490_s3 + $0x28] sm:$0xff] %v401_v8  ;;  %693 = vst [vmem:[%s1490_s3 + $0x38] sm:$0xff] %v514_v9  ;;  %v403_v12 = vadd.f32 %v402_v10, %v1147_v60  ;;  %v516_v13 = vadd.f32 %v515_v11, %v1149_v61 }
  0xea   :  { %v406_v14 = vpop.f32.mrf.mxu0  ;;  %v519_v15 = vpop.f32.mrf.mxu1 }
  0xeb   :  { %692 = vst [vmem:[%s1490_s3 + $0x30] sm:$0xff] %v403_v12  ;;  %694 = vst [vmem:[%s1490_s3 + $0x40] sm:$0xff] %v516_v13  ;;  %v407_v16 = vadd.f32 %v406_v14, %v1143_v58  ;;  %v520_v17 = vadd.f32 %v519_v15, %v1145_v59 }
  0xec   :  { %v408_v18 = vpop.f32.mrf.mxu0  ;;  %v521_v19 = vpop.f32.mrf.mxu1 }
  0xed   :  { %696 = vst [vmem:[%s1490_s3 + $0x50] sm:$0xff] %v407_v16  ;;  %698 = vst [vmem:[%s1490_s3 + $0x60] sm:$0xff] %v520_v17  ;;  %v409_v20 = vadd.f32 %v408_v18, %v1147_v60  ;;  %v522_v21 = vadd.f32 %v521_v19, %v1149_v61 }
  0xee   :  { %v410_v22 = vpop.f32.mrf.mxu0  ;;  %v523_v23 = vpop.f32.mrf.mxu1 }
  0xef   :  { %697 = vst [vmem:[%s1490_s3 + $0x58] sm:$0xff] %v409_v20  ;;  %699 = vst [vmem:[%s1490_s3 + $0x68] sm:$0xff] %v522_v21  ;;  %v411_v24 = vadd.f32 %v410_v22, %v1143_v58  ;;  %v524_v25 = vadd.f32 %v523_v23, %v1145_v59 }
  0xf0   :  { %v412_v26 = vpop.f32.mrf.mxu0  ;;  %v525_v27 = vpop.f32.mrf.mxu1 }
  0xf1   :  { %701 = vst [vmem:[%s1490_s3 + $0x78] sm:$0xff] %v411_v24  ;;  %703 = vst [vmem:[%s1490_s3 + $0x88] sm:$0xff] %v524_v25  ;;  %v413_v28 = vadd.f32 %v412_v26, %v1147_v60  ;;  %v526_v29 = vadd.f32 %v525_v27, %v1149_v61 }
  0xf2   :  { %v416_v30 = vpop.f32.mrf.mxu0  ;;  %v529_v31 = vpop.f32.mrf.mxu1 }
  0xf3   :  { %702 = vst [vmem:[%s1490_s3 + $0x80] sm:$0xff] %v413_v28  ;;  %704 = vst [vmem:[%s1490_s3 + $0x90] sm:$0xff] %v526_v29  ;;  %v417_v32 = vadd.f32 %v416_v30, %v1143_v58  ;;  %v530_v33 = vadd.f32 %v529_v31, %v1145_v59 }
  0xf4   :  { %v418_v34 = vpop.f32.mrf.mxu0  ;;  %v531_v35 = vpop.f32.mrf.mxu1 }
  0xf5   :  { %706 = vst [vmem:[%s1490_s3 + $0xa0] sm:$0xff] %v417_v32  ;;  %708 = vst [vmem:[%s1490_s3 + $0xb0] sm:$0xff] %v530_v33  ;;  %v419_v36 = vadd.f32 %v418_v34, %v1147_v60  ;;  %v532_v37 = vadd.f32 %v531_v35, %v1149_v61 }
  0xf6   :  { %v420_v38 = vpop.f32.mrf.mxu0  ;;  %v533_v39 = vpop.f32.mrf.mxu1 }
  0xf7   :  { %707 = vst [vmem:[%s1490_s3 + $0xa8] sm:$0xff] %v419_v36  ;;  %709 = vst [vmem:[%s1490_s3 + $0xb8] sm:$0xff] %v532_v37  ;;  %v421_v40 = vadd.f32 %v420_v38, %v1143_v58  ;;  %v534_v41 = vadd.f32 %v533_v39, %v1145_v59 }
  0xf8   :  { %v422_v42 = vpop.f32.mrf.mxu0  ;;  %v535_v43 = vpop.f32.mrf.mxu1 }
  0xf9   :  { %711 = vst [vmem:[%s1490_s3 + $0xc8] sm:$0xff] %v421_v40  ;;  %713 = vst [vmem:[%s1490_s3 + $0xd8] sm:$0xff] %v534_v41  ;;  %v423_v44 = vadd.f32 %v422_v42, %v1147_v60  ;;  %v536_v45 = vadd.f32 %v535_v43, %v1149_v61 }
  0xfa   :  { %v426_v46 = vpop.f32.mrf.mxu0  ;;  %v539_v47 = vpop.f32.mrf.mxu1 }
  0xfb   :  { %712 = vst [vmem:[%s1490_s3 + $0xd0] sm:$0xff] %v423_v44  ;;  %714 = vst [vmem:[%s1490_s3 + $0xe0] sm:$0xff] %v536_v45  ;;  %v427_v48 = vadd.f32 %v426_v46, %v1143_v58  ;;  %v540_v49 = vadd.f32 %v539_v47, %v1145_v59 }
  0xfc   :  { %v428_v50 = vpop.f32.mrf.mxu0  ;;  %v541_v51 = vpop.f32.mrf.mxu1 }
  0xfd   :  { %716 = vst [vmem:[%s1490_s3 + $0xf0] sm:$0xff] %v427_v48  ;;  %718 = vst [vmem:[%s1490_s3 + $0x100] sm:$0xff] %v540_v49  ;;  %v429_v52 = vadd.f32 %v428_v50, %v1147_v60  ;;  %v542_v54 = vadd.f32 %v541_v51, %v1149_v61 }
  0xfe   :  { %v430_v55 = vpop.f32.mrf.mxu0  ;;  %v543_v56 = vpop.f32.mrf.mxu1 }
  0xff   :  { %717 = vst [vmem:[%s1490_s3 + $0xf8] sm:$0xff] %v429_v52  ;;  %719 = vst [vmem:[%s1490_s3 + $0x108] sm:$0xff] %v542_v54  ;;  %v431_v57 = vadd.f32 %v430_v55, %v1143_v58  ;;  %v544_v62 = vadd.f32 %v543_v56, %v1145_v59 }
 0x100   :  { %v432_v63 = vpop.f32.mrf.mxu0  ;;  %v545_v0 = vpop.f32.mrf.mxu1 }
 0x101   :  { %721 = vst [vmem:[%s1490_s3 + $0x118] sm:$0xff] %v431_v57  ;;  %723 = vst [vmem:[%s1490_s3 + $0x128] sm:$0xff] %v544_v62  ;;  %v433_v1 = vadd.f32 %v432_v63, %v1147_v60  ;;  %v546_v2 = vadd.f32 %v545_v0, %v1149_v61 }
 0x102   :  { %v436_v3 = vpop.f32.mrf.mxu0  ;;  %v549_v4 = vpop.f32.mrf.mxu1 }
 0x103   :  { %722 = vst [vmem:[%s1490_s3 + $0x120] sm:$0xff] %v433_v1  ;;  %724 = vst [vmem:[%s1490_s3 + $0x130] sm:$0xff] %v546_v2  ;;  %v437_v5 = vadd.f32 %v436_v3, %v1143_v58  ;;  %v550_v6 = vadd.f32 %v549_v4, %v1145_v59 }
 0x104   :  { %v438_v7 = vpop.f32.mrf.mxu0  ;;  %v551_v8 = vpop.f32.mrf.mxu1 }
 0x105   :  { %726 = vst [vmem:[%s1490_s3 + $0x140] sm:$0xff] %v437_v5  ;;  %728 = vst [vmem:[%s1490_s3 + $0x150] sm:$0xff] %v550_v6  ;;  %v439_v9 = vadd.f32 %v438_v7, %v1147_v60  ;;  %v552_v10 = vadd.f32 %v551_v8, %v1149_v61 }
 0x106   :  { %v440_v11 = vpop.f32.mrf.mxu0  ;;  %v553_v12 = vpop.f32.mrf.mxu1 }
 0x107   :  { %727 = vst [vmem:[%s1490_s3 + $0x148] sm:$0xff] %v439_v9  ;;  %729 = vst [vmem:[%s1490_s3 + $0x158] sm:$0xff] %v552_v10  ;;  %v441_v13 = vadd.f32 %v440_v11, %v1143_v58  ;;  %v554_v14 = vadd.f32 %v553_v12, %v1145_v59 }
 0x108   :  { %v442_v15 = vpop.f32.mrf.mxu0  ;;  %v555_v16 = vpop.f32.mrf.mxu1 }
 0x109   :  { %731 = vst [vmem:[%s1490_s3 + $0x168] sm:$0xff] %v441_v13  ;;  %733 = vst [vmem:[%s1490_s3 + $0x178] sm:$0xff] %v554_v14  ;;  %v443_v17 = vadd.f32 %v442_v15, %v1147_v60  ;;  %v556_v18 = vadd.f32 %v555_v16, %v1149_v61 }
 0x10a   :  { %v446_v19 = vpop.f32.mrf.mxu0  ;;  %v559_v20 = vpop.f32.mrf.mxu1 }
 0x10b   :  { %732 = vst [vmem:[%s1490_s3 + $0x170] sm:$0xff] %v443_v17  ;;  %734 = vst [vmem:[%s1490_s3 + $0x180] sm:$0xff] %v556_v18  ;;  %v447_v21 = vadd.f32 %v446_v19, %v1143_v58  ;;  %v560_v22 = vadd.f32 %v559_v20, %v1145_v59 }
 0x10c   :  { %v448_v23 = vpop.f32.mrf.mxu0  ;;  %v561_v24 = vpop.f32.mrf.mxu1 }
 0x10d   :  { %736 = vst [vmem:[%s1490_s3 + $0x190] sm:$0xff] %v447_v21  ;;  %738 = vst [vmem:[%s1490_s3 + $0x1a0] sm:$0xff] %v560_v22  ;;  %v449_v25 = vadd.f32 %v448_v23, %v1147_v60  ;;  %v562_v26 = vadd.f32 %v561_v24, %v1149_v61 }
 0x10e   :  { %v450_v27 = vpop.f32.mrf.mxu0  ;;  %v563_v28 = vpop.f32.mrf.mxu1 }
 0x10f   :  { %737 = vst [vmem:[%s1490_s3 + $0x198] sm:$0xff] %v449_v25  ;;  %739 = vst [vmem:[%s1490_s3 + $0x1a8] sm:$0xff] %v562_v26  ;;  %v451_v29 = vadd.f32 %v450_v27, %v1143_v58  ;;  %v564_v30 = vadd.f32 %v563_v28, %v1145_v59 }
 0x110   :  { %v452_v31 = vpop.f32.mrf.mxu0  ;;  %v565_v32 = vpop.f32.mrf.mxu1 }
 0x111   :  { %741 = vst [vmem:[%s1490_s3 + $0x1b8] sm:$0xff] %v451_v29  ;;  %743 = vst [vmem:[%s1490_s3 + $0x1c8] sm:$0xff] %v564_v30  ;;  %v453_v33 = vadd.f32 %v452_v31, %v1147_v60  ;;  %v566_v34 = vadd.f32 %v565_v32, %v1149_v61 }
 0x112   :  { %v456_v35 = vpop.f32.mrf.mxu0  ;;  %v569_v36 = vpop.f32.mrf.mxu1 }
 0x113   :  { %742 = vst [vmem:[%s1490_s3 + $0x1c0] sm:$0xff] %v453_v33  ;;  %744 = vst [vmem:[%s1490_s3 + $0x1d0] sm:$0xff] %v566_v34  ;;  %v457_v37 = vadd.f32 %v456_v35, %v1143_v58  ;;  %v570_v38 = vadd.f32 %v569_v36, %v1145_v59 }
 0x114   :  { %v458_v39 = vpop.f32.mrf.mxu0  ;;  %v571_v40 = vpop.f32.mrf.mxu1 }
 0x115   :  { %746 = vst [vmem:[%s1490_s3 + $0x1e0] sm:$0xff] %v457_v37  ;;  %748 = vst [vmem:[%s1490_s3 + $0x1f0] sm:$0xff] %v570_v38  ;;  %v459_v41 = vadd.f32 %v458_v39, %v1147_v60  ;;  %v572_v42 = vadd.f32 %v571_v40, %v1149_v61 }
 0x116   :  { %v460_v43 = vpop.f32.mrf.mxu0  ;;  %v573_v44 = vpop.f32.mrf.mxu1 }
 0x117   :  { %747 = vst [vmem:[%s1490_s3 + $0x1e8] sm:$0xff] %v459_v41  ;;  %749 = vst [vmem:[%s1490_s3 + $0x1f8] sm:$0xff] %v572_v42  ;;  %v461_v45 = vadd.f32 %v460_v43, %v1143_v58  ;;  %v574_v46 = vadd.f32 %v573_v44, %v1145_v59 }
 0x118   :  { %v462_v47 = vpop.f32.mrf.mxu0  ;;  %v575_v48 = vpop.f32.mrf.mxu1 }
 0x119   :  { %751 = vst [vmem:[%s1490_s3 + $0x208] sm:$0xff] %v461_v45  ;;  %753 = vst [vmem:[%s1490_s3 + $0x218] sm:$0xff] %v574_v46  ;;  %v463_v49 = vadd.f32 %v462_v47, %v1147_v60  ;;  %v576_v50 = vadd.f32 %v575_v48, %v1149_v61 }
 0x11a   :  { %v466_v51 = vpop.f32.mrf.mxu0  ;;  %v579_v52 = vpop.f32.mrf.mxu1 }
 0x11b   :  { %752 = vst [vmem:[%s1490_s3 + $0x210] sm:$0xff] %v463_v49  ;;  %754 = vst [vmem:[%s1490_s3 + $0x220] sm:$0xff] %v576_v50  ;;  %v467_v54 = vadd.f32 %v466_v51, %v1143_v58  ;;  %v580_v55 = vadd.f32 %v579_v52, %v1145_v59 }
 0x11c   :  { %v468_v56 = vpop.f32.mrf.mxu0  ;;  %v581_v57 = vpop.f32.mrf.mxu1 }
 0x11d   :  { %756 = vst [vmem:[%s1490_s3 + $0x230] sm:$0xff] %v467_v54  ;;  %758 = vst [vmem:[%s1490_s3 + $0x240] sm:$0xff] %v580_v55  ;;  %v469_v62 = vadd.f32 %v468_v56, %v1147_v60  ;;  %v582_v63 = vadd.f32 %v581_v57, %v1149_v61 }
 0x11e   :  { %v470_v0 = vpop.f32.mrf.mxu0  ;;  %v583_v1 = vpop.f32.mrf.mxu1 }
 0x11f   :  { %757 = vst [vmem:[%s1490_s3 + $0x238] sm:$0xff] %v469_v62  ;;  %759 = vst [vmem:[%s1490_s3 + $0x248] sm:$0xff] %v582_v63  ;;  %v471_v2 = vadd.f32 %v470_v0, %v1143_v58  ;;  %v584_v3 = vadd.f32 %v583_v1, %v1145_v59 }
 0x120   :  { %v472_v4 = vpop.f32.mrf.mxu0  ;;  %v585_v5 = vpop.f32.mrf.mxu1 }
 0x121   :  { %761 = vst [vmem:[%s1490_s3 + $0x258] sm:$0xff] %v471_v2  ;;  %763 = vst [vmem:[%s1490_s3 + $0x268] sm:$0xff] %v584_v3  ;;  %v473_v6 = vadd.f32 %v472_v4, %v1147_v60  ;;  %v586_v7 = vadd.f32 %v585_v5, %v1149_v61 }
 0x122   :  { %v852_v8 = vpop.f32.mrf.mxu0  ;;  %v860_v9 = vpop.f32.mrf.mxu1 }
 0x123   :  { %762 = vst [vmem:[%s1490_s3 + $0x260] sm:$0xff] %v473_v6  ;;  %764 = vst [vmem:[%s1490_s3 + $0x270] sm:$0xff] %v586_v7  ;;  %v631_v58 = vadd.f32 %v852_v8, %v1141_v53  ;;  %v663_v59 = vadd.f32 %v860_v9, %v1141_v53 }
 0x124   :  { %v622_v10 = vpop.f32.mrf.mxu0  ;;  %v654_v11 = vpop.f32.mrf.mxu1 }
 0x125   :  { %700 = vst.msk [vmem:[%s1490_s3 + $0x70] sm:$0xff] %vm689_vm0, %v631_v58  ;;  %740 = vst.msk [vmem:[%s1490_s3 + $0x1b0] sm:$0xff] %vm689_vm0, %v663_v59  ;;  %v623_v60 = vadd.f32 %v622_v10, %v1141_v53  ;;  %v655_v61 = vadd.f32 %v654_v11, %v1141_v53 }
 0x126   :  { %v853_v12 = vpop.f32.mrf.mxu0  ;;  %v861_v13 = vpop.f32.mrf.mxu1 }
 0x127   :  { %690 = vst.msk [vmem:[%s1490_s3 + $0x20] sm:$0xff] %vm689_vm0, %v623_v60  ;;  %730 = vst.msk [vmem:[%s1490_s3 + $0x160] sm:$0xff] %vm689_vm0, %v655_v61  ;;  %v634_v14 = vadd.f32 %v853_v12, %v1141_v53  ;;  %v666_v15 = vadd.f32 %v861_v13, %v1141_v53 }
 0x128   :  { %v625_v16 = vpop.f32.mrf.mxu0  ;;  %v657_v17 = vpop.f32.mrf.mxu1 }
 0x129   :  { %705 = vst.msk [vmem:[%s1490_s3 + $0x98] sm:$0xff] %vm689_vm0, %v634_v14  ;;  %745 = vst.msk [vmem:[%s1490_s3 + $0x1d8] sm:$0xff] %vm689_vm0, %v666_v15  ;;  %v626_v18 = vadd.f32 %v625_v16, %v1141_v53  ;;  %v658_v19 = vadd.f32 %v657_v17, %v1141_v53 }
 0x12a   :  { %v856_v20 = vpop.f32.mrf.mxu0  ;;  %v864_v21 = vpop.f32.mrf.mxu1 }
 0x12b   :  { %695 = vst.msk [vmem:[%s1490_s3 + $0x48] sm:$0xff] %vm689_vm0, %v626_v18  ;;  %735 = vst.msk [vmem:[%s1490_s3 + $0x188] sm:$0xff] %vm689_vm0, %v658_v19  ;;  %v647_v22 = vadd.f32 %v856_v20, %v1141_v53  ;;  %v679_v23 = vadd.f32 %v864_v21, %v1141_v53 }
 0x12c   :  { %v638_v24 = vpop.f32.mrf.mxu0  ;;  %v670_v25 = vpop.f32.mrf.mxu1 }
 0x12d   :  { %720 = vst.msk [vmem:[%s1490_s3 + $0x110] sm:$0xff] %vm689_vm0, %v647_v22  ;;  %760 = vst.msk [vmem:[%s1490_s3 + $0x250] sm:$0xff] %vm689_vm0, %v679_v23  ;;  %v639_v26 = vadd.f32 %v638_v24, %v1141_v53  ;;  %v671_v27 = vadd.f32 %v670_v25, %v1141_v53 }
 0x12e   :  { %v857_v28 = vpop.f32.mrf.mxu0  ;;  %v865_v29 = vpop.f32.mrf.mxu1 }
 0x12f   :  { %710 = vst.msk [vmem:[%s1490_s3 + $0xc0] sm:$0xff] %vm689_vm0, %v639_v26  ;;  %750 = vst.msk [vmem:[%s1490_s3 + $0x200] sm:$0xff] %vm689_vm0, %v671_v27  ;;  %v650_v30 = vadd.f32 %v857_v28, %v1141_v53  ;;  %v682_v31 = vadd.f32 %v865_v29, %v1141_v53 }
 0x130   :  { %v641_v32 = vpop.f32.mrf.mxu0  ;;  %v673_v33 = vpop.f32.mrf.mxu1 }
 0x131   :  { %725 = vst.msk [vmem:[%s1490_s3 + $0x138] sm:$0xff] %vm689_vm0, %v650_v30  ;;  %765 = vst.msk [vmem:[%s1490_s3 + $0x278] sm:$0xff] %vm689_vm0, %v682_v31  ;;  %v642_v34 = vadd.f32 %v641_v32, %v1141_v53  ;;  %v674_v35 = vadd.f32 %v673_v33, %v1141_v53 }
 0x133   :  { %715 = vst.msk [vmem:[%s1490_s3 + $0xe8] sm:$0xff] %vm689_vm0, %v642_v34  ;;  %755 = vst.msk [vmem:[%s1490_s3 + $0x228] sm:$0xff] %vm689_vm0, %v674_v35 }

// kernel: generator_forward.23
= control target key start
LH: loop header
LB: loop body
LE: loop exit
PB: predicated region body
PF: predicated region fallthrough
CT: control target
= control target key end

     0   :  { %s2672_s12 = smov 0   ;;  %s2674_s13 = smov 0   ;;  %s3282_s0 = inlined_call_operand.vmem [shape: bf16[512,640], index: 0, kind: input, shape index: {}]   ;;  %s3283_s1 = inlined_call_operand.vmem [shape: bf16[640,128], index: 1, kind: input, shape index: {}]   ;;  %s3284_s2 = inlined_call_operand.vmem [shape: f32[1,128], index: 2, kind: input, shape index: {}]   ;;  %s3285_s3 = inlined_call_operand.vmem [shape: f32[512,128], index: 3, kind: output, shape index: {}]  }
   0x1   :  { %s2676_s14 = smov 0  }
   0x2 LB: > { %s25_s15 = sadd.s32 1, %s2646_s13  ;;  %p1883_p0 = scmp.ge.s32.totalorder %s2650_s14, 1  ;;  %s2650_s14 = sphi %s2676_s14, %s13_s14   ;;  %s2646_s13 = sphi %s2674_s13, %s3323_s13   ;;  %s2642_s12 = sphi %s2672_s12, %s3322_s12  }
   0x3   : > { %p27_p1 = scmp.ge.s32.totalorder %s25_s15, 2  ;;  %p170_p2 = scmp.lt.s32.totalorder %s2650_s14, 3 }
   0x5   : > { %s3325_s15 = smov (%p27_p1, %s25_s15), 0  ;;  %p171_p3 = pnand %p1883_p0, %p170_p2 }
   0x7   : > { %174 = sbr.rel (%p171_p3) target bundleno = 440 (0x1b8), region = 32 }
   0xc   : > { %v2348_v0 = vld [vmem:[%s3283_s1 + $0x78] sm:$0xff]   ;;  %s1884_s18 = sshll.u32 %s2642_s12, 5  ;;  %v2350_v2 = vld [vmem:[%s3283_s1 + $0x70] sm:$0xff]   ;;  %v2352_v4 = vld [vmem:[%s3283_s1 + $0x68] sm:$0xff]  }
   0xd   : > { %v2349_v1 = vld [vmem:[%s3283_s1 + $0x38] sm:$0xff]   ;;  %2011 = vmatprep.subr.bf16.mxu0 %v2348_v0  ;;  %2307 = vmatprep.subr.bf16.mxu1 %v2348_v0  ;;  %p206_p4 = scmp.lt.s32.totalorder %s1884_s18, 63  ;;  %v2351_v3 = vld [vmem:[%s3283_s1 + $0x30] sm:$0xff]   ;;  %v2353_v5 = vld [vmem:[%s3283_s1 + $0x28] sm:$0xff]  }
   0xe   : > { %2012 = vmatpush3.bf16.msra.mxu0 %v2349_v1  ;;  %2315 = vmatpush3.bf16.msra.mxu1 %v2349_v1  ;;  %v2354_v6 = vld [vmem:[%s3283_s1 + $0x60] sm:$0xff]   ;;  %v2356_v8 = vld [vmem:[%s3283_s1 + $0x58] sm:$0xff]   ;;  %v2358_v10 = vld [vmem:[%s3283_s1 + $0x50] sm:$0xff]  }
   0xf   : > { %2013 = vmatprep.subr.bf16.mxu0 %v2350_v2  ;;  %2308 = vmatprep.subr.bf16.mxu1 %v2350_v2  ;;  %s3327_s18 = smov (!%p206_p4, %s1884_s18), 63  ;;  %v2355_v7 = vld [vmem:[%s3283_s1 + $0x20] sm:$0xff]   ;;  %v2357_v9 = vld [vmem:[%s3283_s1 + $0x18] sm:$0xff]   ;;  %v2359_v13 = vld [vmem:[%s3283_s1 + $0x10] sm:$0xff]  }
  0x10   : > { %s2323_s4 = smul.u32 20, %s3327_s18  ;;  %v2360_v14 = vld [vmem:[%s3283_s1 + $0x48] sm:$0xff]   ;;  %v2362_v16 = vld [vmem:[%s3283_s1 + $0x40] sm:$0xff]   ;;  %v2370_v18 = vld [vmem:[%s3283_s1 + $0xf8] sm:$0xff]   ;;  %s1887_s8 = sshll.u32 %s3327_s18, 3 }
  0x11   : > { %v2361_v15 = vld [vmem:[%s3283_s1 + $0x8] sm:$0xff]   ;;  %v2363_v17 = vld [vmem:[%s3283_s1] sm:$0xff]   ;;  %v2373_v19 = vld [vmem:[%s3283_s1 + $0x138] sm:$0xff]   ;;  %s3206_s10 = scalar_lea.vmem %s3285_s3, %s1887_s8 }
  0x12   : > { %2014 = vmatpush3.bf16.msra.mxu0 %v2351_v3  ;;  %2316 = vmatpush3.bf16.msra.mxu1 %v2351_v3  ;;  %s2723_s11 = scalar_lea.vmem %s3282_s0, %s2323_s4  ;;  %v2371_v22 = vld [vmem:[%s3283_s1 + $0xb8] sm:$0xff]   ;;  %v2372_v23 = vld [vmem:[%s3283_s1 + $0xf0] sm:$0xff]   ;;  %v2381_v29 = vld [vmem:[%s3283_s1 + $0xe8] sm:$0xff]  }
  0x13   : > { %2015 = vmatprep.subr.bf16.mxu0 %v2352_v4  ;;  %2309 = vmatprep.subr.bf16.mxu1 %v2352_v4  ;;  %v2366_v11 = vld [vmem:[%s2723_s11 + $0x4] ss:$20 sps:$4 sm:$0xff]   ;;  %v2364_v20 = vld [vmem:[%s2723_s11] ss:$20 sps:$4 sm:$0xff]   ;;  %v2379_v28 = vld [vmem:[%s2723_s11 + $0x28] ss:$20 sps:$4 sm:$0xff]  }
  0x14   : > { %v2369_v12 = vld [vmem:[%s2723_s11 + $0x1e4] ss:$20 sps:$4 sm:$0xff]   ;;  %1100 = vmatprep.mubr.bf16.mxu0 %v2366_v11  ;;  %v2367_v21 = vld [vmem:[%s2723_s11 + $0x1e0] ss:$20 sps:$4 sm:$0xff]   ;;  %v2380_v30 = vld [vmem:[%s2723_s11 + $0x208] ss:$20 sps:$4 sm:$0xff]  }
  0x15   : > { %1196 = vmatprep.mubr.bf16.mxu1 %v2369_v12  ;;  %v2375_v24 = vld [vmem:[%s2723_s11 + $0x2c] ss:$20 sps:$4 sm:$0xff]   ;;  %v2392_v26 = vld [vmem:[%s3283_s1 + $0x130] sm:$0xff]   ;;  %v2391_v36 = vld [vmem:[%s3283_s1 + $0xd8] sm:$0xff]  }
  0x16   : > { %2016 = vmatpush3.bf16.msra.mxu0 %v2353_v5  ;;  %2317 = vmatpush3.bf16.msra.mxu1 %v2353_v5  ;;  %v2377_v25 = vld [vmem:[%s2723_s11 + $0x20c] ss:$20 sps:$4 sm:$0xff]   ;;  %v2374_v27 = vld [vmem:[%s3283_s1 + $0xb0] sm:$0xff]   ;;  %v2393_v40 = vld [vmem:[%s3283_s1 + $0x98] sm:$0xff]  }
  0x17   : > { %2017 = vmatprep.subr.bf16.mxu0 %v2354_v6  ;;  %2310 = vmatprep.subr.bf16.mxu1 %v2354_v6  ;;  %v2382_v31 = vld [vmem:[%s3283_s1 + $0xa8] sm:$0xff]   ;;  %v2383_v33 = vld [vmem:[%s3283_s1 + $0xe0] sm:$0xff]   ;;  %v2394_v41 = vld [vmem:[%s3283_s1 + $0xd0] sm:$0xff]  }
  0x18   : > { %v2385_v32 = vld [vmem:[%s2723_s11 + $0x54] ss:$20 sps:$4 sm:$0xff]   ;;  %v2384_v35 = vld [vmem:[%s3283_s1 + $0xa0] sm:$0xff]   ;;  %v2396_v42 = vld [vmem:[%s2723_s11 + $0x7c] ss:$20 sps:$4 sm:$0xff]  }
  0x19   : > { %v2387_v34 = vld [vmem:[%s2723_s11 + $0x234] ss:$20 sps:$4 sm:$0xff]   ;;  %v2389_v37 = vld [vmem:[%s2723_s11 + $0x50] ss:$20 sps:$4 sm:$0xff]   ;;  %v2400_v46 = vld [vmem:[%s2723_s11 + $0x78] ss:$20 sps:$4 sm:$0xff]  }
  0x1a   : > { %2018 = vmatpush3.bf16.msra.mxu0 %v2355_v7  ;;  %2318 = vmatpush3.bf16.msra.mxu1 %v2355_v7  ;;  %v2405_v38 = vld [vmem:[%s3283_s1 + $0x128] sm:$0xff]   ;;  %v2390_v39 = vld [vmem:[%s2723_s11 + $0x230] ss:$20 sps:$4 sm:$0xff]   ;;  %v2426_v52 = vld [vmem:[%s3283_s1 + $0x118] sm:$0xff]  }
  0x1b   : > { %2019 = vmatprep.subr.bf16.mxu0 %v2356_v8  ;;  %2311 = vmatprep.subr.bf16.mxu1 %v2356_v8  ;;  %v2398_v43 = vld [vmem:[%s2723_s11 + $0x25c] ss:$20 sps:$4 sm:$0xff]   ;;  %v2419_v45 = vld [vmem:[%s3283_s1 + $0x120] sm:$0xff]   ;;  %v2401_v47 = vld [vmem:[%s2723_s11 + $0x258] ss:$20 sps:$4 sm:$0xff]  }
  0x1c   : > { %v2395_v44 = vld [vmem:[%s3283_s1 + $0x90] sm:$0xff]   ;;  %v2402_v48 = vld [vmem:[%s3283_s1 + $0xc8] sm:$0xff]   ;;  %v2404_v50 = vld [vmem:[%s3283_s1 + $0xc0] sm:$0xff]  }
  0x1d   : > { %v2403_v49 = vld [vmem:[%s3283_s1 + $0x88] sm:$0xff]   ;;  %v2407_v51 = vld [vmem:[%s2723_s11 + $0xa4] ss:$20 sps:$4 sm:$0xff]   ;;  %v2412_v56 = vld [vmem:[%s2723_s11 + $0xa0] ss:$20 sps:$4 sm:$0xff]  }
  0x1e   : > { %2020 = vmatpush3.bf16.msra.mxu0 %v2357_v9  ;;  %2319 = vmatpush3.bf16.msra.mxu1 %v2357_v9  ;;  %v2411_v53 = vld [vmem:[%s2723_s11 + $0xc] ss:$20 sps:$4 sm:$0xff]   ;;  %v2409_v55 = vld [vmem:[%s2723_s11 + $0x8] ss:$20 sps:$4 sm:$0xff]   ;;  %v2439_v57 = vld [vmem:[%s3283_s1 + $0x110] sm:$0xff]  }
  0x1f   : > { %2021 = vmatprep.subr.bf16.mxu0 %v2358_v10  ;;  %2312 = vmatprep.subr.bf16.mxu1 %v2358_v10  ;;  %v2406_v54 = vld [vmem:[%s3283_s1 + $0x80] sm:$0xff]   ;;  %v2415_v59 = vld [vmem:[%s2723_s11 + $0x34] ss:$20 sps:$4 sm:$0xff]   ;;  %v2422_v0 = vld [vmem:[%s2723_s11 + $0x5c] ss:$20 sps:$4 sm:$0xff]  }
  0x20   : > { %v2413_v58 = vld [vmem:[%s2723_s11 + $0xcc] ss:$20 sps:$4 sm:$0xff]   ;;  %v2417_v61 = vld [vmem:[%s2723_s11 + $0xc8] ss:$20 sps:$4 sm:$0xff]   ;;  %v2418_v62 = vld [vmem:[%s2723_s11 + $0x30] ss:$20 sps:$4 sm:$0xff]  }
  0x21   : > { %v2446_v60 = vld [vmem:[%s3283_s1 + $0x108] sm:$0xff]   ;;  %v2459_v1 = vld [vmem:[%s3283_s1 + $0x100] sm:$0xff]   ;;  %v2427_v4 = vld [vmem:[%s2723_s11 + $0x11c] ss:$20 sps:$4 sm:$0xff]  }
  0x22   : > { %2022 = vmatpush3.bf16.msra.mxu0 %v2359_v13  ;;  %2320 = vmatpush3.bf16.msra.mxu1 %v2359_v13  ;;  %v2420_v63 = vld [vmem:[%s2723_s11 + $0xf4] ss:$20 sps:$4 sm:$0xff]   ;;  %v2424_v2 = vld [vmem:[%s2723_s11 + $0xf0] ss:$20 sps:$4 sm:$0xff]   ;;  %v2425_v3 = vld [vmem:[%s2723_s11 + $0x58] ss:$20 sps:$4 sm:$0xff]  }
  0x23   : > { %2023 = vmatprep.subr.bf16.mxu0 %v2360_v14  ;;  %2313 = vmatprep.subr.bf16.mxu1 %v2360_v14  ;;  %v2429_v5 = vld [vmem:[%s2723_s11 + $0x84] ss:$20 sps:$4 sm:$0xff]   ;;  %v2432_v7 = vld [vmem:[%s2723_s11 + $0x80] ss:$20 sps:$4 sm:$0xff]   ;;  %v2438_v11 = vld [vmem:[%s2723_s11 + $0xa8] ss:$20 sps:$4 sm:$0xff]  }
  0x24   : > { %v2431_v6 = vld [vmem:[%s2723_s11 + $0x118] ss:$20 sps:$4 sm:$0xff]   ;;  %v2437_v10 = vld [vmem:[%s2723_s11 + $0x140] ss:$20 sps:$4 sm:$0xff]   ;;  %v2444_v14 = vld [vmem:[%s2723_s11 + $0x168] ss:$20 sps:$4 sm:$0xff]  }
  0x25   : > { %v2433_v8 = vld [vmem:[%s2723_s11 + $0x144] ss:$20 sps:$4 sm:$0xff]   ;;  %v2435_v9 = vld [vmem:[%s2723_s11 + $0xac] ss:$20 sps:$4 sm:$0xff]   ;;  %v2442_v13 = vld [vmem:[%s2723_s11 + $0xd4] ss:$20 sps:$4 sm:$0xff]  }
  0x26   : > { %2024 = vmatpush3.bf16.msra.mxu0 %v2361_v15  ;;  %2321 = vmatpush3.bf16.msra.mxu1 %v2361_v15  ;;  %v2440_v12 = vld [vmem:[%s2723_s11 + $0x16c] ss:$20 sps:$4 sm:$0xff]   ;;  %v2445_v15 = vld [vmem:[%s2723_s11 + $0xd0] ss:$20 sps:$4 sm:$0xff]  }
  0x27   : > { %2025 = vmatprep.subr.bf16.mxu0 %v2362_v16  ;;  %2314 = vmatprep.subr.bf16.mxu1 %v2362_v16  ;;  %v2447_v16 = vld [vmem:[%s2723_s11 + $0x194] ss:$20 sps:$4 sm:$0xff]  }
  0x2a   : > { %2026 = vmatpush3.bf16.msra.mxu0 %v2363_v17  ;;  %2322 = vmatpush3.bf16.msra.mxu1 %v2363_v17  ;;  %v2449_v17 = vld [vmem:[%s2723_s11 + $0xfc] ss:$20 sps:$4 sm:$0xff]  }
  0x2b   : > { %2123 = vmatprep.subr.bf16.mxu1 %v2370_v18  ;;  %2259 = vmatprep.subr.bf16.mxu0 %v2373_v19  ;;  %v2451_v18 = vld [vmem:[%s2723_s11 + $0x190] ss:$20 sps:$4 sm:$0xff]  }
  0x2d   : > { %1101 = vmatmul.mubr.bf16.vlgmr.msra.gmra.mxu0 %v2364_v20  ;;  %1197 = vmatmul.mubr.bf16.vlgmr.msra.gmra.mxu1 %v2367_v21  ;;  %v2453_v20 = vld [vmem:[%s2723_s11 + $0x1bc] ss:$20 sps:$4 sm:$0xff]   ;;  %v2455_v21 = vld [vmem:[%s2723_s11 + $0x124] ss:$20 sps:$4 sm:$0xff]  }
  0x2e   : > { %2124 = vmatpush3.bf16.msra.mxu1 %v2371_v22  ;;  %2260 = vmatpush3.bf16.msra.mxu0 %v2373_v19  ;;  %v2452_v19 = vld [vmem:[%s2723_s11 + $0xf8] ss:$20 sps:$4 sm:$0xff]  }
  0x2f   : > { %2125 = vmatprep.subr.bf16.mxu1 %v2372_v23  ;;  %1108 = vmatprep.mubr.bf16.mxu0 %v2375_v24  ;;  %v2457_v22 = vld [vmem:[%s2723_s11 + $0x1b8] ss:$20 sps:$4 sm:$0xff]   ;;  %v2458_v23 = vld [vmem:[%s2723_s11 + $0x120] ss:$20 sps:$4 sm:$0xff]  }
  0x30   : > { %1204 = vmatprep.mubr.bf16.mxu1 %v2377_v25  ;;  %2261 = vmatprep.subr.bf16.mxu0 %v2392_v26  ;;  %v2460_v24 = vld [vmem:[%s2723_s11 + $0x14c] ss:$20 sps:$4 sm:$0xff]   ;;  %v2462_v25 = vld [vmem:[%s2723_s11 + $0x10] ss:$20 sps:$4 sm:$0xff]  }
  0x32   : > { %2126 = vmatpush3.bf16.msra.mxu1 %v2374_v27  ;;  %2262 = vmatpush3.bf16.msra.mxu0 %v2392_v26  ;;  %v2463_v26 = vld [vmem:[%s2723_s11 + $0x148] ss:$20 sps:$4 sm:$0xff]   ;;  %v2464_v27 = vld [vmem:[%s2723_s11 + $0x38] ss:$20 sps:$4 sm:$0xff]  }
  0x33   : > { %2127 = vmatprep.subr.bf16.mxu1 %v2381_v29  ;;  %2263 = vmatprep.subr.bf16.mxu0 %v2405_v38  ;;  %v2467_v29 = vld [vmem:[%s2723_s11 + $0x60] ss:$20 sps:$4 sm:$0xff]  }
  0x35   : > { %1109 = vmatmul.mubr.bf16.gmra.mxu0 %v2379_v28  ;;  %1205 = vmatmul.mubr.bf16.gmra.mxu1 %v2380_v30  ;;  %v2465_v28 = vld [vmem:[%s2723_s11 + $0x174] ss:$20 sps:$4 sm:$0xff]   ;;  %v2468_v30 = vld [vmem:[%s2723_s11 + $0x170] ss:$20 sps:$4 sm:$0xff]  }
  0x36   : > { %2128 = vmatpush3.bf16.msra.mxu1 %v2382_v31  ;;  %1116 = vmatprep.mubr.bf16.mxu0 %v2385_v32  ;;  %v2469_v31 = vld [vmem:[%s2723_s11 + $0x88] ss:$20 sps:$4 sm:$0xff]  }
  0x37   : > { %2129 = vmatprep.subr.bf16.mxu1 %v2383_v33  ;;  %1212 = vmatprep.mubr.bf16.mxu1 %v2387_v34  ;;  %v2470_v32 = vld [vmem:[%s2723_s11 + $0x19c] ss:$20 sps:$4 sm:$0xff]   ;;  %v2473_v34 = vld [vmem:[%s2723_s11 + $0x198] ss:$20 sps:$4 sm:$0xff]  }
  0x38   : > { %2264 = vmatpush3.bf16.msra.mxu0 %v2405_v38  ;;  %v2472_v33 = vld [vmem:[%s2723_s11 + $0xb0] ss:$20 sps:$4 sm:$0xff]   ;;  %v2478_v38 = vld [vmem:[%s2723_s11 + $0x1c0] ss:$20 sps:$4 sm:$0xff]  }
  0x39   : > { %2265 = vmatprep.subr.bf16.mxu0 %v2419_v45 }
  0x3a   : > { %2130 = vmatpush3.bf16.msra.mxu1 %v2384_v35  ;;  %v2474_v35 = vld [vmem:[%s2723_s11 + $0xd8] ss:$20 sps:$4 sm:$0xff]  }
  0x3b   : > { %2131 = vmatprep.subr.bf16.mxu1 %v2391_v36  ;;  %v2475_v36 = vld [vmem:[%s2723_s11 + $0x1c4] ss:$20 sps:$4 sm:$0xff]  }
  0x3c   : > { %2266 = vmatpush3.bf16.msra.mxu0 %v2419_v45  ;;  %v2487_v45 = vld [vmem:[%s2723_s11 + $0x1a0] ss:$20 sps:$4 sm:$0xff]  }
  0x3d   : > { %1117 = vmatmul.mubr.bf16.gmra.mxu0 %v2389_v37  ;;  %1213 = vmatmul.mubr.bf16.gmra.mxu1 %v2390_v39  ;;  %v2477_v37 = vld [vmem:[%s2723_s11 + $0x100] ss:$20 sps:$4 sm:$0xff]   ;;  %v2479_v39 = vld [vmem:[%s2723_s11 + $0x128] ss:$20 sps:$4 sm:$0xff]  }
  0x3e   : > { %2132 = vmatpush3.bf16.msra.mxu1 %v2393_v40  ;;  %1124 = vmatprep.mubr.bf16.mxu0 %v2396_v42  ;;  %v2480_v40 = vld [vmem:[%s2723_s11 + $0x1ec] ss:$20 sps:$4 sm:$0xff]   ;;  %v2483_v42 = vld [vmem:[%s2723_s11 + $0x1e8] ss:$20 sps:$4 sm:$0xff]  }
  0x3f   : > { %2133 = vmatprep.subr.bf16.mxu1 %v2394_v41  ;;  %1220 = vmatprep.mubr.bf16.mxu1 %v2398_v43  ;;  %v2482_v41 = vld [vmem:[%s2723_s11 + $0x150] ss:$20 sps:$4 sm:$0xff]   ;;  %v2484_v43 = vld [vmem:[%s2723_s11 + $0x178] ss:$20 sps:$4 sm:$0xff]  }
  0x40   : > { %2267 = vmatprep.subr.bf16.mxu0 %v2426_v52 }
  0x41   : > { %2268 = vmatpush3.bf16.msra.mxu0 %v2426_v52  ;;  %v2495_v52 = vld [vmem:[%s2723_s11 + $0x264] ss:$20 sps:$4 sm:$0xff]  }
  0x42   : > { %2134 = vmatpush3.bf16.msra.mxu1 %v2395_v44  ;;  %2269 = vmatprep.subr.bf16.mxu0 %v2439_v57  ;;  %v2485_v44 = vld [vmem:[%s2723_s11 + $0x214] ss:$20 sps:$4 sm:$0xff]  }
  0x43   : > { %2135 = vmatprep.subr.bf16.mxu1 %v2402_v48  ;;  %v2490_v48 = vld [vmem:[%s2723_s11 + $0x23c] ss:$20 sps:$4 sm:$0xff]  }
  0x45   : > { %1125 = vmatmul.mubr.bf16.gmra.mxu0 %v2400_v46  ;;  %1221 = vmatmul.mubr.bf16.gmra.mxu1 %v2401_v47  ;;  %v2488_v46 = vld [vmem:[%s2723_s11 + $0x210] ss:$20 sps:$4 sm:$0xff]   ;;  %v2489_v47 = vld [vmem:[%s2723_s11 + $0x1c8] ss:$20 sps:$4 sm:$0xff]  }
  0x46   : > { %2136 = vmatpush3.bf16.msra.mxu1 %v2403_v49  ;;  %1132 = vmatprep.mubr.bf16.mxu0 %v2407_v51  ;;  %v2492_v49 = vld [vmem:[%s2723_s11 + $0x1f0] ss:$20 sps:$4 sm:$0xff]   ;;  %v2494_v51 = vld [vmem:[%s2723_s11 + $0x218] ss:$20 sps:$4 sm:$0xff]  }
  0x47   : > { %2137 = vmatprep.subr.bf16.mxu1 %v2404_v50  ;;  %1261 = vmatprep.mubr.bf16.mxu1 %v2411_v53  ;;  %v2493_v50 = vld [vmem:[%s2723_s11 + $0x238] ss:$20 sps:$4 sm:$0xff]   ;;  %v2497_v53 = vld [vmem:[%s2723_s11 + $0x240] ss:$20 sps:$4 sm:$0xff]  }
  0x48   : > { %2270 = vmatpush3.bf16.msra.mxu0 %v2439_v57 }
  0x49   : > { %2271 = vmatprep.subr.bf16.mxu0 %v2446_v60 }
  0x4a   : > { %2138 = vmatpush3.bf16.msra.mxu1 %v2406_v54  ;;  %v2498_v54 = vld [vmem:[%s2723_s11 + $0x260] ss:$20 sps:$4 sm:$0xff]  }
  0x4c   : > { %2272 = vmatpush3.bf16.msra.mxu0 %v2446_v60 }
  0x4d   : > { %1133 = vmatmul.mubr.bf16.gmra.mxu0 %v2412_v56  ;;  %1262 = vmatmul.mubr.bf16.vlgmr.msra.gmra.mxu1 %v2409_v55  ;;  %v2499_v55 = vld [vmem:[%s2723_s11 + $0x268] ss:$20 sps:$4 sm:$0xff]  }
  0x4e   : > { %1140 = vmatprep.mubr.bf16.mxu0 %v2413_v58  ;;  %1269 = vmatprep.mubr.bf16.mxu1 %v2415_v59 }
  0x4f   : > { %2273 = vmatprep.subr.bf16.mxu0 %v2459_v1 }
  0x50   : > { %2274 = vmatpush3.bf16.msra.mxu0 %v2459_v1 }
  0x55   : > { %1141 = vmatmul.mubr.bf16.gmra.mxu0 %v2417_v61  ;;  %1270 = vmatmul.mubr.bf16.gmra.mxu1 %v2418_v62 }
  0x56   : > { %1148 = vmatprep.mubr.bf16.mxu0 %v2420_v63  ;;  %1277 = vmatprep.mubr.bf16.mxu1 %v2422_v0 }
  0x5d   : > { %1149 = vmatmul.mubr.bf16.gmra.mxu0 %v2424_v2  ;;  %1278 = vmatmul.mubr.bf16.gmra.mxu1 %v2425_v3 }
  0x5e   : > { %1156 = vmatprep.mubr.bf16.mxu0 %v2427_v4  ;;  %1285 = vmatprep.mubr.bf16.mxu1 %v2429_v5 }
  0x65   : > { %1157 = vmatmul.mubr.bf16.gmra.mxu0 %v2431_v6  ;;  %1286 = vmatmul.mubr.bf16.gmra.mxu1 %v2432_v7 }
  0x66   : > { %1164 = vmatprep.mubr.bf16.mxu0 %v2433_v8  ;;  %1293 = vmatprep.mubr.bf16.mxu1 %v2435_v9 }
  0x6d   : > { %1165 = vmatmul.mubr.bf16.gmra.mxu0 %v2437_v10  ;;  %1294 = vmatmul.mubr.bf16.gmra.mxu1 %v2438_v11 }
  0x6e   : > { %1172 = vmatprep.mubr.bf16.mxu0 %v2440_v12  ;;  %1301 = vmatprep.mubr.bf16.mxu1 %v2442_v13 }
  0x75   : > { %1173 = vmatmul.mubr.bf16.gmra.mxu0 %v2444_v14  ;;  %1302 = vmatmul.mubr.bf16.gmra.mxu1 %v2445_v15 }
  0x76   : > { %1180 = vmatprep.mubr.bf16.mxu0 %v2447_v16  ;;  %1309 = vmatprep.mubr.bf16.mxu1 %v2449_v17 }
  0x7d   : > { %1181 = vmatmul.mubr.bf16.gmra.mxu0 %v2451_v18  ;;  %1310 = vmatmul.mubr.bf16.gmra.mxu1 %v2452_v19 }
  0x7e   : > { %1188 = vmatprep.mubr.bf16.mxu0 %v2453_v20  ;;  %1317 = vmatprep.mubr.bf16.mxu1 %v2455_v21 }
  0x85   : > { %1189 = vmatmul.mubr.bf16.gmra.mxu0 %v2457_v22  ;;  %1318 = vmatmul.mubr.bf16.gmra.mxu1 %v2458_v23 }
  0x86   : > { %1325 = vmatprep.mubr.bf16.mxu1 %v2460_v24  ;;  %2275 = vmatprep.mubr.bf16.mxu0 %v2462_v25 }
  0x8d   : > { %1326 = vmatmul.mubr.bf16.gmra.mxu1 %v2463_v26  ;;  %2276 = vmatmul.mubr.bf16.vlgmr.msra.gmra.mxu0 %v2464_v27 }
  0x8e   : > { %1333 = vmatprep.mubr.bf16.mxu1 %v2465_v28  ;;  %2279 = vmatprep.mubr.bf16.mxu0 %v2467_v29 }
  0x95   : > { %1334 = vmatmul.mubr.bf16.gmra.mxu1 %v2468_v30  ;;  %2280 = vmatmul.mubr.bf16.gmra.mxu0 %v2469_v31 }
  0x96   : > { %1341 = vmatprep.mubr.bf16.mxu1 %v2470_v32  ;;  %2283 = vmatprep.mubr.bf16.mxu0 %v2472_v33 }
  0x9d   : > { %1342 = vmatmul.mubr.bf16.gmra.mxu1 %v2473_v34  ;;  %2284 = vmatmul.mubr.bf16.gmra.mxu0 %v2474_v35 }
  0x9e   : > { %1349 = vmatprep.mubr.bf16.mxu1 %v2475_v36  ;;  %2287 = vmatprep.mubr.bf16.mxu0 %v2477_v37 }
  0xa5   : > { %1350 = vmatmul.mubr.bf16.gmra.mxu1 %v2478_v38  ;;  %2288 = vmatmul.mubr.bf16.gmra.mxu0 %v2479_v39 }
  0xa6   : > { %1357 = vmatprep.mubr.bf16.mxu1 %v2480_v40  ;;  %2291 = vmatprep.mubr.bf16.mxu0 %v2482_v41 }
  0xad   : > { %1358 = vmatmul.mubr.bf16.gmra.mxu1 %v2483_v42  ;;  %2292 = vmatmul.mubr.bf16.gmra.mxu0 %v2484_v43 }
  0xae   : > { %1365 = vmatprep.mubr.bf16.mxu1 %v2485_v44  ;;  %2295 = vmatprep.mubr.bf16.mxu0 %v2487_v45 }
  0xb5   : > { %1366 = vmatmul.mubr.bf16.gmra.mxu1 %v2488_v46  ;;  %2296 = vmatmul.mubr.bf16.gmra.mxu0 %v2489_v47 }
  0xb6   : > { %1373 = vmatprep.mubr.bf16.mxu1 %v2490_v48  ;;  %2299 = vmatprep.mubr.bf16.mxu0 %v2492_v49 }
  0xbd   : > { %1374 = vmatmul.mubr.bf16.gmra.mxu1 %v2493_v50  ;;  %2300 = vmatmul.mubr.bf16.gmra.mxu0 %v2494_v51 }
  0xbe   : > { %1381 = vmatprep.mubr.bf16.mxu1 %v2495_v52  ;;  %2303 = vmatprep.mubr.bf16.mxu0 %v2497_v53 }
  0xc5   : > { %1382 = vmatmul.mubr.bf16.gmra.mxu1 %v2498_v54  ;;  %2304 = vmatmul.mubr.bf16.gmra.mxu0 %v2499_v55 }
  0xed   : > { %v2027_v56 = vpop.f32.mrf.mxu0  ;;  %v2099_v57 = vpop.f32.mrf.mxu1 }
  0xef   : > { %v2028_v58 = vpop.f32.mrf.mxu0  ;;  %v2100_v59 = vpop.f32.mrf.mxu1 }
  0xf0   : > { %v2898_v60 = vadd.f32 %v2028_v58, %v2027_v56  ;;  %v2900_v61 = vadd.f32 %v2100_v59, %v2099_v57 }
  0xf1   : > { %v2030_v62 = vpop.f32.mrf.mxu0  ;;  %v2102_v63 = vpop.f32.mrf.mxu1 }
  0xf3   : > { %v2031_v0 = vpop.f32.mrf.mxu0  ;;  %v2103_v1 = vpop.f32.mrf.mxu1 }
  0xf4   : > { %v2902_v2 = vadd.f32 %v2031_v0, %v2030_v62  ;;  %v2904_v3 = vadd.f32 %v2103_v1, %v2102_v63 }
  0xf5   : > { %v2033_v4 = vpop.f32.mrf.mxu0  ;;  %v2105_v5 = vpop.f32.mrf.mxu1 }
  0xf7   : > { %v2034_v6 = vpop.f32.mrf.mxu0  ;;  %v2106_v7 = vpop.f32.mrf.mxu1 }
  0xf8   : > { %v2906_v8 = vadd.f32 %v2034_v6, %v2033_v4  ;;  %v2908_v9 = vadd.f32 %v2106_v7, %v2105_v5 }
  0xf9   : > { %v2036_v10 = vpop.f32.mrf.mxu0  ;;  %v2108_v11 = vpop.f32.mrf.mxu1 }
  0xfb   : > { %v2037_v12 = vpop.f32.mrf.mxu0  ;;  %v2109_v13 = vpop.f32.mrf.mxu1 }
  0xfc   : > { %v2910_v14 = vadd.f32 %v2037_v12, %v2036_v10  ;;  %v2912_v15 = vadd.f32 %v2109_v13, %v2108_v11 }
  0xfd   : > { %v2039_v16 = vpop.f32.mrf.mxu0  ;;  %v2111_v17 = vpop.f32.mrf.mxu1 }
  0xfe   : > { %3286 = vst [vmem:[#allocation2_spill] sm:$0xff] %v2912_v15 }
  0xff   : > { %v2040_v18 = vpop.f32.mrf.mxu0  ;;  %v2112_v19 = vpop.f32.mrf.mxu1 }
 0x100   : > { %v2914_v20 = vadd.f32 %v2040_v18, %v2039_v16  ;;  %v2916_v21 = vadd.f32 %v2112_v19, %v2111_v17 }
 0x101   : > { %v2042_v22 = vpop.f32.mrf.mxu0  ;;  %v2114_v23 = vpop.f32.mrf.mxu1 }
 0x102   : > { %3287 = vst [vmem:[#allocation3_spill] sm:$0xff] %v2916_v21 }
 0x103   : > { %v2043_v24 = vpop.f32.mrf.mxu0  ;;  %v2115_v25 = vpop.f32.mrf.mxu1 }
 0x104   : > { %v2918_v26 = vadd.f32 %v2043_v24, %v2042_v22  ;;  %v2920_v27 = vadd.f32 %v2115_v25, %v2114_v23 }
 0x105   : > { %v2045_v28 = vpop.f32.mrf.mxu0  ;;  %v2117_v29 = vpop.f32.mrf.mxu1 }
 0x106   : > { %3288 = vst [vmem:[#allocation4_spill] sm:$0xff] %v2920_v27 }
 0x107   : > { %v2046_v30 = vpop.f32.mrf.mxu0  ;;  %v2118_v31 = vpop.f32.mrf.mxu1 }
 0x108   : > { %v2922_v32 = vadd.f32 %v2046_v30, %v2045_v28  ;;  %v2924_v33 = vadd.f32 %v2118_v31, %v2117_v29 }
 0x109   : > { %v2048_v34 = vpop.f32.mrf.mxu0  ;;  %v2120_v35 = vpop.f32.mrf.mxu1 }
 0x10a   : > { %3289 = vst [vmem:[#allocation5_spill] sm:$0xff] %v2924_v33 }
 0x10b   : > { %v2049_v36 = vpop.f32.mrf.mxu0  ;;  %v2121_v37 = vpop.f32.mrf.mxu1 }
 0x10c   : > { %v2926_v38 = vadd.f32 %v2049_v36, %v2048_v34  ;;  %v2928_v39 = vadd.f32 %v2121_v37, %v2120_v35 }
 0x10d   : > { %v2051_v40 = vpop.f32.mrf.mxu0  ;;  %v2930_v41 = vpop.f32.mrf.mxu1 }
 0x10e   : > { %3290 = vst [vmem:[#allocation6_spill] sm:$0xff] %v2928_v39 }
 0x10f   : > { %v2052_v42 = vpop.f32.mrf.mxu0  ;;  %v2932_v43 = vpop.f32.mrf.mxu1 }
 0x110   : > { %v2934_v44 = vadd.f32 %v2052_v42, %v2051_v40 }
 0x111   : > { %v2054_v45 = vpop.f32.mrf.mxu0  ;;  %v2936_v46 = vpop.f32.mrf.mxu1 }
 0x113   : > { %v2055_v47 = vpop.f32.mrf.mxu0  ;;  %v2938_v48 = vpop.f32.mrf.mxu1 }
 0x114   : > { %v2940_v49 = vadd.f32 %v2055_v47, %v2054_v45 }
 0x115   : > { %v2057_v50 = vpop.f32.mrf.mxu0  ;;  %v2145_v51 = vpop.f32.mrf.mxu1 }
 0x117   : > { %v2058_v52 = vpop.f32.mrf.mxu0  ;;  %v2146_v53 = vpop.f32.mrf.mxu1 }
 0x118   : > { %v2942_v54 = vadd.f32 %v2058_v52, %v2057_v50 }
 0x119   : > { %v2060_v55 = vpop.f32.mrf.mxu0  ;;  %v2148_v56 = vpop.f32.mrf.mxu1 }
 0x11b   : > { %v2061_v57 = vpop.f32.mrf.mxu0  ;;  %v2149_v58 = vpop.f32.mrf.mxu1 }
 0x11c   : > { %v2944_v59 = vadd.f32 %v2061_v57, %v2060_v55 }
 0x11d   : > { %v2063_v62 = vpop.f32.mrf.mxu0  ;;  %v2946_v63 = vpop.f32.mrf.mxu1 }
 0x11f   : > { %v2064_v0 = vpop.f32.mrf.mxu0  ;;  %v2948_v1 = vpop.f32.mrf.mxu1 }
 0x120   : > { %v2950_v4 = vadd.f32 %v2064_v0, %v2063_v62 }
 0x121   : > { %v2066_v5 = vpop.f32.mrf.mxu0  ;;  %v2952_v6 = vpop.f32.mrf.mxu1 }
 0x123   : > { %v2067_v7 = vpop.f32.mrf.mxu0  ;;  %v2954_v10 = vpop.f32.mrf.mxu1 }
 0x124   : > { %v2956_v11 = vadd.f32 %v2067_v7, %v2066_v5 }
 0x125   : > { %v2958_v12 = vpop.f32.mrf.mxu0  ;;  %v2157_v13 = vpop.f32.mrf.mxu1 }
 0x127   : > { %v2960_v16 = vpop.f32.mrf.mxu0  ;;  %v2158_v17 = vpop.f32.mrf.mxu1 }
 0x129   : > { %v2962_v18 = vpop.f32.mrf.mxu0  ;;  %v2964_v19 = vpop.f32.mrf.mxu1 }
 0x12b   : > { %v2966_v22 = vpop.f32.mrf.mxu0  ;;  %v2968_v23 = vpop.f32.mrf.mxu1 }
 0x12d   : > { %v2970_v24 = vpop.f32.mrf.mxu0  ;;  %v2972_v25 = vpop.f32.mrf.mxu1 }
 0x12f   : > { %v2974_v28 = vpop.f32.mrf.mxu0  ;;  %v2976_v29 = vpop.f32.mrf.mxu1 }
 0x131   : > { %v2978_v30 = vpop.f32.mrf.mxu0  ;;  %v2980_v31 = vpop.f32.mrf.mxu1 }
 0x133   : > { %v2982_v34 = vpop.f32.mrf.mxu0  ;;  %v2984_v35 = vpop.f32.mrf.mxu1 }
 0x135   : > { %v2986_v36 = vpop.f32.mrf.mxu0  ;;  %v2988_v37 = vpop.f32.mrf.mxu1 }
 0x137   : > { %v2990_v40 = vpop.f32.mrf.mxu0  ;;  %v2992_v42 = vpop.f32.mrf.mxu1 }
 0x139   : > { %v2994_v45 = vpop.f32.mrf.mxu0  ;;  %v2996_v47 = vpop.f32.mrf.mxu1 }
 0x13b   : > { %v2998_v50 = vpop.f32.mrf.mxu0  ;;  %v3000_v52 = vpop.f32.mrf.mxu1 }
 0x13d   : > { %v3002_v55 = vpop.f32.mrf.mxu0  ;;  %v3004_v57 = vpop.f32.mrf.mxu1 }
 0x13e   : > { %3291 = vst [vmem:[#allocation7_spill] sm:$0xff] %v3002_v55  ;;  %3292 = vst [vmem:[#allocation8_spill] sm:$0xff] %v3004_v57 }
 0x13f   : > { %v3006_v62 = vpop.f32.mrf.mxu0  ;;  %v3008_v0 = vpop.f32.mrf.mxu1 }
 0x140   : > { %3293 = vst [vmem:[#allocation9_spill] sm:$0xff] %v3008_v0  ;;  %v3029_v0 = vld [vmem:[%s3284_s2] ss:$0 sm:$0xff] }
 0x141   : > { %v3010_v5 = vpop.f32.mrf.mxu0  ;;  %v3012_v7 = vpop.f32.mrf.mxu1 }
 0x142   : > { %3294 = vst [vmem:[#allocation10_spill] sm:$0xff] %v3010_v5  ;;  %3295 = vst [vmem:[#allocation11_spill] sm:$0xff] %v3012_v7  ;;  %v2147_v5 = vadd.f32 %v2146_v53, %v2145_v51  ;;  %v1106_v53 = vadd.f32 %v2902_v2, %v3029_v0 }
 0x143   : > { %v3014_v39 = vpop.f32.mrf.mxu0  ;;  %v3016_v27 = vpop.f32.mrf.mxu1 }
 0x144   : > { %3296 = vst [vmem:[#allocation12_spill] sm:$0xff] %v3014_v39  ;;  %3297 = vst [vmem:[#allocation13_spill] sm:$0xff] %v3016_v27  ;;  %v1111_v39 = vadd.f32 %v2906_v8, %v3029_v0  ;;  %v3043_v27 = vadd.f32 %v2900_v61, %v3029_v0  ;;  %v3053_v8 = vadd.f32 %v2904_v3, %v3029_v0 }
 0x145   : > { %v3018_v33 = vpop.f32.mrf.mxu0  ;;  %v3020_v21 = vpop.f32.mrf.mxu1  ;;  %v1114_v61 = vadd.f32 %v2910_v14, %v3029_v0  ;;  %v1122_v3 = vadd.f32 %v2918_v26, %v3029_v0  ;;  %v1130_v14 = vadd.f32 %v2926_v38, %v3029_v0  ;;  %v3081_v26 = vadd.f32 %v2940_v49, %v3029_v0 }
 0x146   : > { %3298 = vst [vmem:[#allocation14_spill] sm:$0xff] %v3018_v33  ;;  %v2141_v33 = vadd.f32 %v2932_v43, %v2930_v41  ;;  %3302 = vst [vmem:[#allocation18_spill] sm:$0xff] %v3043_v27  ;;  %v1272_v41 = vadd.f32 %v2147_v5, %v1111_v39  ;;  %v1119_v43 = vadd.f32 %v2914_v20, %v3029_v0 }
 0x147   : > { %v3022_v15 = vpop.f32.mrf.mxu0  ;;  %v3024_v55 = vpop.f32.mrf.mxu1  ;;  %v2144_v27 = vadd.f32 %v2938_v48, %v2936_v46  ;;  %v1127_v39 = vadd.f32 %v2922_v32, %v3029_v0  ;;  %v1135_v20 = vadd.f32 %v2934_v44, %v3029_v0  ;;  %v2153_v46 = vadd.f32 %v2948_v1, %v2946_v63 }
 0x148   : > { %3299 = vst [vmem:[#allocation15_spill] sm:$0xff] %v3022_v15  ;;  %3300 = vst [vmem:[#allocation16_spill] sm:$0xff] %v3024_v55  ;;  %v1103_v15 = vadd.f32 %v2898_v60, %v3029_v0  ;;  %v3057_v60 = vadd.f32 %v2908_v9, %v3029_v0  ;;  %v2159_v48 = vadd.f32 %v2158_v17, %v2157_v13 }
 0x149   : > { %v3031_v57 = vpop.f32.mrf.mxu0  ;;  %v3033_v7 = vpop.f32.mrf.mxu1  ;;  %v3087_v38 = vadd.f32 %v2944_v59, %v3029_v0  ;;  %v3091_v44 = vadd.f32 %v2950_v4, %v3029_v0  ;;  %v1267_v13 = vadd.f32 %v2144_v27, %v1106_v53  ;;  %v2156_v49 = vadd.f32 %v2954_v10, %v2952_v6 }
 0x14a   : > { %3301 = vst [vmem:[#allocation17_spill] sm:$0xff] %v3031_v57  ;;  %v2150_v57 = vadd.f32 %v2149_v58, %v2148_v56  ;;  %v1264_v56 = vadd.f32 %v2141_v33, %v1103_v15  ;;  %v1143_v33 = vadd.f32 %v2942_v54, %v3029_v0  ;;  %v2071_v54 = vadd.f32 %v2960_v16, %v2958_v12 }
 0x14b   : > { %v3045_v55 = vpop.f32.mrf.mxu0  ;;  %v3047_v51 = vpop.f32.mrf.mxu1  ;;  %v2074_v59 = vadd.f32 %v2966_v22, %v2962_v18  ;;  %v2162_v27 = vadd.f32 %v2968_v23, %v2964_v19  ;;  %v3107_v10 = vadd.f32 %v2956_v11, %v3029_v0  ;;  %v2077_v12 = vadd.f32 %v2974_v28, %v2970_v24 }
 0x14c   : > { %3303 = vst [vmem:[#allocation19_spill] sm:$0xff] %v3045_v55  ;;  %v1275_v15 = vadd.f32 %v2150_v57, %v1114_v61  ;;  %v2165_v16 = vadd.f32 %v2976_v29, %v2972_v25  ;;  %v1283_v23 = vadd.f32 %v2156_v49, %v1122_v3  ;;  %v2171_v24 = vadd.f32 %v2992_v42, %v2988_v37 }
 0x14d   : > { %v3065_v2 = vpop.f32.mrf.mxu1  ;;  %v2277_v55 = vpop.f32.mrf.mxu0  ;;  %v3119_v11 = vadd.f32 %v2074_v59, %v3029_v0  ;;  %v2080_v3 = vadd.f32 %v2982_v34, %v2978_v30  ;;  %v2168_v37 = vadd.f32 %v2984_v35, %v2980_v31 }
 0x14e   : > { %v1433_v9 = vadd.f32 %v2277_v55, %v1272_v41  ;;  %v1296_v49 = vadd.f32 %v2165_v16, %v1135_v20  ;;  %v1304_v34 = vadd.f32 %v2171_v24, %v1143_v33  ;;  %v2174_v20 = vadd.f32 %v3000_v52, %v2996_v47 }
 0x14f   : > { %v3077_v58 = vpop.f32.mrf.mxu1  ;;  %v1424_v5 = vpop.f32.mrf.mxu0  ;;  %v3143_v35 = vadd.f32 %v2080_v3, %v3029_v0  ;;  %v1299_v47 = vadd.f32 %v2168_v37, %v3081_v26 }
 0x150   : > { %v1553_v32 = vsub.f32 0.0, %v1433_v9  ;;  %v1425_v55 = vadd.f32 %v1424_v5, %v1264_v56  ;;  %v1288_v9 = vadd.f32 %v2159_v48, %v1127_v39  ;;  %v1280_v56 = vadd.f32 %v2153_v46, %v1119_v43 }
 0x151   : > { %v3093_v63 = vpop.f32.mrf.mxu1  ;;  %v2278_v1 = vpop.f32.mrf.mxu0  ;;  %v3116_v46 = vadd.f32 %v2071_v54, %v3029_v0 }
 0x152   : > { %v1587_v17 = vmul.f32 1.442695, %v1553_v32  ;;  %v1551_v57 = vsub.f32 0.0, %v1425_v55  ;;  %v1436_v41 = vadd.f32 %v2278_v1, %v1275_v15  ;;  %v1291_v32 = vadd.f32 %v2162_v27, %v1130_v14 }
 0x153   : > { %v3101_v61 = vpop.f32.mrf.mxu1  ;;  %v1427_v4 = vpop.f32.mrf.mxu0  ;;  %v3126_v55 = vadd.f32 %v2077_v12, %v3029_v0  ;;  %v2083_v14 = vadd.f32 %v2990_v40, %v2986_v36  ;;  %v3305_v40 = vld [vmem:[#allocation8_spill] sm:$0xff] }
 0x154   : > { %2500 = vpow2.f32 %v1587_v17  ;;  %v1583_v53 = vmul.f32 1.442695, %v1551_v57  ;;  %v1554_v6 = vsub.f32 0.0, %v1436_v41  ;;  %v1428_v18 = vadd.f32 %v1427_v4, %v1267_v13  ;;  %v3304_v4 = vld [vmem:[#allocation7_spill] sm:$0xff] }
 0x155   : > { %v3113_v22 = vpop.f32.mrf.mxu1  ;;  %v2281_v43 = vpop.f32.mrf.mxu0  ;;  %v2086_v41 = vadd.f32 %v2998_v50, %v2994_v45  ;;  %v2089_v36 = vadd.f32 %v3006_v62, %v3304_v4  ;;  %v3153_v52 = vadd.f32 %v2083_v14, %v3029_v0  ;;  %v3307_v62 = vld [vmem:[#allocation16_spill] sm:$0xff]  ;;  %v2186_v14 = vadd.f32 %v3047_v51, %v3033_v7  ;;  %v3312_v4 = vld [vmem:[#allocation14_spill] sm:$0xff] }
 0x156   : > { %2502 = vpow2.f32 %v1583_v53  ;;  %v1589_v39 = vmul.f32 1.442695, %v1554_v6  ;;  %v1449_v19 = vadd.f32 %v2281_v43, %v1288_v9  ;;  %v1552_v28 = vsub.f32 0.0, %v1428_v18  ;;  %v3306_v9 = vld [vmem:[#allocation9_spill] sm:$0xff] }
 0x157   : > { %v3123_v48 = vpop.f32.mrf.mxu1  ;;  %v1440_v25 = vpop.f32.mrf.mxu0  ;;  %v2177_v45 = vadd.f32 %v3306_v9, %v3305_v40  ;;  %v3156_v6 = vadd.f32 %v2086_v41, %v3029_v0  ;;  %v2183_v12 = vadd.f32 %v3307_v62, %v3020_v21  ;;  %v3164_v26 = vadd.f32 %v2089_v36, %v3029_v0  ;;  %v3313_v36 = vld [vmem:[#allocation15_spill] sm:$0xff] }
 0x158   : > { %2504 = vpow2.f32 %v1589_v39  ;;  %v1557_v29 = vsub.f32 0.0, %v1449_v19  ;;  %v1441_v5 = vadd.f32 %v1440_v25, %v1280_v56  ;;  %v1585_v15 = vmul.f32 1.442695, %v1552_v28  ;;  %v3308_v28 = vld [vmem:[#allocation11_spill] sm:$0xff]  ;;  %v3309_v25 = vld [vmem:[#allocation13_spill] sm:$0xff] }
 0x159   : > { %v3130_v1 = vpop.f32.mrf.mxu1  ;;  %v2282_v13 = vpop.f32.mrf.mxu0  ;;  %v1312_v3 = vadd.f32 %v2177_v45, %v3091_v44  ;;  %v2095_v40 = vadd.f32 %v3313_v36, %v3312_v4 }
 0x15a   : > { %v1595_v42 = vmul.f32 1.442695, %v1557_v29  ;;  %v1555_v17 = vsub.f32 0.0, %v1441_v5  ;;  %v1452_v57 = vadd.f32 %v2282_v13, %v1291_v32  ;;  %2506 = vpow2.f32 %v1585_v15 }
 0x15b   : > { %v3138_v54 = vpop.f32.mrf.mxu1  ;;  %v1443_v30 = vpop.f32.mrf.mxu0  ;;  %v2180_v29 = vadd.f32 %v3309_v25, %v3308_v28  ;;  %v2189_v28 = vadd.f32 %v3077_v58, %v3065_v2 }
 0x15c   : > { %2508 = vpow2.f32 %v1595_v42  ;;  %v1591_v59 = vmul.f32 1.442695, %v1555_v17  ;;  %v1558_v31 = vsub.f32 0.0, %v1452_v57  ;;  %v1444_v50 = vadd.f32 %v1443_v30, %v1283_v23  ;;  %v3310_v17 = vld [vmem:[#allocation10_spill] sm:$0xff] }
 0x15d   : > { %v3149_v56 = vpop.f32.mrf.mxu1  ;;  %v2285_v27 = vpop.f32.mrf.mxu0  ;;  %v1307_v23 = vadd.f32 %v2174_v20, %v3087_v38  ;;  %v3311_v38 = vld [vmem:[#allocation12_spill] sm:$0xff]  ;;  %v1315_v7 = vadd.f32 %v2180_v29, %v3107_v10  ;;  %v2198_v2 = vadd.f32 %v3138_v54, %v3130_v1 }
 0x15e   : > { %2510 = vpow2.f32 %v1591_v59  ;;  %v1597_v33 = vmul.f32 1.442695, %v1558_v31  ;;  %v1465_v53 = vadd.f32 %v2285_v27, %v1304_v34  ;;  %v1556_v16 = vsub.f32 0.0, %v1444_v50 }
 0x15f   : > { %v3160_v18 = vpop.f32.mrf.mxu1  ;;  %v1456_v43 = vpop.f32.mrf.mxu0  ;;  %v3173_v57 = vadd.f32 %v3311_v38, %v3310_v17  ;;  %v1320_v34 = vadd.f32 %v2183_v12, %v3116_v46  ;;  %v3315_v46 = vld [vmem:[#allocation19_spill] sm:$0xff] }
 0x160   : > { %2512 = vpow2.f32 %v1597_v33  ;;  %v1561_v39 = vsub.f32 0.0, %v1465_v53  ;;  %v1457_v19 = vadd.f32 %v1456_v43, %v1296_v49  ;;  %v1593_v5 = vmul.f32 1.442695, %v1556_v16  ;;  %v3314_v53 = vld [vmem:[#allocation17_spill] sm:$0xff] }
 0x161   : > { %v2501_v24 = vpop.eup %2500  ;;  %v3168_v32 = vpop.f32.mrf.mxu1  ;;  %v2098_v62 = vadd.f32 %v3315_v46, %v3314_v53  ;;  %v2201_v53 = vadd.f32 %v3160_v18, %v3149_v56 }
 0x162   : > { %v2286_v21 = vpop.f32.mrf.mxu0  ;;  %v1649_v15 = vadd.f32 1.0, %v2501_v24  ;;  %v1603_v13 = vmul.f32 1.442695, %v1561_v39  ;;  %v1559_v37 = vsub.f32 0.0, %v1457_v19  ;;  %2514 = vpow2.f32 %v1593_v5 }
 0x163   : > { %v1468_v42 = vadd.f32 %v2286_v21, %v1307_v23  ;;  %v2503_v49 = vpop.eup %2502  ;;  %v3177_v41 = vpop.f32.mrf.mxu1  ;;  %v1323_v39 = vadd.f32 %v2186_v14, %v3119_v11 }
 0x164   : > { %v1459_v30 = vpop.f32.mrf.mxu0  ;;  %2516 = vrcp.f32 %v1649_v15  ;;  %v1647_v44 = vadd.f32 1.0, %v2503_v49  ;;  %v1599_v20 = vmul.f32 1.442695, %v1559_v37  ;;  %v3191_v15 = vadd.f32 %v2095_v40, %v3029_v0 }
 0x165   : > { %v1562_v59 = vsub.f32 0.0, %v1468_v42  ;;  %v2505_v31 = vpop.eup %2504  ;;  %2518 = vpow2.f32 %v1603_v13  ;;  %v1460_v9 = vadd.f32 %v1459_v30, %v1299_v47  ;;  %v2205_v45 = vpop.f32.mrf.mxu1  ;;  %v2195_v47 = vadd.f32 %v3123_v48, %v3113_v22 }
 0x166   : > { %v2289_v50 = vpop.f32.mrf.mxu0  ;;  %2520 = vrcp.f32 %v1647_v44  ;;  %v1650_v51 = vadd.f32 1.0, %v2505_v31  ;;  %v3194_v22 = vadd.f32 %v2098_v62, %v3029_v0 }
 0x167   : > { %v1605_v27 = vmul.f32 1.442695, %v1562_v59  ;;  %v1481_v33 = vadd.f32 %v2289_v50, %v1320_v34  ;;  %2522 = vpow2.f32 %v1599_v20  ;;  %v1560_v12 = vsub.f32 0.0, %v1460_v9  ;;  %v2206_v16 = vpop.f32.mrf.mxu1  ;;  %v2507_v19 = vpop.eup %2506 }
 0x168   : > { %v1472_v43 = vpop.f32.mrf.mxu0  ;;  %2524 = vrcp.f32 %v1650_v51  ;;  %v1648_v25 = vadd.f32 1.0, %v2507_v19  ;;  %v1336_v38 = vadd.f32 %v2195_v47, %v3153_v52  ;;  %v1328_v59 = vadd.f32 %v2189_v28, %v3126_v55 }
 0x169   : > { %v1565_v23 = vsub.f32 0.0, %v1481_v33  ;;  %v1473_v10 = vadd.f32 %v1472_v43, %v1312_v3  ;;  %v2509_v24 = vpop.eup %2508  ;;  %2526 = vpow2.f32 %v1605_v27  ;;  %v1601_v29 = vmul.f32 1.442695, %v1560_v12  ;;  %v2208_v5 = vpop.f32.mrf.mxu1 }
 0x16a   : > { %v2290_v21 = vpop.f32.mrf.mxu0  ;;  %v1653_v11 = vadd.f32 1.0, %v2509_v24  ;;  %2528 = vrcp.f32 %v1648_v25  ;;  %v2192_v52 = vadd.f32 %v3101_v61, %v3093_v63  ;;  %v1339_v9 = vadd.f32 %v2198_v2, %v3156_v6 }
 0x16b   : > { %v1563_v13 = vsub.f32 0.0, %v1473_v10  ;;  %v1484_v37 = vadd.f32 %v2290_v21, %v1323_v39  ;;  %v2511_v42 = vpop.eup %2510  ;;  %v1611_v58 = vmul.f32 1.442695, %v1565_v23  ;;  %v2209_v48 = vpop.f32.mrf.mxu1  ;;  %v2207_v50 = vadd.f32 %v2206_v16, %v2205_v45 }
 0x16c   : > { %v1475_v3 = vpop.f32.mrf.mxu0  ;;  %2530 = vrcp.f32 %v1653_v11  ;;  %v1651_v49 = vadd.f32 1.0, %v2511_v42  ;;  %v2210_v39 = vadd.f32 %v2209_v48, %v2208_v5  ;;  %v1331_v56 = vadd.f32 %v2192_v52, %v3143_v35 }
 0x16d   : > { %v1566_v17 = vsub.f32 0.0, %v1484_v37  ;;  %v2513_v14 = vpop.eup %2512  ;;  %2532 = vpow2.f32 %v1601_v29  ;;  %v1607_v30 = vmul.f32 1.442695, %v1563_v13  ;;  %v1476_v34 = vadd.f32 %v1475_v3, %v1315_v7  ;;  %v3200_v44 = vpop.f32.mrf.mxu1 }
 0x16e   : > { %v2293_v20 = vpop.f32.mrf.mxu0  ;;  %2534 = vrcp.f32 %v1651_v49  ;;  %v1654_v1 = vadd.f32 1.0, %v2513_v14  ;;  %v1352_v24 = vadd.f32 %v2207_v50, %v3191_v15  ;;  %v1344_v5 = vadd.f32 %v2201_v53, %v3164_v26 }
 0x16f   : > { %v1613_v54 = vmul.f32 1.442695, %v1566_v17  ;;  %v1497_v31 = vadd.f32 %v2293_v20, %v1336_v38  ;;  %2536 = vpow2.f32 %v1611_v58  ;;  %v1564_v4 = vsub.f32 0.0, %v1476_v34  ;;  %v2212_v36 = vpop.f32.mrf.mxu1  ;;  %v2515_v55 = vpop.eup %2514 }
 0x170   : > { %v1488_v40 = vpop.f32.mrf.mxu0  ;;  %2538 = vrcp.f32 %v1654_v1  ;;  %v1652_v33 = vadd.f32 1.0, %v2515_v55  ;;  %v2204_v35 = vadd.f32 %v3177_v41, %v3168_v32  ;;  %v1355_v3 = vadd.f32 %v2210_v39, %v3194_v22 }
 0x171   : > { %v1569_v7 = vsub.f32 0.0, %v1497_v31  ;;  %v1489_v51 = vadd.f32 %v1488_v40, %v1328_v59  ;;  %v2517_v27 = vpop.eup %2516  ;;  %2540 = vpow2.f32 %v1607_v30  ;;  %v1609_v46 = vmul.f32 1.442695, %v1564_v4  ;;  %v3213_v63 = vpop.f32.mrf.mxu1 }
 0x172   : > { %v2294_v61 = vpop.f32.mrf.mxu0  ;;  %v2519_v62 = vpop.eup %2518  ;;  %1745 = vst [vmem:[%s3206_s10 + $0x10] sm:$0xff] %v2517_v27  ;;  %2542 = vpow2.f32 %v1613_v54  ;;  %v1186_v32 = vadd.f32 %v3173_v57, %v3029_v0  ;;  %v2213_v41 = vadd.f32 %v2212_v36, %v3200_v44 }
 0x173   : > { %v1619_v6 = vmul.f32 1.442695, %v1569_v7  ;;  %v1567_v12 = vsub.f32 0.0, %v1489_v51  ;;  %v1500_v43 = vadd.f32 %v2294_v61, %v1339_v9  ;;  %v2521_v45 = vpop.eup %2520  ;;  %2544 = vrcp.f32 %v1652_v33  ;;  %v3216_v19 = vpop.f32.mrf.mxu1  ;;  %v3316_v51 = vld [vmem:[#allocation2_spill] sm:$0xff] }
 0x174   : > { %v1657_v16 = vadd.f32 1.0, %v2519_v62  ;;  %v1491_v18 = vpop.f32.mrf.mxu0  ;;  %v2523_v47 = vpop.eup %2522  ;;  %1743 = vst [vmem:[%s3206_s10] sm:$0xff] %v2521_v45  ;;  %2546 = vpow2.f32 %v1609_v46  ;;  %v1347_v40 = vadd.f32 %v2204_v35, %v1186_v32  ;;  %v1210_v27 = vadd.f32 %v3316_v51, %v3029_v0 }
 0x175   : > { %v1615_v23 = vmul.f32 1.442695, %v1567_v12  ;;  %v1570_v10 = vsub.f32 0.0, %v1500_v43  ;;  %v2525_v28 = vpop.eup %2524  ;;  %v1655_v25 = vadd.f32 1.0, %v2523_v47  ;;  %v1492_v29 = vadd.f32 %v1491_v18, %v1331_v56  ;;  %v2217_v21 = vpop.f32.mrf.mxu1  ;;  %v3317_v12 = vld [vmem:[#allocation18_spill] sm:$0xff] }
 0x176   : > { %2548 = vrcp.f32 %v1657_v16  ;;  %v2297_v11 = vpop.f32.mrf.mxu0  ;;  %v2527_v13 = vpop.eup %2526  ;;  %1746 = vst [vmem:[%s3206_s10 + $0x18] sm:$0xff] %v2525_v28  ;;  %v1360_v43 = vadd.f32 %v2213_v41, %v3317_v12  ;;  %v2216_v39 = vadd.f32 %v3216_v19, %v3213_v63 }
 0x177   : > { %2550 = vpow2.f32 %v1619_v6  ;;  %v1621_v37 = vmul.f32 1.442695, %v1570_v10  ;;  %v1513_v42 = vadd.f32 %v2297_v11, %v1352_v24  ;;  %v1658_v2 = vadd.f32 1.0, %v2527_v13  ;;  %v2218_v58 = vpop.f32.mrf.mxu1  ;;  %v2529_v49 = vpop.eup %2528 }
 0x178   : > { %2552 = vrcp.f32 %v1655_v25  ;;  %v1568_v15 = vsub.f32 0.0, %v1492_v29  ;;  %v1504_v48 = vpop.f32.mrf.mxu0  ;;  %v2219_v17 = vadd.f32 %v2218_v58, %v2217_v21  ;;  %1744 = vst [vmem:[%s3206_s10 + $0x8] sm:$0xff] %v2529_v49  ;;  %v1363_v58 = vadd.f32 %v2216_v39, %v3053_v8  ;;  %v3318_v49 = vld [vmem:[#allocation3_spill] sm:$0xff] }
 0x179   : > { %2554 = vpow2.f32 %v1615_v23  ;;  %v1573_v26 = vsub.f32 0.0, %v1513_v42  ;;  %v1505_v38 = vadd.f32 %v1504_v48, %v1344_v5  ;;  %v2531_v14 = vpop.eup %2530  ;;  %v2220_v34 = vpop.f32.mrf.mxu1 }
 0x17a   : > { %2556 = vrcp.f32 %v1658_v2  ;;  %v1617_v30 = vmul.f32 1.442695, %v1568_v15  ;;  %v2298_v20 = vpop.f32.mrf.mxu0  ;;  %v2533_v59 = vpop.eup %2532  ;;  %1749 = vst [vmem:[%s3206_s10 + $0x30] sm:$0xff] %v2531_v14  ;;  %v1368_v9 = vadd.f32 %v2219_v17, %v3057_v60 }
 0x17b   : > { %2558 = vpow2.f32 %v1621_v37  ;;  %v1627_v22 = vmul.f32 1.442695, %v1573_v26  ;;  %v1571_v1 = vsub.f32 0.0, %v1505_v38  ;;  %v1516_v54 = vadd.f32 %v2298_v20, %v1355_v3  ;;  %v2535_v31 = vpop.eup %2534  ;;  %v2221_v4 = vpop.f32.mrf.mxu1 }
 0x17c   : > { %v1656_v52 = vadd.f32 1.0, %v2533_v59  ;;  %2560 = vpow2.f32 %v1617_v30  ;;  %v1507_v57 = vpop.f32.mrf.mxu0  ;;  %v2537_v44 = vpop.eup %2536  ;;  %1747 = vst [vmem:[%s3206_s10 + $0x20] sm:$0xff] %v2535_v31  ;;  %v2222_v50 = vadd.f32 %v2221_v4, %v2220_v34  ;;  %v1215_v26 = vadd.f32 %v3318_v49, %v3029_v0 }
 0x17d   : > { %2562 = vpow2.f32 %v1627_v22  ;;  %v1623_v36 = vmul.f32 1.442695, %v1571_v1  ;;  %v1574_v55 = vsub.f32 0.0, %v1516_v54  ;;  %v2539_v7 = vpop.eup %2538  ;;  %v1661_v33 = vadd.f32 1.0, %v2537_v44  ;;  %v2223_v46 = vpop.f32.mrf.mxu1  ;;  %v3319_v54 = vld [vmem:[#allocation5_spill] sm:$0xff] }
 0x17e   : > { %2564 = vrcp.f32 %v1656_v52  ;;  %v1508_v53 = vadd.f32 %v1507_v57, %v1347_v40  ;;  %v2301_v61 = vpop.f32.mrf.mxu0  ;;  %v2541_v62 = vpop.eup %2540  ;;  %1750 = vst [vmem:[%s3206_s10 + $0x38] sm:$0xff] %v2539_v7  ;;  %v1371_v28 = vadd.f32 %v2222_v50, %v1210_v27  ;;  %v1223_v31 = vadd.f32 %v3319_v54, %v3029_v0  ;;  %v3320_v7 = vld [vmem:[#allocation4_spill] sm:$0xff] }
 0x17f   : > { %2566 = vpow2.f32 %v1623_v36  ;;  %v1629_v6 = vmul.f32 1.442695, %v1574_v55  ;;  %v1529_v60 = vadd.f32 %v2301_v61, %v1368_v9  ;;  %v2543_v45 = vpop.eup %2542  ;;  %v1659_v16 = vadd.f32 1.0, %v2541_v62  ;;  %v2224_v18 = vpop.f32.mrf.mxu1 }
 0x180   : > { %2568 = vrcp.f32 %v1661_v33  ;;  %v1572_v56 = vsub.f32 0.0, %v1508_v53  ;;  %v1520_v47 = vpop.f32.mrf.mxu0  ;;  %v2545_v23 = vpop.eup %2544  ;;  %v1662_v10 = vadd.f32 1.0, %v2543_v45  ;;  %v2225_v21 = vadd.f32 %v2224_v18, %v2223_v46 }
 0x181   : > { %2570 = vpow2.f32 %v1629_v6  ;;  %v1577_v24 = vsub.f32 0.0, %v1529_v60  ;;  %v2547_v25 = vpop.eup %2546  ;;  %1748 = vst [vmem:[%s3206_s10 + $0x28] sm:$0xff] %v2545_v23  ;;  %v1521_v11 = vadd.f32 %v1520_v47, %v1360_v43  ;;  %v2226_v5 = vpop.f32.mrf.mxu1  ;;  %v1218_v51 = vadd.f32 %v3320_v7, %v3029_v0 }
 0x182   : > { %2572 = vrcp.f32 %v1659_v16  ;;  %v1625_v29 = vmul.f32 1.442695, %v1572_v56  ;;  %v2302_v13 = vpop.f32.mrf.mxu0  ;;  %v1660_v63 = vadd.f32 1.0, %v2547_v25  ;;  %v1376_v22 = vadd.f32 %v2225_v21, %v1215_v26 }
 0x183   : > { %v2549_v35 = vpop.eup %2548  ;;  %2574 = vrcp.f32 %v1662_v10  ;;  %v1635_v19 = vmul.f32 1.442695, %v1577_v24  ;;  %v1532_v37 = vadd.f32 %v2302_v13, %v1371_v28  ;;  %v1575_v2 = vsub.f32 0.0, %v1521_v11  ;;  %v2227_v15 = vpop.f32.mrf.mxu1  ;;  %v3321_v10 = vld [vmem:[#allocation6_spill] sm:$0xff] }
 0x184   : > { %v2551_v42 = vpop.eup %2550  ;;  %1753 = vst [vmem:[%s3206_s10 + $0x50] sm:$0xff] %v2549_v35  ;;  %2576 = vpow2.f32 %v1625_v29  ;;  %v1523_v48 = vpop.f32.mrf.mxu0  ;;  %v2228_v52 = vadd.f32 %v2227_v15, %v2226_v5  ;;  %v1226_v24 = vadd.f32 %v3321_v10, %v3029_v0 }
 0x185   : > { %v2553_v3 = vpop.eup %2552  ;;  %2578 = vrcp.f32 %v1660_v63  ;;  %v1665_v17 = vadd.f32 1.0, %v2551_v42  ;;  %v1578_v38 = vsub.f32 0.0, %v1532_v37  ;;  %v1631_v32 = vmul.f32 1.442695, %v1575_v2  ;;  %v2229_v30 = vpop.f32.mrf.mxu1 }
 0x186   : > { %v2555_v14 = vpop.eup %2554  ;;  %1751 = vst [vmem:[%s3206_s10 + $0x40] sm:$0xff] %v2553_v3  ;;  %2580 = vpow2.f32 %v1635_v19  ;;  %v1524_v41 = vadd.f32 %v1523_v48, %v1363_v58  ;;  %v2305_v34 = vpop.f32.mrf.mxu0  ;;  %v1379_v45 = vadd.f32 %v2228_v52, %v1218_v51 }
 0x187   : > { %v2557_v20 = vpop.eup %2556  ;;  %2582 = vrcp.f32 %v1665_v17  ;;  %v1663_v59 = vadd.f32 1.0, %v2555_v14  ;;  %v1637_v8 = vmul.f32 1.442695, %v1578_v38  ;;  %v2230_v40 = vpop.f32.mrf.mxu1 }
 0x188   : > { %v2559_v1 = vpop.eup %2558  ;;  %1754 = vst [vmem:[%s3206_s10 + $0x58] sm:$0xff] %v2557_v20  ;;  %2584 = vpow2.f32 %v1631_v32  ;;  %v1576_v4 = vsub.f32 0.0, %v1524_v41  ;;  %v1536_v57 = vpop.f32.mrf.mxu0  ;;  %v2231_v36 = vadd.f32 %v2230_v40, %v2229_v30 }
 0x189   : > { %v2561_v9 = vpop.eup %2560  ;;  %2586 = vrcp.f32 %v1663_v59  ;;  %v1666_v44 = vadd.f32 1.0, %v2559_v1  ;;  %v1537_v55 = vadd.f32 %v1536_v57, %v1376_v22  ;;  %v2232_v53 = vpop.f32.mrf.mxu1 }
 0x18a   : > { %v2563_v50 = vpop.eup %2562  ;;  %v1664_v27 = vadd.f32 1.0, %v2561_v9  ;;  %2588 = vpow2.f32 %v1637_v8  ;;  %v1633_v33 = vmul.f32 1.442695, %v1576_v4  ;;  %v2306_v46 = vpop.f32.mrf.mxu0  ;;  %v1384_v6 = vadd.f32 %v2231_v36, %v1223_v31 }
 0x18b   : > { %v2565_v61 = vpop.eup %2564  ;;  %2590 = vrcp.f32 %v1666_v44  ;;  %v1669_v62 = vadd.f32 1.0, %v2563_v50  ;;  %v1579_v60 = vsub.f32 0.0, %v1537_v55  ;;  %v2233_v43 = vpop.f32.mrf.mxu1 }
 0x18c   : > { %v2567_v12 = vpop.eup %2566  ;;  %1752 = vst [vmem:[%s3206_s10 + $0x48] sm:$0xff] %v2565_v61  ;;  %2592 = vrcp.f32 %v1664_v27  ;;  %v1539_v16 = vpop.f32.mrf.mxu0  ;;  %v1545_v18 = vadd.f32 %v2305_v34, %v1384_v6  ;;  %v2234_v28 = vadd.f32 %v2233_v43, %v2232_v53 }
 0x18d   : > { %v2569_v39 = vpop.eup %2568  ;;  %2594 = vrcp.f32 %v1669_v62  ;;  %v1667_v56 = vadd.f32 1.0, %v2567_v12  ;;  %v1639_v47 = vmul.f32 1.442695, %v1579_v60  ;;  %v1540_v25 = vadd.f32 %v1539_v16, %v1379_v45 }
 0x18e   : > { %v2571_v23 = vpop.eup %2570  ;;  %1757 = vst [vmem:[%s3206_s10 + $0x70] sm:$0xff] %v2569_v39  ;;  %2596 = vpow2.f32 %v1633_v33  ;;  %v1581_v11 = vsub.f32 0.0, %v1545_v18  ;;  %v1387_v13 = vadd.f32 %v2234_v28, %v1226_v24 }
 0x18f   : > { %v2573_v29 = vpop.eup %2572  ;;  %2598 = vrcp.f32 %v1667_v56  ;;  %v1670_v21 = vadd.f32 1.0, %v2571_v23  ;;  %v1580_v35 = vsub.f32 0.0, %v1540_v25 }
 0x190   : > { %v2575_v5 = vpop.eup %2574  ;;  %1755 = vst [vmem:[%s3206_s10 + $0x60] sm:$0xff] %v2573_v29  ;;  %2600 = vpow2.f32 %v1639_v47  ;;  %v1643_v19 = vmul.f32 1.442695, %v1581_v11  ;;  %v1548_v42 = vadd.f32 %v2306_v46, %v1387_v13 }
 0x191   : > { %v2577_v63 = vpop.eup %2576  ;;  %1758 = vst [vmem:[%s3206_s10 + $0x78] sm:$0xff] %v2575_v5  ;;  %2602 = vrcp.f32 %v1670_v21  ;;  %v1641_v2 = vmul.f32 1.442695, %v1580_v35 }
 0x192   : > { %v2579_v0 = vpop.eup %2578  ;;  %v1668_v37 = vadd.f32 1.0, %v2577_v63  ;;  %2604 = vpow2.f32 %v1643_v19  ;;  %v1582_v3 = vsub.f32 0.0, %v1548_v42 }
 0x193   : > { %v2581_v15 = vpop.eup %2580  ;;  %1756 = vst [vmem:[%s3206_s10 + $0x68] sm:$0xff] %v2579_v0 }
 0x194   : > { %v2583_v58 = vpop.eup %2582  ;;  %2606 = vrcp.f32 %v1668_v37  ;;  %v1673_v48 = vadd.f32 1.0, %v2581_v15  ;;  %v1645_v38 = vmul.f32 1.442695, %v1582_v3 }
 0x195   : > { %v2585_v49 = vpop.eup %2584  ;;  %1761 = vst [vmem:[%s3206_s10 + $0x90] sm:$0xff] %v2583_v58  ;;  %2608 = vpow2.f32 %v1641_v2 }
 0x196   : > { %v2587_v26 = vpop.eup %2586  ;;  %2610 = vrcp.f32 %v1673_v48  ;;  %v1671_v17 = vadd.f32 1.0, %v2585_v49 }
 0x197   : > { %v2589_v14 = vpop.eup %2588  ;;  %1759 = vst [vmem:[%s3206_s10 + $0x80] sm:$0xff] %v2587_v26 }
 0x198   : > { %v2591_v32 = vpop.eup %2590  ;;  %2612 = vrcp.f32 %v1671_v17  ;;  %v1674_v41 = vadd.f32 1.0, %v2589_v14 }
 0x199   : > { %v2593_v30 = vpop.eup %2592  ;;  %1762 = vst [vmem:[%s3206_s10 + $0x98] sm:$0xff] %v2591_v32  ;;  %2614 = vpow2.f32 %v1645_v38 }
 0x19a   : > { %v2595_v34 = vpop.eup %2594  ;;  %1760 = vst [vmem:[%s3206_s10 + $0x88] sm:$0xff] %v2593_v30  ;;  %2616 = vrcp.f32 %v1674_v41 }
 0x19b   : > { %v2597_v20 = vpop.eup %2596  ;;  %1765 = vst [vmem:[%s3206_s10 + $0xb0] sm:$0xff] %v2595_v34 }
 0x19c   : > { %v2599_v59 = vpop.eup %2598  ;;  %v1672_v8 = vadd.f32 1.0, %v2597_v20 }
 0x19d   : > { %v2601_v22 = vpop.eup %2600  ;;  %1763 = vst [vmem:[%s3206_s10 + $0xa0] sm:$0xff] %v2599_v59 }
 0x19e   : > { %v2603_v1 = vpop.eup %2602  ;;  %2618 = vrcp.f32 %v1672_v8  ;;  %v1675_v54 = vadd.f32 1.0, %v2601_v22 }
 0x19f   : > { %1766 = vst [vmem:[%s3206_s10 + $0xb8] sm:$0xff] %v2603_v1  ;;  %v2605_v31 = vpop.eup %2604 }
 0x1a0   : > { %2620 = vrcp.f32 %v1675_v54  ;;  %v1677_v4 = vadd.f32 1.0, %v2605_v31 }
 0x1a1   : > { %v2607_v52 = vpop.eup %2606 }
 0x1a2   : > { %v2609_v40 = vpop.eup %2608  ;;  %1764 = vst [vmem:[%s3206_s10 + $0xa8] sm:$0xff] %v2607_v52  ;;  %2622 = vrcp.f32 %v1677_v4 }
 0x1a3   : > { %v2611_v57 = vpop.eup %2610  ;;  %v1676_v9 = vadd.f32 1.0, %v2609_v40 }
 0x1a4   : > { %1769 = vst [vmem:[%s3206_s10 + $0xd0] sm:$0xff] %v2611_v57 }
 0x1a5   : > { %v2613_v44 = vpop.eup %2612  ;;  %2624 = vrcp.f32 %v1676_v9 }
 0x1a6   : > { %v2615_v36 = vpop.eup %2614  ;;  %1767 = vst [vmem:[%s3206_s10 + $0xc0] sm:$0xff] %v2613_v44 }
 0x1a7   : > { %v2617_v55 = vpop.eup %2616  ;;  %v1678_v50 = vadd.f32 1.0, %v2615_v36 }
 0x1a8   : > { %1770 = vst [vmem:[%s3206_s10 + $0xd8] sm:$0xff] %v2617_v55 }
 0x1a9   : > { %2626 = vrcp.f32 %v1678_v50 }
 0x1ab   : > { %v2619_v7 = vpop.eup %2618 }
 0x1ac   : > { %1768 = vst [vmem:[%s3206_s10 + $0xc8] sm:$0xff] %v2619_v7 }
 0x1ad   : > { %v2621_v51 = vpop.eup %2620 }
 0x1ae   : > { %1771 = vst [vmem:[%s3206_s10 + $0xe0] sm:$0xff] %v2621_v51 }
 0x1af   : > { %v2623_v27 = vpop.eup %2622 }
 0x1b0   : > { %1773 = vst [vmem:[%s3206_s10 + $0xf0] sm:$0xff] %v2623_v27 }
 0x1b2   : > { %v2625_v33 = vpop.eup %2624 }
 0x1b3   : > { %1772 = vst [vmem:[%s3206_s10 + $0xe8] sm:$0xff] %v2625_v33 }
 0x1b6   : > { %v2627_v53 = vpop.eup %2626 }
 0x1b7   : > { %1774 = vst [vmem:[%s3206_s10 + $0xf8] sm:$0xff] %v2627_v53 }
 0x1b8 PF: > { %s13_s14 = sadd.s32 1, %s2650_s14   ;;  %s3322_s12 = smov %s2646_s13 }
 0x1b9   : > { %p10_p5 = scmp.ge.s32.totalorder %s13_s14, 4   ;;  %s3323_s13 = smov %s3325_s15 }
 0x1bb   :  { %12 = sbr.rel (!%p10_p5) target bundleno = 2 (0x2), region = 68 }

</bundles_post_ra>
